<compile_context>
chip_gen: v7x
topology: tpu7x:2x2x1
jax: 0.10.0
libtpu: 0.0.40
codegen_flags: <defaults>
</compile_context>

<pallas_src>
import functools

import jax
import jax.numpy as jnp
from jax.experimental import pallas as pl
from jax.experimental.pallas import tpu as pltpu

_EPS = 1e-5
_VMEM_LIMIT_BYTES = 48 * 1024 * 1024  # headroom under v7x's 64 MiB physical VMEM


# ---------------------------------------------------------------------------
# Small static helpers
# ---------------------------------------------------------------------------
def _round_up(x, m):
    return (x + m - 1) // m * m


def _largest_divisor_leq(n, cap):
    cap = max(1, min(n, cap))
    for t in range(cap, 0, -1):
        if n % t == 0:
            return t
    return 1


def _pick_tile_m(m, cmax):
    # ~2 MiB of f32 per row-tile buffer, capped at 256 rows, multiple of 8.
    cap = max(8, ((2 << 20) // (4 * cmax)) // 8 * 8)
    return int(min(256, cap, _round_up(m, 8)))


def _pick_tile_h(h, w):
    # Aim for ~256 output rows per conv row-tile; prefer >=2 tiles so the
    # manual input-prefetch pipeline is exercised.
    th = _largest_divisor_leq(h, max(1, 256 // max(1, w)))
    if h // th < 2 and h > 1:
        th = _largest_divisor_leq(h, max(1, h // 2))
    return th


def _pad_rows_cols(a, rows, cols):
    return jnp.pad(a, ((0, rows - a.shape[0]), (0, cols - a.shape[1])))


# ---------------------------------------------------------------------------
# Kernels
# ---------------------------------------------------------------------------
def _matmul_stats_kernel(*refs, fuse_in, tile_m, m_true, compute_dtype):
    """1x1 conv tile (matmul over channels) + masked per-tile BN partial stats.

    Optionally fuses the previous stage's BN+relu onto the input tile
    (fuse_in=True): x <- relu(x * in_scale + in_bias).
    """
    if fuse_in:
        x_ref, w_ref, s_ref, b_ref, y_ref, st_ref = refs
    else:
        x_ref, w_ref, y_ref, st_ref = refs

    x = x_ref[...]
    if fuse_in:
        x = jnp.maximum(x.astype(jnp.float32) * s_ref[...] + b_ref[...], 0.0)
    y = jnp.dot(x.astype(compute_dtype), w_ref[...],
                preferred_element_type=jnp.float32)
    y_ref[...] = y

    # Mask rows that are pure padding of the M axis out of the statistics.
    rows = (pl.program_id(0) * tile_m
            + jax.lax.broadcasted_iota(jnp.int32, (tile_m, 1), 0))
    ym = jnp.where(rows < m_true, y, 0.0)
    st_ref[...] = jnp.concatenate(
        [jnp.sum(ym, axis=0, keepdims=True),
         jnp.sum(ym * ym, axis=0, keepdims=True)], axis=0)[None]


def _conv3x3_stats_kernel(hp_ref, w_ref, y_ref, st_ref, xwin, sem,
                          *, th, d, w_cols, compute_dtype):
    """Dilated 3x3 conv over one halo'd row tile + BN partial stats.

    hp_ref : full spatially padded input (N, H+2d, W+2d, Ci) left in HBM.
    Each grid step DMAs rows [i*th, i*th + th + 2d) into a double-buffered
    VMEM scratch and prefetches the next tile while computing.
    """
    b = pl.program_id(0)
    i = pl.program_id(1)
    nh = pl.num_programs(1)
    thd = th + 2 * d
    co = y_ref.shape[-1]

    def _issue(row0, slot):
        pltpu.make_async_copy(hp_ref.at[b, pl.ds(row0, thd)],
                              xwin.at[slot], sem.at[slot]).start()

    @pl.when(i == 0)
    def _prime():
        _issue(0, 0)

    @pl.when(i + 1 < nh)
    def _prefetch():
        _issue((i + 1) * th, (i + 1) % 2)

    slot = i % 2
    pltpu.make_async_copy(hp_ref.at[b, pl.ds(0, thd)],
                          xwin.at[slot], sem.at[slot]).wait()

    win = xwin[slot]  # (thd, Wp, Ci) held in VMEM
    acc = jnp.zeros((th * w_cols, co), jnp.float32)
    for ky in range(3):  # static unrolled 3x3 taps, accumulated on the MXU
        for kx in range(3):
            tap = win[ky * d:ky * d + th, kx * d:kx * d + w_cols, :]
            tap = tap.reshape(th * w_cols, tap.shape[-1]).astype(compute_dtype)
            acc = acc + jnp.dot(tap, w_ref[ky * 3 + kx],
                                preferred_element_type=jnp.float32)

    y_ref[...] = acc.reshape(1, th, w_cols, co)
    st_ref[...] = jnp.concatenate(
        [jnp.sum(acc, axis=0, keepdims=True),
         jnp.sum(acc * acc, axis=0, keepdims=True)], axis=0).reshape(1, 1, 2, co)


def _bn_act_kernel(*refs, has_res, res_norm, relu):
    """Elementwise pass B: y*scale+bias (+ residual [optionally normalized]) (+relu)."""
    if has_res and res_norm:
        y_ref, s_ref, b_ref, r_ref, rs_ref, rb_ref, o_ref = refs
    elif has_res:
        y_ref, s_ref, b_ref, r_ref, o_ref = refs
    else:
        y_ref, s_ref, b_ref, o_ref = refs

    v = y_ref[...].astype(jnp.float32) * s_ref[...] + b_ref[...]
    if has_res:
        r = r_ref[...].astype(jnp.float32)
        if res_norm:
            r = r * rs_ref[...] + rb_ref[...]
        v = v + r
    if relu:
        v = jnp.maximum(v, 0.0)
    o_ref[...] = v.astype(o_ref.dtype)


# ---------------------------------------------------------------------------
# Pallas-call wrappers
# ---------------------------------------------------------------------------
def _matmul_stats(x, w, *, m_true, tile_m, compute_dtype,
                  in_scale=None, in_bias=None):
    mp, cin = x.shape
    cout = w.shape[1]
    nt = mp // tile_m
    fuse = in_scale is not None
    w = w.astype(compute_dtype)

    kernel = functools.partial(_matmul_stats_kernel, fuse_in=fuse,
                               tile_m=tile_m, m_true=m_true,
                               compute_dtype=compute_dtype)

    row_spec = pl.BlockSpec((tile_m, cin), lambda i: (i, 0))
    w_spec = pl.BlockSpec((cin, cout), lambda i: (0, 0))
    vec_spec = pl.BlockSpec((1, cin), lambda i: (0, 0))
    in_specs = [row_spec, w_spec]
    args = [x, w]
    if fuse:
        in_specs += [vec_spec, vec_spec]
        args += [in_scale, in_bias]

    flops = 2 * mp * cin * cout
    bytes_accessed = (x.size * x.dtype.itemsize + w.size * w.dtype.itemsize
                      + mp * cout * 4)

    y, st = pl.pallas_call(
        kernel,
        grid=(nt,),
        in_specs=in_specs,
        out_specs=[pl.BlockSpec((tile_m, cout), lambda i: (i, 0)),
                   pl.BlockSpec((1, 2, cout), lambda i: (i, 0, 0))],
        out_shape=[jax.ShapeDtypeStruct((mp, cout), jnp.float32),
                   jax.ShapeDtypeStruct((nt, 2, cout), jnp.float32)],
        compiler_params=pltpu.CompilerParams(
            dimension_semantics=("parallel",),
            vmem_limit_bytes=_VMEM_LIMIT_BYTES),
        cost_estimate=pl.CostEstimate(flops=flops, transcendentals=0,
                                      bytes_accessed=bytes_accessed),
    )(*args)
    return y, st


def _conv3x3_stats(hp, w9, *, h_out, w_out, d, th, compute_dtype):
    n, hp_h, hp_w, ci = hp.shape
    co = w9.shape[-1]
    nh = h_out // th
    thd = th + 2 * d
    w9 = w9.astype(compute_dtype)

    kernel = functools.partial(_conv3x3_stats_kernel, th=th, d=d,
                               w_cols=w_out, compute_dtype=compute_dtype)

    flops = 2 * 9 * n * h_out * w_out * ci * co
    bytes_accessed = (hp.size * hp.dtype.itemsize + w9.size * w9.dtype.itemsize
                      + n * h_out * w_out * co * 4)

    y, st = pl.pallas_call(
        kernel,
        grid=(n, nh),
        in_specs=[pl.BlockSpec(memory_space=pl.ANY),           # padded input (HBM)
                  pl.BlockSpec((9, ci, co), lambda b, i: (0, 0, 0))],
        out_specs=[pl.BlockSpec((1, th, w_out, co), lambda b, i: (b, i, 0, 0)),
                   pl.BlockSpec((1, 1, 2, co), lambda b, i: (b, i, 0, 0))],
        out_shape=[jax.ShapeDtypeStruct((n, h_out, w_out, co), jnp.float32),
                   jax.ShapeDtypeStruct((n, nh, 2, co), jnp.float32)],
        scratch_shapes=[pltpu.VMEM((2, thd, hp_w, ci), hp.dtype),
                        pltpu.SemaphoreType.DMA((2,))],
        compiler_params=pltpu.CompilerParams(
            dimension_semantics=("parallel", "arbitrary"),
            vmem_limit_bytes=_VMEM_LIMIT_BYTES),
        cost_estimate=pl.CostEstimate(flops=flops, transcendentals=0,
                                      bytes_accessed=bytes_accessed),
    )(hp, w9)
    return y, st


def _bn_act(y, scale, bias, *, relu, out_dtype, tile_m,
            residual=None, res_scale=None, res_bias=None):
    mp, c = y.shape
    nt = mp // tile_m
    has_res = residual is not None
    res_norm = res_scale is not None

    kernel = functools.partial(_bn_act_kernel, has_res=has_res,
                               res_norm=res_norm, relu=relu)

    row_spec = pl.BlockSpec((tile_m, c), lambda i: (i, 0))
    vec_spec = pl.BlockSpec((1, c), lambda i: (0, 0))
    in_specs = [row_spec, vec_spec, vec_spec]
    args = [y, scale, bias]
    if has_res:
        in_specs.append(row_spec)
        args.append(residual)
        if res_norm:
            in_specs += [vec_spec, vec_spec]
            args += [res_scale, res_bias]

    return pl.pallas_call(
        kernel,
        grid=(nt,),
        in_specs=in_specs,
        out_specs=row_spec,
        out_shape=jax.ShapeDtypeStruct((mp, c), out_dtype),
        compiler_params=pltpu.CompilerParams(
            dimension_semantics=("parallel",),
            vmem_limit_bytes=_VMEM_LIMIT_BYTES),
    )(*args)


def _bn_scale_bias(stats, m_true, gamma, beta, c_pad):
    """Reduce per-tile (sum, sumsq) partials into per-channel scale/bias."""
    tot = jnp.sum(stats.reshape(-1, 2, c_pad), axis=0)          # (2, C_pad)
    mean = tot[0] / m_true
    var = jnp.maximum(tot[1] / m_true - mean * mean, 0.0)
    g = jnp.pad(gamma.astype(jnp.float32), (0, c_pad - gamma.shape[0]))
    b = jnp.pad(beta.astype(jnp.float32), (0, c_pad - beta.shape[0]))
    scale = g * jax.lax.rsqrt(var + _EPS)
    bias = b - mean * scale
    return scale.reshape(1, c_pad), bias.reshape(1, c_pad)


# ---------------------------------------------------------------------------
# Bottleneck / block forward
# ---------------------------------------------------------------------------
def _bottleneck(x_nhwc, p, *, stride, dilation, downsample, compute_dtype):
    if stride != 1:
        # A 1x1 conv with stride s just subsamples the input spatially.
        x_nhwc = x_nhwc[:, ::stride, ::stride, :]
    n, h, w, cin = x_nhwc.shape
    mid = p["reduce_w"].shape[1]
    cout = p["inc_w"].shape[1]
    cin_p = _round_up(cin, 128)     # lane-dense channel padding
    mid_p = _round_up(mid, 128)
    cout_p = _round_up(cout, 128)
    m = n * h * w
    tile_m = _pick_tile_m(m, max(cin_p, mid_p, cout_p))
    m_pad = _round_up(m, tile_m)

    x2d = x_nhwc.reshape(m, cin)
    x_mm = _pad_rows_cols(x2d.astype(compute_dtype), m_pad, cin_p)

    # --- reduce: 1x1 conv + BN partial stats -------------------------------
    y1, s1 = _matmul_stats(x_mm, _pad_rows_cols(p["reduce_w"], cin_p, mid_p),
                           m_true=m, tile_m=tile_m, compute_dtype=compute_dtype)
    sc1, b1 = _bn_scale_bias(s1, m, p["reduce_g"], p["reduce_b"], mid_p)
    h1 = _bn_act(y1, sc1, b1, relu=True, out_dtype=compute_dtype, tile_m=tile_m)
    h1 = h1[:m].reshape(n, h, w, mid_p)

    # --- 3x3 dilated conv + stats (halo row tiles, manual DMA pipeline) ----
    d = dilation
    h1p = jnp.pad(h1, ((0, 0), (d, d), (d, d), (0, 0)))
    th = _pick_tile_h(h, w)
    w9 = jnp.pad(p["c3_w"].reshape(9, mid, mid),
                 ((0, 0), (0, mid_p - mid), (0, mid_p - mid)))
    y2, s2 = _conv3x3_stats(h1p, w9, h_out=h, w_out=w, d=d, th=th,
                            compute_dtype=compute_dtype)
    sc2, b2 = _bn_scale_bias(s2, m, p["c3_g"], p["c3_b"], mid_p)

    # --- increase: BN+relu of the 3x3 output fused into the matmul input ---
    y2f = jnp.pad(y2.reshape(m, mid_p), ((0, m_pad - m), (0, 0)))
    y3, s3 = _matmul_stats(y2f, _pad_rows_cols(p["inc_w"], mid_p, cout_p),
                           m_true=m, tile_m=tile_m, compute_dtype=compute_dtype,
                           in_scale=sc2, in_bias=b2)
    sc3, b3 = _bn_scale_bias(s3, m, p["inc_g"], p["inc_b"], cout_p)

    # --- residual path + fused add / final relu ----------------------------
    if downsample:
        y4, s4 = _matmul_stats(x_mm, _pad_rows_cols(p["proj_w"], cin_p, cout_p),
                               m_true=m, tile_m=tile_m, compute_dtype=compute_dtype)
        sc4, b4 = _bn_scale_bias(s4, m, p["proj_g"], p["proj_b"], cout_p)
        out = _bn_act(y3, sc3, b3, relu=True, out_dtype=x_nhwc.dtype,
                      tile_m=tile_m, residual=y4, res_scale=sc4, res_bias=b4)
    else:
        res = _pad_rows_cols(x2d, m_pad, cout_p)     # identity shortcut
        out = _bn_act(y3, sc3, b3, relu=True, out_dtype=x_nhwc.dtype,
                      tile_m=tile_m, residual=res)
    return out[:m, :cout].reshape(n, h, w, cout)


def residual_block_mulgrid(x_nchw, params, *, stride=1, dilation=2,
                           mulgrid=(1, 2, 1), compute_dtype=jnp.float32):
    x = jnp.transpose(x_nchw, (0, 2, 3, 1))  # NCHW -> NHWC
    x = _bottleneck(x, params[0], stride=stride, dilation=dilation * mulgrid[0],
                    downsample=True, compute_dtype=compute_dtype)
    x = _bottleneck(x, params[1], stride=stride, dilation=dilation * mulgrid[1],
                    downsample=False, compute_dtype=compute_dtype)
    x = _bottleneck(x, params[2], stride=stride, dilation=dilation * mulgrid[2],
                    downsample=False, compute_dtype=compute_dtype)
    return jnp.transpose(x, (0, 3, 1, 2))    # NHWC -> NCHW


# ---------------------------------------------------------------------------
# Deterministic parameter init
# ---------------------------------------------------------------------------
def _init_bottleneck(key, inplanes, midplanes, outplanes, downsample):
    ks = jax.random.split(key, 12)
    p = {
        "reduce_w": 0.1 * jax.random.normal(ks[0], (inplanes, midplanes), jnp.float32),
        "reduce_g": 1.0 + 0.1 * jax.random.normal(ks[1], (midplanes,), jnp.float32),
        "reduce_b": 0.1 * jax.random.normal(ks[2], (midplanes,), jnp.float32),
        "c3_w": 0.1 * jax.random.normal(ks[3], (3, 3, midplanes, midplanes), jnp.float32),
        "c3_g": 1.0 + 0.1 * jax.random.normal(ks[4], (midplanes,), jnp.float32),
        "c3_b": 0.1 * jax.random.normal(ks[5], (midplanes,), jnp.float32),
        "inc_w": 0.1 * jax.random.normal(ks[6], (midplanes, outplanes), jnp.float32),
        "inc_g": 1.0 + 0.1 * jax.random.normal(ks[7], (outplanes,), jnp.float32),
        "inc_b": 0.1 * jax.random.normal(ks[8], (outplanes,), jnp.float32),
    }
    if downsample:
        p["proj_w"] = 0.1 * jax.random.normal(ks[9], (inplanes, outplanes), jnp.float32)
        p["proj_g"] = 1.0 + 0.1 * jax.random.normal(ks[10], (outplanes,), jnp.float32)
        p["proj_b"] = 0.1 * jax.random.normal(ks[11], (outplanes,), jnp.float32)
    return p


# ---------------------------------------------------------------------------
# Pure-JAX reference (for a correctness check)
# ---------------------------------------------------------------------------
def _ref_bn(y, g, b):
    mean = jnp.mean(y, axis=(0, 1, 2), keepdims=True)
    var = jnp.mean(jnp.square(y - mean), axis=(0, 1, 2), keepdims=True)
    return (y - mean) * jax.lax.rsqrt(var + _EPS) * g.reshape(1, 1, 1, -1) + b.reshape(1, 1, 1, -1)


def _ref_cbr(x, w_hwio, g, b, stride, padding, dilation, relu):
    y = jax.lax.conv_general_dilated(
        x, w_hwio, (stride, stride), [(padding, padding)] * 2,
        rhs_dilation=(dilation, dilation),
        dimension_numbers=("NHWC", "HWIO", "NHWC"))
    y = _ref_bn(y, g, b)
    return jnp.maximum(y, 0.0) if relu else y


def _ref_bottleneck(x, p, stride, dilation, downsample):
    cin, mid = p["reduce_w"].shape
    h = _ref_cbr(x, p["reduce_w"].reshape(1, 1, cin, mid), p["reduce_g"], p["reduce_b"],
                 stride, 0, 1, True)
    h = _ref_cbr(h, p["c3_w"], p["c3_g"], p["c3_b"], 1, dilation, dilation, True)
    mid2, cout = p["inc_w"].shape
    h = _ref_cbr(h, p["inc_w"].reshape(1, 1, mid2, cout), p["inc_g"], p["inc_b"], 1, 0, 1, False)
    if downsample:
        res = _ref_cbr(x, p["proj_w"].reshape(1, 1, cin, cout), p["proj_g"], p["proj_b"],
                       stride, 0, 1, False)
    else:
        res = x
    return jnp.maximum(h + res, 0.0)


def _ref_forward(x_nchw, params, stride=1, dilation=2, mulgrid=(1, 2, 1)):
    x = jnp.transpose(x_nchw, (0, 2, 3, 1))
    x = _ref_bottleneck(x, params[0], stride, dilation * mulgrid[0], True)
    x = _ref_bottleneck(x, params[1], stride, dilation * mulgrid[1], False)
    x = _ref_bottleneck(x, params[2], stride, dilation * mulgrid[2], False)
    return jnp.transpose(x, (0, 3, 1, 2))


# ---------------------------------------------------------------------------
if __name__ == "__main__":
    key = jax.random.PRNGKey(0)
    kx, k1, k2, k3 = jax.random.split(key, 4)

    # Small shapes consistent with the module (stride=1, dilation=2, mulgrid=[1,2,1]).
    batch, inplanes, midplanes, outplanes, spatial = 2, 16, 8, 32, 16
    x = jax.random.normal(kx, (batch, inplanes, spatial, spatial), jnp.float32)  # NCHW

    params = (
        _init_bottleneck(k1, inplanes, midplanes, outplanes, downsample=True),
        _init_bottleneck(k2, outplanes, midplanes, outplanes, downsample=False),
        _init_bottleneck(k3, outplanes, midplanes, outplanes, downsample=False),
    )

    ref = _ref_forward(x, params)

    # f32 compute path: tight check against the pure-JAX reference.
    fwd = jax.jit(functools.partial(residual_block_mulgrid, stride=1, dilation=2,
                                    mulgrid=(1, 2, 1), compute_dtype=jnp.float32))
    out = fwd(x, params)
    jax.block_until_ready(out)
    assert out.shape == (batch, outplanes, spatial, spatial), out.shape
    assert bool(jnp.all(jnp.isfinite(out)))
    assert jnp.allclose(out, ref, atol=2e-3, rtol=2e-3), float(jnp.max(jnp.abs(out - ref)))

    # bf16 MXU path (perf configuration): loose sanity check only.
    fwd_bf16 = jax.jit(functools.partial(residual_block_mulgrid, stride=1, dilation=2,
                                         mulgrid=(1, 2, 1), compute_dtype=jnp.bfloat16))
    out16 = fwd_bf16(x, params)
    jax.block_until_ready(out16)
    assert bool(jnp.all(jnp.isfinite(out16)))
    assert float(jnp.max(jnp.abs(out16.astype(jnp.float32) - ref))) < 0.3

    print("KERNEL_OK")
</pallas_src>

<mosaic_0001>
module attributes {stable_mosaic.version = 11 : i64} {
  func.func @_matmul_stats_kernel(%arg0: i32, %arg1: memref<256x128xf32, #tpu.memory_space<vmem>>, %arg2: memref<128x128xf32, #tpu.memory_space<vmem>>, %arg3: memref<256x128xf32, #tpu.memory_space<vmem>>, %arg4: memref<1x2x128xf32, #tpu.memory_space<vmem>>) attributes {dimension_semantics = [#tpu.dimension_semantics<parallel>], iteration_bounds = array<i64: 2>, scalar_prefetch = 0 : i64, scratch_operands = 0 : i64, tpu.core_type = #tpu.core_type<tc>, window_params = [{transform_indices = @transform_0, window_bounds = array<i64: 256, 128>}, {pipeline_mode = #tpu.pipeline_mode<synchronous>, transform_indices = @transform_1, window_bounds = array<i64: 128, 128>}, {transform_indices = @transform_2, window_bounds = array<i64: 256, 128>}, {transform_indices = @transform_3, window_bounds = array<i64: 1, 2, 128>}]} {
    %c0 = arith.constant 0 : index
    %c0_0 = arith.constant 0 : index
    %0 = vector.load %arg1[%c0, %c0_0] : memref<256x128xf32, #tpu.memory_space<vmem>>, vector<256x128xf32>
    %c0_1 = arith.constant 0 : index
    %c0_2 = arith.constant 0 : index
    %1 = vector.load %arg2[%c0_1, %c0_2] : memref<128x128xf32, #tpu.memory_space<vmem>>, vector<128x128xf32>
    %cst = arith.constant dense<0.000000e+00> : vector<256x128xf32>
    %2 = tpu.matmul %0, %1, %cst {dimension_numbers = #tpu.dot_dimension_numbers<[1], [0], [0], [1], [0, 0, 1, 1], [], []>} : vector<256x128xf32>, vector<128x128xf32>, vector<256x128xf32> -> vector<256x128xf32>
    %c0_3 = arith.constant 0 : index
    %c0_4 = arith.constant 0 : index
    %3 = vector.load %arg3[%c0_3, %c0_4] : memref<256x128xf32, #tpu.memory_space<vmem>>, vector<256x128xf32>
    tpu.vector_store %arg3[%c0_3, %c0_4], %2 {strides = array<i32>} : memref<256x128xf32, #tpu.memory_space<vmem>>, vector<256x128xf32>,
    %c256_i32 = arith.constant 256 : i32
    %4 = arith.muli %arg0, %c256_i32 : i32
    %5 = tpu.iota {dimensions = array<i32: 0>} : vector<256x1xi32>
    %6 = vector.broadcast %4 : i32 to vector<256x1xi32>
    %7 = arith.addi %6, %5 : vector<256x1xi32>
    %c512_i32 = arith.constant 512 : i32
    %8 = vector.broadcast %c512_i32 : i32 to vector<256x1xi32>
    %9 = arith.cmpi slt, %7, %8 : vector<256x1xi32>
    %cst_5 = arith.constant 0.000000e+00 : f32
    %10 = vector.shape_cast %9 : vector<256x1xi1> to vector<256x1xi1>
    %11 = vector.broadcast %10 : vector<256x1xi1> to vector<256x128xi1>
    %12 = vector.broadcast %cst_5 : f32 to vector<256x128xf32>
    %13 = arith.select %11, %2, %12 : vector<256x128xi1>, vector<256x128xf32>
    %cst_6 = arith.constant dense<0.000000e+00> : vector<128xf32>
    %14 = vector.multi_reduction <add>, %13, %cst_6 [0] : vector<256x128xf32> to vector<128xf32>
    %15 = vector.shape_cast %14 : vector<128xf32> to vector<1x128xf32>
    %16 = arith.mulf %13, %13 : vector<256x128xf32>
    %cst_7 = arith.constant dense<0.000000e+00> : vector<128xf32>
    %17 = vector.multi_reduction <add>, %16, %cst_7 [0] : vector<256x128xf32> to vector<128xf32>
    %18 = vector.shape_cast %17 : vector<128xf32> to vector<1x128xf32>
    %19 = tpu.concatenate %15, %18 in 0 : vector<1x128xf32>, vector<1x128xf32> -> vector<2x128xf32>
    %20 = vector.shape_cast %19 : vector<2x128xf32> to vector<1x2x128xf32>
    %c0_8 = arith.constant 0 : index
    %c0_9 = arith.constant 0 : index
    %c0_10 = arith.constant 0 : index
    %21 = vector.load %arg4[%c0_8, %c0_9, %c0_10] : memref<1x2x128xf32, #tpu.memory_space<vmem>>, vector<1x2x128xf32>
    tpu.vector_store %arg4[%c0_8, %c0_9, %c0_10], %20 {strides = array<i32>} : memref<1x2x128xf32, #tpu.memory_space<vmem>>, vector<1x2x128xf32>,
    return
  }
  func.func @transform_0(%arg0: i32) -> (i32, i32) {
    %c0_i32 = arith.constant 0 : i32
    %c0_i32_0 = arith.constant 0 : i32
    return %arg0, %c0_i32 : i32, i32
  }
  func.func @transform_1(%arg0: i32) -> (i32, i32) {
    %c0_i32 = arith.constant 0 : i32
    %c0_i32_0 = arith.constant 0 : i32
    %c0_i32_1 = arith.constant 0 : i32
    return %c0_i32, %c0_i32_0 : i32, i32
  }
  func.func @transform_2(%arg0: i32) -> (i32, i32) {
    %c0_i32 = arith.constant 0 : i32
    %c0_i32_0 = arith.constant 0 : i32
    return %arg0, %c0_i32 : i32, i32
  }
  func.func @transform_3(%arg0: i32) -> (i32, i32, i32) {
    %c0_i32 = arith.constant 0 : i32
    %c0_i32_0 = arith.constant 0 : i32
    %c0_i32_1 = arith.constant 0 : i32
    return %arg0, %c0_i32, %c0_i32_0 : i32, i32, i32
  }
}

module attributes {stable_mosaic.version = 11 : i64} {
  func.func @_bn_act_kernel(%arg0: i32, %arg1: memref<256x128xf32, #tpu.memory_space<vmem>>, %arg2: memref<1x128xf32, #tpu.memory_space<vmem>>, %arg3: memref<1x128xf32, #tpu.memory_space<vmem>>, %arg4: memref<256x128xf32, #tpu.memory_space<vmem>>) attributes {dimension_semantics = [#tpu.dimension_semantics<parallel>], iteration_bounds = array<i64: 2>, scalar_prefetch = 0 : i64, scratch_operands = 0 : i64, tpu.core_type = #tpu.core_type<tc>, window_params = [{transform_indices = @transform_0, window_bounds = array<i64: 256, 128>}, {pipeline_mode = #tpu.pipeline_mode<synchronous>, transform_indices = @transform_1, window_bounds = array<i64: 1, 128>}, {pipeline_mode = #tpu.pipeline_mode<synchronous>, transform_indices = @transform_2, window_bounds = array<i64: 1, 128>}, {transform_indices = @transform_3, window_bounds = array<i64: 256, 128>}]} {
    %c0 = arith.constant 0 : index
    %c0_0 = arith.constant 0 : index
    %0 = vector.load %arg1[%c0, %c0_0] : memref<256x128xf32, #tpu.memory_space<vmem>>, vector<256x128xf32>
    %c0_1 = arith.constant 0 : index
    %c0_2 = arith.constant 0 : index
    %1 = vector.load %arg2[%c0_1, %c0_2] : memref<1x128xf32, #tpu.memory_space<vmem>>, vector<1x128xf32>
    %2 = vector.broadcast %1 : vector<1x128xf32> to vector<256x128xf32>
    %3 = arith.mulf %0, %2 : vector<256x128xf32>
    %c0_3 = arith.constant 0 : index
    %c0_4 = arith.constant 0 : index
    %4 = vector.load %arg3[%c0_3, %c0_4] : memref<1x128xf32, #tpu.memory_space<vmem>>, vector<1x128xf32>
    %5 = vector.broadcast %4 : vector<1x128xf32> to vector<256x128xf32>
    %6 = arith.addf %3, %5 : vector<256x128xf32>
    %cst = arith.constant 0.000000e+00 : f32
    %7 = vector.broadcast %cst : f32 to vector<256x128xf32>
    %8 = arith.maximumf %6, %7 : vector<256x128xf32>
    %c0_5 = arith.constant 0 : index
    %c0_6 = arith.constant 0 : index
    %9 = vector.load %arg4[%c0_5, %c0_6] : memref<256x128xf32, #tpu.memory_space<vmem>>, vector<256x128xf32>
    tpu.vector_store %arg4[%c0_5, %c0_6], %8 {strides = array<i32>} : memref<256x128xf32, #tpu.memory_space<vmem>>, vector<256x128xf32>,
    return
  }
  func.func @transform_0(%arg0: i32) -> (i32, i32) {
    %c0_i32 = arith.constant 0 : i32
    %c0_i32_0 = arith.constant 0 : i32
    return %arg0, %c0_i32 : i32, i32
  }
  func.func @transform_1(%arg0: i32) -> (i32, i32) {
    %c0_i32 = arith.constant 0 : i32
    %c0_i32_0 = arith.constant 0 : i32
    %c0_i32_1 = arith.constant 0 : i32
    return %c0_i32, %c0_i32_0 : i32, i32
  }
  func.func @transform_2(%arg0: i32) -> (i32, i32) {
    %c0_i32 = arith.constant 0 : i32
    %c0_i32_0 = arith.constant 0 : i32
    %c0_i32_1 = arith.constant 0 : i32
    return %c0_i32, %c0_i32_0 : i32, i32
  }
  func.func @transform_3(%arg0: i32) -> (i32, i32) {
    %c0_i32 = arith.constant 0 : i32
    %c0_i32_0 = arith.constant 0 : i32
    return %arg0, %c0_i32 : i32, i32
  }
}

module attributes {stable_mosaic.version = 11 : i64} {
  func.func @_conv3x3_stats_kernel(%arg0: i32, %arg1: i32, %arg2: memref<2x20x20x128xf32, #tpu.memory_space<any>>, %arg3: memref<9x128x128xf32, #tpu.memory_space<vmem>>, %arg4: memref<1x8x16x128xf32, #tpu.memory_space<vmem>>, %arg5: memref<1x1x2x128xf32, #tpu.memory_space<vmem>>, %arg6: memref<2x12x20x128xf32, #tpu.memory_space<vmem>>, %arg7: memref<2x!tpu.dma_semaphore, #tpu.memory_space<semaphore_mem>>) attributes {dimension_semantics = [#tpu.dimension_semantics<parallel>, #tpu.dimension_semantics<arbitrary>], iteration_bounds = array<i64: 2, 2>, scalar_prefetch = 0 : i64, scratch_operands = 2 : i64, tpu.core_type = #tpu.core_type<tc>, window_params = [{}, {pipeline_mode = #tpu.pipeline_mode<synchronous>, transform_indices = @transform_1, window_bounds = array<i64: 9, 128, 128>}, {transform_indices = @transform_2, window_bounds = array<i64: 1, 8, 16, 128>}, {transform_indices = @transform_3, window_bounds = array<i64: 1, 1, 2, 128>}]} {
    %c0_i32 = arith.constant 0 : i32
    %0 = arith.cmpi eq, %arg1, %c0_i32 : i32
    %1 = arith.extui %0 : i1 to i32
    %c0_i32_0 = arith.constant 0 : i32
    %2 = arith.cmpi ne, %1, %c0_i32_0 : i32
    scf.if %2 {
      %c0_i32_54 = arith.constant 0 : i32
      %c0_i32_55 = arith.constant 0 : i32
      %c0_i32_56 = arith.constant 0 : i32
      %c0_i32_57 = arith.constant 0 : i32
      %c0_i32_58 = arith.constant 0 : i32
      %91 = tpu.memref_slice %arg2[%arg0, %c0_i32_56, %c0_i32_57, %c0_i32_58] : memref<2x20x20x128xf32, #tpu.memory_space<any>> -> memref<1x12x20x128xf32, #tpu.memory_space<any>>
      %92 = tpu.memref_squeeze %91 : memref<1x12x20x128xf32, #tpu.memory_space<any>> -> memref<12x20x128xf32, #tpu.memory_space<any>>
      %c0_i32_59 = arith.constant 0 : i32
      %c0_i32_60 = arith.constant 0 : i32
      %c0_i32_61 = arith.constant 0 : i32
      %93 = tpu.memref_slice %arg6[%c0_i32_54, %c0_i32_59, %c0_i32_60, %c0_i32_61] : memref<2x12x20x128xf32, #tpu.memory_space<vmem>> -> memref<1x12x20x128xf32, #tpu.memory_space<vmem>>
      %94 = tpu.memref_squeeze %93 : memref<1x12x20x128xf32, #tpu.memory_space<vmem>> -> memref<12x20x128xf32, #tpu.memory_space<vmem>>
      %95 = tpu.memref_slice %arg7[%c0_i32_55] : memref<2x!tpu.dma_semaphore, #tpu.memory_space<semaphore_mem>> -> memref<1x!tpu.dma_semaphore, #tpu.memory_space<semaphore_mem>>
      %96 = tpu.memref_squeeze %95 : memref<1x!tpu.dma_semaphore, #tpu.memory_space<semaphore_mem>> -> memref<!tpu.dma_semaphore, #tpu.memory_space<semaphore_mem>>
      tpu.enqueue_dma source(%92 : memref<12x20x128xf32, #tpu.memory_space<any>>) target(%94 : memref<12x20x128xf32, #tpu.memory_space<vmem>>) target_semaphore(%96 : memref<!tpu.dma_semaphore, #tpu.memory_space<semaphore_mem>>)
    } else {
    }
    %c1_i32 = arith.constant 1 : i32
    %3 = arith.addi %arg1, %c1_i32 : i32
    %c2_i32 = arith.constant 2 : i32
    %4 = arith.cmpi slt, %3, %c2_i32 : i32
    %5 = arith.extui %4 : i1 to i32
    %c0_i32_1 = arith.constant 0 : i32
    %6 = arith.cmpi ne, %5, %c0_i32_1 : i32
    scf.if %6 {
      %c1_i32_54 = arith.constant 1 : i32
      %91 = arith.addi %arg1, %c1_i32_54 : i32
      %c8_i32 = arith.constant 8 : i32
      %92 = arith.muli %91, %c8_i32 : i32
      %c1_i32_55 = arith.constant 1 : i32
      %93 = arith.addi %arg1, %c1_i32_55 : i32
      %c2_i32_56 = arith.constant 2 : i32
      %c0_i32_57 = arith.constant 0 : i32
      %94 = arith.cmpi eq, %c2_i32_56, %c0_i32_57 : i32
      %c1_i32_58 = arith.constant 1 : i32
      %95 = arith.select %94, %c1_i32_58, %c2_i32_56 : i32
      %96 = arith.remsi %93, %95 : i32
      %c0_i32_59 = arith.constant 0 : i32
      %97 = arith.cmpi ne, %96, %c0_i32_59 : i32
      %c0_i32_60 = arith.constant 0 : i32
      %98 = arith.cmpi slt, %96, %c0_i32_60 : i32
      %c0_i32_61 = arith.constant 0 : i32
      %99 = arith.cmpi slt, %95, %c0_i32_61 : i32
      %100 = arith.xori %98, %99 : i1
      %101 = arith.andi %100, %97 : i1
      %102 = arith.addi %96, %95 : i32
      %103 = arith.select %101, %102, %96 : i32
      %c0_i32_62 = arith.constant 0 : i32
      %c0_i32_63 = arith.constant 0 : i32
      %104 = tpu.memref_slice %arg2[%arg0, %92, %c0_i32_62, %c0_i32_63] : memref<2x20x20x128xf32, #tpu.memory_space<any>> -> memref<1x12x20x128xf32, #tpu.memory_space<any>>
      %105 = tpu.memref_squeeze %104 : memref<1x12x20x128xf32, #tpu.memory_space<any>> -> memref<12x20x128xf32, #tpu.memory_space<any>>
      %c0_i32_64 = arith.constant 0 : i32
      %c0_i32_65 = arith.constant 0 : i32
      %c0_i32_66 = arith.constant 0 : i32
      %106 = tpu.memref_slice %arg6[%103, %c0_i32_64, %c0_i32_65, %c0_i32_66] : memref<2x12x20x128xf32, #tpu.memory_space<vmem>> -> memref<1x12x20x128xf32, #tpu.memory_space<vmem>>
      %107 = tpu.memref_squeeze %106 : memref<1x12x20x128xf32, #tpu.memory_space<vmem>> -> memref<12x20x128xf32, #tpu.memory_space<vmem>>
      %108 = tpu.memref_slice %arg7[%103] : memref<2x!tpu.dma_semaphore, #tpu.memory_space<semaphore_mem>> -> memref<1x!tpu.dma_semaphore, #tpu.memory_space<semaphore_mem>>
      %109 = tpu.memref_squeeze %108 : memref<1x!tpu.dma_semaphore, #tpu.memory_space<semaphore_mem>> -> memref<!tpu.dma_semaphore, #tpu.memory_space<semaphore_mem>>
      tpu.enqueue_dma source(%105 : memref<12x20x128xf32, #tpu.memory_space<any>>) target(%107 : memref<12x20x128xf32, #tpu.memory_space<vmem>>) target_semaphore(%109 : memref<!tpu.dma_semaphore, #tpu.memory_space<semaphore_mem>>)
    } else {
    }
    %c2_i32_2 = arith.constant 2 : i32
    %c0_i32_3 = arith.constant 0 : i32
    %7 = arith.cmpi eq, %c2_i32_2, %c0_i32_3 : i32
    %c1_i32_4 = arith.constant 1 : i32
    %8 = arith.select %7, %c1_i32_4, %c2_i32_2 : i32
    %9 = arith.remsi %arg1, %8 : i32
    %c0_i32_5 = arith.constant 0 : i32
    %10 = arith.cmpi ne, %9, %c0_i32_5 : i32
    %c0_i32_6 = arith.constant 0 : i32
    %11 = arith.cmpi slt, %9, %c0_i32_6 : i32
    %c0_i32_7 = arith.constant 0 : i32
    %12 = arith.cmpi slt, %8, %c0_i32_7 : i32
    %13 = arith.xori %11, %12 : i1
    %14 = arith.andi %13, %10 : i1
    %15 = arith.addi %9, %8 : i32
    %16 = arith.select %14, %15, %9 : i32
    %c0_i32_8 = arith.constant 0 : i32
    %c0_i32_9 = arith.constant 0 : i32
    %c0_i32_10 = arith.constant 0 : i32
    %17 = tpu.memref_slice %arg2[%arg0, %c0_i32_8, %c0_i32_9, %c0_i32_10] : memref<2x20x20x128xf32, #tpu.memory_space<any>> -> memref<1x12x20x128xf32, #tpu.memory_space<any>>
    %18 = tpu.memref_squeeze %17 : memref<1x12x20x128xf32, #tpu.memory_space<any>> -> memref<12x20x128xf32, #tpu.memory_space<any>>
    %c0_i32_11 = arith.constant 0 : i32
    %c0_i32_12 = arith.constant 0 : i32
    %c0_i32_13 = arith.constant 0 : i32
    %19 = tpu.memref_slice %arg6[%16, %c0_i32_11, %c0_i32_12, %c0_i32_13] : memref<2x12x20x128xf32, #tpu.memory_space<vmem>> -> memref<1x12x20x128xf32, #tpu.memory_space<vmem>>
    %20 = tpu.memref_squeeze %19 : memref<1x12x20x128xf32, #tpu.memory_space<vmem>> -> memref<12x20x128xf32, #tpu.memory_space<vmem>>
    %21 = tpu.memref_slice %arg7[%16] : memref<2x!tpu.dma_semaphore, #tpu.memory_space<semaphore_mem>> -> memref<1x!tpu.dma_semaphore, #tpu.memory_space<semaphore_mem>>
    %22 = tpu.memref_squeeze %21 : memref<1x!tpu.dma_semaphore, #tpu.memory_space<semaphore_mem>> -> memref<!tpu.dma_semaphore, #tpu.memory_space<semaphore_mem>>
    tpu.wait_dma2 semaphore(%22 : memref<!tpu.dma_semaphore, #tpu.memory_space<semaphore_mem>>) src(%18 : memref<12x20x128xf32, #tpu.memory_space<any>>) dst(%20 : memref<12x20x128xf32, #tpu.memory_space<vmem>>)
    %23 = arith.index_cast %16 : i32 to index
    %c0 = arith.constant 0 : index
    %c0_14 = arith.constant 0 : index
    %c0_15 = arith.constant 0 : index
    %24 = vector.load %arg6[%23, %c0, %c0_14, %c0_15] : memref<2x12x20x128xf32, #tpu.memory_space<vmem>>, vector<1x12x20x128xf32>
    %25 = vector.shape_cast %24 : vector<1x12x20x128xf32> to vector<12x20x128xf32>
    %cst = arith.constant 0.000000e+00 : f32
    %26 = vector.broadcast %cst : f32 to vector<128x128xf32>
    %27 = vector.extract_strided_slice %25 {offsets = [0, 0, 0], sizes = [8, 16, 128], strides = [1, 1, 1]} : vector<12x20x128xf32> to vector<8x16x128xf32>
    %28 = vector.shape_cast %27 : vector<8x16x128xf32> to vector<128x128xf32>
    %c0_16 = arith.constant 0 : index
    %c0_17 = arith.constant 0 : index
    %c0_18 = arith.constant 0 : index
    %29 = vector.load %arg3[%c0_16, %c0_17, %c0_18] : memref<9x128x128xf32, #tpu.memory_space<vmem>>, vector<1x128x128xf32>
    %30 = vector.shape_cast %29 : vector<1x128x128xf32> to vector<128x128xf32>
    %cst_19 = arith.constant dense<0.000000e+00> : vector<128x128xf32>
    %31 = tpu.matmul %28, %30, %cst_19 {dimension_numbers = #tpu.dot_dimension_numbers<[1], [0], [0], [1], [0, 0, 1, 1], [], []>} : vector<128x128xf32>, vector<128x128xf32>, vector<128x128xf32> -> vector<128x128xf32>
    %32 = arith.addf %26, %31 : vector<128x128xf32>
    %33 = vector.extract_strided_slice %25 {offsets = [0, 2, 0], sizes = [8, 16, 128], strides = [1, 1, 1]} : vector<12x20x128xf32> to vector<8x16x128xf32>
    %34 = vector.shape_cast %33 : vector<8x16x128xf32> to vector<128x128xf32>
    %c1 = arith.constant 1 : index
    %c0_20 = arith.constant 0 : index
    %c0_21 = arith.constant 0 : index
    %35 = vector.load %arg3[%c1, %c0_20, %c0_21] : memref<9x128x128xf32, #tpu.memory_space<vmem>>, vector<1x128x128xf32>
    %36 = vector.shape_cast %35 : vector<1x128x128xf32> to vector<128x128xf32>
    %cst_22 = arith.constant dense<0.000000e+00> : vector<128x128xf32>
    %37 = tpu.matmul %34, %36, %cst_22 {dimension_numbers = #tpu.dot_dimension_numbers<[1], [0], [0], [1], [0, 0, 1, 1], [], []>} : vector<128x128xf32>, vector<128x128xf32>, vector<128x128xf32> -> vector<128x128xf32>
    %38 = arith.addf %32, %37 : vector<128x128xf32>
    %39 = vector.extract_strided_slice %25 {offsets = [0, 4, 0], sizes = [8, 16, 128], strides = [1, 1, 1]} : vector<12x20x128xf32> to vector<8x16x128xf32>
    %40 = vector.shape_cast %39 : vector<8x16x128xf32> to vector<128x128xf32>
    %c2 = arith.constant 2 : index
    %c0_23 = arith.constant 0 : index
    %c0_24 = arith.constant 0 : index
    %41 = vector.load %arg3[%c2, %c0_23, %c0_24] : memref<9x128x128xf32, #tpu.memory_space<vmem>>, vector<1x128x128xf32>
    %42 = vector.shape_cast %41 : vector<1x128x128xf32> to vector<128x128xf32>
    %cst_25 = arith.constant dense<0.000000e+00> : vector<128x128xf32>
    %43 = tpu.matmul %40, %42, %cst_25 {dimension_numbers = #tpu.dot_dimension_numbers<[1], [0], [0], [1], [0, 0, 1, 1], [], []>} : vector<128x128xf32>, vector<128x128xf32>, vector<128x128xf32> -> vector<128x128xf32>
    %44 = arith.addf %38, %43 : vector<128x128xf32>
    %45 = vector.extract_strided_slice %25 {offsets = [2, 0, 0], sizes = [8, 16, 128], strides = [1, 1, 1]} : vector<12x20x128xf32> to vector<8x16x128xf32>
    %46 = vector.shape_cast %45 : vector<8x16x128xf32> to vector<128x128xf32>
    %c3 = arith.constant 3 : index
    %c0_26 = arith.constant 0 : index
    %c0_27 = arith.constant 0 : index
    %47 = vector.load %arg3[%c3, %c0_26, %c0_27] : memref<9x128x128xf32, #tpu.memory_space<vmem>>, vector<1x128x128xf32>
    %48 = vector.shape_cast %47 : vector<1x128x128xf32> to vector<128x128xf32>
    %cst_28 = arith.constant dense<0.000000e+00> : vector<128x128xf32>
    %49 = tpu.matmul %46, %48, %cst_28 {dimension_numbers = #tpu.dot_dimension_numbers<[1], [0], [0], [1], [0, 0, 1, 1], [], []>} : vector<128x128xf32>, vector<128x128xf32>, vector<128x128xf32> -> vector<128x128xf32>
    %50 = arith.addf %44, %49 : vector<128x128xf32>
    %51 = vector.extract_strided_slice %25 {offsets = [2, 2, 0], sizes = [8, 16, 128], strides = [1, 1, 1]} : vector<12x20x128xf32> to vector<8x16x128xf32>
    %52 = vector.shape_cast %51 : vector<8x16x128xf32> to vector<128x128xf32>
    %c4 = arith.constant 4 : index
    %c0_29 = arith.constant 0 : index
    %c0_30 = arith.constant 0 : index
    %53 = vector.load %arg3[%c4, %c0_29, %c0_30] : memref<9x128x128xf32, #tpu.memory_space<vmem>>, vector<1x128x128xf32>
    %54 = vector.shape_cast %53 : vector<1x128x128xf32> to vector<128x128xf32>
    %cst_31 = arith.constant dense<0.000000e+00> : vector<128x128xf32>
    %55 = tpu.matmul %52, %54, %cst_31 {dimension_numbers = #tpu.dot_dimension_numbers<[1], [0], [0], [1], [0, 0, 1, 1], [], []>} : vector<128x128xf32>, vector<128x128xf32>, vector<128x128xf32> -> vector<128x128xf32>
    %56 = arith.addf %50, %55 : vector<128x128xf32>
    %57 = vector.extract_strided_slice %25 {offsets = [2, 4, 0], sizes = [8, 16, 128], strides = [1, 1, 1]} : vector<12x20x128xf32> to vector<8x16x128xf32>
    %58 = vector.shape_cast %57 : vector<8x16x128xf32> to vector<128x128xf32>
    %c5 = arith.constant 5 : index
    %c0_32 = arith.constant 0 : index
    %c0_33 = arith.constant 0 : index
    %59 = vector.load %arg3[%c5, %c0_32, %c0_33] : memref<9x128x128xf32, #tpu.memory_space<vmem>>, vector<1x128x128xf32>
    %60 = vector.shape_cast %59 : vector<1x128x128xf32> to vector<128x128xf32>
    %cst_34 = arith.constant dense<0.000000e+00> : vector<128x128xf32>
    %61 = tpu.matmul %58, %60, %cst_34 {dimension_numbers = #tpu.dot_dimension_numbers<[1], [0], [0], [1], [0, 0, 1, 1], [], []>} : vector<128x128xf32>, vector<128x128xf32>, vector<128x128xf32> -> vector<128x128xf32>
    %62 = arith.addf %56, %61 : vector<128x128xf32>
    %63 = vector.extract_strided_slice %25 {offsets = [4, 0, 0], sizes = [8, 16, 128], strides = [1, 1, 1]} : vector<12x20x128xf32> to vector<8x16x128xf32>
    %64 = vector.shape_cast %63 : vector<8x16x128xf32> to vector<128x128xf32>
    %c6 = arith.constant 6 : index
    %c0_35 = arith.constant 0 : index
    %c0_36 = arith.constant 0 : index
    %65 = vector.load %arg3[%c6, %c0_35, %c0_36] : memref<9x128x128xf32, #tpu.memory_space<vmem>>, vector<1x128x128xf32>
    %66 = vector.shape_cast %65 : vector<1x128x128xf32> to vector<128x128xf32>
    %cst_37 = arith.constant dense<0.000000e+00> : vector<128x128xf32>
    %67 = tpu.matmul %64, %66, %cst_37 {dimension_numbers = #tpu.dot_dimension_numbers<[1], [0], [0], [1], [0, 0, 1, 1], [], []>} : vector<128x128xf32>, vector<128x128xf32>, vector<128x128xf32> -> vector<128x128xf32>
    %68 = arith.addf %62, %67 : vector<128x128xf32>
    %69 = vector.extract_strided_slice %25 {offsets = [4, 2, 0], sizes = [8, 16, 128], strides = [1, 1, 1]} : vector<12x20x128xf32> to vector<8x16x128xf32>
    %70 = vector.shape_cast %69 : vector<8x16x128xf32> to vector<128x128xf32>
    %c7 = arith.constant 7 : index
    %c0_38 = arith.constant 0 : index
    %c0_39 = arith.constant 0 : index
    %71 = vector.load %arg3[%c7, %c0_38, %c0_39] : memref<9x128x128xf32, #tpu.memory_space<vmem>>, vector<1x128x128xf32>
    %72 = vector.shape_cast %71 : vector<1x128x128xf32> to vector<128x128xf32>
    %cst_40 = arith.constant dense<0.000000e+00> : vector<128x128xf32>
    %73 = tpu.matmul %70, %72, %cst_40 {dimension_numbers = #tpu.dot_dimension_numbers<[1], [0], [0], [1], [0, 0, 1, 1], [], []>} : vector<128x128xf32>, vector<128x128xf32>, vector<128x128xf32> -> vector<128x128xf32>
    %74 = arith.addf %68, %73 : vector<128x128xf32>
    %75 = vector.extract_strided_slice %25 {offsets = [4, 4, 0], sizes = [8, 16, 128], strides = [1, 1, 1]} : vector<12x20x128xf32> to vector<8x16x128xf32>
    %76 = vector.shape_cast %75 : vector<8x16x128xf32> to vector<128x128xf32>
    %c8 = arith.constant 8 : index
    %c0_41 = arith.constant 0 : index
    %c0_42 = arith.constant 0 : index
    %77 = vector.load %arg3[%c8, %c0_41, %c0_42] : memref<9x128x128xf32, #tpu.memory_space<vmem>>, vector<1x128x128xf32>
    %78 = vector.shape_cast %77 : vector<1x128x128xf32> to vector<128x128xf32>
    %cst_43 = arith.constant dense<0.000000e+00> : vector<128x128xf32>
    %79 = tpu.matmul %76, %78, %cst_43 {dimension_numbers = #tpu.dot_dimension_numbers<[1], [0], [0], [1], [0, 0, 1, 1], [], []>} : vector<128x128xf32>, vector<128x128xf32>, vector<128x128xf32> -> vector<128x128xf32>
    %80 = arith.addf %74, %79 : vector<128x128xf32>
    %81 = vector.shape_cast %80 : vector<128x128xf32> to vector<1x8x16x128xf32>
    %c0_44 = arith.constant 0 : index
    %c0_45 = arith.constant 0 : index
    %c0_46 = arith.constant 0 : index
    %c0_47 = arith.constant 0 : index
    %82 = vector.load %arg4[%c0_44, %c0_45, %c0_46, %c0_47] : memref<1x8x16x128xf32, #tpu.memory_space<vmem>>, vector<1x8x16x128xf32>
    tpu.vector_store %arg4[%c0_44, %c0_45, %c0_46, %c0_47], %81 {strides = array<i32>} : memref<1x8x16x128xf32, #tpu.memory_space<vmem>>, vector<1x8x16x128xf32>,
    %cst_48 = arith.constant dense<0.000000e+00> : vector<128xf32>
    %83 = vector.multi_reduction <add>, %80, %cst_48 [0] : vector<128x128xf32> to vector<128xf32>
    %84 = vector.shape_cast %83 : vector<128xf32> to vector<1x128xf32>
    %85 = arith.mulf %80, %80 : vector<128x128xf32>
    %cst_49 = arith.constant dense<0.000000e+00> : vector<128xf32>
    %86 = vector.multi_reduction <add>, %85, %cst_49 [0] : vector<128x128xf32> to vector<128xf32>
    %87 = vector.shape_cast %86 : vector<128xf32> to vector<1x128xf32>
    %88 = tpu.concatenate %84, %87 in 0 : vector<1x128xf32>, vector<1x128xf32> -> vector<2x128xf32>
    %89 = vector.shape_cast %88 : vector<2x128xf32> to vector<1x1x2x128xf32>
    %c0_50 = arith.constant 0 : index
    %c0_51 = arith.constant 0 : index
    %c0_52 = arith.constant 0 : index
    %c0_53 = arith.constant 0 : index
    %90 = vector.load %arg5[%c0_50, %c0_51, %c0_52, %c0_53] : memref<1x1x2x128xf32, #tpu.memory_space<vmem>>, vector<1x1x2x128xf32>
    tpu.vector_store %arg5[%c0_50, %c0_51, %c0_52, %c0_53], %89 {strides = array<i32>} : memref<1x1x2x128xf32, #tpu.memory_space<vmem>>, vector<1x1x2x128xf32>,
    return
  }
  func.func @transform_1(%arg0: i32, %arg1: i32) -> (i32, i32, i32) {
    %c0_i32 = arith.constant 0 : i32
    %c0_i32_0 = arith.constant 0 : i32
    %c0_i32_1 = arith.constant 0 : i32
    %c0_i32_2 = arith.constant 0 : i32
    return %c0_i32, %c0_i32_0, %c0_i32_1 : i32, i32, i32
  }
  func.func @transform_2(%arg0: i32, %arg1: i32) -> (i32, i32, i32, i32) {
    %c0_i32 = arith.constant 0 : i32
    %c0_i32_0 = arith.constant 0 : i32
    %c0_i32_1 = arith.constant 0 : i32
    return %arg0, %arg1, %c0_i32, %c0_i32_0 : i32, i32, i32, i32
  }
  func.func @transform_3(%arg0: i32, %arg1: i32) -> (i32, i32, i32, i32) {
    %c0_i32 = arith.constant 0 : i32
    %c0_i32_0 = arith.constant 0 : i32
    %c0_i32_1 = arith.constant 0 : i32
    return %arg0, %arg1, %c0_i32, %c0_i32_0 : i32, i32, i32, i32
  }
}

module attributes {stable_mosaic.version = 11 : i64} {
  func.func @_matmul_stats_kernel(%arg0: i32, %arg1: memref<256x128xf32, #tpu.memory_space<vmem>>, %arg2: memref<128x128xf32, #tpu.memory_space<vmem>>, %arg3: memref<1x128xf32, #tpu.memory_space<vmem>>, %arg4: memref<1x128xf32, #tpu.memory_space<vmem>>, %arg5: memref<256x128xf32, #tpu.memory_space<vmem>>, %arg6: memref<1x2x128xf32, #tpu.memory_space<vmem>>) attributes {dimension_semantics = [#tpu.dimension_semantics<parallel>], iteration_bounds = array<i64: 2>, scalar_prefetch = 0 : i64, scratch_operands = 0 : i64, tpu.core_type = #tpu.core_type<tc>, window_params = [{transform_indices = @transform_0, window_bounds = array<i64: 256, 128>}, {pipeline_mode = #tpu.pipeline_mode<synchronous>, transform_indices = @transform_1, window_bounds = array<i64: 128, 128>}, {pipeline_mode = #tpu.pipeline_mode<synchronous>, transform_indices = @transform_2, window_bounds = array<i64: 1, 128>}, {pipeline_mode = #tpu.pipeline_mode<synchronous>, transform_indices = @transform_3, window_bounds = array<i64: 1, 128>}, {transform_indices = @transform_4, window_bounds = array<i64: 256, 128>}, {transform_indices = @transform_5, window_bounds = array<i64: 1, 2, 128>}]} {
    %c0 = arith.constant 0 : index
    %c0_0 = arith.constant 0 : index
    %0 = vector.load %arg1[%c0, %c0_0] : memref<256x128xf32, #tpu.memory_space<vmem>>, vector<256x128xf32>
    %c0_1 = arith.constant 0 : index
    %c0_2 = arith.constant 0 : index
    %1 = vector.load %arg3[%c0_1, %c0_2] : memref<1x128xf32, #tpu.memory_space<vmem>>, vector<1x128xf32>
    %2 = vector.broadcast %1 : vector<1x128xf32> to vector<256x128xf32>
    %3 = arith.mulf %0, %2 : vector<256x128xf32>
    %c0_3 = arith.constant 0 : index
    %c0_4 = arith.constant 0 : index
    %4 = vector.load %arg4[%c0_3, %c0_4] : memref<1x128xf32, #tpu.memory_space<vmem>>, vector<1x128xf32>
    %5 = vector.broadcast %4 : vector<1x128xf32> to vector<256x128xf32>
    %6 = arith.addf %3, %5 : vector<256x128xf32>
    %cst = arith.constant 0.000000e+00 : f32
    %7 = vector.broadcast %cst : f32 to vector<256x128xf32>
    %8 = arith.maximumf %6, %7 : vector<256x128xf32>
    %c0_5 = arith.constant 0 : index
    %c0_6 = arith.constant 0 : index
    %9 = vector.load %arg2[%c0_5, %c0_6] : memref<128x128xf32, #tpu.memory_space<vmem>>, vector<128x128xf32>
    %cst_7 = arith.constant dense<0.000000e+00> : vector<256x128xf32>
    %10 = tpu.matmul %8, %9, %cst_7 {dimension_numbers = #tpu.dot_dimension_numbers<[1], [0], [0], [1], [0, 0, 1, 1], [], []>} : vector<256x128xf32>, vector<128x128xf32>, vector<256x128xf32> -> vector<256x128xf32>
    %c0_8 = arith.constant 0 : index
    %c0_9 = arith.constant 0 : index
    %11 = vector.load %arg5[%c0_8, %c0_9] : memref<256x128xf32, #tpu.memory_space<vmem>>, vector<256x128xf32>
    tpu.vector_store %arg5[%c0_8, %c0_9], %10 {strides = array<i32>} : memref<256x128xf32, #tpu.memory_space<vmem>>, vector<256x128xf32>,
    %c256_i32 = arith.constant 256 : i32
    %12 = arith.muli %arg0, %c256_i32 : i32
    %13 = tpu.iota {dimensions = array<i32: 0>} : vector<256x1xi32>
    %14 = vector.broadcast %12 : i32 to vector<256x1xi32>
    %15 = arith.addi %14, %13 : vector<256x1xi32>
    %c512_i32 = arith.constant 512 : i32
    %16 = vector.broadcast %c512_i32 : i32 to vector<256x1xi32>
    %17 = arith.cmpi slt, %15, %16 : vector<256x1xi32>
    %cst_10 = arith.constant 0.000000e+00 : f32
    %18 = vector.shape_cast %17 : vector<256x1xi1> to vector<256x1xi1>
    %19 = vector.broadcast %18 : vector<256x1xi1> to vector<256x128xi1>
    %20 = vector.broadcast %cst_10 : f32 to vector<256x128xf32>
    %21 = arith.select %19, %10, %20 : vector<256x128xi1>, vector<256x128xf32>
    %cst_11 = arith.constant dense<0.000000e+00> : vector<128xf32>
    %22 = vector.multi_reduction <add>, %21, %cst_11 [0] : vector<256x128xf32> to vector<128xf32>
    %23 = vector.shape_cast %22 : vector<128xf32> to vector<1x128xf32>
    %24 = arith.mulf %21, %21 : vector<256x128xf32>
    %cst_12 = arith.constant dense<0.000000e+00> : vector<128xf32>
    %25 = vector.multi_reduction <add>, %24, %cst_12 [0] : vector<256x128xf32> to vector<128xf32>
    %26 = vector.shape_cast %25 : vector<128xf32> to vector<1x128xf32>
    %27 = tpu.concatenate %23, %26 in 0 : vector<1x128xf32>, vector<1x128xf32> -> vector<2x128xf32>
    %28 = vector.shape_cast %27 : vector<2x128xf32> to vector<1x2x128xf32>
    %c0_13 = arith.constant 0 : index
    %c0_14 = arith.constant 0 : index
    %c0_15 = arith.constant 0 : index
    %29 = vector.load %arg6[%c0_13, %c0_14, %c0_15] : memref<1x2x128xf32, #tpu.memory_space<vmem>>, vector<1x2x128xf32>
    tpu.vector_store %arg6[%c0_13, %c0_14, %c0_15], %28 {strides = array<i32>} : memref<1x2x128xf32, #tpu.memory_space<vmem>>, vector<1x2x128xf32>,
    return
  }
  func.func @transform_0(%arg0: i32) -> (i32, i32) {
    %c0_i32 = arith.constant 0 : i32
    %c0_i32_0 = arith.constant 0 : i32
    return %arg0, %c0_i32 : i32, i32
  }
  func.func @transform_1(%arg0: i32) -> (i32, i32) {
    %c0_i32 = arith.constant 0 : i32
    %c0_i32_0 = arith.constant 0 : i32
    %c0_i32_1 = arith.constant 0 : i32
    return %c0_i32, %c0_i32_0 : i32, i32
  }
  func.func @transform_2(%arg0: i32) -> (i32, i32) {
    %c0_i32 = arith.constant 0 : i32
    %c0_i32_0 = arith.constant 0 : i32
    %c0_i32_1 = arith.constant 0 : i32
    return %c0_i32, %c0_i32_0 : i32, i32
  }
  func.func @transform_3(%arg0: i32) -> (i32, i32) {
    %c0_i32 = arith.constant 0 : i32
    %c0_i32_0 = arith.constant 0 : i32
    %c0_i32_1 = arith.constant 0 : i32
    return %c0_i32, %c0_i32_0 : i32, i32
  }
  func.func @transform_4(%arg0: i32) -> (i32, i32) {
    %c0_i32 = arith.constant 0 : i32
    %c0_i32_0 = arith.constant 0 : i32
    return %arg0, %c0_i32 : i32, i32
  }
  func.func @transform_5(%arg0: i32) -> (i32, i32, i32) {
    %c0_i32 = arith.constant 0 : i32
    %c0_i32_0 = arith.constant 0 : i32
    %c0_i32_1 = arith.constant 0 : i32
    return %arg0, %c0_i32, %c0_i32_0 : i32, i32, i32
  }
}

module attributes {stable_mosaic.version = 11 : i64} {
  func.func @_bn_act_kernel(%arg0: i32, %arg1: memref<256x128xf32, #tpu.memory_space<vmem>>, %arg2: memref<1x128xf32, #tpu.memory_space<vmem>>, %arg3: memref<1x128xf32, #tpu.memory_space<vmem>>, %arg4: memref<256x128xf32, #tpu.memory_space<vmem>>, %arg5: memref<1x128xf32, #tpu.memory_space<vmem>>, %arg6: memref<1x128xf32, #tpu.memory_space<vmem>>, %arg7: memref<256x128xf32, #tpu.memory_space<vmem>>) attributes {dimension_semantics = [#tpu.dimension_semantics<parallel>], iteration_bounds = array<i64: 2>, scalar_prefetch = 0 : i64, scratch_operands = 0 : i64, tpu.core_type = #tpu.core_type<tc>, window_params = [{transform_indices = @transform_0, window_bounds = array<i64: 256, 128>}, {pipeline_mode = #tpu.pipeline_mode<synchronous>, transform_indices = @transform_1, window_bounds = array<i64: 1, 128>}, {pipeline_mode = #tpu.pipeline_mode<synchronous>, transform_indices = @transform_2, window_bounds = array<i64: 1, 128>}, {transform_indices = @transform_3, window_bounds = array<i64: 256, 128>}, {pipeline_mode = #tpu.pipeline_mode<synchronous>, transform_indices = @transform_4, window_bounds = array<i64: 1, 128>}, {pipeline_mode = #tpu.pipeline_mode<synchronous>, transform_indices = @transform_5, window_bounds = array<i64: 1, 128>}, {transform_indices = @transform_6, window_bounds = array<i64: 256, 128>}]} {
    %c0 = arith.constant 0 : index
    %c0_0 = arith.constant 0 : index
    %0 = vector.load %arg1[%c0, %c0_0] : memref<256x128xf32, #tpu.memory_space<vmem>>, vector<256x128xf32>
    %c0_1 = arith.constant 0 : index
    %c0_2 = arith.constant 0 : index
    %1 = vector.load %arg2[%c0_1, %c0_2] : memref<1x128xf32, #tpu.memory_space<vmem>>, vector<1x128xf32>
    %2 = vector.broadcast %1 : vector<1x128xf32> to vector<256x128xf32>
    %3 = arith.mulf %0, %2 : vector<256x128xf32>
    %c0_3 = arith.constant 0 : index
    %c0_4 = arith.constant 0 : index
    %4 = vector.load %arg3[%c0_3, %c0_4] : memref<1x128xf32, #tpu.memory_space<vmem>>, vector<1x128xf32>
    %5 = vector.broadcast %4 : vector<1x128xf32> to vector<256x128xf32>
    %6 = arith.addf %3, %5 : vector<256x128xf32>
    %c0_5 = arith.constant 0 : index
    %c0_6 = arith.constant 0 : index
    %7 = vector.load %arg4[%c0_5, %c0_6] : memref<256x128xf32, #tpu.memory_space<vmem>>, vector<256x128xf32>
    %c0_7 = arith.constant 0 : index
    %c0_8 = arith.constant 0 : index
    %8 = vector.load %arg5[%c0_7, %c0_8] : memref<1x128xf32, #tpu.memory_space<vmem>>, vector<1x128xf32>
    %9 = vector.broadcast %8 : vector<1x128xf32> to vector<256x128xf32>
    %10 = arith.mulf %7, %9 : vector<256x128xf32>
    %c0_9 = arith.constant 0 : index
    %c0_10 = arith.constant 0 : index
    %11 = vector.load %arg6[%c0_9, %c0_10] : memref<1x128xf32, #tpu.memory_space<vmem>>, vector<1x128xf32>
    %12 = vector.broadcast %11 : vector<1x128xf32> to vector<256x128xf32>
    %13 = arith.addf %10, %12 : vector<256x128xf32>
    %14 = arith.addf %6, %13 : vector<256x128xf32>
    %cst = arith.constant 0.000000e+00 : f32
    %15 = vector.broadcast %cst : f32 to vector<256x128xf32>
    %16 = arith.maximumf %14, %15 : vector<256x128xf32>
    %c0_11 = arith.constant 0 : index
    %c0_12 = arith.constant 0 : index
    %17 = vector.load %arg7[%c0_11, %c0_12] : memref<256x128xf32, #tpu.memory_space<vmem>>, vector<256x128xf32>
    tpu.vector_store %arg7[%c0_11, %c0_12], %16 {strides = array<i32>} : memref<256x128xf32, #tpu.memory_space<vmem>>, vector<256x128xf32>,
    return
  }
  func.func @transform_0(%arg0: i32) -> (i32, i32) {
    %c0_i32 = arith.constant 0 : i32
    %c0_i32_0 = arith.constant 0 : i32
    return %arg0, %c0_i32 : i32, i32
  }
  func.func @transform_1(%arg0: i32) -> (i32, i32) {
    %c0_i32 = arith.constant 0 : i32
    %c0_i32_0 = arith.constant 0 : i32
    %c0_i32_1 = arith.constant 0 : i32
    return %c0_i32, %c0_i32_0 : i32, i32
  }
  func.func @transform_2(%arg0: i32) -> (i32, i32) {
    %c0_i32 = arith.constant 0 : i32
    %c0_i32_0 = arith.constant 0 : i32
    %c0_i32_1 = arith.constant 0 : i32
    return %c0_i32, %c0_i32_0 : i32, i32
  }
  func.func @transform_3(%arg0: i32) -> (i32, i32) {
    %c0_i32 = arith.constant 0 : i32
    %c0_i32_0 = arith.constant 0 : i32
    return %arg0, %c0_i32 : i32, i32
  }
  func.func @transform_4(%arg0: i32) -> (i32, i32) {
    %c0_i32 = arith.constant 0 : i32
    %c0_i32_0 = arith.constant 0 : i32
    %c0_i32_1 = arith.constant 0 : i32
    return %c0_i32, %c0_i32_0 : i32, i32
  }
  func.func @transform_5(%arg0: i32) -> (i32, i32) {
    %c0_i32 = arith.constant 0 : i32
    %c0_i32_0 = arith.constant 0 : i32
    %c0_i32_1 = arith.constant 0 : i32
    return %c0_i32, %c0_i32_0 : i32, i32
  }
  func.func @transform_6(%arg0: i32) -> (i32, i32) {
    %c0_i32 = arith.constant 0 : i32
    %c0_i32_0 = arith.constant 0 : i32
    return %arg0, %c0_i32 : i32, i32
  }
}

module attributes {stable_mosaic.version = 11 : i64} {
  func.func @_conv3x3_stats_kernel(%arg0: i32, %arg1: i32, %arg2: memref<2x24x24x128xf32, #tpu.memory_space<any>>, %arg3: memref<9x128x128xf32, #tpu.memory_space<vmem>>, %arg4: memref<1x8x16x128xf32, #tpu.memory_space<vmem>>, %arg5: memref<1x1x2x128xf32, #tpu.memory_space<vmem>>, %arg6: memref<2x16x24x128xf32, #tpu.memory_space<vmem>>, %arg7: memref<2x!tpu.dma_semaphore, #tpu.memory_space<semaphore_mem>>) attributes {dimension_semantics = [#tpu.dimension_semantics<parallel>, #tpu.dimension_semantics<arbitrary>], iteration_bounds = array<i64: 2, 2>, scalar_prefetch = 0 : i64, scratch_operands = 2 : i64, tpu.core_type = #tpu.core_type<tc>, window_params = [{}, {pipeline_mode = #tpu.pipeline_mode<synchronous>, transform_indices = @transform_1, window_bounds = array<i64: 9, 128, 128>}, {transform_indices = @transform_2, window_bounds = array<i64: 1, 8, 16, 128>}, {transform_indices = @transform_3, window_bounds = array<i64: 1, 1, 2, 128>}]} {
    %c0_i32 = arith.constant 0 : i32
    %0 = arith.cmpi eq, %arg1, %c0_i32 : i32
    %1 = arith.extui %0 : i1 to i32
    %c0_i32_0 = arith.constant 0 : i32
    %2 = arith.cmpi ne, %1, %c0_i32_0 : i32
    scf.if %2 {
      %c0_i32_54 = arith.constant 0 : i32
      %c0_i32_55 = arith.constant 0 : i32
      %c0_i32_56 = arith.constant 0 : i32
      %c0_i32_57 = arith.constant 0 : i32
      %c0_i32_58 = arith.constant 0 : i32
      %91 = tpu.memref_slice %arg2[%arg0, %c0_i32_56, %c0_i32_57, %c0_i32_58] : memref<2x24x24x128xf32, #tpu.memory_space<any>> -> memref<1x16x24x128xf32, #tpu.memory_space<any>>
      %92 = tpu.memref_squeeze %91 : memref<1x16x24x128xf32, #tpu.memory_space<any>> -> memref<16x24x128xf32, #tpu.memory_space<any>>
      %c0_i32_59 = arith.constant 0 : i32
      %c0_i32_60 = arith.constant 0 : i32
      %c0_i32_61 = arith.constant 0 : i32
      %93 = tpu.memref_slice %arg6[%c0_i32_54, %c0_i32_59, %c0_i32_60, %c0_i32_61] : memref<2x16x24x128xf32, #tpu.memory_space<vmem>> -> memref<1x16x24x128xf32, #tpu.memory_space<vmem>>
      %94 = tpu.memref_squeeze %93 : memref<1x16x24x128xf32, #tpu.memory_space<vmem>> -> memref<16x24x128xf32, #tpu.memory_space<vmem>>
      %95 = tpu.memref_slice %arg7[%c0_i32_55] : memref<2x!tpu.dma_semaphore, #tpu.memory_space<semaphore_mem>> -> memref<1x!tpu.dma_semaphore, #tpu.memory_space<semaphore_mem>>
      %96 = tpu.memref_squeeze %95 : memref<1x!tpu.dma_semaphore, #tpu.memory_space<semaphore_mem>> -> memref<!tpu.dma_semaphore, #tpu.memory_space<semaphore_mem>>
      tpu.enqueue_dma source(%92 : memref<16x24x128xf32, #tpu.memory_space<any>>) target(%94 : memref<16x24x128xf32, #tpu.memory_space<vmem>>) target_semaphore(%96 : memref<!tpu.dma_semaphore, #tpu.memory_space<semaphore_mem>>)
    } else {
    }
    %c1_i32 = arith.constant 1 : i32
    %3 = arith.addi %arg1, %c1_i32 : i32
    %c2_i32 = arith.constant 2 : i32
    %4 = arith.cmpi slt, %3, %c2_i32 : i32
    %5 = arith.extui %4 : i1 to i32
    %c0_i32_1 = arith.constant 0 : i32
    %6 = arith.cmpi ne, %5, %c0_i32_1 : i32
    scf.if %6 {
      %c1_i32_54 = arith.constant 1 : i32
      %91 = arith.addi %arg1, %c1_i32_54 : i32
      %c8_i32 = arith.constant 8 : i32
      %92 = arith.muli %91, %c8_i32 : i32
      %c1_i32_55 = arith.constant 1 : i32
      %93 = arith.addi %arg1, %c1_i32_55 : i32
      %c2_i32_56 = arith.constant 2 : i32
      %c0_i32_57 = arith.constant 0 : i32
      %94 = arith.cmpi eq, %c2_i32_56, %c0_i32_57 : i32
      %c1_i32_58 = arith.constant 1 : i32
      %95 = arith.select %94, %c1_i32_58, %c2_i32_56 : i32
      %96 = arith.remsi %93, %95 : i32
      %c0_i32_59 = arith.constant 0 : i32
      %97 = arith.cmpi ne, %96, %c0_i32_59 : i32
      %c0_i32_60 = arith.constant 0 : i32
      %98 = arith.cmpi slt, %96, %c0_i32_60 : i32
      %c0_i32_61 = arith.constant 0 : i32
      %99 = arith.cmpi slt, %95, %c0_i32_61 : i32
      %100 = arith.xori %98, %99 : i1
      %101 = arith.andi %100, %97 : i1
      %102 = arith.addi %96, %95 : i32
      %103 = arith.select %101, %102, %96 : i32
      %c0_i32_62 = arith.constant 0 : i32
      %c0_i32_63 = arith.constant 0 : i32
      %104 = tpu.memref_slice %arg2[%arg0, %92, %c0_i32_62, %c0_i32_63] : memref<2x24x24x128xf32, #tpu.memory_space<any>> -> memref<1x16x24x128xf32, #tpu.memory_space<any>>
      %105 = tpu.memref_squeeze %104 : memref<1x16x24x128xf32, #tpu.memory_space<any>> -> memref<16x24x128xf32, #tpu.memory_space<any>>
      %c0_i32_64 = arith.constant 0 : i32
      %c0_i32_65 = arith.constant 0 : i32
      %c0_i32_66 = arith.constant 0 : i32
      %106 = tpu.memref_slice %arg6[%103, %c0_i32_64, %c0_i32_65, %c0_i32_66] : memref<2x16x24x128xf32, #tpu.memory_space<vmem>> -> memref<1x16x24x128xf32, #tpu.memory_space<vmem>>
      %107 = tpu.memref_squeeze %106 : memref<1x16x24x128xf32, #tpu.memory_space<vmem>> -> memref<16x24x128xf32, #tpu.memory_space<vmem>>
      %108 = tpu.memref_slice %arg7[%103] : memref<2x!tpu.dma_semaphore, #tpu.memory_space<semaphore_mem>> -> memref<1x!tpu.dma_semaphore, #tpu.memory_space<semaphore_mem>>
      %109 = tpu.memref_squeeze %108 : memref<1x!tpu.dma_semaphore, #tpu.memory_space<semaphore_mem>> -> memref<!tpu.dma_semaphore, #tpu.memory_space<semaphore_mem>>
      tpu.enqueue_dma source(%105 : memref<16x24x128xf32, #tpu.memory_space<any>>) target(%107 : memref<16x24x128xf32, #tpu.memory_space<vmem>>) target_semaphore(%109 : memref<!tpu.dma_semaphore, #tpu.memory_space<semaphore_mem>>)
    } else {
    }
    %c2_i32_2 = arith.constant 2 : i32
    %c0_i32_3 = arith.constant 0 : i32
    %7 = arith.cmpi eq, %c2_i32_2, %c0_i32_3 : i32
    %c1_i32_4 = arith.constant 1 : i32
    %8 = arith.select %7, %c1_i32_4, %c2_i32_2 : i32
    %9 = arith.remsi %arg1, %8 : i32
    %c0_i32_5 = arith.constant 0 : i32
    %10 = arith.cmpi ne, %9, %c0_i32_5 : i32
    %c0_i32_6 = arith.constant 0 : i32
    %11 = arith.cmpi slt, %9, %c0_i32_6 : i32
    %c0_i32_7 = arith.constant 0 : i32
    %12 = arith.cmpi slt, %8, %c0_i32_7 : i32
    %13 = arith.xori %11, %12 : i1
    %14 = arith.andi %13, %10 : i1
    %15 = arith.addi %9, %8 : i32
    %16 = arith.select %14, %15, %9 : i32
    %c0_i32_8 = arith.constant 0 : i32
    %c0_i32_9 = arith.constant 0 : i32
    %c0_i32_10 = arith.constant 0 : i32
    %17 = tpu.memref_slice %arg2[%arg0, %c0_i32_8, %c0_i32_9, %c0_i32_10] : memref<2x24x24x128xf32, #tpu.memory_space<any>> -> memref<1x16x24x128xf32, #tpu.memory_space<any>>
    %18 = tpu.memref_squeeze %17 : memref<1x16x24x128xf32, #tpu.memory_space<any>> -> memref<16x24x128xf32, #tpu.memory_space<any>>
    %c0_i32_11 = arith.constant 0 : i32
    %c0_i32_12 = arith.constant 0 : i32
    %c0_i32_13 = arith.constant 0 : i32
    %19 = tpu.memref_slice %arg6[%16, %c0_i32_11, %c0_i32_12, %c0_i32_13] : memref<2x16x24x128xf32, #tpu.memory_space<vmem>> -> memref<1x16x24x128xf32, #tpu.memory_space<vmem>>
    %20 = tpu.memref_squeeze %19 : memref<1x16x24x128xf32, #tpu.memory_space<vmem>> -> memref<16x24x128xf32, #tpu.memory_space<vmem>>
    %21 = tpu.memref_slice %arg7[%16] : memref<2x!tpu.dma_semaphore, #tpu.memory_space<semaphore_mem>> -> memref<1x!tpu.dma_semaphore, #tpu.memory_space<semaphore_mem>>
    %22 = tpu.memref_squeeze %21 : memref<1x!tpu.dma_semaphore, #tpu.memory_space<semaphore_mem>> -> memref<!tpu.dma_semaphore, #tpu.memory_space<semaphore_mem>>
    tpu.wait_dma2 semaphore(%22 : memref<!tpu.dma_semaphore, #tpu.memory_space<semaphore_mem>>) src(%18 : memref<16x24x128xf32, #tpu.memory_space<any>>) dst(%20 : memref<16x24x128xf32, #tpu.memory_space<vmem>>)
    %23 = arith.index_cast %16 : i32 to index
    %c0 = arith.constant 0 : index
    %c0_14 = arith.constant 0 : index
    %c0_15 = arith.constant 0 : index
    %24 = vector.load %arg6[%23, %c0, %c0_14, %c0_15] : memref<2x16x24x128xf32, #tpu.memory_space<vmem>>, vector<1x16x24x128xf32>
    %25 = vector.shape_cast %24 : vector<1x16x24x128xf32> to vector<16x24x128xf32>
    %cst = arith.constant 0.000000e+00 : f32
    %26 = vector.broadcast %cst : f32 to vector<128x128xf32>
    %27 = vector.extract_strided_slice %25 {offsets = [0, 0, 0], sizes = [8, 16, 128], strides = [1, 1, 1]} : vector<16x24x128xf32> to vector<8x16x128xf32>
    %28 = vector.shape_cast %27 : vector<8x16x128xf32> to vector<128x128xf32>
    %c0_16 = arith.constant 0 : index
    %c0_17 = arith.constant 0 : index
    %c0_18 = arith.constant 0 : index
    %29 = vector.load %arg3[%c0_16, %c0_17, %c0_18] : memref<9x128x128xf32, #tpu.memory_space<vmem>>, vector<1x128x128xf32>
    %30 = vector.shape_cast %29 : vector<1x128x128xf32> to vector<128x128xf32>
    %cst_19 = arith.constant dense<0.000000e+00> : vector<128x128xf32>
    %31 = tpu.matmul %28, %30, %cst_19 {dimension_numbers = #tpu.dot_dimension_numbers<[1], [0], [0], [1], [0, 0, 1, 1], [], []>} : vector<128x128xf32>, vector<128x128xf32>, vector<128x128xf32> -> vector<128x128xf32>
    %32 = arith.addf %26, %31 : vector<128x128xf32>
    %33 = vector.extract_strided_slice %25 {offsets = [0, 4, 0], sizes = [8, 16, 128], strides = [1, 1, 1]} : vector<16x24x128xf32> to vector<8x16x128xf32>
    %34 = vector.shape_cast %33 : vector<8x16x128xf32> to vector<128x128xf32>
    %c1 = arith.constant 1 : index
    %c0_20 = arith.constant 0 : index
    %c0_21 = arith.constant 0 : index
    %35 = vector.load %arg3[%c1, %c0_20, %c0_21] : memref<9x128x128xf32, #tpu.memory_space<vmem>>, vector<1x128x128xf32>
    %36 = vector.shape_cast %35 : vector<1x128x128xf32> to vector<128x128xf32>
    %cst_22 = arith.constant dense<0.000000e+00> : vector<128x128xf32>
    %37 = tpu.matmul %34, %36, %cst_22 {dimension_numbers = #tpu.dot_dimension_numbers<[1], [0], [0], [1], [0, 0, 1, 1], [], []>} : vector<128x128xf32>, vector<128x128xf32>, vector<128x128xf32> -> vector<128x128xf32>
    %38 = arith.addf %32, %37 : vector<128x128xf32>
    %39 = vector.extract_strided_slice %25 {offsets = [0, 8, 0], sizes = [8, 16, 128], strides = [1, 1, 1]} : vector<16x24x128xf32> to vector<8x16x128xf32>
    %40 = vector.shape_cast %39 : vector<8x16x128xf32> to vector<128x128xf32>
    %c2 = arith.constant 2 : index
    %c0_23 = arith.constant 0 : index
    %c0_24 = arith.constant 0 : index
    %41 = vector.load %arg3[%c2, %c0_23, %c0_24] : memref<9x128x128xf32, #tpu.memory_space<vmem>>, vector<1x128x128xf32>
    %42 = vector.shape_cast %41 : vector<1x128x128xf32> to vector<128x128xf32>
    %cst_25 = arith.constant dense<0.000000e+00> : vector<128x128xf32>
    %43 = tpu.matmul %40, %42, %cst_25 {dimension_numbers = #tpu.dot_dimension_numbers<[1], [0], [0], [1], [0, 0, 1, 1], [], []>} : vector<128x128xf32>, vector<128x128xf32>, vector<128x128xf32> -> vector<128x128xf32>
    %44 = arith.addf %38, %43 : vector<128x128xf32>
    %45 = vector.extract_strided_slice %25 {offsets = [4, 0, 0], sizes = [8, 16, 128], strides = [1, 1, 1]} : vector<16x24x128xf32> to vector<8x16x128xf32>
    %46 = vector.shape_cast %45 : vector<8x16x128xf32> to vector<128x128xf32>
    %c3 = arith.constant 3 : index
    %c0_26 = arith.constant 0 : index
    %c0_27 = arith.constant 0 : index
    %47 = vector.load %arg3[%c3, %c0_26, %c0_27] : memref<9x128x128xf32, #tpu.memory_space<vmem>>, vector<1x128x128xf32>
    %48 = vector.shape_cast %47 : vector<1x128x128xf32> to vector<128x128xf32>
    %cst_28 = arith.constant dense<0.000000e+00> : vector<128x128xf32>
    %49 = tpu.matmul %46, %48, %cst_28 {dimension_numbers = #tpu.dot_dimension_numbers<[1], [0], [0], [1], [0, 0, 1, 1], [], []>} : vector<128x128xf32>, vector<128x128xf32>, vector<128x128xf32> -> vector<128x128xf32>
    %50 = arith.addf %44, %49 : vector<128x128xf32>
    %51 = vector.extract_strided_slice %25 {offsets = [4, 4, 0], sizes = [8, 16, 128], strides = [1, 1, 1]} : vector<16x24x128xf32> to vector<8x16x128xf32>
    %52 = vector.shape_cast %51 : vector<8x16x128xf32> to vector<128x128xf32>
    %c4 = arith.constant 4 : index
    %c0_29 = arith.constant 0 : index
    %c0_30 = arith.constant 0 : index
    %53 = vector.load %arg3[%c4, %c0_29, %c0_30] : memref<9x128x128xf32, #tpu.memory_space<vmem>>, vector<1x128x128xf32>
    %54 = vector.shape_cast %53 : vector<1x128x128xf32> to vector<128x128xf32>
    %cst_31 = arith.constant dense<0.000000e+00> : vector<128x128xf32>
    %55 = tpu.matmul %52, %54, %cst_31 {dimension_numbers = #tpu.dot_dimension_numbers<[1], [0], [0], [1], [0, 0, 1, 1], [], []>} : vector<128x128xf32>, vector<128x128xf32>, vector<128x128xf32> -> vector<128x128xf32>
    %56 = arith.addf %50, %55 : vector<128x128xf32>
    %57 = vector.extract_strided_slice %25 {offsets = [4, 8, 0], sizes = [8, 16, 128], strides = [1, 1, 1]} : vector<16x24x128xf32> to vector<8x16x128xf32>
    %58 = vector.shape_cast %57 : vector<8x16x128xf32> to vector<128x128xf32>
    %c5 = arith.constant 5 : index
    %c0_32 = arith.constant 0 : index
    %c0_33 = arith.constant 0 : index
    %59 = vector.load %arg3[%c5, %c0_32, %c0_33] : memref<9x128x128xf32, #tpu.memory_space<vmem>>, vector<1x128x128xf32>
    %60 = vector.shape_cast %59 : vector<1x128x128xf32> to vector<128x128xf32>
    %cst_34 = arith.constant dense<0.000000e+00> : vector<128x128xf32>
    %61 = tpu.matmul %58, %60, %cst_34 {dimension_numbers = #tpu.dot_dimension_numbers<[1], [0], [0], [1], [0, 0, 1, 1], [], []>} : vector<128x128xf32>, vector<128x128xf32>, vector<128x128xf32> -> vector<128x128xf32>
    %62 = arith.addf %56, %61 : vector<128x128xf32>
    %63 = vector.extract_strided_slice %25 {offsets = [8, 0, 0], sizes = [8, 16, 128], strides = [1, 1, 1]} : vector<16x24x128xf32> to vector<8x16x128xf32>
    %64 = vector.shape_cast %63 : vector<8x16x128xf32> to vector<128x128xf32>
    %c6 = arith.constant 6 : index
    %c0_35 = arith.constant 0 : index
    %c0_36 = arith.constant 0 : index
    %65 = vector.load %arg3[%c6, %c0_35, %c0_36] : memref<9x128x128xf32, #tpu.memory_space<vmem>>, vector<1x128x128xf32>
    %66 = vector.shape_cast %65 : vector<1x128x128xf32> to vector<128x128xf32>
    %cst_37 = arith.constant dense<0.000000e+00> : vector<128x128xf32>
    %67 = tpu.matmul %64, %66, %cst_37 {dimension_numbers = #tpu.dot_dimension_numbers<[1], [0], [0], [1], [0, 0, 1, 1], [], []>} : vector<128x128xf32>, vector<128x128xf32>, vector<128x128xf32> -> vector<128x128xf32>
    %68 = arith.addf %62, %67 : vector<128x128xf32>
    %69 = vector.extract_strided_slice %25 {offsets = [8, 4, 0], sizes = [8, 16, 128], strides = [1, 1, 1]} : vector<16x24x128xf32> to vector<8x16x128xf32>
    %70 = vector.shape_cast %69 : vector<8x16x128xf32> to vector<128x128xf32>
    %c7 = arith.constant 7 : index
    %c0_38 = arith.constant 0 : index
    %c0_39 = arith.constant 0 : index
    %71 = vector.load %arg3[%c7, %c0_38, %c0_39] : memref<9x128x128xf32, #tpu.memory_space<vmem>>, vector<1x128x128xf32>
    %72 = vector.shape_cast %71 : vector<1x128x128xf32> to vector<128x128xf32>
    %cst_40 = arith.constant dense<0.000000e+00> : vector<128x128xf32>
    %73 = tpu.matmul %70, %72, %cst_40 {dimension_numbers = #tpu.dot_dimension_numbers<[1], [0], [0], [1], [0, 0, 1, 1], [], []>} : vector<128x128xf32>, vector<128x128xf32>, vector<128x128xf32> -> vector<128x128xf32>
    %74 = arith.addf %68, %73 : vector<128x128xf32>
    %75 = vector.extract_strided_slice %25 {offsets = [8, 8, 0], sizes = [8, 16, 128], strides = [1, 1, 1]} : vector<16x24x128xf32> to vector<8x16x128xf32>
    %76 = vector.shape_cast %75 : vector<8x16x128xf32> to vector<128x128xf32>
    %c8 = arith.constant 8 : index
    %c0_41 = arith.constant 0 : index
    %c0_42 = arith.constant 0 : index
    %77 = vector.load %arg3[%c8, %c0_41, %c0_42] : memref<9x128x128xf32, #tpu.memory_space<vmem>>, vector<1x128x128xf32>
    %78 = vector.shape_cast %77 : vector<1x128x128xf32> to vector<128x128xf32>
    %cst_43 = arith.constant dense<0.000000e+00> : vector<128x128xf32>
    %79 = tpu.matmul %76, %78, %cst_43 {dimension_numbers = #tpu.dot_dimension_numbers<[1], [0], [0], [1], [0, 0, 1, 1], [], []>} : vector<128x128xf32>, vector<128x128xf32>, vector<128x128xf32> -> vector<128x128xf32>
    %80 = arith.addf %74, %79 : vector<128x128xf32>
    %81 = vector.shape_cast %80 : vector<128x128xf32> to vector<1x8x16x128xf32>
    %c0_44 = arith.constant 0 : index
    %c0_45 = arith.constant 0 : index
    %c0_46 = arith.constant 0 : index
    %c0_47 = arith.constant 0 : index
    %82 = vector.load %arg4[%c0_44, %c0_45, %c0_46, %c0_47] : memref<1x8x16x128xf32, #tpu.memory_space<vmem>>, vector<1x8x16x128xf32>
    tpu.vector_store %arg4[%c0_44, %c0_45, %c0_46, %c0_47], %81 {strides = array<i32>} : memref<1x8x16x128xf32, #tpu.memory_space<vmem>>, vector<1x8x16x128xf32>,
    %cst_48 = arith.constant dense<0.000000e+00> : vector<128xf32>
    %83 = vector.multi_reduction <add>, %80, %cst_48 [0] : vector<128x128xf32> to vector<128xf32>
    %84 = vector.shape_cast %83 : vector<128xf32> to vector<1x128xf32>
    %85 = arith.mulf %80, %80 : vector<128x128xf32>
    %cst_49 = arith.constant dense<0.000000e+00> : vector<128xf32>
    %86 = vector.multi_reduction <add>, %85, %cst_49 [0] : vector<128x128xf32> to vector<128xf32>
    %87 = vector.shape_cast %86 : vector<128xf32> to vector<1x128xf32>
    %88 = tpu.concatenate %84, %87 in 0 : vector<1x128xf32>, vector<1x128xf32> -> vector<2x128xf32>
    %89 = vector.shape_cast %88 : vector<2x128xf32> to vector<1x1x2x128xf32>
    %c0_50 = arith.constant 0 : index
    %c0_51 = arith.constant 0 : index
    %c0_52 = arith.constant 0 : index
    %c0_53 = arith.constant 0 : index
    %90 = vector.load %arg5[%c0_50, %c0_51, %c0_52, %c0_53] : memref<1x1x2x128xf32, #tpu.memory_space<vmem>>, vector<1x1x2x128xf32>
    tpu.vector_store %arg5[%c0_50, %c0_51, %c0_52, %c0_53], %89 {strides = array<i32>} : memref<1x1x2x128xf32, #tpu.memory_space<vmem>>, vector<1x1x2x128xf32>,
    return
  }
  func.func @transform_1(%arg0: i32, %arg1: i32) -> (i32, i32, i32) {
    %c0_i32 = arith.constant 0 : i32
    %c0_i32_0 = arith.constant 0 : i32
    %c0_i32_1 = arith.constant 0 : i32
    %c0_i32_2 = arith.constant 0 : i32
    return %c0_i32, %c0_i32_0, %c0_i32_1 : i32, i32, i32
  }
  func.func @transform_2(%arg0: i32, %arg1: i32) -> (i32, i32, i32, i32) {
    %c0_i32 = arith.constant 0 : i32
    %c0_i32_0 = arith.constant 0 : i32
    %c0_i32_1 = arith.constant 0 : i32
    return %arg0, %arg1, %c0_i32, %c0_i32_0 : i32, i32, i32, i32
  }
  func.func @transform_3(%arg0: i32, %arg1: i32) -> (i32, i32, i32, i32) {
    %c0_i32 = arith.constant 0 : i32
    %c0_i32_0 = arith.constant 0 : i32
    %c0_i32_1 = arith.constant 0 : i32
    return %arg0, %arg1, %c0_i32, %c0_i32_0 : i32, i32, i32, i32
  }
}

module attributes {stable_mosaic.version = 11 : i64} {
  func.func @_bn_act_kernel(%arg0: i32, %arg1: memref<256x128xf32, #tpu.memory_space<vmem>>, %arg2: memref<1x128xf32, #tpu.memory_space<vmem>>, %arg3: memref<1x128xf32, #tpu.memory_space<vmem>>, %arg4: memref<256x128xf32, #tpu.memory_space<vmem>>, %arg5: memref<256x128xf32, #tpu.memory_space<vmem>>) attributes {dimension_semantics = [#tpu.dimension_semantics<parallel>], iteration_bounds = array<i64: 2>, scalar_prefetch = 0 : i64, scratch_operands = 0 : i64, tpu.core_type = #tpu.core_type<tc>, window_params = [{transform_indices = @transform_0, window_bounds = array<i64: 256, 128>}, {pipeline_mode = #tpu.pipeline_mode<synchronous>, transform_indices = @transform_1, window_bounds = array<i64: 1, 128>}, {pipeline_mode = #tpu.pipeline_mode<synchronous>, transform_indices = @transform_2, window_bounds = array<i64: 1, 128>}, {transform_indices = @transform_3, window_bounds = array<i64: 256, 128>}, {transform_indices = @transform_4, window_bounds = array<i64: 256, 128>}]} {
    %c0 = arith.constant 0 : index
    %c0_0 = arith.constant 0 : index
    %0 = vector.load %arg1[%c0, %c0_0] : memref<256x128xf32, #tpu.memory_space<vmem>>, vector<256x128xf32>
    %c0_1 = arith.constant 0 : index
    %c0_2 = arith.constant 0 : index
    %1 = vector.load %arg2[%c0_1, %c0_2] : memref<1x128xf32, #tpu.memory_space<vmem>>, vector<1x128xf32>
    %2 = vector.broadcast %1 : vector<1x128xf32> to vector<256x128xf32>
    %3 = arith.mulf %0, %2 : vector<256x128xf32>
    %c0_3 = arith.constant 0 : index
    %c0_4 = arith.constant 0 : index
    %4 = vector.load %arg3[%c0_3, %c0_4] : memref<1x128xf32, #tpu.memory_space<vmem>>, vector<1x128xf32>
    %5 = vector.broadcast %4 : vector<1x128xf32> to vector<256x128xf32>
    %6 = arith.addf %3, %5 : vector<256x128xf32>
    %c0_5 = arith.constant 0 : index
    %c0_6 = arith.constant 0 : index
    %7 = vector.load %arg4[%c0_5, %c0_6] : memref<256x128xf32, #tpu.memory_space<vmem>>, vector<256x128xf32>
    %8 = arith.addf %6, %7 : vector<256x128xf32>
    %cst = arith.constant 0.000000e+00 : f32
    %9 = vector.broadcast %cst : f32 to vector<256x128xf32>
    %10 = arith.maximumf %8, %9 : vector<256x128xf32>
    %c0_7 = arith.constant 0 : index
    %c0_8 = arith.constant 0 : index
    %11 = vector.load %arg5[%c0_7, %c0_8] : memref<256x128xf32, #tpu.memory_space<vmem>>, vector<256x128xf32>
    tpu.vector_store %arg5[%c0_7, %c0_8], %10 {strides = array<i32>} : memref<256x128xf32, #tpu.memory_space<vmem>>, vector<256x128xf32>,
    return
  }
  func.func @transform_0(%arg0: i32) -> (i32, i32) {
    %c0_i32 = arith.constant 0 : i32
    %c0_i32_0 = arith.constant 0 : i32
    return %arg0, %c0_i32 : i32, i32
  }
  func.func @transform_1(%arg0: i32) -> (i32, i32) {
    %c0_i32 = arith.constant 0 : i32
    %c0_i32_0 = arith.constant 0 : i32
    %c0_i32_1 = arith.constant 0 : i32
    return %c0_i32, %c0_i32_0 : i32, i32
  }
  func.func @transform_2(%arg0: i32) -> (i32, i32) {
    %c0_i32 = arith.constant 0 : i32
    %c0_i32_0 = arith.constant 0 : i32
    %c0_i32_1 = arith.constant 0 : i32
    return %c0_i32, %c0_i32_0 : i32, i32
  }
  func.func @transform_3(%arg0: i32) -> (i32, i32) {
    %c0_i32 = arith.constant 0 : i32
    %c0_i32_0 = arith.constant 0 : i32
    return %arg0, %c0_i32 : i32, i32
  }
  func.func @transform_4(%arg0: i32) -> (i32, i32) {
    %c0_i32 = arith.constant 0 : i32
    %c0_i32_0 = arith.constant 0 : i32
    return %arg0, %c0_i32 : i32, i32
  }
}

module attributes {stable_mosaic.version = 11 : i64} {
  func.func @_bn_act_kernel(%arg0: i32, %arg1: memref<256x128xf32, #tpu.memory_space<vmem>>, %arg2: memref<1x128xf32, #tpu.memory_space<vmem>>, %arg3: memref<1x128xf32, #tpu.memory_space<vmem>>, %arg4: memref<256x128xf32, #tpu.memory_space<vmem>>, %arg5: memref<256x128xf32, #tpu.memory_space<vmem>>) attributes {dimension_semantics = [#tpu.dimension_semantics<parallel>], iteration_bounds = array<i64: 2>, scalar_prefetch = 0 : i64, scratch_operands = 0 : i64, tpu.core_type = #tpu.core_type<tc>, window_params = [{transform_indices = @transform_0, window_bounds = array<i64: 256, 128>}, {pipeline_mode = #tpu.pipeline_mode<synchronous>, transform_indices = @transform_1, window_bounds = array<i64: 1, 128>}, {pipeline_mode = #tpu.pipeline_mode<synchronous>, transform_indices = @transform_2, window_bounds = array<i64: 1, 128>}, {transform_indices = @transform_3, window_bounds = array<i64: 256, 128>}, {transform_indices = @transform_4, window_bounds = array<i64: 256, 128>}]} {
    %c0 = arith.constant 0 : index
    %c0_0 = arith.constant 0 : index
    %0 = vector.load %arg1[%c0, %c0_0] : memref<256x128xf32, #tpu.memory_space<vmem>>, vector<256x128xf32>
    %c0_1 = arith.constant 0 : index
    %c0_2 = arith.constant 0 : index
    %1 = vector.load %arg2[%c0_1, %c0_2] : memref<1x128xf32, #tpu.memory_space<vmem>>, vector<1x128xf32>
    %2 = vector.broadcast %1 : vector<1x128xf32> to vector<256x128xf32>
    %3 = arith.mulf %0, %2 : vector<256x128xf32>
    %c0_3 = arith.constant 0 : index
    %c0_4 = arith.constant 0 : index
    %4 = vector.load %arg3[%c0_3, %c0_4] : memref<1x128xf32, #tpu.memory_space<vmem>>, vector<1x128xf32>
    %5 = vector.broadcast %4 : vector<1x128xf32> to vector<256x128xf32>
    %6 = arith.addf %3, %5 : vector<256x128xf32>
    %c0_5 = arith.constant 0 : index
    %c0_6 = arith.constant 0 : index
    %7 = vector.load %arg4[%c0_5, %c0_6] : memref<256x128xf32, #tpu.memory_space<vmem>>, vector<256x128xf32>
    %8 = arith.addf %6, %7 : vector<256x128xf32>
    %cst = arith.constant 0.000000e+00 : f32
    %9 = vector.broadcast %cst : f32 to vector<256x128xf32>
    %10 = arith.maximumf %8, %9 : vector<256x128xf32>
    %c0_7 = arith.constant 0 : index
    %c0_8 = arith.constant 0 : index
    %11 = vector.load %arg5[%c0_7, %c0_8] : memref<256x128xf32, #tpu.memory_space<vmem>>, vector<256x128xf32>
    tpu.vector_store %arg5[%c0_7, %c0_8], %10 {strides = array<i32>} : memref<256x128xf32, #tpu.memory_space<vmem>>, vector<256x128xf32>,
    return
  }
  func.func @transform_0(%arg0: i32) -> (i32, i32) {
    %c0_i32 = arith.constant 0 : i32
    %c0_i32_0 = arith.constant 0 : i32
    return %arg0, %c0_i32 : i32, i32
  }
  func.func @transform_1(%arg0: i32) -> (i32, i32) {
    %c0_i32 = arith.constant 0 : i32
    %c0_i32_0 = arith.constant 0 : i32
    %c0_i32_1 = arith.constant 0 : i32
    return %c0_i32, %c0_i32_0 : i32, i32
  }
  func.func @transform_2(%arg0: i32) -> (i32, i32) {
    %c0_i32 = arith.constant 0 : i32
    %c0_i32_0 = arith.constant 0 : i32
    %c0_i32_1 = arith.constant 0 : i32
    return %c0_i32, %c0_i32_0 : i32, i32
  }
  func.func @transform_3(%arg0: i32) -> (i32, i32) {
    %c0_i32 = arith.constant 0 : i32
    %c0_i32_0 = arith.constant 0 : i32
    return %arg0, %c0_i32 : i32, i32
  }
  func.func @transform_4(%arg0: i32) -> (i32, i32) {
    %c0_i32 = arith.constant 0 : i32
    %c0_i32_0 = arith.constant 0 : i32
    return %arg0, %c0_i32 : i32, i32
  }
}

</mosaic_0001>

<bundles_post_ra>
// kernel: residual_block_mulgrid.17
= control target key start
LH: loop header
LB: loop body
LE: loop exit
PB: predicated region body
PF: predicated region fallthrough
CT: control target
= control target key end

     0   :  { %s453_s12 = smov 0   ;;  %s612_s0 = inlined_call_operand.vmem [shape: f32[512,128], index: 0, kind: input, shape index: {}]   ;;  %s613_s1 = inlined_call_operand.vmem [shape: f32[1,128], index: 1, kind: input, shape index: {}]   ;;  %s614_s2 = inlined_call_operand.vmem [shape: f32[1,128], index: 2, kind: input, shape index: {}]   ;;  %s615_s3 = inlined_call_operand.vmem [shape: f32[512,128], index: 3, kind: output, shape index: {}]  }
   0x1 LB: > { %s404_s13 = sadd.s32 4294967295, %s431_s12   ;;  %p408_p0 = scmp.ge.s32.totalorder %s431_s12, 1  ;;  %s431_s12 = sphi %s453_s12, %s13_s12  }
   0x2   : > { %p138_p1 = scmp.lt.s32.totalorder %s431_s12, 3 }
   0x4   : > { %p139_p2 = pnand %p408_p0, %p138_p1 }
   0x5   : > { %s409_s14 = sshll.u32 (!%p139_p2), %s404_s13, 5  ;;  %v464_v0 = vld [vmem:[%s613_s1] ss:$0 sm:$0xff] (!%p139_p2) }
   0x6   : > { %142 = sbr.rel (%p139_p2) target bundleno = 46 (0x2e), region = 32  ;;  %p163_p3 = scmp.lt.s32.totalorder (!%p139_p2), %s409_s14, 63  ;;  %v474_v1 = vld [vmem:[%s614_s2] ss:$0 sm:$0xff] (!%p139_p2) }
   0xd   : > { %s617_s14 = smov (!%p163_p3, %s409_s14), 63 }
   0xe   : > { %s410_s15 = sshll.u32 %s617_s14, 3 }
   0xf   : > { %s469_s20 = scalar_lea.vmem %s612_s0, %s410_s15  ;;  %s497_s25 = scalar_lea.vmem %s615_s3, %s410_s15 }
  0x10   : > { %v174_v2 = vld [vmem:[%s469_s20] sm:$0xff]  ;;  %v175_v3 = vld [vmem:[%s469_s20 + $0x8] sm:$0xff]  ;;  %v176_v4 = vld [vmem:[%s469_s20 + $0x10] sm:$0xff] }
  0x11   : > { %v213_v5 = vmul.f32 %v464_v0, %v174_v2  ;;  %v214_v6 = vmul.f32 %v464_v0, %v175_v3  ;;  %v215_v7 = vmul.f32 %v464_v0, %v176_v4  ;;  %v177_v8 = vld [vmem:[%s469_s20 + $0x18] sm:$0xff]  ;;  %v178_v9 = vld [vmem:[%s469_s20 + $0x20] sm:$0xff]  ;;  %v179_v10 = vld [vmem:[%s469_s20 + $0x28] sm:$0xff] }
  0x12   : > { %v216_v11 = vmul.f32 %v464_v0, %v177_v8  ;;  %v217_v12 = vmul.f32 %v464_v0, %v178_v9  ;;  %v218_v13 = vmul.f32 %v464_v0, %v179_v10  ;;  %v180_v14 = vld [vmem:[%s469_s20 + $0x30] sm:$0xff]  ;;  %v181_v15 = vld [vmem:[%s469_s20 + $0x38] sm:$0xff]  ;;  %v182_v24 = vld [vmem:[%s469_s20 + $0x40] sm:$0xff] }
  0x13   : > { %v252_v16 = vadd.f32 %v474_v1, %v213_v5  ;;  %v253_v17 = vadd.f32 %v474_v1, %v214_v6  ;;  %v254_v18 = vadd.f32 %v474_v1, %v215_v7  ;;  %v219_v19 = vmul.f32 %v464_v0, %v180_v14  ;;  %v183_v25 = vld [vmem:[%s469_s20 + $0x48] sm:$0xff]  ;;  %v184_v26 = vld [vmem:[%s469_s20 + $0x50] sm:$0xff]  ;;  %v185_v31 = vld [vmem:[%s469_s20 + $0x58] sm:$0xff] }
  0x14   : > { %v255_v20 = vadd.f32 %v474_v1, %v216_v11  ;;  %v256_v21 = vadd.f32 %v474_v1, %v217_v12  ;;  %v257_v22 = vadd.f32 %v474_v1, %v218_v13  ;;  %v220_v23 = vmul.f32 %v464_v0, %v181_v15  ;;  %v186_v32 = vld [vmem:[%s469_s20 + $0x60] sm:$0xff]  ;;  %v187_v33 = vld [vmem:[%s469_s20 + $0x68] sm:$0xff]  ;;  %v188_v38 = vld [vmem:[%s469_s20 + $0x70] sm:$0xff] }
  0x15   : > { %v284_v27 = vmax.f32 %v252_v16, 0.0  ;;  %v285_v28 = vmax.f32 %v253_v17, 0.0  ;;  %v286_v29 = vmax.f32 %v254_v18, 0.0  ;;  %v258_v30 = vadd.f32 %v474_v1, %v219_v19  ;;  %v189_v43 = vld [vmem:[%s469_s20 + $0x78] sm:$0xff]  ;;  %v190_v56 = vld [vmem:[%s469_s20 + $0x80] sm:$0xff]  ;;  %v191_v57 = vld [vmem:[%s469_s20 + $0x88] sm:$0xff] }
  0x16   : > { %v287_v34 = vmax.f32 %v255_v20, 0.0  ;;  %v288_v35 = vmax.f32 %v256_v21, 0.0  ;;  %v289_v36 = vmax.f32 %v257_v22, 0.0  ;;  %v259_v37 = vadd.f32 %v474_v1, %v220_v23  ;;  %v192_v58 = vld [vmem:[%s469_s20 + $0x90] sm:$0xff]  ;;  %v193_v63 = vld [vmem:[%s469_s20 + $0x98] sm:$0xff]  ;;  %v194_v2 = vld [vmem:[%s469_s20 + $0xa0] sm:$0xff] }
  0x17   : > { %316 = vst [vmem:[%s497_s25] sm:$0xff] %v284_v27  ;;  %317 = vst [vmem:[%s497_s25 + $0x8] sm:$0xff] %v285_v28  ;;  %v290_v39 = vmax.f32 %v258_v30, 0.0  ;;  %v221_v40 = vmul.f32 %v464_v0, %v182_v24  ;;  %v222_v41 = vmul.f32 %v464_v0, %v183_v25  ;;  %v223_v42 = vmul.f32 %v464_v0, %v184_v26  ;;  %v195_v3 = vld [vmem:[%s469_s20 + $0xa8] sm:$0xff]  ;;  %v196_v8 = vld [vmem:[%s469_s20 + $0xb0] sm:$0xff] }
  0x18   : > { %318 = vst [vmem:[%s497_s25 + $0x10] sm:$0xff] %v286_v29  ;;  %319 = vst [vmem:[%s497_s25 + $0x18] sm:$0xff] %v287_v34  ;;  %v291_v44 = vmax.f32 %v259_v37, 0.0  ;;  %v224_v45 = vmul.f32 %v464_v0, %v185_v31  ;;  %v225_v46 = vmul.f32 %v464_v0, %v186_v32  ;;  %v226_v47 = vmul.f32 %v464_v0, %v187_v33  ;;  %v197_v13 = vld [vmem:[%s469_s20 + $0xb8] sm:$0xff]  ;;  %v198_v26 = vld [vmem:[%s469_s20 + $0xc0] sm:$0xff] }
  0x19   : > { %320 = vst [vmem:[%s497_s25 + $0x20] sm:$0xff] %v288_v35  ;;  %321 = vst [vmem:[%s497_s25 + $0x28] sm:$0xff] %v289_v36  ;;  %v260_v48 = vadd.f32 %v474_v1, %v221_v40  ;;  %v261_v49 = vadd.f32 %v474_v1, %v222_v41  ;;  %v262_v50 = vadd.f32 %v474_v1, %v223_v42  ;;  %v199_v27 = vld [vmem:[%s469_s20 + $0xc8] sm:$0xff]  ;;  %v200_v28 = vld [vmem:[%s469_s20 + $0xd0] sm:$0xff] }
  0x1a   : > { %322 = vst [vmem:[%s497_s25 + $0x30] sm:$0xff] %v290_v39  ;;  %v227_v51 = vmul.f32 %v464_v0, %v188_v38  ;;  %323 = vst [vmem:[%s497_s25 + $0x38] sm:$0xff] %v291_v44  ;;  %v263_v52 = vadd.f32 %v474_v1, %v224_v45  ;;  %v264_v53 = vadd.f32 %v474_v1, %v225_v46  ;;  %v201_v33 = vld [vmem:[%s469_s20 + $0xd8] sm:$0xff]  ;;  %v202_v34 = vld [vmem:[%s469_s20 + $0xe0] sm:$0xff] }
  0x1b   : > { %v265_v54 = vadd.f32 %v474_v1, %v226_v47  ;;  %v228_v55 = vmul.f32 %v464_v0, %v189_v43  ;;  %v292_v59 = vmax.f32 %v260_v48, 0.0  ;;  %v293_v60 = vmax.f32 %v261_v49, 0.0  ;;  %v203_v35 = vld [vmem:[%s469_s20 + $0xe8] sm:$0xff]  ;;  %v204_v40 = vld [vmem:[%s469_s20 + $0xf0] sm:$0xff]  ;;  %v205_v45 = vld [vmem:[%s469_s20 + $0xf8] sm:$0xff] }
  0x1c   : > { %v294_v61 = vmax.f32 %v262_v50, 0.0  ;;  %v266_v62 = vadd.f32 %v474_v1, %v227_v51  ;;  %v295_v4 = vmax.f32 %v263_v52, 0.0  ;;  %v296_v5 = vmax.f32 %v264_v53, 0.0 }
  0x1d   : > { %v297_v6 = vmax.f32 %v265_v54, 0.0  ;;  %v267_v7 = vadd.f32 %v474_v1, %v228_v55  ;;  %324 = vst [vmem:[%s497_s25 + $0x40] sm:$0xff] %v292_v59  ;;  %325 = vst [vmem:[%s497_s25 + $0x48] sm:$0xff] %v293_v60  ;;  %v229_v10 = vmul.f32 %v464_v0, %v190_v56  ;;  %v230_v11 = vmul.f32 %v464_v0, %v191_v57 }
  0x1e   : > { %326 = vst [vmem:[%s497_s25 + $0x50] sm:$0xff] %v294_v61  ;;  %v298_v9 = vmax.f32 %v266_v62, 0.0  ;;  %v231_v12 = vmul.f32 %v464_v0, %v192_v58  ;;  %327 = vst [vmem:[%s497_s25 + $0x58] sm:$0xff] %v295_v4  ;;  %v232_v15 = vmul.f32 %v464_v0, %v193_v63  ;;  %v233_v16 = vmul.f32 %v464_v0, %v194_v2 }
  0x1f   : > { %328 = vst [vmem:[%s497_s25 + $0x60] sm:$0xff] %v296_v5  ;;  %329 = vst [vmem:[%s497_s25 + $0x68] sm:$0xff] %v297_v6  ;;  %v299_v14 = vmax.f32 %v267_v7, 0.0  ;;  %v234_v17 = vmul.f32 %v464_v0, %v195_v3  ;;  %v268_v18 = vadd.f32 %v474_v1, %v229_v10  ;;  %v269_v19 = vadd.f32 %v474_v1, %v230_v11 }
  0x20   : > { %330 = vst [vmem:[%s497_s25 + $0x70] sm:$0xff] %v298_v9  ;;  %v270_v20 = vadd.f32 %v474_v1, %v231_v12  ;;  %v235_v21 = vmul.f32 %v464_v0, %v196_v8  ;;  %v271_v22 = vadd.f32 %v474_v1, %v232_v15  ;;  %v272_v23 = vadd.f32 %v474_v1, %v233_v16 }
  0x21   : > { %331 = vst [vmem:[%s497_s25 + $0x78] sm:$0xff] %v299_v14  ;;  %v273_v24 = vadd.f32 %v474_v1, %v234_v17  ;;  %v236_v25 = vmul.f32 %v464_v0, %v197_v13  ;;  %v300_v29 = vmax.f32 %v268_v18, 0.0  ;;  %v301_v30 = vmax.f32 %v269_v19, 0.0 }
  0x22   : > { %v302_v31 = vmax.f32 %v270_v20, 0.0  ;;  %v274_v32 = vadd.f32 %v474_v1, %v235_v21  ;;  %v303_v36 = vmax.f32 %v271_v22, 0.0  ;;  %v304_v37 = vmax.f32 %v272_v23, 0.0 }
  0x23   : > { %v305_v38 = vmax.f32 %v273_v24, 0.0  ;;  %v275_v39 = vadd.f32 %v474_v1, %v236_v25  ;;  %332 = vst [vmem:[%s497_s25 + $0x80] sm:$0xff] %v300_v29  ;;  %333 = vst [vmem:[%s497_s25 + $0x88] sm:$0xff] %v301_v30  ;;  %v237_v42 = vmul.f32 %v464_v0, %v198_v26  ;;  %v238_v43 = vmul.f32 %v464_v0, %v199_v27 }
  0x24   : > { %334 = vst [vmem:[%s497_s25 + $0x90] sm:$0xff] %v302_v31  ;;  %v306_v41 = vmax.f32 %v274_v32, 0.0  ;;  %v239_v44 = vmul.f32 %v464_v0, %v200_v28  ;;  %335 = vst [vmem:[%s497_s25 + $0x98] sm:$0xff] %v303_v36  ;;  %v240_v47 = vmul.f32 %v464_v0, %v201_v33  ;;  %v241_v48 = vmul.f32 %v464_v0, %v202_v34 }
  0x25   : > { %336 = vst [vmem:[%s497_s25 + $0xa0] sm:$0xff] %v304_v37  ;;  %337 = vst [vmem:[%s497_s25 + $0xa8] sm:$0xff] %v305_v38  ;;  %v307_v46 = vmax.f32 %v275_v39, 0.0  ;;  %v242_v49 = vmul.f32 %v464_v0, %v203_v35  ;;  %v276_v50 = vadd.f32 %v474_v1, %v237_v42  ;;  %v277_v51 = vadd.f32 %v474_v1, %v238_v43 }
  0x26   : > { %338 = vst [vmem:[%s497_s25 + $0xb0] sm:$0xff] %v306_v41  ;;  %v278_v52 = vadd.f32 %v474_v1, %v239_v44  ;;  %v243_v53 = vmul.f32 %v464_v0, %v204_v40  ;;  %v279_v54 = vadd.f32 %v474_v1, %v240_v47  ;;  %v280_v55 = vadd.f32 %v474_v1, %v241_v48 }
  0x27   : > { %339 = vst [vmem:[%s497_s25 + $0xb8] sm:$0xff] %v307_v46  ;;  %v281_v56 = vadd.f32 %v474_v1, %v242_v49  ;;  %v244_v57 = vmul.f32 %v464_v0, %v205_v45  ;;  %v308_v58 = vmax.f32 %v276_v50, 0.0  ;;  %v309_v59 = vmax.f32 %v277_v51, 0.0 }
  0x28   : > { %v310_v60 = vmax.f32 %v278_v52, 0.0  ;;  %v282_v61 = vadd.f32 %v474_v1, %v243_v53  ;;  %v311_v62 = vmax.f32 %v279_v54, 0.0  ;;  %v312_v63 = vmax.f32 %v280_v55, 0.0 }
  0x29   : > { %v313_v2 = vmax.f32 %v281_v56, 0.0  ;;  %v283_v3 = vadd.f32 %v474_v1, %v244_v57  ;;  %340 = vst [vmem:[%s497_s25 + $0xc0] sm:$0xff] %v308_v58  ;;  %341 = vst [vmem:[%s497_s25 + $0xc8] sm:$0xff] %v309_v59 }
  0x2a   : > { %342 = vst [vmem:[%s497_s25 + $0xd0] sm:$0xff] %v310_v60  ;;  %v314_v4 = vmax.f32 %v282_v61, 0.0  ;;  %343 = vst [vmem:[%s497_s25 + $0xd8] sm:$0xff] %v311_v62 }
  0x2b   : > { %344 = vst [vmem:[%s497_s25 + $0xe0] sm:$0xff] %v312_v63  ;;  %345 = vst [vmem:[%s497_s25 + $0xe8] sm:$0xff] %v313_v2  ;;  %v315_v0 = vmax.f32 %v283_v3, 0.0 }
  0x2c   : > { %346 = vst [vmem:[%s497_s25 + $0xf0] sm:$0xff] %v314_v4 }
  0x2d   : > { %347 = vst [vmem:[%s497_s25 + $0xf8] sm:$0xff] %v315_v0 }
  0x2e PF: > { %s13_s12 = sadd.s32 1, %s431_s12  }
  0x2f   : > { %p10_p4 = scmp.ge.s32.totalorder %s13_s12, 4  }
  0x31   :  { %12 = sbr.rel (!%p10_p4) target bundleno = 1 (0x1), region = 62 }

// kernel: residual_block_mulgrid.16
= control target key start
LH: loop header
LB: loop body
LE: loop exit
PB: predicated region body
PF: predicated region fallthrough
CT: control target
= control target key end

     0   :  { %s1106_s12 = smov 0   ;;  %s1405_s0 = inlined_call_operand.vmem [shape: f32[512,128], index: 0, kind: input, shape index: {}]   ;;  %s1406_s1 = inlined_call_operand.vmem [shape: f32[128,128], index: 1, kind: input, shape index: {}]   ;;  %s1407_s2 = inlined_call_operand.vmem [shape: f32[512,128], index: 2, kind: output, shape index: {0}]   ;;  %s1408_s3 = inlined_call_operand.vmem [shape: f32[2,2,128], index: 3, kind: output, shape index: {1}]  }
   0x1 LB: > { %s1112_s13 = sadd.s32 4294967295, %s1084_s12   ;;  %p885_p0 = scmp.ge.s32.totalorder %s1084_s12, 1  ;;  %s1084_s12 = sphi %s1106_s12, %s14_s12  }
   0x2   : > { %p141_p1 = scmp.lt.s32.totalorder %s1084_s12, 3 }
   0x4   : > { %p142_p2 = pnand %p885_p0, %p141_p1 }
   0x5   : > { %v217_v0 = vld [vmem:[%s1406_s1] sm:$0xff] (!%p142_p2)  ;;  %v218_v1 = vld [vmem:[%s1406_s1 + $0x8] sm:$0xff] (!%p142_p2)  ;;  %v219_v2 = vld [vmem:[%s1406_s1 + $0x10] sm:$0xff] (!%p142_p2)  ;;  %s886_s20 = sshll.u32 (!%p142_p2), %s1112_s13, 5  ;;  %v491_v56 = vlaneseq (!%p142_p2)  ;;  %s891_s28 = sshll.u32 (!%p142_p2), %s1112_s13, 8 }
   0x6   : > { %145 = sbr.rel (%p142_p2) target bundleno = 334 (0x14e), region = 28  ;;  %v1022_v3 = vpack.c.bf16 (!%p142_p2), %v218_v1, %v217_v0  ;;  %v220_v4 = vld [vmem:[%s1406_s1 + $0x18] sm:$0xff] (!%p142_p2)  ;;  %p170_p3 = scmp.lt.s32.totalorder (!%p142_p2), %s886_s20, 63  ;;  %v221_v6 = vld [vmem:[%s1406_s1 + $0x20] sm:$0xff] (!%p142_p2)  ;;  %v222_v7 = vld [vmem:[%s1406_s1 + $0x28] sm:$0xff] (!%p142_p2)  ;;  %v1211_v59 = vstv (!%p142_p2), %s891_s28 }
   0x7   : > { %v1026_v5 = vpack.c.bf16 (!%p142_p2), %v220_v4, %v219_v2  ;;  %v1030_v8 = vpack.c.bf16 (!%p142_p2), %v222_v7, %v221_v6  ;;  %v223_v9 = vld [vmem:[%s1406_s1 + $0x30] sm:$0xff] (!%p142_p2)  ;;  %v224_v10 = vld [vmem:[%s1406_s1 + $0x38] sm:$0xff] (!%p142_p2)  ;;  %v225_v13 = vld [vmem:[%s1406_s1 + $0x40] sm:$0xff] (!%p142_p2)  ;;  %v1207_v57 = vshrl.u32 (!%p142_p2), %v491_v56, 7  ;;  %p181_p4 = scmp.lt.s32.totalorder (!%p142_p2), %s1112_s13, 1 }
   0x8   : > { %1023 = vmatprep.subr.bf16.mxu0 (!%p142_p2), %v1022_v3  ;;  %1054 = vmatprep.subr.bf16.mxu1 (!%p142_p2), %v1022_v3  ;;  %v1034_v12 = vpack.c.bf16 (!%p142_p2), %v224_v10, %v223_v9  ;;  %v226_v14 = vld [vmem:[%s1406_s1 + $0x48] sm:$0xff] (!%p142_p2)  ;;  %v227_v17 = vld [vmem:[%s1406_s1 + $0x50] sm:$0xff] (!%p142_p2)  ;;  %v228_v18 = vld [vmem:[%s1406_s1 + $0x58] sm:$0xff] (!%p142_p2) }
   0x9   : > { %1025 = vmatpush3.bf16.msra.mxu0 (!%p142_p2), %v1022_v3  ;;  %1062 = vmatpush3.bf16.msra.mxu1 (!%p142_p2), %v1022_v3  ;;  %v1038_v16 = vpack.c.bf16 (!%p142_p2), %v226_v14, %v225_v13  ;;  %v1042_v19 = vpack.c.bf16 (!%p142_p2), %v228_v18, %v227_v17  ;;  %v229_v20 = vld [vmem:[%s1406_s1 + $0x60] sm:$0xff] (!%p142_p2)  ;;  %v230_v21 = vld [vmem:[%s1406_s1 + $0x68] sm:$0xff] (!%p142_p2)  ;;  %v231_v23 = vld [vmem:[%s1406_s1 + $0x70] sm:$0xff] (!%p142_p2)  ;;  %v493_v58 = vadd.s32 (!%p142_p2), 8, %v1207_v57  ;;  %v495_v61 = vadd.s32 (!%p142_p2), 24, %v1207_v57 }
   0xa   : > { %1027 = vmatprep.subr.bf16.mxu0 (!%p142_p2), %v1026_v5  ;;  %1055 = vmatprep.subr.bf16.mxu1 (!%p142_p2), %v1026_v5  ;;  %v1046_v22 = vpack.c.bf16 (!%p142_p2), %v230_v21, %v229_v20  ;;  %v232_v24 = vld [vmem:[%s1406_s1 + $0x78] sm:$0xff] (!%p142_p2)  ;;  %v494_v62 = vadd.s32 (!%p142_p2), 16, %v1207_v57  ;;  %v525_v63 = vadd.s32 (!%p142_p2), %v1211_v59, %v1207_v57  ;;  %v497_v0 = vadd.s32 (!%p142_p2), 40, %v1207_v57 }
   0xb   : > { %v1050_v25 = vpack.c.bf16 (!%p142_p2), %v232_v24, %v231_v23  ;;  %v526_v60 = vadd.s32 (!%p142_p2), %v1211_v59, %v493_v58  ;;  %v528_v1 = vadd.s32 (!%p142_p2), %v1211_v59, %v495_v61  ;;  %v496_v3 = vadd.s32 (!%p142_p2), 32, %v1207_v57 }
   0xc   : > { %v527_v2 = vadd.s32 (!%p142_p2), %v1211_v59, %v494_v62  ;;  %vm557_vm1 = vcmp.lt.s32.totalorder (!%p142_p2), %v525_v63, 512  ;;  %v501_v24 = vadd.s32 (!%p142_p2), 72, %v1207_v57  ;;  %v504_v63 = vadd.s32 (!%p142_p2), 96, %v1207_v57 }
   0xd   : > { %s1410_s20 = smov (!%p170_p3, %s886_s20), 63  ;;  %1029 = vmatpush3.bf16.msra.mxu0 %v1026_v5  ;;  %1063 = vmatpush3.bf16.msra.mxu1 %v1026_v5  ;;  %vm558_vm0 = vcmp.lt.s32.totalorder %v526_v60, 512  ;;  %v499_v5 = vadd.s32 56, %v1207_v57  ;;  %vm560_vm2 = vcmp.lt.s32.totalorder %v528_v1, 512  ;;  %s1412_s13 = smov (!%p181_p4, %s1112_s13), 1 }
   0xe   : > { %s887_s27 = sshll.u32 %s1410_s20, 3  ;;  %1031 = vmatprep.subr.bf16.mxu0 %v1030_v8  ;;  %1056 = vmatprep.subr.bf16.mxu1 %v1030_v8  ;;  %vm559_vm3 = vcmp.lt.s32.totalorder %v527_v2, 512  ;;  %v507_v2 = vadd.s32 120, %v1207_v57  ;;  %s890_s20 = sshll.u32 %s1412_s13, 1 }
   0xf   : > { %s1149_s7 = scalar_lea.vmem %s1405_s0, %s887_s27  ;;  %s1224_s4 = scalar_lea.vmem %s1407_s2, %s887_s27  ;;  %v532_v18 = vadd.s32 %v1211_v59, %v499_v5 }
  0x10   : > { %v185_v11 = vld [vmem:[%s1149_s7] sm:$0xff]  ;;  %v186_v26 = vld [vmem:[%s1149_s7 + $0x8] sm:$0xff]  ;;  %v187_v27 = vld [vmem:[%s1149_s7 + $0x10] sm:$0xff]  ;;  %s184_s6 = scalar_lea.vmem %s1408_s3, %s890_s20 }
  0x11   : > { %974 = vmatprep.mubr.f32.mxu0 %v185_v11  ;;  %1033 = vmatpush3.bf16.msra.mxu0 %v1030_v8  ;;  %v201_v15 = vld [vmem:[%s1149_s7 + $0x80] sm:$0xff]  ;;  %v202_v28 = vld [vmem:[%s1149_s7 + $0x88] sm:$0xff]  ;;  %v203_v29 = vld [vmem:[%s1149_s7 + $0x90] sm:$0xff]  ;;  %vm564_vm6 = vcmp.lt.s32.totalorder %v532_v18, 512  ;;  %v537_v18 = vadd.s32 %v1211_v59, %v504_v63 }
  0x12   : > { %1035 = vmatprep.subr.bf16.mxu0 %v1034_v12  ;;  %1064 = vmatpush3.bf16.msra.mxu1 %v1030_v8  ;;  %v188_v30 = vld [vmem:[%s1149_s7 + $0x18] sm:$0xff]  ;;  %v189_v31 = vld [vmem:[%s1149_s7 + $0x20] sm:$0xff]  ;;  %v190_v34 = vld [vmem:[%s1149_s7 + $0x28] sm:$0xff]  ;;  %v530_v8 = vadd.s32 %v1211_v59, %v497_v0 }
  0x13   : > { %1057 = vmatprep.subr.bf16.mxu1 %v1034_v12  ;;  %998 = vmatprep.mubr.f32.mxu1 %v201_v15  ;;  %v204_v32 = vld [vmem:[%s1149_s7 + $0x98] sm:$0xff]  ;;  %v205_v33 = vld [vmem:[%s1149_s7 + $0xa0] sm:$0xff]  ;;  %v191_v35 = vld [vmem:[%s1149_s7 + $0x30] sm:$0xff]  ;;  %v529_v15 = vadd.s32 %v1211_v59, %v496_v3  ;;  %vm569_vm13 = vcmp.lt.s32.totalorder %v537_v18, 512 }
  0x14   : > { %v206_v36 = vld [vmem:[%s1149_s7 + $0xa8] sm:$0xff]  ;;  %v207_v37 = vld [vmem:[%s1149_s7 + $0xb0] sm:$0xff]  ;;  %v192_v38 = vld [vmem:[%s1149_s7 + $0x38] sm:$0xff]  ;;  %vm562_vm4 = vcmp.lt.s32.totalorder %v530_v8, 512 }
  0x15   : > { %1037 = vmatpush3.bf16.msra.mxu0 %v1034_v12  ;;  %v193_v39 = vld [vmem:[%s1149_s7 + $0x40] sm:$0xff]  ;;  %v208_v40 = vld [vmem:[%s1149_s7 + $0xb8] sm:$0xff]  ;;  %v194_v42 = vld [vmem:[%s1149_s7 + $0x48] sm:$0xff]  ;;  %vm561_vm5 = vcmp.lt.s32.totalorder %v529_v15, 512 }
  0x16   : > { %1039 = vmatprep.subr.bf16.mxu0 %v1038_v16  ;;  %1065 = vmatpush3.bf16.msra.mxu1 %v1034_v12  ;;  %v209_v41 = vld [vmem:[%s1149_s7 + $0xc0] sm:$0xff]  ;;  %v195_v43 = vld [vmem:[%s1149_s7 + $0x50] sm:$0xff]  ;;  %v210_v44 = vld [vmem:[%s1149_s7 + $0xc8] sm:$0xff] }
  0x17   : > { %1058 = vmatprep.subr.bf16.mxu1 %v1038_v16  ;;  %v211_v45 = vld [vmem:[%s1149_s7 + $0xd0] sm:$0xff]  ;;  %v196_v46 = vld [vmem:[%s1149_s7 + $0x58] sm:$0xff]  ;;  %v197_v47 = vld [vmem:[%s1149_s7 + $0x60] sm:$0xff] }
  0x18   : > { %v212_v48 = vld [vmem:[%s1149_s7 + $0xd8] sm:$0xff]  ;;  %v213_v49 = vld [vmem:[%s1149_s7 + $0xe0] sm:$0xff]  ;;  %v198_v50 = vld [vmem:[%s1149_s7 + $0x68] sm:$0xff] }
  0x19   : > { %1041 = vmatpush3.bf16.msra.mxu0 %v1038_v16  ;;  %v199_v51 = vld [vmem:[%s1149_s7 + $0x70] sm:$0xff]  ;;  %v214_v52 = vld [vmem:[%s1149_s7 + $0xe8] sm:$0xff]  ;;  %v200_v54 = vld [vmem:[%s1149_s7 + $0x78] sm:$0xff] }
  0x1a   : > { %1043 = vmatprep.subr.bf16.mxu0 %v1042_v19  ;;  %1066 = vmatpush3.bf16.msra.mxu1 %v1038_v16  ;;  %v215_v53 = vld [vmem:[%s1149_s7 + $0xf0] sm:$0xff]  ;;  %v216_v55 = vld [vmem:[%s1149_s7 + $0xf8] sm:$0xff]  ;;  %v498_v16 = vadd.s32 48, %v1207_v57 }
  0x1b   : > { %1059 = vmatprep.subr.bf16.mxu1 %v1042_v19 }
  0x1d   : > { %1045 = vmatpush3.bf16.msra.mxu0 %v1042_v19 }
  0x1e   : > { %1047 = vmatprep.subr.bf16.mxu0 %v1046_v22  ;;  %1067 = vmatpush3.bf16.msra.mxu1 %v1042_v19 }
  0x1f   : > { %1060 = vmatprep.subr.bf16.mxu1 %v1046_v22 }
  0x21   : > { %1049 = vmatpush3.bf16.msra.mxu0 %v1046_v22 }
  0x22   : > { %1051 = vmatprep.subr.bf16.mxu0 %v1050_v25  ;;  %1068 = vmatpush3.bf16.msra.mxu1 %v1046_v22 }
  0x23   : > { %1061 = vmatprep.subr.bf16.mxu1 %v1050_v25 }
  0x25   : > { %1053 = vmatpush3.bf16.msra.mxu0 %v1050_v25 }
  0x26   : > { %1069 = vmatpush3.bf16.msra.mxu1 %v1050_v25  ;;  %v500_v25 = vadd.s32 64, %v1207_v57 }
  0x28   : > { %975 = vmatmul.mubr.f32.vlgmr.msra.gmra.mrb[0].mxu0 %v186_v26 }
  0x29   : > { %977 = vmatprep.mubr.f32.mxu0 %v187_v27  ;;  %999 = vmatmul.mubr.f32.vlgmr.msra.gmra.mrb[0].mxu1 %v202_v28 }
  0x2a   : > { %1001 = vmatprep.mubr.f32.mxu1 %v203_v29  ;;  %v531_v29 = vadd.s32 %v1211_v59, %v498_v16 }
  0x2c   : > { %978 = vmatmul.mubr.f32.gmra.mrb[2].mxu0 %v188_v30  ;;  %vm563_vm7 = vcmp.lt.s32.totalorder %v531_v29, 512 }
  0x2d   : > { %980 = vmatprep.mubr.f32.mxu0 %v189_v31  ;;  %1002 = vmatmul.mubr.f32.gmra.mrb[2].mxu1 %v204_v32  ;;  %v503_v31 = vadd.s32 88, %v1207_v57 }
  0x2e   : > { %1004 = vmatprep.mubr.f32.mxu1 %v205_v33 }
  0x30   : > { %981 = vmatmul.mubr.f32.gmra.mrb[4].mxu0 %v190_v34 }
  0x31   : > { %983 = vmatprep.mubr.f32.mxu0 %v191_v35  ;;  %1005 = vmatmul.mubr.f32.gmra.mrb[4].mxu1 %v206_v36  ;;  %v502_v36 = vadd.s32 80, %v1207_v57 }
  0x32   : > { %1007 = vmatprep.mubr.f32.mxu1 %v207_v37 }
  0x34   : > { %984 = vmatmul.mubr.f32.gmra.mrb[6].mxu0 %v192_v38 }
  0x35   : > { %986 = vmatprep.mubr.f32.mxu0 %v193_v39  ;;  %1008 = vmatmul.mubr.f32.gmra.mrb[6].mxu1 %v208_v40  ;;  %v534_v40 = vadd.s32 %v1211_v59, %v501_v24 }
  0x36   : > { %1010 = vmatprep.mubr.f32.mxu1 %v209_v41  ;;  %v533_v41 = vadd.s32 %v1211_v59, %v500_v25 }
  0x37   : > { %vm566_vm8 = vcmp.lt.s32.totalorder %v534_v40, 512 }
  0x38   : > { %987 = vmatmul.mubr.f32.gmra.mrb[8].mxu0 %v194_v42  ;;  %vm565_vm9 = vcmp.lt.s32.totalorder %v533_v41, 512  ;;  %v511_v41 = vadd.s32 152, %v1207_v57 }
  0x39   : > { %989 = vmatprep.mubr.f32.mxu0 %v195_v43  ;;  %1011 = vmatmul.mubr.f32.gmra.mrb[8].mxu1 %v210_v44 }
  0x3a   : > { %1013 = vmatprep.mubr.f32.mxu1 %v211_v45 }
  0x3c   : > { %990 = vmatmul.mubr.f32.gmra.mrb[10].mxu0 %v196_v46 }
  0x3d   : > { %992 = vmatprep.mubr.f32.mxu0 %v197_v47  ;;  %1014 = vmatmul.mubr.f32.gmra.mrb[10].mxu1 %v212_v48  ;;  %v536_v47 = vadd.s32 %v1211_v59, %v503_v31  ;;  %v505_v48 = vadd.s32 104, %v1207_v57 }
  0x3e   : > { %1016 = vmatprep.mubr.f32.mxu1 %v213_v49 }
  0x3f   : > { %vm568_vm10 = vcmp.lt.s32.totalorder %v536_v47, 512  ;;  %v538_v1 = vadd.s32 %v1211_v59, %v505_v48 }
  0x40   : > { %993 = vmatmul.mubr.f32.gmra.mrb[12].mxu0 %v198_v50 }
  0x41   : > { %995 = vmatprep.mubr.f32.mxu0 %v199_v51  ;;  %1017 = vmatmul.mubr.f32.gmra.mrb[12].mxu1 %v214_v52  ;;  %vm570_vm12 = vcmp.lt.s32.totalorder %v538_v1, 512 }
  0x42   : > { %1019 = vmatprep.mubr.f32.mxu1 %v215_v53  ;;  %v535_v53 = vadd.s32 %v1211_v59, %v502_v36 }
  0x44   : > { %996 = vmatmul.mubr.f32.gmra.mrb[14].mxu0 %v200_v54  ;;  %vm567_vm11 = vcmp.lt.s32.totalorder %v535_v53, 512 }
  0x45   : > { %1020 = vmatmul.mubr.f32.gmra.mrb[14].mxu1 %v216_v55 }
  0xfb   : > { %v976_v4 = vpop.f32.mrb[0].mxu0 }
  0xfc   : > { %459 = vst [vmem:[%s1224_s4 + $0x8] sm:$0xff] %v976_v4  ;;  %v654_v6 = vsel %vm558_vm0, %v976_v4, 0.0  ;;  %v299_v7 = vpop.f32.mrb[1].mxu0  ;;  %v1232_v9 = vpop.f32.mrb[0].mxu1 }
  0xfd   : > { %v723_v10 = vmul.f32 %v654_v6, %v654_v6  ;;  %458 = vst [vmem:[%s1224_s4] sm:$0xff] %v299_v7  ;;  %v653_v11 = vsel %vm557_vm1, %v299_v7, 0.0  ;;  %475 = vst [vmem:[%s1224_s4 + $0x88] sm:$0xff] %v1232_v9  ;;  %v1237_v12 = vpop.f32.mrb[1].mxu1 }
  0xfe   : > { %v685_v13 = vadd.f32 %v654_v6, %v653_v11  ;;  %v722_v14 = vmul.f32 %v653_v11, %v653_v11  ;;  %474 = vst [vmem:[%s1224_s4 + $0x80] sm:$0xff] %v1237_v12  ;;  %v506_v11 = vadd.s32 112, %v1207_v57 }
  0xff   : > { %v979_v17 = vpop.f32.mrb[2].mxu0 }
 0x100   : > { %v754_v19 = vadd.f32 %v723_v10, %v722_v14  ;;  %461 = vst [vmem:[%s1224_s4 + $0x18] sm:$0xff] %v979_v17  ;;  %v309_v20 = vpop.f32.mrb[3].mxu0  ;;  %v1245_v21 = vpop.f32.mrb[2].mxu1  ;;  %v656_v22 = vsel %vm560_vm2, %v979_v17, 0.0 }
 0x101   : > { %460 = vst [vmem:[%s1224_s4 + $0x10] sm:$0xff] %v309_v20  ;;  %v655_v23 = vsel %vm559_vm3, %v309_v20, 0.0  ;;  %477 = vst [vmem:[%s1224_s4 + $0x98] sm:$0xff] %v1245_v21  ;;  %v1254_v26 = vpop.f32.mrb[3].mxu1  ;;  %v725_v32 = vmul.f32 %v656_v22, %v656_v22  ;;  %v540_v20 = vadd.s32 %v1211_v59, %v507_v2 }
 0x102   : > { %v686_v27 = vadd.f32 %v685_v13, %v655_v23  ;;  %v724_v28 = vmul.f32 %v655_v23, %v655_v23  ;;  %476 = vst [vmem:[%s1224_s4 + $0x90] sm:$0xff] %v1254_v26  ;;  %v508_v13 = vadd.s32 128, %v1207_v57 }
 0x103   : > { %v982_v30 = vpop.f32.mrb[4].mxu0  ;;  %vm572_vm14 = vcmp.lt.s32.totalorder %v540_v20, 512 }
 0x104   : > { %v755_v33 = vadd.f32 %v754_v19, %v724_v28  ;;  %463 = vst [vmem:[%s1224_s4 + $0x28] sm:$0xff] %v982_v30  ;;  %v319_v34 = vpop.f32.mrb[5].mxu0  ;;  %v687_v35 = vadd.f32 %v686_v27, %v656_v22  ;;  %v1262_v37 = vpop.f32.mrb[4].mxu1  ;;  %v658_v38 = vsel %vm562_vm4, %v982_v30, 0.0  ;;  %v509_v22 = vadd.s32 136, %v1207_v57 }
 0x105   : > { %462 = vst [vmem:[%s1224_s4 + $0x20] sm:$0xff] %v319_v34  ;;  %v657_v39 = vsel %vm561_vm5, %v319_v34, 0.0  ;;  %479 = vst [vmem:[%s1224_s4 + $0xa8] sm:$0xff] %v1262_v37  ;;  %v1270_v42 = vpop.f32.mrb[5].mxu1  ;;  %v727_v49 = vmul.f32 %v658_v38, %v658_v38  ;;  %v510_v28 = vadd.s32 144, %v1207_v57 }
 0x106   : > { %v688_v43 = vadd.f32 %v687_v35, %v657_v39  ;;  %v726_v44 = vmul.f32 %v657_v39, %v657_v39  ;;  %v756_v45 = vadd.f32 %v755_v33, %v725_v32  ;;  %478 = vst [vmem:[%s1224_s4 + $0xa0] sm:$0xff] %v1270_v42  ;;  %v539_v32 = vadd.s32 %v1211_v59, %v506_v11 }
 0x107   : > { %v985_v46 = vpop.f32.mrb[6].mxu0  ;;  %v541_v33 = vadd.s32 %v1211_v59, %v508_v13  ;;  %v542_v40 = vadd.s32 %v1211_v59, %v509_v22  ;;  %v543_v47 = vadd.s32 %v1211_v59, %v510_v28 }
 0x108   : > { %v757_v50 = vadd.f32 %v756_v45, %v726_v44  ;;  %465 = vst [vmem:[%s1224_s4 + $0x38] sm:$0xff] %v985_v46  ;;  %v329_v51 = vpop.f32.mrb[7].mxu0  ;;  %v689_v52 = vadd.f32 %v688_v43, %v658_v38  ;;  %v1278_v54 = vpop.f32.mrb[6].mxu1  ;;  %v660_v55 = vsel %vm564_vm6, %v985_v46, 0.0  ;;  %vm571_vm15 = vcmp.lt.s32.totalorder %v539_v32, 512 }
 0x109   : > { %464 = vst [vmem:[%s1224_s4 + $0x30] sm:$0xff] %v329_v51  ;;  %v659_v56 = vsel %vm563_vm7, %v329_v51, 0.0  ;;  %481 = vst [vmem:[%s1224_s4 + $0xb8] sm:$0xff] %v1278_v54  ;;  %v1284_v58 = vpop.f32.mrb[7].mxu1  ;;  %v729_v3 = vmul.f32 %v660_v55, %v660_v55  ;;  %vm573_vm0 = vcmp.lt.s32.totalorder %v541_v33, 512  ;;  %vm574_vm1 = vcmp.lt.s32.totalorder %v542_v40, 512 }
 0x10a   : > { %v690_v60 = vadd.f32 %v689_v52, %v659_v56  ;;  %v728_v61 = vmul.f32 %v659_v56, %v659_v56  ;;  %v758_v62 = vadd.f32 %v757_v50, %v727_v49  ;;  %480 = vst [vmem:[%s1224_s4 + $0xb0] sm:$0xff] %v1284_v58  ;;  %v512_v56 = vadd.s32 160, %v1207_v57 }
 0x10b   : > { %v988_v0 = vpop.f32.mrb[8].mxu0  ;;  %vm575_vm2 = vcmp.lt.s32.totalorder %v543_v47, 512  ;;  %v670_v22 = vsel %vm574_vm1, %v1232_v9, 0.0 }
 0x10c   : > { %v759_v4 = vadd.f32 %v758_v62, %v728_v61  ;;  %467 = vst [vmem:[%s1224_s4 + $0x48] sm:$0xff] %v988_v0  ;;  %v339_v5 = vpop.f32.mrb[9].mxu0  ;;  %v691_v6 = vadd.f32 %v690_v60, %v660_v55  ;;  %v1292_v7 = vpop.f32.mrb[8].mxu1  ;;  %v662_v8 = vsel %vm566_vm8, %v988_v0, 0.0  ;;  %v544_v61 = vadd.s32 %v1211_v59, %v511_v41 }
 0x10d   : > { %466 = vst [vmem:[%s1224_s4 + $0x40] sm:$0xff] %v339_v5  ;;  %v661_v10 = vsel %vm565_vm9, %v339_v5, 0.0  ;;  %483 = vst [vmem:[%s1224_s4 + $0xc8] sm:$0xff] %v1292_v7  ;;  %v1301_v14 = vpop.f32.mrb[9].mxu1  ;;  %v731_v23 = vmul.f32 %v662_v8, %v662_v8  ;;  %v513_v62 = vadd.s32 168, %v1207_v57  ;;  %v739_v32 = vmul.f32 %v670_v22, %v670_v22 }
 0x10e   : > { %v692_v15 = vadd.f32 %v691_v6, %v661_v10  ;;  %v730_v16 = vmul.f32 %v661_v10, %v661_v10  ;;  %v760_v17 = vadd.f32 %v759_v4, %v729_v3  ;;  %482 = vst [vmem:[%s1224_s4 + $0xc0] sm:$0xff] %v1301_v14  ;;  %v669_v6 = vsel %vm573_vm0, %v1237_v12, 0.0 }
 0x10f   : > { %v991_v19 = vpop.f32.mrb[10].mxu0  ;;  %vm576_vm3 = vcmp.lt.s32.totalorder %v544_v61, 512  ;;  %v738_v12 = vmul.f32 %v669_v6, %v669_v6  ;;  %vm791_vm0 = vcmask 1040384  }
 0x110   : > { %v761_v24 = vadd.f32 %v760_v17, %v730_v16  ;;  %469 = vst [vmem:[%s1224_s4 + $0x58] sm:$0xff] %v991_v19  ;;  %v349_v25 = vpop.f32.mrb[11].mxu0  ;;  %v693_v27 = vadd.f32 %v692_v15, %v662_v8  ;;  %v1310_v29 = vpop.f32.mrb[10].mxu1  ;;  %v664_v30 = vsel %vm568_vm10, %v991_v19, 0.0  ;;  %v514_v8 = vadd.s32 176, %v1207_v57 }
 0x111   : > { %468 = vst [vmem:[%s1224_s4 + $0x50] sm:$0xff] %v349_v25  ;;  %v663_v31 = vsel %vm567_vm11, %v349_v25, 0.0  ;;  %485 = vst [vmem:[%s1224_s4 + $0xd8] sm:$0xff] %v1310_v29  ;;  %v1319_v34 = vpop.f32.mrb[11].mxu1  ;;  %v733_v43 = vmul.f32 %v664_v30, %v664_v30  ;;  %v545_v16 = vadd.s32 %v1211_v59, %v512_v56  ;;  %v546_v17 = vadd.s32 %v1211_v59, %v513_v62 }
 0x112   : > { %v694_v35 = vadd.f32 %v693_v27, %v663_v31  ;;  %v732_v36 = vmul.f32 %v663_v31, %v663_v31  ;;  %v762_v38 = vadd.f32 %v761_v24, %v731_v23  ;;  %484 = vst [vmem:[%s1224_s4 + $0xd0] sm:$0xff] %v1319_v34  ;;  %v671_v23 = vsel %vm575_vm2, %v1254_v26, 0.0 }
 0x113   : > { %v994_v39 = vpop.f32.mrb[12].mxu0  ;;  %v515_v24 = vadd.s32 184, %v1207_v57  ;;  %v547_v25 = vadd.s32 %v1211_v59, %v514_v8  ;;  %vm577_vm4 = vcmp.lt.s32.totalorder %v545_v16, 512  ;;  %vm578_vm5 = vcmp.lt.s32.totalorder %v546_v17, 512 }
 0x114   : > { %v763_v44 = vadd.f32 %v762_v38, %v732_v36  ;;  %471 = vst [vmem:[%s1224_s4 + $0x68] sm:$0xff] %v994_v39  ;;  %v359_v45 = vpop.f32.mrb[13].mxu0  ;;  %v695_v46 = vadd.f32 %v694_v35, %v664_v30  ;;  %v1327_v48 = vpop.f32.mrb[12].mxu1  ;;  %v666_v49 = vsel %vm570_vm12, %v994_v39, 0.0  ;;  %v516_v30 = vadd.s32 192, %v1207_v57 }
 0x115   : > { %470 = vst [vmem:[%s1224_s4 + $0x60] sm:$0xff] %v359_v45  ;;  %v665_v50 = vsel %vm569_vm13, %v359_v45, 0.0  ;;  %487 = vst [vmem:[%s1224_s4 + $0xe8] sm:$0xff] %v1327_v48  ;;  %v1333_v51 = vpop.f32.mrb[13].mxu1  ;;  %v735_v63 = vmul.f32 %v666_v49, %v666_v49  ;;  %v517_v31 = vadd.s32 200, %v1207_v57  ;;  %v740_v36 = vmul.f32 %v671_v23, %v671_v23 }
 0x116   : > { %v696_v52 = vadd.f32 %v695_v46, %v665_v50  ;;  %v734_v53 = vmul.f32 %v665_v50, %v665_v50  ;;  %v764_v55 = vadd.f32 %v763_v44, %v733_v43  ;;  %486 = vst [vmem:[%s1224_s4 + $0xe0] sm:$0xff] %v1333_v51  ;;  %v672_v9 = vsel %vm576_vm3, %v1245_v21, 0.0 }
 0x117   : > { %v997_v60 = vpop.f32.mrb[14].mxu0  ;;  %v673_v26 = vsel %vm577_vm4, %v1270_v42, 0.0  ;;  %v548_v38 = vadd.s32 %v1211_v59, %v515_v24  ;;  %vm579_vm6 = vcmp.lt.s32.totalorder %v547_v25, 512  ;;  %v549_v41 = vadd.s32 %v1211_v59, %v516_v30 }
 0x118   : > { %v765_v0 = vadd.f32 %v764_v55, %v734_v53  ;;  %473 = vst [vmem:[%s1224_s4 + $0x78] sm:$0xff] %v997_v60  ;;  %v369_v1 = vpop.f32.mrb[15].mxu0  ;;  %v697_v2 = vadd.f32 %v696_v52, %v666_v49  ;;  %v1341_v3 = vpop.f32.mrb[14].mxu1  ;;  %v668_v4 = vsel %vm572_vm14, %v997_v60, 0.0  ;;  %v518_v43 = vadd.s32 208, %v1207_v57 }
 0x119   : > { %472 = vst [vmem:[%s1224_s4 + $0x70] sm:$0xff] %v369_v1  ;;  %v667_v5 = vsel %vm571_vm15, %v369_v1, 0.0  ;;  %489 = vst [vmem:[%s1224_s4 + $0xf8] sm:$0xff] %v1341_v3  ;;  %v1351_v10 = vpop.f32.mrb[15].mxu1  ;;  %v737_v18 = vmul.f32 %v668_v4, %v668_v4  ;;  %v550_v44 = vadd.s32 %v1211_v59, %v517_v31  ;;  %v519_v45 = vadd.s32 216, %v1207_v57 }
 0x11a   : > { %v698_v11 = vadd.f32 %v697_v2, %v667_v5  ;;  %v736_v13 = vmul.f32 %v667_v5, %v667_v5  ;;  %v766_v15 = vadd.f32 %v765_v0, %v735_v63  ;;  %488 = vst [vmem:[%s1224_s4 + $0xf0] sm:$0xff] %v1351_v10  ;;  %v741_v46 = vmul.f32 %v672_v9, %v672_v9 }
 0x11b   : > { %v742_v50 = vmul.f32 %v673_v26, %v673_v26  ;;  %v674_v21 = vsel %vm578_vm5, %v1262_v37, 0.0  ;;  %vm580_vm7 = vcmp.lt.s32.totalorder %v548_v38, 512  ;;  %v675_v42 = vsel %vm579_vm6, %v1284_v58, 0.0 }
 0x11c   : > { %v699_v19 = vadd.f32 %v698_v11, %v668_v4  ;;  %v767_v20 = vadd.f32 %v766_v15, %v736_v13  ;;  %v520_v52 = vadd.s32 224, %v1207_v57  ;;  %vm581_vm8 = vcmp.lt.s32.totalorder %v549_v41, 512 }
 0x11d   : > { %v551_v56 = vadd.s32 %v1211_v59, %v518_v43  ;;  %vm582_vm9 = vcmp.lt.s32.totalorder %v550_v44, 512  ;;  %v552_v60 = vadd.s32 %v1211_v59, %v519_v45  ;;  %v743_v61 = vmul.f32 %v674_v21, %v674_v21 }
 0x11e   : > { %v768_v27 = vadd.f32 %v767_v20, %v737_v18  ;;  %v700_v28 = vadd.f32 %v699_v19, %v669_v6  ;;  %v744_v0 = vmul.f32 %v675_v42, %v675_v42  ;;  %v676_v1 = vsel %vm580_vm7, %v1278_v54, 0.0 }
 0x11f   : > { %v677_v37 = vsel %vm581_vm8, %v1301_v14, 0.0  ;;  %v521_v58 = vadd.s32 232, %v1207_v57  ;;  %v553_v2 = vadd.s32 %v1211_v59, %v520_v52  ;;  %vm583_vm10 = vcmp.lt.s32.totalorder %v551_v56, 512 }
 0x120   : > { %v769_v33 = vadd.f32 %v768_v27, %v738_v12  ;;  %v701_v35 = vadd.f32 %v700_v28, %v670_v22  ;;  %v522_v6 = vadd.s32 240, %v1207_v57  ;;  %vm584_vm11 = vcmp.lt.s32.totalorder %v552_v60, 512 }
 0x121   : > { %v745_v8 = vmul.f32 %v676_v1, %v676_v1  ;;  %v746_v15 = vmul.f32 %v677_v37, %v677_v37  ;;  %v678_v16 = vsel %vm582_vm9, %v1292_v7, 0.0  ;;  %v679_v54 = vsel %vm583_vm10, %v1319_v34, 0.0 }
 0x122   : > { %v702_v39 = vadd.f32 %v701_v35, %v671_v23  ;;  %v770_v40 = vadd.f32 %v769_v33, %v739_v32  ;;  %v554_v14 = vadd.s32 %v1211_v59, %v521_v58  ;;  %vm585_vm12 = vcmp.lt.s32.totalorder %v553_v2, 512 }
 0x123   : > { %v523_v19 = vadd.s32 248, %v1207_v57  ;;  %v555_v20 = vadd.s32 %v1211_v59, %v522_v6  ;;  %v747_v12 = vmul.f32 %v678_v16, %v678_v16  ;;  %v748_v24 = vmul.f32 %v679_v54, %v679_v54 }
 0x124   : > { %v771_v47 = vadd.f32 %v770_v40, %v740_v36  ;;  %v703_v49 = vadd.f32 %v702_v39, %v672_v9  ;;  %v680_v25 = vsel %vm584_vm11, %v1310_v29, 0.0  ;;  %vm586_vm13 = vcmp.lt.s32.totalorder %v554_v14, 512 }
 0x125   : > { %v681_v7 = vsel %vm585_vm12, %v1333_v51, 0.0  ;;  %v556_v28 = vadd.s32 %v1211_v59, %v523_v19  ;;  %vm587_vm14 = vcmp.lt.s32.totalorder %v555_v20, 512  ;;  %v749_v30 = vmul.f32 %v680_v25, %v680_v25 }
 0x126   : > { %v704_v53 = vadd.f32 %v703_v49, %v673_v26  ;;  %v772_v55 = vadd.f32 %v771_v47, %v741_v46  ;;  %v750_v32 = vmul.f32 %v681_v7, %v681_v7  ;;  %v682_v33 = vsel %vm586_vm13, %v1327_v48, 0.0 }
 0x127   : > { %v683_v35 = vsel %vm587_vm14, %v1351_v10, 0.0  ;;  %vm588_vm15 = vcmp.lt.s32.totalorder %v556_v28, 512  ;;  %v751_v29 = vmul.f32 %v682_v33, %v682_v33 }
 0x128   : > { %v773_v62 = vadd.f32 %v772_v55, %v742_v50  ;;  %v705_v63 = vadd.f32 %v704_v53, %v674_v21  ;;  %v752_v38 = vmul.f32 %v683_v35, %v683_v35  ;;  %v684_v59 = vsel %vm588_vm15, %v1341_v3, 0.0 }
 0x129   : > { %v753_v41 = vmul.f32 %v684_v59, %v684_v59 }
 0x12a   : > { %v706_v4 = vadd.f32 %v705_v63, %v675_v42  ;;  %v774_v5 = vadd.f32 %v773_v62, %v743_v61 }
 0x12c   : > { %v775_v11 = vadd.f32 %v774_v5, %v744_v0  ;;  %v707_v13 = vadd.f32 %v706_v4, %v676_v1 }
 0x12e   : > { %v708_v17 = vadd.f32 %v707_v13, %v677_v37  ;;  %v776_v18 = vadd.f32 %v775_v11, %v745_v8 }
 0x130   : > { %v777_v22 = vadd.f32 %v776_v18, %v746_v15  ;;  %v709_v23 = vadd.f32 %v708_v17, %v678_v16 }
 0x132   : > { %v710_v34 = vadd.f32 %v709_v23, %v679_v54  ;;  %v778_v27 = vadd.f32 %v777_v22, %v747_v12 }
 0x134   : > { %v779_v31 = vadd.f32 %v778_v27, %v748_v24  ;;  %v711_v57 = vadd.f32 %v710_v34, %v680_v25 }
 0x136   : > { %v712_v36 = vadd.f32 %v711_v57, %v681_v7  ;;  %v780_v9 = vadd.f32 %v779_v31, %v749_v30 }
 0x138   : > { %v781_v26 = vadd.f32 %v780_v9, %v750_v32  ;;  %v713_v51 = vadd.f32 %v712_v36, %v682_v33 }
 0x13a   : > { %v714_v39 = vadd.f32 %v713_v51, %v683_v35  ;;  %v782_v40 = vadd.f32 %v781_v26, %v751_v29 }
 0x13c   : > { %v715_v43 = vadd.f32 %v714_v39, %v684_v59  ;;  %v783_v44 = vadd.f32 %v782_v40, %v752_v38 }
 0x13e   : > { %v716_v45 = vrot.slane %v715_v43, 4  ;;  %v784_v48 = vadd.f32 %v783_v44, %v753_v41 }
 0x140   : > { %v717_v10 = vadd.f32 %v716_v45, %v715_v43  ;;  %v785_v46 = vrot.slane %v784_v48, 4 }
 0x142   : > { %v718_v47 = vrot.slane %v717_v10, 2  ;;  %v786_v49 = vadd.f32 %v785_v46, %v784_v48 }
 0x144   : > { %v719_v50 = vadd.f32 %v718_v47, %v717_v10  ;;  %v787_v21 = vrot.slane %v786_v49, 2 }
 0x146   : > { %v720_v42 = vrot.slane %v719_v50, 1  ;;  %v788_v52 = vadd.f32 %v787_v21, %v786_v49 }
 0x148   : > { %v789_v53 = vrot.slane %v788_v52, 1  ;;  %v721_v3 = vadd.f32 %v720_v42, %v719_v50 }
 0x14a   : > { %v790_v55 = vadd.f32 %v789_v53, %v788_v52 }
 0x14c   : > { %v792_v56 = vsel %vm791_vm0, %v721_v3, %v790_v55 }
 0x14d   : > { %793 = vst [vmem:[%s184_s6] sm:$0x3] %v792_v56 }
 0x14e PF: > { %s14_s12 = sadd.s32 1, %s1084_s12  }
 0x14f   : > { %p11_p5 = scmp.ge.s32.totalorder %s14_s12, 4  }
 0x151   :  { %13 = sbr.rel (!%p11_p5) target bundleno = 1 (0x1), region = 70 }

// kernel: residual_block_mulgrid.21
= control target key start
LH: loop header
LB: loop body
LE: loop exit
PB: predicated region body
PF: predicated region fallthrough
CT: control target
= control target key end

     0   :  { %s729_s21 = smov 0   ;;  %s1004_s0 = inlined_call_operand.vmem [shape: f32[512,128], index: 0, kind: input, shape index: {}]   ;;  %s1005_s1 = inlined_call_operand.vmem [shape: f32[1,128], index: 1, kind: input, shape index: {}]   ;;  %s1006_s2 = inlined_call_operand.vmem [shape: f32[1,128], index: 2, kind: input, shape index: {}]   ;;  %s1007_s3 = inlined_call_operand.vmem [shape: f32[512,128], index: 3, kind: input, shape index: {}]   ;;  %s1008_s4 = inlined_call_operand.vmem [shape: f32[1,128], index: 4, kind: input, shape index: {}]   ;;  %s1009_s5 = inlined_call_operand.vmem [shape: f32[1,128], index: 5, kind: input, shape index: {}]   ;;  %s1010_s6 = inlined_call_operand.vmem [shape: f32[512,128], index: 6, kind: output, shape index: {}]  }
   0x1 LB: > { %s661_s22 = sadd.s32 4294967295, %s692_s21   ;;  %p665_p0 = scmp.ge.s32.totalorder %s692_s21, 1  ;;  %s692_s21 = sphi %s729_s21, %s16_s21  }
   0x2   : > { %p224_p1 = scmp.lt.s32.totalorder %s692_s21, 3 }
   0x4   : > { %p225_p2 = pnand %p665_p0, %p224_p1 }
   0x5   : > { %s666_s23 = sshll.u32 (!%p225_p2), %s661_s22, 5  ;;  %v742_v0 = vld [vmem:[%s1005_s1] ss:$0 sm:$0xff] (!%p225_p2) }
   0x6   : > { %228 = sbr.rel (%p225_p2) target bundleno = 71 (0x47), region = 44  ;;  %p260_p3 = scmp.lt.s32.totalorder (!%p225_p2), %s666_s23, 63  ;;  %v747_v1 = vld [vmem:[%s1008_s4] ss:$0 sm:$0xff] (!%p225_p2) }
   0x7   : > { %v764_v2 = vld [vmem:[%s1006_s2] ss:$0 sm:$0xff] (!%p225_p2) }
   0x8   : > { %v769_v3 = vld [vmem:[%s1009_s5] ss:$0 sm:$0xff] (!%p225_p2) }
   0xd   : > { %s1012_s23 = smov (!%p260_p3, %s666_s23), 63 }
   0xe   : > { %s737_s24 = sshll.u32 %s1012_s23, 3 }
   0xf   : > { %s753_s7 = scalar_lea.vmem %s1004_s0, %s737_s24  ;;  %s759_s10 = scalar_lea.vmem %s1007_s3, %s737_s24 }
  0x10   : > { %v277_v4 = vld [vmem:[%s753_s7] sm:$0xff]  ;;  %v278_v6 = vld [vmem:[%s753_s7 + $0x8] sm:$0xff]  ;;  %v279_v11 = vld [vmem:[%s753_s7 + $0x10] sm:$0xff]  ;;  %s804_s17 = scalar_lea.vmem %s1010_s6, %s737_s24 }
  0x11   : > { %v387_v5 = vld [vmem:[%s759_s10] sm:$0xff]  ;;  %v316_v7 = vmul.f32 %v742_v0, %v277_v4  ;;  %v317_v9 = vmul.f32 %v742_v0, %v278_v6  ;;  %v388_v10 = vld [vmem:[%s759_s10 + $0x8] sm:$0xff]  ;;  %v389_v12 = vld [vmem:[%s759_s10 + $0x10] sm:$0xff]  ;;  %v318_v14 = vmul.f32 %v742_v0, %v279_v11 }
  0x12   : > { %v426_v8 = vmul.f32 %v747_v1, %v387_v5  ;;  %v427_v13 = vmul.f32 %v747_v1, %v388_v10  ;;  %v428_v15 = vmul.f32 %v747_v1, %v389_v12  ;;  %v280_v16 = vld [vmem:[%s753_s7 + $0x18] sm:$0xff]  ;;  %v281_v18 = vld [vmem:[%s753_s7 + $0x20] sm:$0xff]  ;;  %v282_v24 = vld [vmem:[%s753_s7 + $0x28] sm:$0xff] }
  0x13   : > { %v390_v17 = vld [vmem:[%s759_s10 + $0x18] sm:$0xff]  ;;  %v355_v19 = vadd.f32 %v764_v2, %v316_v7  ;;  %v356_v21 = vadd.f32 %v764_v2, %v317_v9  ;;  %v319_v22 = vmul.f32 %v742_v0, %v280_v16  ;;  %v391_v23 = vld [vmem:[%s759_s10 + $0x20] sm:$0xff]  ;;  %v357_v26 = vadd.f32 %v764_v2, %v318_v14  ;;  %v392_v29 = vld [vmem:[%s759_s10 + $0x28] sm:$0xff] }
  0x14   : > { %v465_v20 = vadd.f32 %v769_v3, %v426_v8  ;;  %v466_v25 = vadd.f32 %v769_v3, %v427_v13  ;;  %v467_v27 = vadd.f32 %v769_v3, %v428_v15  ;;  %v429_v28 = vmul.f32 %v747_v1, %v390_v17  ;;  %v283_v38 = vld [vmem:[%s753_s7 + $0x30] sm:$0xff]  ;;  %v284_v44 = vld [vmem:[%s753_s7 + $0x38] sm:$0xff]  ;;  %v285_v46 = vld [vmem:[%s753_s7 + $0x40] sm:$0xff] }
  0x15   : > { %v358_v31 = vadd.f32 %v764_v2, %v319_v22  ;;  %v320_v32 = vmul.f32 %v742_v0, %v281_v18  ;;  %v430_v33 = vmul.f32 %v747_v1, %v391_v23  ;;  %v321_v37 = vmul.f32 %v742_v0, %v282_v24  ;;  %v393_v39 = vld [vmem:[%s759_s10 + $0x30] sm:$0xff]  ;;  %v394_v45 = vld [vmem:[%s759_s10 + $0x38] sm:$0xff]  ;;  %v395_v55 = vld [vmem:[%s759_s10 + $0x40] sm:$0xff] }
  0x16   : > { %v497_v30 = vadd.f32 %v465_v20, %v355_v19  ;;  %v498_v34 = vadd.f32 %v466_v25, %v356_v21  ;;  %v499_v35 = vadd.f32 %v467_v27, %v357_v26  ;;  %v468_v36 = vadd.f32 %v769_v3, %v429_v28  ;;  %v286_v60 = vld [vmem:[%s753_s7 + $0x48] sm:$0xff]  ;;  %v287_v6 = vld [vmem:[%s753_s7 + $0x50] sm:$0xff]  ;;  %v288_v12 = vld [vmem:[%s753_s7 + $0x58] sm:$0xff] }
  0x17   : > { %v359_v41 = vadd.f32 %v764_v2, %v320_v32  ;;  %v469_v42 = vadd.f32 %v769_v3, %v430_v33  ;;  %v431_v43 = vmul.f32 %v747_v1, %v392_v29  ;;  %v360_v50 = vadd.f32 %v764_v2, %v321_v37  ;;  %v396_v61 = vld [vmem:[%s759_s10 + $0x48] sm:$0xff]  ;;  %v397_v7 = vld [vmem:[%s759_s10 + $0x50] sm:$0xff]  ;;  %v398_v21 = vld [vmem:[%s759_s10 + $0x58] sm:$0xff] }
  0x18   : > { %v529_v40 = vmax.f32 %v497_v30, 0.0  ;;  %v530_v47 = vmax.f32 %v498_v34, 0.0  ;;  %v531_v48 = vmax.f32 %v499_v35, 0.0  ;;  %v500_v49 = vadd.f32 %v468_v36, %v358_v31  ;;  %v289_v22 = vld [vmem:[%s753_s7 + $0x60] sm:$0xff]  ;;  %v290_v28 = vld [vmem:[%s753_s7 + $0x68] sm:$0xff] }
  0x19   : > { %v501_v51 = vadd.f32 %v469_v42, %v359_v41  ;;  %v470_v52 = vadd.f32 %v769_v3, %v431_v43  ;;  %v322_v53 = vmul.f32 %v742_v0, %v283_v38  ;;  %v432_v54 = vmul.f32 %v747_v1, %v393_v39  ;;  %v399_v27 = vld [vmem:[%s759_s10 + $0x60] sm:$0xff]  ;;  %v400_v33 = vld [vmem:[%s759_s10 + $0x68] sm:$0xff]  ;;  %v291_v38 = vld [vmem:[%s753_s7 + $0x70] sm:$0xff] }
  0x1a   : > { %561 = vst [vmem:[%s804_s17] sm:$0xff] %v529_v40  ;;  %562 = vst [vmem:[%s804_s17 + $0x8] sm:$0xff] %v530_v47  ;;  %v532_v56 = vmax.f32 %v500_v49, 0.0  ;;  %v323_v57 = vmul.f32 %v742_v0, %v284_v44  ;;  %v433_v58 = vmul.f32 %v747_v1, %v394_v45  ;;  %v324_v59 = vmul.f32 %v742_v0, %v285_v46  ;;  %v401_v43 = vld [vmem:[%s759_s10 + $0x70] sm:$0xff]  ;;  %v292_v44 = vld [vmem:[%s753_s7 + $0x78] sm:$0xff] }
  0x1b   : > { %563 = vst [vmem:[%s804_s17 + $0x10] sm:$0xff] %v531_v48  ;;  %v533_v62 = vmax.f32 %v501_v51, 0.0  ;;  %v502_v63 = vadd.f32 %v470_v52, %v360_v50  ;;  %v361_v4 = vadd.f32 %v764_v2, %v322_v53  ;;  %v471_v5 = vadd.f32 %v769_v3, %v432_v54  ;;  %v402_v49 = vld [vmem:[%s759_s10 + $0x78] sm:$0xff]  ;;  %v293_v50 = vld [vmem:[%s753_s7 + $0x80] sm:$0xff] }
  0x1c   : > { %564 = vst [vmem:[%s804_s17 + $0x18] sm:$0xff] %v532_v56  ;;  %v362_v8 = vadd.f32 %v764_v2, %v323_v57  ;;  %v472_v9 = vadd.f32 %v769_v3, %v433_v58  ;;  %v363_v10 = vadd.f32 %v764_v2, %v324_v59  ;;  %v434_v11 = vmul.f32 %v747_v1, %v395_v55  ;;  %v403_v59 = vld [vmem:[%s759_s10 + $0x80] sm:$0xff] }
  0x1d   : > { %565 = vst [vmem:[%s804_s17 + $0x20] sm:$0xff] %v533_v62  ;;  %v534_v13 = vmax.f32 %v502_v63, 0.0  ;;  %v503_v14 = vadd.f32 %v471_v5, %v361_v4  ;;  %v325_v15 = vmul.f32 %v742_v0, %v286_v60  ;;  %v435_v16 = vmul.f32 %v747_v1, %v396_v61  ;;  %v294_v4 = vld [vmem:[%s753_s7 + $0x88] sm:$0xff] }
  0x1e   : > { %v504_v17 = vadd.f32 %v472_v9, %v362_v8  ;;  %v473_v18 = vadd.f32 %v769_v3, %v434_v11  ;;  %v326_v19 = vmul.f32 %v742_v0, %v287_v6  ;;  %v436_v20 = vmul.f32 %v747_v1, %v397_v7  ;;  %v404_v5 = vld [vmem:[%s759_s10 + $0x88] sm:$0xff]  ;;  %v405_v11 = vld [vmem:[%s759_s10 + $0x90] sm:$0xff] }
  0x1f   : > { %566 = vst [vmem:[%s804_s17 + $0x28] sm:$0xff] %v534_v13  ;;  %v535_v23 = vmax.f32 %v503_v14, 0.0  ;;  %v364_v24 = vadd.f32 %v764_v2, %v325_v15  ;;  %v474_v25 = vadd.f32 %v769_v3, %v435_v16  ;;  %v327_v26 = vmul.f32 %v742_v0, %v288_v12  ;;  %v296_v16 = vld [vmem:[%s753_s7 + $0x98] sm:$0xff] }
  0x20   : > { %v536_v29 = vmax.f32 %v504_v17, 0.0  ;;  %v505_v30 = vadd.f32 %v473_v18, %v363_v10  ;;  %v365_v31 = vadd.f32 %v764_v2, %v326_v19  ;;  %v475_v32 = vadd.f32 %v769_v3, %v436_v20  ;;  %v295_v10 = vld [vmem:[%s753_s7 + $0x90] sm:$0xff] }
  0x21   : > { %567 = vst [vmem:[%s804_s17 + $0x30] sm:$0xff] %v535_v23  ;;  %v506_v34 = vadd.f32 %v474_v25, %v364_v24  ;;  %v366_v35 = vadd.f32 %v764_v2, %v327_v26  ;;  %v437_v36 = vmul.f32 %v747_v1, %v398_v21  ;;  %v328_v37 = vmul.f32 %v742_v0, %v289_v22  ;;  %v406_v25 = vld [vmem:[%s759_s10 + $0x98] sm:$0xff]  ;;  %v297_v26 = vld [vmem:[%s753_s7 + $0xa0] sm:$0xff] }
  0x22   : > { %568 = vst [vmem:[%s804_s17 + $0x38] sm:$0xff] %v536_v29  ;;  %v537_v39 = vmax.f32 %v505_v30, 0.0  ;;  %v507_v40 = vadd.f32 %v475_v32, %v365_v31  ;;  %v438_v41 = vmul.f32 %v747_v1, %v399_v27  ;;  %v329_v42 = vmul.f32 %v742_v0, %v290_v28  ;;  %v407_v31 = vld [vmem:[%s759_s10 + $0xa0] sm:$0xff]  ;;  %v298_v32 = vld [vmem:[%s753_s7 + $0xa8] sm:$0xff] }
  0x23   : > { %v538_v45 = vmax.f32 %v506_v34, 0.0  ;;  %v476_v46 = vadd.f32 %v769_v3, %v437_v36  ;;  %v367_v47 = vadd.f32 %v764_v2, %v328_v37  ;;  %v439_v48 = vmul.f32 %v747_v1, %v400_v33  ;;  %v408_v37 = vld [vmem:[%s759_s10 + $0xa8] sm:$0xff] }
  0x24   : > { %569 = vst [vmem:[%s804_s17 + $0x40] sm:$0xff] %v537_v39  ;;  %v539_v51 = vmax.f32 %v507_v40, 0.0  ;;  %v477_v52 = vadd.f32 %v769_v3, %v438_v41  ;;  %v368_v53 = vadd.f32 %v764_v2, %v329_v42  ;;  %v330_v54 = vmul.f32 %v742_v0, %v291_v38  ;;  %v299_v42 = vld [vmem:[%s753_s7 + $0xb0] sm:$0xff] }
  0x25   : > { %570 = vst [vmem:[%s804_s17 + $0x48] sm:$0xff] %v538_v45  ;;  %v508_v55 = vadd.f32 %v476_v46, %v366_v35  ;;  %v478_v56 = vadd.f32 %v769_v3, %v439_v48  ;;  %v440_v57 = vmul.f32 %v747_v1, %v401_v43  ;;  %v331_v58 = vmul.f32 %v742_v0, %v292_v44  ;;  %v300_v48 = vld [vmem:[%s753_s7 + $0xb8] sm:$0xff] }
  0x26   : > { %571 = vst [vmem:[%s804_s17 + $0x50] sm:$0xff] %v539_v51  ;;  %v509_v60 = vadd.f32 %v477_v52, %v367_v47  ;;  %v369_v61 = vadd.f32 %v764_v2, %v330_v54  ;;  %v441_v62 = vmul.f32 %v747_v1, %v402_v49  ;;  %v332_v63 = vmul.f32 %v742_v0, %v293_v50  ;;  %v409_v47 = vld [vmem:[%s759_s10 + $0xb0] sm:$0xff]  ;;  %v301_v54 = vld [vmem:[%s753_s7 + $0xc0] sm:$0xff] }
  0x27   : > { %v540_v6 = vmax.f32 %v508_v55, 0.0  ;;  %v510_v7 = vadd.f32 %v478_v56, %v368_v53  ;;  %v479_v8 = vadd.f32 %v769_v3, %v440_v57  ;;  %v370_v9 = vadd.f32 %v764_v2, %v331_v58  ;;  %v410_v53 = vld [vmem:[%s759_s10 + $0xb8] sm:$0xff] }
  0x28   : > { %v541_v12 = vmax.f32 %v509_v60, 0.0  ;;  %v480_v13 = vadd.f32 %v769_v3, %v441_v62  ;;  %v371_v14 = vadd.f32 %v764_v2, %v332_v63  ;;  %v442_v15 = vmul.f32 %v747_v1, %v403_v59  ;;  %v411_v63 = vld [vmem:[%s759_s10 + $0xc0] sm:$0xff] }
  0x29   : > { %572 = vst [vmem:[%s804_s17 + $0x58] sm:$0xff] %v540_v6  ;;  %v542_v17 = vmax.f32 %v510_v7, 0.0  ;;  %v511_v18 = vadd.f32 %v479_v8, %v369_v61  ;;  %v333_v19 = vmul.f32 %v742_v0, %v294_v4  ;;  %v443_v20 = vmul.f32 %v747_v1, %v404_v5  ;;  %v302_v8 = vld [vmem:[%s753_s7 + $0xc8] sm:$0xff] }
  0x2a   : > { %573 = vst [vmem:[%s804_s17 + $0x60] sm:$0xff] %v541_v12  ;;  %v512_v21 = vadd.f32 %v480_v13, %v370_v9  ;;  %v481_v22 = vadd.f32 %v769_v3, %v442_v15  ;;  %v334_v23 = vmul.f32 %v742_v0, %v295_v10  ;;  %v444_v24 = vmul.f32 %v747_v1, %v405_v11  ;;  %v412_v9 = vld [vmem:[%s759_s10 + $0xc8] sm:$0xff]  ;;  %v413_v15 = vld [vmem:[%s759_s10 + $0xd0] sm:$0xff] }
  0x2b   : > { %574 = vst [vmem:[%s804_s17 + $0x68] sm:$0xff] %v542_v17  ;;  %v543_v27 = vmax.f32 %v511_v18, 0.0  ;;  %v372_v28 = vadd.f32 %v764_v2, %v333_v19  ;;  %v482_v29 = vadd.f32 %v769_v3, %v443_v20  ;;  %v335_v30 = vmul.f32 %v742_v0, %v296_v16  ;;  %v304_v20 = vld [vmem:[%s753_s7 + $0xd8] sm:$0xff] }
  0x2c   : > { %v544_v33 = vmax.f32 %v512_v21, 0.0  ;;  %v513_v34 = vadd.f32 %v481_v22, %v371_v14  ;;  %v373_v35 = vadd.f32 %v764_v2, %v334_v23  ;;  %v483_v36 = vadd.f32 %v769_v3, %v444_v24  ;;  %v303_v14 = vld [vmem:[%s753_s7 + $0xd0] sm:$0xff] }
  0x2d   : > { %575 = vst [vmem:[%s804_s17 + $0x70] sm:$0xff] %v543_v27  ;;  %v514_v38 = vadd.f32 %v482_v29, %v372_v28  ;;  %v374_v39 = vadd.f32 %v764_v2, %v335_v30  ;;  %v445_v40 = vmul.f32 %v747_v1, %v406_v25  ;;  %v336_v41 = vmul.f32 %v742_v0, %v297_v26  ;;  %v414_v29 = vld [vmem:[%s759_s10 + $0xd8] sm:$0xff]  ;;  %v305_v30 = vld [vmem:[%s753_s7 + $0xe0] sm:$0xff] }
  0x2e   : > { %576 = vst [vmem:[%s804_s17 + $0x78] sm:$0xff] %v544_v33  ;;  %v545_v43 = vmax.f32 %v513_v34, 0.0  ;;  %v515_v44 = vadd.f32 %v483_v36, %v373_v35  ;;  %v446_v45 = vmul.f32 %v747_v1, %v407_v31  ;;  %v337_v46 = vmul.f32 %v742_v0, %v298_v32  ;;  %v415_v35 = vld [vmem:[%s759_s10 + $0xe0] sm:$0xff]  ;;  %v306_v36 = vld [vmem:[%s753_s7 + $0xe8] sm:$0xff] }
  0x2f   : > { %v546_v49 = vmax.f32 %v514_v38, 0.0  ;;  %v484_v50 = vadd.f32 %v769_v3, %v445_v40  ;;  %v375_v51 = vadd.f32 %v764_v2, %v336_v41  ;;  %v447_v52 = vmul.f32 %v747_v1, %v408_v37  ;;  %v416_v41 = vld [vmem:[%s759_s10 + $0xe8] sm:$0xff] }
  0x30   : > { %577 = vst [vmem:[%s804_s17 + $0x80] sm:$0xff] %v545_v43  ;;  %v547_v55 = vmax.f32 %v515_v44, 0.0  ;;  %v485_v56 = vadd.f32 %v769_v3, %v446_v45  ;;  %v376_v57 = vadd.f32 %v764_v2, %v337_v46  ;;  %v338_v58 = vmul.f32 %v742_v0, %v299_v42  ;;  %v307_v46 = vld [vmem:[%s753_s7 + $0xf0] sm:$0xff] }
  0x31   : > { %578 = vst [vmem:[%s804_s17 + $0x88] sm:$0xff] %v546_v49  ;;  %v516_v59 = vadd.f32 %v484_v50, %v374_v39  ;;  %v486_v60 = vadd.f32 %v769_v3, %v447_v52  ;;  %v448_v61 = vmul.f32 %v747_v1, %v409_v47  ;;  %v339_v62 = vmul.f32 %v742_v0, %v300_v48  ;;  %v308_v52 = vld [vmem:[%s753_s7 + $0xf8] sm:$0xff] }
  0x32   : > { %579 = vst [vmem:[%s804_s17 + $0x90] sm:$0xff] %v547_v55  ;;  %v517_v4 = vadd.f32 %v485_v56, %v375_v51  ;;  %v377_v5 = vadd.f32 %v764_v2, %v338_v58  ;;  %v449_v6 = vmul.f32 %v747_v1, %v410_v53  ;;  %v340_v7 = vmul.f32 %v742_v0, %v301_v54  ;;  %v417_v51 = vld [vmem:[%s759_s10 + $0xf0] sm:$0xff] }
  0x33   : > { %v548_v10 = vmax.f32 %v516_v59, 0.0  ;;  %v518_v11 = vadd.f32 %v486_v60, %v376_v57  ;;  %v487_v12 = vadd.f32 %v769_v3, %v448_v61  ;;  %v378_v13 = vadd.f32 %v764_v2, %v339_v62  ;;  %v418_v57 = vld [vmem:[%s759_s10 + $0xf8] sm:$0xff] }
  0x34   : > { %v549_v16 = vmax.f32 %v517_v4, 0.0  ;;  %v488_v17 = vadd.f32 %v769_v3, %v449_v6  ;;  %v379_v18 = vadd.f32 %v764_v2, %v340_v7  ;;  %v450_v19 = vmul.f32 %v747_v1, %v411_v63 }
  0x35   : > { %580 = vst [vmem:[%s804_s17 + $0x98] sm:$0xff] %v548_v10  ;;  %v550_v21 = vmax.f32 %v518_v11, 0.0  ;;  %v519_v22 = vadd.f32 %v487_v12, %v377_v5  ;;  %v341_v23 = vmul.f32 %v742_v0, %v302_v8  ;;  %v451_v24 = vmul.f32 %v747_v1, %v412_v9 }
  0x36   : > { %581 = vst [vmem:[%s804_s17 + $0xa0] sm:$0xff] %v549_v16  ;;  %v520_v25 = vadd.f32 %v488_v17, %v378_v13  ;;  %v489_v26 = vadd.f32 %v769_v3, %v450_v19  ;;  %v342_v27 = vmul.f32 %v742_v0, %v303_v14  ;;  %v452_v28 = vmul.f32 %v747_v1, %v413_v15 }
  0x37   : > { %582 = vst [vmem:[%s804_s17 + $0xa8] sm:$0xff] %v550_v21  ;;  %v551_v31 = vmax.f32 %v519_v22, 0.0  ;;  %v380_v32 = vadd.f32 %v764_v2, %v341_v23  ;;  %v490_v33 = vadd.f32 %v769_v3, %v451_v24  ;;  %v343_v34 = vmul.f32 %v742_v0, %v304_v20 }
  0x38   : > { %v552_v37 = vmax.f32 %v520_v25, 0.0  ;;  %v521_v38 = vadd.f32 %v489_v26, %v379_v18  ;;  %v381_v39 = vadd.f32 %v764_v2, %v342_v27  ;;  %v491_v40 = vadd.f32 %v769_v3, %v452_v28 }
  0x39   : > { %583 = vst [vmem:[%s804_s17 + $0xb0] sm:$0xff] %v551_v31  ;;  %v522_v42 = vadd.f32 %v490_v33, %v380_v32  ;;  %v382_v43 = vadd.f32 %v764_v2, %v343_v34  ;;  %v453_v44 = vmul.f32 %v747_v1, %v414_v29  ;;  %v344_v45 = vmul.f32 %v742_v0, %v305_v30 }
  0x3a   : > { %584 = vst [vmem:[%s804_s17 + $0xb8] sm:$0xff] %v552_v37  ;;  %v553_v47 = vmax.f32 %v521_v38, 0.0  ;;  %v523_v48 = vadd.f32 %v491_v40, %v381_v39  ;;  %v454_v49 = vmul.f32 %v747_v1, %v415_v35  ;;  %v345_v50 = vmul.f32 %v742_v0, %v306_v36 }
  0x3b   : > { %v554_v53 = vmax.f32 %v522_v42, 0.0  ;;  %v492_v54 = vadd.f32 %v769_v3, %v453_v44  ;;  %v383_v55 = vadd.f32 %v764_v2, %v344_v45  ;;  %v455_v56 = vmul.f32 %v747_v1, %v416_v41 }
  0x3c   : > { %585 = vst [vmem:[%s804_s17 + $0xc0] sm:$0xff] %v553_v47  ;;  %v555_v58 = vmax.f32 %v523_v48, 0.0  ;;  %v493_v59 = vadd.f32 %v769_v3, %v454_v49  ;;  %v384_v60 = vadd.f32 %v764_v2, %v345_v50  ;;  %v346_v61 = vmul.f32 %v742_v0, %v307_v46 }
  0x3d   : > { %586 = vst [vmem:[%s804_s17 + $0xc8] sm:$0xff] %v554_v53  ;;  %v524_v62 = vadd.f32 %v492_v54, %v382_v43  ;;  %v494_v63 = vadd.f32 %v769_v3, %v455_v56  ;;  %v456_v4 = vmul.f32 %v747_v1, %v417_v51  ;;  %v347_v5 = vmul.f32 %v742_v0, %v308_v52 }
  0x3e   : > { %587 = vst [vmem:[%s804_s17 + $0xd0] sm:$0xff] %v555_v58  ;;  %v525_v6 = vadd.f32 %v493_v59, %v383_v55  ;;  %v385_v7 = vadd.f32 %v764_v2, %v346_v61  ;;  %v457_v8 = vmul.f32 %v747_v1, %v418_v57 }
  0x3f   : > { %v556_v9 = vmax.f32 %v524_v62, 0.0  ;;  %v526_v10 = vadd.f32 %v494_v63, %v384_v60  ;;  %v495_v11 = vadd.f32 %v769_v3, %v456_v4  ;;  %v386_v12 = vadd.f32 %v764_v2, %v347_v5 }
  0x40   : > { %v557_v13 = vmax.f32 %v525_v6, 0.0  ;;  %v496_v14 = vadd.f32 %v769_v3, %v457_v8 }
  0x41   : > { %588 = vst [vmem:[%s804_s17 + $0xd8] sm:$0xff] %v556_v9  ;;  %v558_v0 = vmax.f32 %v526_v10, 0.0  ;;  %v527_v15 = vadd.f32 %v495_v11, %v385_v7 }
  0x42   : > { %589 = vst [vmem:[%s804_s17 + $0xe0] sm:$0xff] %v557_v13  ;;  %v528_v16 = vadd.f32 %v496_v14, %v386_v12 }
  0x43   : > { %590 = vst [vmem:[%s804_s17 + $0xe8] sm:$0xff] %v558_v0  ;;  %v559_v17 = vmax.f32 %v527_v15, 0.0 }
  0x44   : > { %v560_v18 = vmax.f32 %v528_v16, 0.0 }
  0x45   : > { %591 = vst [vmem:[%s804_s17 + $0xf0] sm:$0xff] %v559_v17 }
  0x46   : > { %592 = vst [vmem:[%s804_s17 + $0xf8] sm:$0xff] %v560_v18 }
  0x47 PF: > { %s16_s21 = sadd.s32 1, %s692_s21  }
  0x48   : > { %p13_p4 = scmp.ge.s32.totalorder %s16_s21, 4  }
  0x4a   :  { %15 = sbr.rel (!%p13_p4) target bundleno = 1 (0x1), region = 77 }

// kernel: residual_block_mulgrid.19
= control target key start
LH: loop header
LB: loop body
LE: loop exit
PB: predicated region body
PF: predicated region fallthrough
CT: control target
= control target key end

     0   :  { %s1282_s18 = smov 0   ;;  %s1657_s0 = inlined_call_operand.vmem [shape: f32[512,128], index: 0, kind: input, shape index: {}]   ;;  %s1658_s1 = inlined_call_operand.vmem [shape: f32[128,128], index: 1, kind: input, shape index: {}]   ;;  %s1659_s2 = inlined_call_operand.vmem [shape: f32[1,128], index: 2, kind: input, shape index: {}]   ;;  %s1660_s3 = inlined_call_operand.vmem [shape: f32[1,128], index: 3, kind: input, shape index: {}]   ;;  %s1661_s4 = inlined_call_operand.vmem [shape: f32[512,128], index: 4, kind: output, shape index: {0}]   ;;  %s1662_s5 = inlined_call_operand.vmem [shape: f32[2,2,128], index: 5, kind: output, shape index: {1}]  }
   0x1 LB: > { %s1288_s19 = sadd.s32 4294967295, %s1250_s18   ;;  %p1049_p0 = scmp.ge.s32.totalorder %s1250_s18, 1  ;;  %s1250_s18 = sphi %s1282_s18, %s16_s18  }
   0x2   : > { %p191_p1 = scmp.lt.s32.totalorder %s1250_s18, 3 }
   0x4   : > { %p192_p2 = pnand %p1049_p0, %p191_p1 }
   0x5   : > { %v381_v0 = vld [vmem:[%s1658_s1] sm:$0xff] (!%p192_p2)  ;;  %v382_v1 = vld [vmem:[%s1658_s1 + $0x8] sm:$0xff] (!%p192_p2)  ;;  %v383_v2 = vld [vmem:[%s1658_s1 + $0x10] sm:$0xff] (!%p192_p2)  ;;  %s1050_s26 = sshll.u32 (!%p192_p2), %s1288_s19, 5  ;;  %s1057_s15 = sshll.u32 (!%p192_p2), %s1288_s19, 8 }
   0x6   : > { %195 = sbr.rel (%p192_p2) target bundleno = 334 (0x14e), region = 36  ;;  %v1188_v3 = vpack.c.bf16 (!%p192_p2), %v382_v1, %v381_v0  ;;  %v384_v4 = vld [vmem:[%s1658_s1 + $0x18] sm:$0xff] (!%p192_p2)  ;;  %p224_p3 = scmp.lt.s32.totalorder (!%p192_p2), %s1050_s26, 63  ;;  %v385_v6 = vld [vmem:[%s1658_s1 + $0x20] sm:$0xff] (!%p192_p2)  ;;  %v386_v7 = vld [vmem:[%s1658_s1 + $0x28] sm:$0xff] (!%p192_p2) }
   0x7   : > { %v1192_v5 = vpack.c.bf16 (!%p192_p2), %v384_v4, %v383_v2  ;;  %v1196_v8 = vpack.c.bf16 (!%p192_p2), %v386_v7, %v385_v6  ;;  %v1317_v9 = vld [vmem:[%s1659_s2] ss:$0 sm:$0xff] (!%p192_p2)  ;;  %v387_v10 = vld [vmem:[%s1658_s1 + $0x30] sm:$0xff] (!%p192_p2)  ;;  %v388_v11 = vld [vmem:[%s1658_s1 + $0x38] sm:$0xff] (!%p192_p2)  ;;  %p235_p4 = scmp.lt.s32.totalorder (!%p192_p2), %s1288_s19, 1 }
   0x8   : > { %1189 = vmatprep.subr.bf16.mxu0 (!%p192_p2), %v1188_v3  ;;  %1220 = vmatprep.subr.bf16.mxu1 (!%p192_p2), %v1188_v3  ;;  %v1336_v13 = vld [vmem:[%s1660_s3] ss:$0 sm:$0xff] (!%p192_p2)  ;;  %v1200_v15 = vpack.c.bf16 (!%p192_p2), %v388_v11, %v387_v10  ;;  %v390_v17 = vld [vmem:[%s1658_s1 + $0x48] sm:$0xff] (!%p192_p2)  ;;  %v391_v21 = vld [vmem:[%s1658_s1 + $0x50] sm:$0xff] (!%p192_p2) }
   0x9   : > { %1191 = vmatpush3.bf16.msra.mxu0 (!%p192_p2), %v1188_v3  ;;  %1228 = vmatpush3.bf16.msra.mxu1 (!%p192_p2), %v1188_v3  ;;  %v389_v16 = vld [vmem:[%s1658_s1 + $0x40] sm:$0xff] (!%p192_p2)  ;;  %v392_v22 = vld [vmem:[%s1658_s1 + $0x58] sm:$0xff] (!%p192_p2)  ;;  %v394_v26 = vld [vmem:[%s1658_s1 + $0x68] sm:$0xff] (!%p192_p2) }
   0xa   : > { %1193 = vmatprep.subr.bf16.mxu0 (!%p192_p2), %v1192_v5  ;;  %1221 = vmatprep.subr.bf16.mxu1 (!%p192_p2), %v1192_v5  ;;  %v1204_v20 = vpack.c.bf16 (!%p192_p2), %v390_v17, %v389_v16  ;;  %v1208_v23 = vpack.c.bf16 (!%p192_p2), %v392_v22, %v391_v21  ;;  %v393_v25 = vld [vmem:[%s1658_s1 + $0x60] sm:$0xff] (!%p192_p2)  ;;  %v395_v33 = vld [vmem:[%s1658_s1 + $0x70] sm:$0xff] (!%p192_p2)  ;;  %v396_v34 = vld [vmem:[%s1658_s1 + $0x78] sm:$0xff] (!%p192_p2) }
   0xb   : > { %v1212_v30 = vpack.c.bf16 (!%p192_p2), %v394_v26, %v393_v25  ;;  %v1216_v44 = vpack.c.bf16 (!%p192_p2), %v396_v34, %v395_v33 }
   0xd   : > { %s1664_s26 = smov (!%p224_p3, %s1050_s26), 63  ;;  %1195 = vmatpush3.bf16.msra.mxu0 %v1192_v5  ;;  %1229 = vmatpush3.bf16.msra.mxu1 %v1192_v5  ;;  %s1666_s19 = smov (!%p235_p4, %s1288_s19), 1 }
   0xe   : > { %s1051_s8 = sshll.u32 %s1664_s26, 3  ;;  %1197 = vmatprep.subr.bf16.mxu0 %v1196_v8  ;;  %1222 = vmatprep.subr.bf16.mxu1 %v1196_v8  ;;  %s1054_s26 = sshll.u32 %s1666_s19, 1 }
   0xf   : > { %s1330_s17 = scalar_lea.vmem %s1657_s0, %s1051_s8  ;;  %s1474_s20 = scalar_lea.vmem %s1661_s4, %s1051_s8 }
  0x10   : > { %v239_v12 = vld [vmem:[%s1330_s17] sm:$0xff]  ;;  %v240_v27 = vld [vmem:[%s1330_s17 + $0x8] sm:$0xff]  ;;  %v241_v31 = vld [vmem:[%s1330_s17 + $0x10] sm:$0xff]  ;;  %s238_s22 = scalar_lea.vmem %s1662_s5, %s1054_s26 }
  0x11   : > { %v278_v14 = vmul.f32 %v1317_v9, %v239_v12  ;;  %1199 = vmatpush3.bf16.msra.mxu0 %v1196_v8  ;;  %1230 = vmatpush3.bf16.msra.mxu1 %v1196_v8  ;;  %v255_v24 = vld [vmem:[%s1330_s17 + $0x80] sm:$0xff]  ;;  %v256_v29 = vld [vmem:[%s1330_s17 + $0x88] sm:$0xff]  ;;  %v257_v32 = vld [vmem:[%s1330_s17 + $0x90] sm:$0xff]  ;;  %v279_v36 = vmul.f32 %v1317_v9, %v240_v27  ;;  %v280_v40 = vmul.f32 %v1317_v9, %v241_v31 }
  0x12   : > { %1201 = vmatprep.subr.bf16.mxu0 %v1200_v15  ;;  %1223 = vmatprep.subr.bf16.mxu1 %v1200_v15  ;;  %v294_v28 = vmul.f32 %v1317_v9, %v255_v24  ;;  %v242_v37 = vld [vmem:[%s1330_s17 + $0x18] sm:$0xff]  ;;  %v243_v38 = vld [vmem:[%s1330_s17 + $0x20] sm:$0xff]  ;;  %v295_v39 = vmul.f32 %v1317_v9, %v256_v29  ;;  %v296_v42 = vmul.f32 %v1317_v9, %v257_v32  ;;  %v244_v49 = vld [vmem:[%s1330_s17 + $0x28] sm:$0xff] }
  0x13   : > { %v317_v18 = vadd.f32 %v1336_v13, %v278_v14  ;;  %v258_v43 = vld [vmem:[%s1330_s17 + $0x98] sm:$0xff]  ;;  %v259_v45 = vld [vmem:[%s1330_s17 + $0xa0] sm:$0xff]  ;;  %v281_v46 = vmul.f32 %v1317_v9, %v242_v37  ;;  %v282_v47 = vmul.f32 %v1317_v9, %v243_v38  ;;  %v318_v48 = vadd.f32 %v1336_v13, %v279_v36  ;;  %v245_v50 = vld [vmem:[%s1330_s17 + $0x30] sm:$0xff] }
  0x14   : > { %v333_v35 = vadd.f32 %v1336_v13, %v294_v28  ;;  %v334_v51 = vadd.f32 %v1336_v13, %v295_v39  ;;  %v297_v52 = vmul.f32 %v1317_v9, %v258_v43  ;;  %v319_v53 = vadd.f32 %v1336_v13, %v280_v40  ;;  %v260_v56 = vld [vmem:[%s1330_s17 + $0xa8] sm:$0xff]  ;;  %v261_v57 = vld [vmem:[%s1330_s17 + $0xb0] sm:$0xff]  ;;  %v246_v63 = vld [vmem:[%s1330_s17 + $0x38] sm:$0xff] }
  0x15   : > { %v349_v19 = vmax.f32 %v317_v18, 0.0  ;;  %1203 = vmatpush3.bf16.msra.mxu0 %v1200_v15  ;;  %1231 = vmatpush3.bf16.msra.mxu1 %v1200_v15  ;;  %v335_v54 = vadd.f32 %v1336_v13, %v296_v42  ;;  %v298_v55 = vmul.f32 %v1317_v9, %v259_v45  ;;  %v320_v58 = vadd.f32 %v1336_v13, %v281_v46  ;;  %v262_v7 = vld [vmem:[%s1330_s17 + $0xb8] sm:$0xff]  ;;  %v247_v8 = vld [vmem:[%s1330_s17 + $0x40] sm:$0xff]  ;;  %v248_v17 = vld [vmem:[%s1330_s17 + $0x48] sm:$0xff] }
  0x16   : > { %1205 = vmatprep.subr.bf16.mxu0 %v1204_v20  ;;  %1224 = vmatprep.subr.bf16.mxu1 %v1204_v20  ;;  %v365_v41 = vmax.f32 %v333_v35, 0.0  ;;  %v321_v59 = vadd.f32 %v1336_v13, %v282_v47  ;;  %v283_v60 = vmul.f32 %v1317_v9, %v244_v49  ;;  %v284_v61 = vmul.f32 %v1317_v9, %v245_v50  ;;  %v263_v10 = vld [vmem:[%s1330_s17 + $0xc0] sm:$0xff]  ;;  %v249_v22 = vld [vmem:[%s1330_s17 + $0x50] sm:$0xff]  ;;  %v264_v26 = vld [vmem:[%s1330_s17 + $0xc8] sm:$0xff] }
  0x17   : > { %1140 = vmatprep.mubr.f32.mxu0 %v349_v19  ;;  %v350_v62 = vmax.f32 %v318_v48, 0.0  ;;  %v366_v0 = vmax.f32 %v334_v51, 0.0  ;;  %v336_v1 = vadd.f32 %v1336_v13, %v297_v52  ;;  %v299_v2 = vmul.f32 %v1317_v9, %v260_v56  ;;  %v265_v27 = vld [vmem:[%s1330_s17 + $0xd0] sm:$0xff]  ;;  %v250_v33 = vld [vmem:[%s1330_s17 + $0x58] sm:$0xff]  ;;  %v251_v34 = vld [vmem:[%s1330_s17 + $0x60] sm:$0xff] }
  0x18   : > { %1164 = vmatprep.mubr.f32.mxu1 %v365_v41  ;;  %v351_v3 = vmax.f32 %v319_v53, 0.0  ;;  %v367_v4 = vmax.f32 %v335_v54, 0.0  ;;  %v337_v5 = vadd.f32 %v1336_v13, %v298_v55  ;;  %v300_v6 = vmul.f32 %v1317_v9, %v261_v57  ;;  %v266_v42 = vld [vmem:[%s1330_s17 + $0xd8] sm:$0xff]  ;;  %v267_v43 = vld [vmem:[%s1330_s17 + $0xe0] sm:$0xff]  ;;  %v252_v49 = vld [vmem:[%s1330_s17 + $0x68] sm:$0xff] }
  0x19   : > { %1207 = vmatpush3.bf16.msra.mxu0 %v1204_v20  ;;  %1232 = vmatpush3.bf16.msra.mxu1 %v1204_v20  ;;  %v352_v11 = vmax.f32 %v320_v58, 0.0  ;;  %v322_v12 = vadd.f32 %v1336_v13, %v283_v60  ;;  %v323_v14 = vadd.f32 %v1336_v13, %v284_v61  ;;  %v285_v15 = vmul.f32 %v1317_v9, %v246_v63  ;;  %v268_v57 = vld [vmem:[%s1330_s17 + $0xe8] sm:$0xff]  ;;  %v253_v58 = vld [vmem:[%s1330_s17 + $0x70] sm:$0xff] }
  0x1a   : > { %1209 = vmatprep.subr.bf16.mxu0 %v1208_v23  ;;  %1225 = vmatprep.subr.bf16.mxu1 %v1208_v23  ;;  %v353_v16 = vmax.f32 %v321_v59, 0.0  ;;  %v368_v18 = vmax.f32 %v336_v1, 0.0  ;;  %v338_v19 = vadd.f32 %v1336_v13, %v299_v2  ;;  %v301_v20 = vmul.f32 %v1317_v9, %v262_v7  ;;  %v269_v59 = vld [vmem:[%s1330_s17 + $0xf0] sm:$0xff] }
  0x1b   : > { %v286_v21 = vmul.f32 %v1317_v9, %v247_v8  ;;  %v339_v24 = vadd.f32 %v1336_v13, %v300_v6  ;;  %v302_v25 = vmul.f32 %v1317_v9, %v263_v10  ;;  %v354_v28 = vmax.f32 %v322_v12, 0.0  ;;  %v270_v10 = vld [vmem:[%s1330_s17 + $0xf8] sm:$0xff] }
  0x1c   : > { %v355_v29 = vmax.f32 %v323_v14, 0.0  ;;  %v287_v31 = vmul.f32 %v1317_v9, %v248_v17  ;;  %v288_v32 = vmul.f32 %v1317_v9, %v249_v22  ;;  %v370_v35 = vmax.f32 %v338_v19, 0.0 }
  0x1d   : > { %1211 = vmatpush3.bf16.msra.mxu0 %v1208_v23  ;;  %1233 = vmatpush3.bf16.msra.mxu1 %v1208_v23  ;;  %v369_v23 = vmax.f32 %v337_v5, 0.0  ;;  %v340_v36 = vadd.f32 %v1336_v13, %v301_v20  ;;  %v303_v37 = vmul.f32 %v1317_v9, %v264_v26  ;;  %v325_v38 = vadd.f32 %v1336_v13, %v286_v21  ;;  %v254_v5 = vld [vmem:[%s1330_s17 + $0x78] sm:$0xff] }
  0x1e   : > { %1213 = vmatprep.subr.bf16.mxu0 %v1212_v30  ;;  %1226 = vmatprep.subr.bf16.mxu1 %v1212_v30  ;;  %v371_v39 = vmax.f32 %v339_v24, 0.0  ;;  %v341_v40 = vadd.f32 %v1336_v13, %v302_v25  ;;  %v304_v41 = vmul.f32 %v1317_v9, %v265_v27  ;;  %v326_v45 = vadd.f32 %v1336_v13, %v287_v31 }
  0x1f   : > { %v289_v46 = vmul.f32 %v1317_v9, %v250_v33  ;;  %v290_v47 = vmul.f32 %v1317_v9, %v251_v34  ;;  %v327_v48 = vadd.f32 %v1336_v13, %v288_v32  ;;  %v372_v50 = vmax.f32 %v340_v36, 0.0 }
  0x20   : > { %v342_v51 = vadd.f32 %v1336_v13, %v303_v37  ;;  %v305_v52 = vmul.f32 %v1317_v9, %v266_v42  ;;  %v357_v53 = vmax.f32 %v325_v38, 0.0  ;;  %v373_v54 = vmax.f32 %v341_v40, 0.0 }
  0x21   : > { %1215 = vmatpush3.bf16.msra.mxu0 %v1212_v30  ;;  %1234 = vmatpush3.bf16.msra.mxu1 %v1212_v30  ;;  %v324_v30 = vadd.f32 %v1336_v13, %v285_v15  ;;  %v343_v55 = vadd.f32 %v1336_v13, %v304_v41  ;;  %v306_v56 = vmul.f32 %v1317_v9, %v267_v43  ;;  %v358_v60 = vmax.f32 %v326_v45, 0.0 }
  0x22   : > { %1217 = vmatprep.subr.bf16.mxu0 %v1216_v44  ;;  %1227 = vmatprep.subr.bf16.mxu1 %v1216_v44  ;;  %v328_v61 = vadd.f32 %v1336_v13, %v289_v46  ;;  %v291_v63 = vmul.f32 %v1317_v9, %v252_v49  ;;  %v374_v1 = vmax.f32 %v342_v51, 0.0  ;;  %v344_v2 = vadd.f32 %v1336_v13, %v305_v52 }
  0x23   : > { %v375_v6 = vmax.f32 %v343_v55, 0.0  ;;  %v345_v7 = vadd.f32 %v1336_v13, %v306_v56  ;;  %v308_v8 = vmul.f32 %v1317_v9, %v269_v59  ;;  %v293_v14 = vmul.f32 %v1317_v9, %v254_v5 }
  0x24   : > { %v330_v12 = vadd.f32 %v1336_v13, %v291_v63  ;;  %v376_v15 = vmax.f32 %v344_v2, 0.0  ;;  %v309_v17 = vmul.f32 %v1317_v9, %v270_v10 }
  0x25   : > { %1219 = vmatpush3.bf16.msra.mxu0 %v1216_v44  ;;  %1235 = vmatpush3.bf16.msra.mxu1 %v1216_v44  ;;  %v356_v44 = vmax.f32 %v324_v30, 0.0  ;;  %v377_v20 = vmax.f32 %v345_v7, 0.0  ;;  %v347_v21 = vadd.f32 %v1336_v13, %v308_v8 }
  0x26   : > { %v362_v22 = vmax.f32 %v330_v12, 0.0  ;;  %v348_v25 = vadd.f32 %v1336_v13, %v309_v17 }
  0x28   : > { %1141 = vmatmul.mubr.f32.vlgmr.msra.gmra.mrb[0].mxu0 %v350_v62  ;;  %1165 = vmatmul.mubr.f32.vlgmr.msra.gmra.mrb[0].mxu1 %v366_v0  ;;  %v329_v62 = vadd.f32 %v1336_v13, %v290_v47  ;;  %v359_v0 = vmax.f32 %v327_v48, 0.0 }
  0x29   : > { %1143 = vmatprep.mubr.f32.mxu0 %v351_v3  ;;  %1167 = vmatprep.mubr.f32.mxu1 %v367_v4  ;;  %v307_v3 = vmul.f32 %v1317_v9, %v268_v57  ;;  %v292_v4 = vmul.f32 %v1317_v9, %v253_v58  ;;  %v379_v9 = vmax.f32 %v347_v21, 0.0 }
  0x2b   : > { %v331_v19 = vadd.f32 %v1336_v13, %v292_v4 }
  0x2c   : > { %1144 = vmatmul.mubr.f32.gmra.mrb[2].mxu0 %v352_v11  ;;  %1168 = vmatmul.mubr.f32.gmra.mrb[2].mxu1 %v368_v18  ;;  %v360_v11 = vmax.f32 %v328_v61, 0.0  ;;  %v361_v18 = vmax.f32 %v329_v62, 0.0 }
  0x2d   : > { %1146 = vmatprep.mubr.f32.mxu0 %v353_v16  ;;  %1170 = vmatprep.mubr.f32.mxu1 %v369_v23  ;;  %v346_v16 = vadd.f32 %v1336_v13, %v307_v3  ;;  %v332_v23 = vadd.f32 %v1336_v13, %v293_v14  ;;  %v363_v26 = vmax.f32 %v331_v19, 0.0  ;;  %v1461_v13 = vstv %s1057_s15 }
  0x2f   : > { %v378_v24 = vmax.f32 %v346_v16, 0.0  ;;  %v364_v27 = vmax.f32 %v332_v23, 0.0 }
  0x30   : > { %1147 = vmatmul.mubr.f32.gmra.mrb[4].mxu0 %v354_v28  ;;  %1171 = vmatmul.mubr.f32.gmra.mrb[4].mxu1 %v370_v35  ;;  %v380_v28 = vmax.f32 %v348_v25, 0.0 }
  0x31   : > { %1149 = vmatprep.mubr.f32.mxu0 %v355_v29  ;;  %1173 = vmatprep.mubr.f32.mxu1 %v371_v39  ;;  %v655_v29 = vlaneseq }
  0x33   : > { %v1457_v30 = vshrl.u32 %v655_v29, 7 }
  0x34   : > { %1150 = vmatmul.mubr.f32.gmra.mrb[6].mxu0 %v356_v44  ;;  %1174 = vmatmul.mubr.f32.gmra.mrb[6].mxu1 %v372_v50 }
  0x35   : > { %1152 = vmatprep.mubr.f32.mxu0 %v357_v53  ;;  %1176 = vmatprep.mubr.f32.mxu1 %v373_v54  ;;  %v657_v31 = vadd.s32 8, %v1457_v30  ;;  %v659_v33 = vadd.s32 24, %v1457_v30  ;;  %v658_v34 = vadd.s32 16, %v1457_v30  ;;  %v689_v35 = vadd.s32 %v1461_v13, %v1457_v30 }
  0x36   : > { %v661_v36 = vadd.s32 40, %v1457_v30  ;;  %v660_v39 = vadd.s32 32, %v1457_v30  ;;  %v663_v41 = vadd.s32 56, %v1457_v30  ;;  %v662_v52 = vadd.s32 48, %v1457_v30 }
  0x37   : > { %v690_v32 = vadd.s32 %v1461_v13, %v657_v31  ;;  %v692_v37 = vadd.s32 %v1461_v13, %v659_v33  ;;  %v691_v38 = vadd.s32 %v1461_v13, %v658_v34  ;;  %vm721_vm1 = vcmp.lt.s32.totalorder %v689_v35, 512 }
  0x38   : > { %1153 = vmatmul.mubr.f32.gmra.mrb[8].mxu0 %v358_v60  ;;  %1177 = vmatmul.mubr.f32.gmra.mrb[8].mxu1 %v374_v1  ;;  %v694_v45 = vadd.s32 %v1461_v13, %v661_v36  ;;  %v693_v51 = vadd.s32 %v1461_v13, %v660_v39  ;;  %v696_v54 = vadd.s32 %v1461_v13, %v663_v41  ;;  %v665_v61 = vadd.s32 72, %v1457_v30 }
  0x39   : > { %1155 = vmatprep.mubr.f32.mxu0 %v359_v0  ;;  %1179 = vmatprep.mubr.f32.mxu1 %v375_v6  ;;  %vm722_vm0 = vcmp.lt.s32.totalorder %v690_v32, 512  ;;  %vm724_vm2 = vcmp.lt.s32.totalorder %v692_v37, 512  ;;  %vm723_vm3 = vcmp.lt.s32.totalorder %v691_v38, 512  ;;  %v664_v62 = vadd.s32 64, %v1457_v30 }
  0x3a   : > { %vm726_vm4 = vcmp.lt.s32.totalorder %v694_v45, 512  ;;  %vm725_vm5 = vcmp.lt.s32.totalorder %v693_v51, 512  ;;  %v695_v1 = vadd.s32 %v1461_v13, %v662_v52  ;;  %vm728_vm6 = vcmp.lt.s32.totalorder %v696_v54, 512 }
  0x3b   : > { %v667_v3 = vadd.s32 88, %v1457_v30  ;;  %v666_v10 = vadd.s32 80, %v1457_v30  ;;  %v697_v16 = vadd.s32 %v1461_v13, %v664_v62  ;;  %v668_v35 = vadd.s32 96, %v1457_v30 }
  0x3c   : > { %1156 = vmatmul.mubr.f32.gmra.mrb[10].mxu0 %v360_v11  ;;  %1180 = vmatmul.mubr.f32.gmra.mrb[10].mxu1 %v376_v15  ;;  %v698_v15 = vadd.s32 %v1461_v13, %v665_v61  ;;  %vm727_vm7 = vcmp.lt.s32.totalorder %v695_v1, 512  ;;  %v671_v38 = vadd.s32 120, %v1457_v30  ;;  %v674_v1 = vadd.s32 144, %v1457_v30 }
  0x3d   : > { %1158 = vmatprep.mubr.f32.mxu0 %v361_v18  ;;  %1182 = vmatprep.mubr.f32.mxu1 %v377_v20  ;;  %v700_v21 = vadd.s32 %v1461_v13, %v667_v3  ;;  %vm729_vm9 = vcmp.lt.s32.totalorder %v697_v16, 512  ;;  %v701_v54 = vadd.s32 %v1461_v13, %v668_v35  ;;  %v675_v16 = vadd.s32 152, %v1457_v30 }
  0x3e   : > { %vm730_vm8 = vcmp.lt.s32.totalorder %v698_v15, 512 }
  0x3f   : > { %vm732_vm10 = vcmp.lt.s32.totalorder %v700_v21, 512  ;;  %vm733_vm13 = vcmp.lt.s32.totalorder %v701_v54, 512 }
  0x40   : > { %1159 = vmatmul.mubr.f32.gmra.mrb[12].mxu0 %v362_v22  ;;  %1183 = vmatmul.mubr.f32.gmra.mrb[12].mxu1 %v378_v24  ;;  %v669_v22 = vadd.s32 104, %v1457_v30 }
  0x41   : > { %1161 = vmatprep.mubr.f32.mxu0 %v363_v26  ;;  %1185 = vmatprep.mubr.f32.mxu1 %v379_v9 }
  0x42   : > { %v702_v37 = vadd.s32 %v1461_v13, %v669_v22  ;;  %v707_v22 = vadd.s32 %v1461_v13, %v674_v1 }
  0x44   : > { %1162 = vmatmul.mubr.f32.gmra.mrb[14].mxu0 %v364_v27  ;;  %1186 = vmatmul.mubr.f32.gmra.mrb[14].mxu1 %v380_v28  ;;  %v699_v27 = vadd.s32 %v1461_v13, %v666_v10  ;;  %vm734_vm12 = vcmp.lt.s32.totalorder %v702_v37, 512 }
  0x46   : > { %vm731_vm11 = vcmp.lt.s32.totalorder %v699_v27, 512 }
  0xfb   : > { %v1142_v40 = vpop.f32.mrb[0].mxu0  ;;  %v1480_v42 = vpop.f32.mrb[0].mxu1 }
  0xfc   : > { %623 = vst [vmem:[%s1474_s20 + $0x8] sm:$0xff] %v1142_v40  ;;  %v818_v43 = vsel %vm722_vm0, %v1142_v40, 0.0  ;;  %v463_v44 = vpop.f32.mrb[1].mxu0  ;;  %639 = vst [vmem:[%s1474_s20 + $0x88] sm:$0xff] %v1480_v42  ;;  %v1486_v46 = vpop.f32.mrb[1].mxu1 }
  0xfd   : > { %v887_v47 = vmul.f32 %v818_v43, %v818_v43  ;;  %622 = vst [vmem:[%s1474_s20] sm:$0xff] %v463_v44  ;;  %v817_v48 = vsel %vm721_vm1, %v463_v44, 0.0  ;;  %638 = vst [vmem:[%s1474_s20 + $0x80] sm:$0xff] %v1486_v46 }
  0xfe   : > { %v849_v49 = vadd.f32 %v818_v43, %v817_v48  ;;  %v886_v50 = vmul.f32 %v817_v48, %v817_v48 }
  0xff   : > { %v1145_v53 = vpop.f32.mrb[2].mxu0  ;;  %v1494_v55 = vpop.f32.mrb[2].mxu1 }
 0x100   : > { %v918_v56 = vadd.f32 %v887_v47, %v886_v50  ;;  %625 = vst [vmem:[%s1474_s20 + $0x18] sm:$0xff] %v1145_v53  ;;  %v473_v57 = vpop.f32.mrb[3].mxu0  ;;  %641 = vst [vmem:[%s1474_s20 + $0x98] sm:$0xff] %v1494_v55  ;;  %v1499_v58 = vpop.f32.mrb[3].mxu1  ;;  %v820_v59 = vsel %vm724_vm2, %v1145_v53, 0.0  ;;  %v672_v50 = vadd.s32 128, %v1457_v30 }
 0x101   : > { %624 = vst [vmem:[%s1474_s20 + $0x10] sm:$0xff] %v473_v57  ;;  %v819_v60 = vsel %vm723_vm3, %v473_v57, 0.0  ;;  %640 = vst [vmem:[%s1474_s20 + $0x90] sm:$0xff] %v1499_v58  ;;  %v889_v5 = vmul.f32 %v820_v59, %v820_v59  ;;  %v704_v57 = vadd.s32 %v1461_v13, %v671_v38  ;;  %vm739_vm2 = vcmp.lt.s32.totalorder %v707_v22, 512 }
 0x102   : > { %v850_v63 = vadd.f32 %v849_v49, %v819_v60  ;;  %v888_v0 = vmul.f32 %v819_v60, %v819_v60  ;;  %v670_v49 = vadd.s32 112, %v1457_v30 }
 0x103   : > { %v1148_v2 = vpop.f32.mrb[4].mxu0  ;;  %v1510_v4 = vpop.f32.mrb[4].mxu1  ;;  %vm736_vm14 = vcmp.lt.s32.totalorder %v704_v57, 512 }
 0x104   : > { %v919_v6 = vadd.f32 %v918_v56, %v888_v0  ;;  %627 = vst [vmem:[%s1474_s20 + $0x28] sm:$0xff] %v1148_v2  ;;  %v483_v7 = vpop.f32.mrb[5].mxu0  ;;  %v851_v8 = vadd.f32 %v850_v63, %v820_v59  ;;  %643 = vst [vmem:[%s1474_s20 + $0xa8] sm:$0xff] %v1510_v4  ;;  %v1516_v11 = vpop.f32.mrb[5].mxu1  ;;  %v822_v12 = vsel %vm726_vm4, %v1148_v2, 0.0  ;;  %v673_v59 = vadd.s32 136, %v1457_v30 }
 0x105   : > { %626 = vst [vmem:[%s1474_s20 + $0x20] sm:$0xff] %v483_v7  ;;  %v821_v14 = vsel %vm725_vm5, %v483_v7, 0.0  ;;  %642 = vst [vmem:[%s1474_s20 + $0xa0] sm:$0xff] %v1516_v11  ;;  %v891_v24 = vmul.f32 %v822_v12, %v822_v12  ;;  %v705_v7 = vadd.s32 %v1461_v13, %v672_v50 }
 0x106   : > { %v852_v17 = vadd.f32 %v851_v8, %v821_v14  ;;  %v890_v18 = vmul.f32 %v821_v14, %v821_v14  ;;  %v920_v19 = vadd.f32 %v919_v6, %v889_v5  ;;  %v703_v6 = vadd.s32 %v1461_v13, %v670_v49 }
 0x107   : > { %v1151_v20 = vpop.f32.mrb[6].mxu0  ;;  %v1527_v23 = vpop.f32.mrb[6].mxu1  ;;  %v706_v15 = vadd.s32 %v1461_v13, %v673_v59  ;;  %vm737_vm0 = vcmp.lt.s32.totalorder %v705_v7, 512 }
 0x108   : > { %v921_v25 = vadd.f32 %v920_v19, %v890_v18  ;;  %629 = vst [vmem:[%s1474_s20 + $0x38] sm:$0xff] %v1151_v20  ;;  %v493_v26 = vpop.f32.mrb[7].mxu0  ;;  %v853_v9 = vadd.f32 %v852_v17, %v822_v12  ;;  %645 = vst [vmem:[%s1474_s20 + $0xb8] sm:$0xff] %v1527_v23  ;;  %v1533_v28 = vpop.f32.mrb[7].mxu1  ;;  %v824_v29 = vsel %vm728_vm6, %v1151_v20, 0.0  ;;  %vm735_vm15 = vcmp.lt.s32.totalorder %v703_v6, 512 }
 0x109   : > { %628 = vst [vmem:[%s1474_s20 + $0x30] sm:$0xff] %v493_v26  ;;  %v823_v31 = vsel %vm727_vm7, %v493_v26, 0.0  ;;  %644 = vst [vmem:[%s1474_s20 + $0xb0] sm:$0xff] %v1533_v28  ;;  %v893_v40 = vmul.f32 %v824_v29, %v824_v29  ;;  %vm738_vm1 = vcmp.lt.s32.totalorder %v706_v15, 512 }
 0x10a   : > { %v854_v32 = vadd.f32 %v853_v9, %v823_v31  ;;  %v892_v33 = vmul.f32 %v823_v31, %v823_v31  ;;  %v922_v34 = vadd.f32 %v921_v25, %v891_v24  ;;  %v676_v31 = vadd.s32 160, %v1457_v30 }
 0x10b   : > { %v1154_v36 = vpop.f32.mrb[8].mxu0  ;;  %v1542_v39 = vpop.f32.mrb[8].mxu1 }
 0x10c   : > { %v923_v41 = vadd.f32 %v922_v34, %v892_v33  ;;  %631 = vst [vmem:[%s1474_s20 + $0x48] sm:$0xff] %v1154_v36  ;;  %v503_v43 = vpop.f32.mrb[9].mxu0  ;;  %v855_v44 = vadd.f32 %v854_v32, %v824_v29  ;;  %647 = vst [vmem:[%s1474_s20 + $0xc8] sm:$0xff] %v1542_v39  ;;  %v1547_v45 = vpop.f32.mrb[9].mxu1  ;;  %v826_v47 = vsel %vm730_vm8, %v1154_v36, 0.0  ;;  %v708_v33 = vadd.s32 %v1461_v13, %v675_v16 }
 0x10d   : > { %630 = vst [vmem:[%s1474_s20 + $0x40] sm:$0xff] %v503_v43  ;;  %v825_v48 = vsel %vm729_vm9, %v503_v43, 0.0  ;;  %646 = vst [vmem:[%s1474_s20 + $0xc0] sm:$0xff] %v1547_v45  ;;  %v895_v61 = vmul.f32 %v826_v47, %v826_v47  ;;  %v677_v34 = vadd.s32 168, %v1457_v30 }
 0x10e   : > { %v856_v51 = vadd.f32 %v855_v44, %v825_v48  ;;  %v894_v52 = vmul.f32 %v825_v48, %v825_v48  ;;  %v924_v53 = vadd.f32 %v923_v41, %v893_v40  ;;  %v678_v48 = vadd.s32 176, %v1457_v30 }
 0x10f   : > { %v1157_v56 = vpop.f32.mrb[10].mxu0  ;;  %v1559_v60 = vpop.f32.mrb[10].mxu1  ;;  %vm740_vm3 = vcmp.lt.s32.totalorder %v708_v33, 512 }
 0x110   : > { %v925_v62 = vadd.f32 %v924_v53, %v894_v52  ;;  %633 = vst [vmem:[%s1474_s20 + $0x58] sm:$0xff] %v1157_v56  ;;  %v513_v63 = vpop.f32.mrb[11].mxu0  ;;  %v857_v0 = vadd.f32 %v856_v51, %v826_v47  ;;  %649 = vst [vmem:[%s1474_s20 + $0xd8] sm:$0xff] %v1559_v60  ;;  %v1565_v2 = vpop.f32.mrb[11].mxu1  ;;  %v828_v3 = vsel %vm732_vm10, %v1157_v56, 0.0  ;;  %v833_v47 = vsel %vm737_vm0, %v1486_v46, 0.0 }
 0x111   : > { %632 = vst [vmem:[%s1474_s20 + $0x50] sm:$0xff] %v513_v63  ;;  %v827_v5 = vsel %vm731_vm11, %v513_v63, 0.0  ;;  %648 = vst [vmem:[%s1474_s20 + $0xd0] sm:$0xff] %v1565_v2  ;;  %v897_v18 = vmul.f32 %v828_v3, %v828_v3  ;;  %v709_v52 = vadd.s32 %v1461_v13, %v676_v31  ;;  %v710_v53 = vadd.s32 %v1461_v13, %v677_v34 }
 0x112   : > { %v858_v8 = vadd.f32 %v857_v0, %v827_v5  ;;  %v896_v10 = vmul.f32 %v827_v5, %v827_v5  ;;  %v926_v12 = vadd.f32 %v925_v62, %v895_v61  ;;  %v902_v59 = vmul.f32 %v833_v47, %v833_v47 }
 0x113   : > { %v1160_v14 = vpop.f32.mrb[12].mxu0  ;;  %v1576_v17 = vpop.f32.mrb[12].mxu1  ;;  %v834_v61 = vsel %vm738_vm1, %v1480_v42, 0.0  ;;  %v835_v46 = vsel %vm739_vm2, %v1499_v58, 0.0  ;;  %v679_v62 = vadd.s32 184, %v1457_v30  ;;  %v711_v63 = vadd.s32 %v1461_v13, %v678_v48 }
 0x114   : > { %v927_v19 = vadd.f32 %v926_v12, %v896_v10  ;;  %635 = vst [vmem:[%s1474_s20 + $0x68] sm:$0xff] %v1160_v14  ;;  %v523_v20 = vpop.f32.mrb[13].mxu0  ;;  %v859_v21 = vadd.f32 %v858_v8, %v828_v3  ;;  %651 = vst [vmem:[%s1474_s20 + $0xe8] sm:$0xff] %v1576_v17  ;;  %v1582_v24 = vpop.f32.mrb[13].mxu1  ;;  %v830_v25 = vsel %vm734_vm12, %v1160_v14, 0.0  ;;  %vm741_vm4 = vcmp.lt.s32.totalorder %v709_v52, 512 }
 0x115   : > { %634 = vst [vmem:[%s1474_s20 + $0x60] sm:$0xff] %v523_v20  ;;  %v829_v26 = vsel %vm733_vm13, %v523_v20, 0.0  ;;  %650 = vst [vmem:[%s1474_s20 + $0xe0] sm:$0xff] %v1582_v24  ;;  %v899_v36 = vmul.f32 %v830_v25, %v830_v25  ;;  %v680_v3 = vadd.s32 192, %v1457_v30  ;;  %vm742_vm5 = vcmp.lt.s32.totalorder %v710_v53, 512 }
 0x116   : > { %v860_v9 = vadd.f32 %v859_v21, %v829_v26  ;;  %v898_v27 = vmul.f32 %v829_v26, %v829_v26  ;;  %v928_v29 = vadd.f32 %v927_v19, %v897_v18  ;;  %v681_v5 = vadd.s32 200, %v1457_v30 }
 0x117   : > { %v1163_v32 = vpop.f32.mrb[14].mxu0  ;;  %v1592_v35 = vpop.f32.mrb[14].mxu1  ;;  %v903_v6 = vmul.f32 %v834_v61, %v834_v61  ;;  %v904_v10 = vmul.f32 %v835_v46, %v835_v46  ;;  %v836_v42 = vsel %vm740_vm3, %v1494_v55, 0.0  ;;  %v837_v58 = vsel %vm741_vm4, %v1516_v11, 0.0 }
 0x118   : > { %v929_v37 = vadd.f32 %v928_v29, %v898_v27  ;;  %637 = vst [vmem:[%s1474_s20 + $0x78] sm:$0xff] %v1163_v32  ;;  %v533_v38 = vpop.f32.mrb[15].mxu0  ;;  %v861_v40 = vadd.f32 %v860_v9, %v830_v25  ;;  %653 = vst [vmem:[%s1474_s20 + $0xf8] sm:$0xff] %v1592_v35  ;;  %v1597_v41 = vpop.f32.mrb[15].mxu1  ;;  %v832_v43 = vsel %vm736_vm14, %v1163_v32, 0.0  ;;  %v712_v12 = vadd.s32 %v1461_v13, %v679_v62 }
 0x119   : > { %636 = vst [vmem:[%s1474_s20 + $0x70] sm:$0xff] %v533_v38  ;;  %v831_v44 = vsel %vm735_vm15, %v533_v38, 0.0  ;;  %652 = vst [vmem:[%s1474_s20 + $0xf0] sm:$0xff] %v1597_v41  ;;  %v901_v54 = vmul.f32 %v832_v43, %v832_v43  ;;  %vm743_vm6 = vcmp.lt.s32.totalorder %v711_v63, 512  ;;  %v713_v16 = vadd.s32 %v1461_v13, %v680_v3 }
 0x11a   : > { %v862_v49 = vadd.f32 %v861_v40, %v831_v44  ;;  %v900_v50 = vmul.f32 %v831_v44, %v831_v44  ;;  %v930_v51 = vadd.f32 %v929_v37, %v899_v36  ;;  %v682_v18 = vadd.s32 208, %v1457_v30 }
 0x11b   : > { %v714_v19 = vadd.s32 %v1461_v13, %v681_v5  ;;  %v683_v20 = vadd.s32 216, %v1457_v30  ;;  %v905_v21 = vmul.f32 %v836_v42, %v836_v42  ;;  %v906_v26 = vmul.f32 %v837_v58, %v837_v58 }
 0x11c   : > { %v863_v56 = vadd.f32 %v862_v49, %v832_v43  ;;  %v931_v57 = vadd.f32 %v930_v51, %v900_v50  ;;  %v838_v55 = vsel %vm742_vm5, %v1510_v4, 0.0  ;;  %vm744_vm7 = vcmp.lt.s32.totalorder %v712_v12, 512 }
 0x11d   : > { %v839_v11 = vsel %vm743_vm6, %v1533_v28, 0.0  ;;  %v684_v9 = vadd.s32 224, %v1457_v30  ;;  %vm745_vm8 = vcmp.lt.s32.totalorder %v713_v16, 512  ;;  %v715_v31 = vadd.s32 %v1461_v13, %v682_v18 }
 0x11e   : > { %v932_v0 = vadd.f32 %v931_v57, %v901_v54  ;;  %v864_v1 = vadd.f32 %v863_v56, %v833_v47  ;;  %vm746_vm9 = vcmp.lt.s32.totalorder %v714_v19, 512  ;;  %v716_v32 = vadd.s32 %v1461_v13, %v683_v20 }
 0x11f   : > { %v907_v33 = vmul.f32 %v838_v55, %v838_v55  ;;  %v908_v37 = vmul.f32 %v839_v11, %v839_v11  ;;  %v840_v38 = vsel %vm744_vm7, %v1527_v23, 0.0  ;;  %v841_v4 = vsel %vm745_vm8, %v1547_v45, 0.0 }
 0x120   : > { %v933_v7 = vadd.f32 %v932_v0, %v902_v59  ;;  %v865_v8 = vadd.f32 %v864_v1, %v834_v61  ;;  %v685_v28 = vadd.s32 232, %v1457_v30  ;;  %v717_v40 = vadd.s32 %v1461_v13, %v684_v9 }
 0x121   : > { %vm747_vm10 = vcmp.lt.s32.totalorder %v715_v31, 512  ;;  %v686_v47 = vadd.s32 240, %v1457_v30  ;;  %vm748_vm11 = vcmp.lt.s32.totalorder %v716_v32, 512  ;;  %v909_v48 = vmul.f32 %v840_v38, %v840_v38 }
 0x122   : > { %v866_v14 = vadd.f32 %v865_v8, %v835_v46  ;;  %v934_v15 = vadd.f32 %v933_v7, %v903_v6  ;;  %v910_v51 = vmul.f32 %v841_v4, %v841_v4  ;;  %v842_v52 = vsel %vm746_vm9, %v1542_v39, 0.0 }
 0x123   : > { %v843_v23 = vsel %vm747_vm10, %v1565_v2, 0.0  ;;  %v718_v45 = vadd.s32 %v1461_v13, %v685_v28  ;;  %vm749_vm12 = vcmp.lt.s32.totalorder %v717_v40, 512  ;;  %v687_v56 = vadd.s32 248, %v1457_v30 }
 0x124   : > { %v935_v22 = vadd.f32 %v934_v15, %v904_v10  ;;  %v867_v25 = vadd.f32 %v866_v14, %v836_v42  ;;  %v719_v57 = vadd.s32 %v1461_v13, %v686_v47  ;;  %v911_v59 = vmul.f32 %v842_v52, %v842_v52 }
 0x125   : > { %v912_v62 = vmul.f32 %v843_v23, %v843_v23  ;;  %v844_v63 = vsel %vm748_vm11, %v1559_v60, 0.0  ;;  %vm750_vm13 = vcmp.lt.s32.totalorder %v718_v45, 512  ;;  %v845_v39 = vsel %vm749_vm12, %v1582_v24, 0.0 }
 0x126   : > { %v868_v27 = vadd.f32 %v867_v25, %v837_v58  ;;  %v936_v29 = vadd.f32 %v935_v22, %v905_v21  ;;  %v720_v1 = vadd.s32 %v1461_v13, %v687_v56  ;;  %vm751_vm14 = vcmp.lt.s32.totalorder %v719_v57, 512 }
 0x127   : > { %v913_v3 = vmul.f32 %v844_v63, %v844_v63  ;;  %v914_v6 = vmul.f32 %v845_v39, %v845_v39  ;;  %v846_v7 = vsel %vm750_vm13, %v1576_v17, 0.0  ;;  %v847_v8 = vsel %vm751_vm14, %v1597_v41, 0.0 }
 0x128   : > { %v937_v34 = vadd.f32 %v936_v29, %v906_v26  ;;  %v869_v36 = vadd.f32 %v868_v27, %v838_v55  ;;  %vm752_vm15 = vcmp.lt.s32.totalorder %v720_v1, 512  ;;  %v915_v60 = vmul.f32 %v846_v7, %v846_v7 }
 0x129   : > { %v916_v12 = vmul.f32 %v847_v8, %v847_v8  ;;  %v848_v13 = vsel %vm752_vm15, %v1592_v35, 0.0  ;;  %vm955_vm0 = vcmask 1040384  }
 0x12a   : > { %v870_v43 = vadd.f32 %v869_v36, %v839_v11  ;;  %v938_v44 = vadd.f32 %v937_v34, %v907_v33  ;;  %v917_v16 = vmul.f32 %v848_v13, %v848_v13 }
 0x12c   : > { %v939_v49 = vadd.f32 %v938_v44, %v908_v37  ;;  %v871_v50 = vadd.f32 %v870_v43, %v840_v38 }
 0x12e   : > { %v872_v53 = vadd.f32 %v871_v50, %v841_v4  ;;  %v940_v54 = vadd.f32 %v939_v49, %v909_v48 }
 0x130   : > { %v941_v61 = vadd.f32 %v940_v54, %v910_v51  ;;  %v873_v46 = vadd.f32 %v872_v53, %v842_v52 }
 0x132   : > { %v874_v2 = vadd.f32 %v873_v46, %v843_v23  ;;  %v942_v0 = vadd.f32 %v941_v61, %v911_v59 }
 0x134   : > { %v943_v5 = vadd.f32 %v942_v0, %v912_v62  ;;  %v875_v30 = vadd.f32 %v874_v2, %v844_v63 }
 0x136   : > { %v876_v10 = vadd.f32 %v875_v30, %v845_v39  ;;  %v944_v42 = vadd.f32 %v943_v5, %v913_v3 }
 0x138   : > { %v945_v58 = vadd.f32 %v944_v42, %v914_v6  ;;  %v877_v24 = vadd.f32 %v876_v10, %v846_v7 }
 0x13a   : > { %v878_v14 = vadd.f32 %v877_v24, %v847_v8  ;;  %v946_v15 = vadd.f32 %v945_v58, %v915_v60 }
 0x13c   : > { %v879_v18 = vadd.f32 %v878_v14, %v848_v13  ;;  %v947_v19 = vadd.f32 %v946_v15, %v916_v12 }
 0x13e   : > { %v880_v20 = vrot.slane %v879_v18, 4  ;;  %v948_v17 = vadd.f32 %v947_v19, %v917_v16 }
 0x140   : > { %v881_v41 = vadd.f32 %v880_v20, %v879_v18  ;;  %v949_v21 = vrot.slane %v948_v17, 4 }
 0x142   : > { %v882_v22 = vrot.slane %v881_v41, 2  ;;  %v950_v25 = vadd.f32 %v949_v21, %v948_v17 }
 0x144   : > { %v883_v26 = vadd.f32 %v882_v22, %v881_v41  ;;  %v951_v55 = vrot.slane %v950_v25, 2 }
 0x146   : > { %v884_v11 = vrot.slane %v883_v26, 1  ;;  %v952_v9 = vadd.f32 %v951_v55, %v950_v25 }
 0x148   : > { %v953_v27 = vrot.slane %v952_v9, 1  ;;  %v885_v35 = vadd.f32 %v884_v11, %v883_v26 }
 0x14a   : > { %v954_v29 = vadd.f32 %v953_v27, %v952_v9 }
 0x14c   : > { %v956_v31 = vsel %vm955_vm0, %v885_v35, %v954_v29 }
 0x14d   : > { %957 = vst [vmem:[%s238_s22] sm:$0x3] %v956_v31 }
 0x14e PF: > { %s16_s18 = sadd.s32 1, %s1250_s18  }
 0x14f   : > { %p13_p5 = scmp.ge.s32.totalorder %s16_s18, 4  }
 0x151   :  { %15 = sbr.rel (!%p13_p5) target bundleno = 1 (0x1), region = 78 }

// kernel: residual_block_mulgrid.26
= control target key start
LH: loop header
LB: loop body
LE: loop exit
PB: predicated region body
PF: predicated region fallthrough
CT: control target
= control target key end

     0   :  { %s585_s15 = smov 0   ;;  %s786_s0 = inlined_call_operand.vmem [shape: f32[512,128], index: 0, kind: input, shape index: {}]   ;;  %s787_s1 = inlined_call_operand.vmem [shape: f32[1,128], index: 1, kind: input, shape index: {}]   ;;  %s788_s2 = inlined_call_operand.vmem [shape: f32[1,128], index: 2, kind: input, shape index: {}]   ;;  %s789_s3 = inlined_call_operand.vmem [shape: f32[512,128], index: 3, kind: input, shape index: {}]   ;;  %s790_s4 = inlined_call_operand.vmem [shape: f32[512,128], index: 4, kind: output, shape index: {}]  }
   0x1 LB: > { %s529_s16 = sadd.s32 4294967295, %s558_s15   ;;  %p533_p0 = scmp.ge.s32.totalorder %s558_s15, 1  ;;  %s558_s15 = sphi %s585_s15, %s14_s15  }
   0x2   : > { %p174_p1 = scmp.lt.s32.totalorder %s558_s15, 3 }
   0x4   : > { %p175_p2 = pnand %p533_p0, %p174_p1 }
   0x5   : > { %s534_s17 = sshll.u32 (!%p175_p2), %s529_s16, 5  ;;  %v598_v0 = vld [vmem:[%s787_s1] ss:$0 sm:$0xff] (!%p175_p2) }
   0x6   : > { %178 = sbr.rel (%p175_p2) target bundleno = 55 (0x37), region = 36  ;;  %p206_p3 = scmp.lt.s32.totalorder (!%p175_p2), %s534_s17, 63  ;;  %v616_v2 = vld [vmem:[%s788_s2] ss:$0 sm:$0xff] (!%p175_p2) }
   0xd   : > { %s792_s17 = smov (!%p206_p3, %s534_s17), 63 }
   0xe   : > { %s593_s18 = sshll.u32 %s792_s17, 3 }
   0xf   : > { %s604_s23 = scalar_lea.vmem %s786_s0, %s593_s18  ;;  %s610_s26 = scalar_lea.vmem %s789_s3, %s593_s18 }
  0x10   : > { %v223_v1 = vld [vmem:[%s604_s23] sm:$0xff]  ;;  %v224_v3 = vld [vmem:[%s604_s23 + $0x8] sm:$0xff]  ;;  %v225_v7 = vld [vmem:[%s604_s23 + $0x10] sm:$0xff]  ;;  %s646_s5 = scalar_lea.vmem %s790_s4, %s593_s18 }
  0x11   : > { %v262_v4 = vmul.f32 %v598_v0, %v223_v1  ;;  %v333_v5 = vld [vmem:[%s610_s26] sm:$0xff]  ;;  %v263_v6 = vmul.f32 %v598_v0, %v224_v3  ;;  %v334_v8 = vld [vmem:[%s610_s26 + $0x8] sm:$0xff]  ;;  %v264_v9 = vmul.f32 %v598_v0, %v225_v7  ;;  %v226_v10 = vld [vmem:[%s604_s23 + $0x18] sm:$0xff] }
  0x12   : > { %v227_v11 = vld [vmem:[%s604_s23 + $0x20] sm:$0xff]  ;;  %v335_v14 = vld [vmem:[%s610_s26 + $0x10] sm:$0xff]  ;;  %v265_v15 = vmul.f32 %v598_v0, %v226_v10  ;;  %v336_v16 = vld [vmem:[%s610_s26 + $0x18] sm:$0xff] }
  0x13   : > { %v301_v12 = vadd.f32 %v616_v2, %v262_v4  ;;  %v302_v13 = vadd.f32 %v616_v2, %v263_v6  ;;  %v266_v17 = vmul.f32 %v598_v0, %v227_v11  ;;  %v228_v18 = vld [vmem:[%s604_s23 + $0x28] sm:$0xff]  ;;  %v303_v19 = vadd.f32 %v616_v2, %v264_v9  ;;  %v337_v20 = vld [vmem:[%s610_s26 + $0x20] sm:$0xff]  ;;  %v229_v22 = vld [vmem:[%s604_s23 + $0x30] sm:$0xff] }
  0x14   : > { %v267_v21 = vmul.f32 %v598_v0, %v228_v18  ;;  %v230_v23 = vld [vmem:[%s604_s23 + $0x38] sm:$0xff]  ;;  %v304_v26 = vadd.f32 %v616_v2, %v265_v15  ;;  %v338_v28 = vld [vmem:[%s610_s26 + $0x28] sm:$0xff]  ;;  %v268_v31 = vmul.f32 %v598_v0, %v229_v22  ;;  %v231_v33 = vld [vmem:[%s604_s23 + $0x40] sm:$0xff] }
  0x15   : > { %v365_v24 = vadd.f32 %v333_v5, %v301_v12  ;;  %v366_v25 = vadd.f32 %v334_v8, %v302_v13  ;;  %v305_v27 = vadd.f32 %v616_v2, %v266_v17  ;;  %v367_v29 = vadd.f32 %v335_v14, %v303_v19  ;;  %v232_v34 = vld [vmem:[%s604_s23 + $0x48] sm:$0xff]  ;;  %v339_v39 = vld [vmem:[%s610_s26 + $0x30] sm:$0xff]  ;;  %v340_v40 = vld [vmem:[%s610_s26 + $0x38] sm:$0xff] }
  0x16   : > { %v306_v30 = vadd.f32 %v616_v2, %v267_v21  ;;  %v269_v32 = vmul.f32 %v598_v0, %v230_v23  ;;  %v368_v37 = vadd.f32 %v336_v16, %v304_v26  ;;  %v233_v41 = vld [vmem:[%s604_s23 + $0x50] sm:$0xff]  ;;  %v307_v44 = vadd.f32 %v616_v2, %v268_v31  ;;  %v234_v46 = vld [vmem:[%s604_s23 + $0x58] sm:$0xff]  ;;  %v235_v47 = vld [vmem:[%s604_s23 + $0x60] sm:$0xff] }
  0x17   : > { %v397_v35 = vmax.f32 %v365_v24, 0.0  ;;  %v398_v36 = vmax.f32 %v366_v25, 0.0  ;;  %v369_v38 = vadd.f32 %v337_v20, %v305_v27  ;;  %v399_v42 = vmax.f32 %v367_v29, 0.0  ;;  %v236_v52 = vld [vmem:[%s604_s23 + $0x68] sm:$0xff]  ;;  %v341_v56 = vld [vmem:[%s610_s26 + $0x40] sm:$0xff]  ;;  %v343_v61 = vld [vmem:[%s610_s26 + $0x50] sm:$0xff] }
  0x18   : > { %v370_v43 = vadd.f32 %v338_v28, %v306_v30  ;;  %v308_v45 = vadd.f32 %v616_v2, %v269_v32  ;;  %v400_v48 = vmax.f32 %v368_v37, 0.0  ;;  %v270_v50 = vmul.f32 %v598_v0, %v231_v33  ;;  %v342_v57 = vld [vmem:[%s610_s26 + $0x48] sm:$0xff]  ;;  %v237_v1 = vld [vmem:[%s604_s23 + $0x70] sm:$0xff]  ;;  %v238_v3 = vld [vmem:[%s604_s23 + $0x78] sm:$0xff] }
  0x19   : > { %429 = vst [vmem:[%s646_s5] sm:$0xff] %v397_v35  ;;  %430 = vst [vmem:[%s646_s5 + $0x8] sm:$0xff] %v398_v36  ;;  %v401_v49 = vmax.f32 %v369_v38, 0.0  ;;  %v271_v51 = vmul.f32 %v598_v0, %v232_v34  ;;  %v371_v54 = vadd.f32 %v339_v39, %v307_v44  ;;  %v272_v58 = vmul.f32 %v598_v0, %v233_v41  ;;  %v344_v7 = vld [vmem:[%s610_s26 + $0x58] sm:$0xff]  ;;  %v345_v8 = vld [vmem:[%s610_s26 + $0x60] sm:$0xff] }
  0x1a   : > { %431 = vst [vmem:[%s646_s5 + $0x10] sm:$0xff] %v399_v42  ;;  %v402_v53 = vmax.f32 %v370_v43, 0.0  ;;  %v372_v55 = vadd.f32 %v340_v40, %v308_v45  ;;  %432 = vst [vmem:[%s646_s5 + $0x18] sm:$0xff] %v400_v48  ;;  %v309_v59 = vadd.f32 %v616_v2, %v270_v50  ;;  %v273_v62 = vmul.f32 %v598_v0, %v234_v46  ;;  %v346_v14 = vld [vmem:[%s610_s26 + $0x68] sm:$0xff]  ;;  %v239_v19 = vld [vmem:[%s604_s23 + $0x80] sm:$0xff] }
  0x1b   : > { %433 = vst [vmem:[%s646_s5 + $0x20] sm:$0xff] %v401_v49  ;;  %v310_v60 = vadd.f32 %v616_v2, %v271_v51  ;;  %v274_v63 = vmul.f32 %v598_v0, %v235_v47  ;;  %v403_v4 = vmax.f32 %v371_v54, 0.0  ;;  %v311_v6 = vadd.f32 %v616_v2, %v272_v58  ;;  %v240_v20 = vld [vmem:[%s604_s23 + $0x88] sm:$0xff]  ;;  %v347_v25 = vld [vmem:[%s610_s26 + $0x70] sm:$0xff]  ;;  %v348_v26 = vld [vmem:[%s610_s26 + $0x78] sm:$0xff] }
  0x1c   : > { %434 = vst [vmem:[%s646_s5 + $0x28] sm:$0xff] %v402_v53  ;;  %v404_v5 = vmax.f32 %v372_v55, 0.0  ;;  %v275_v9 = vmul.f32 %v598_v0, %v236_v52  ;;  %v373_v10 = vadd.f32 %v341_v56, %v309_v59  ;;  %v312_v12 = vadd.f32 %v616_v2, %v273_v62  ;;  %v241_v27 = vld [vmem:[%s604_s23 + $0x90] sm:$0xff]  ;;  %v242_v32 = vld [vmem:[%s604_s23 + $0x98] sm:$0xff]  ;;  %v243_v33 = vld [vmem:[%s604_s23 + $0xa0] sm:$0xff] }
  0x1d   : > { %v374_v11 = vadd.f32 %v342_v57, %v310_v60  ;;  %v313_v13 = vadd.f32 %v616_v2, %v274_v63  ;;  %435 = vst [vmem:[%s646_s5 + $0x30] sm:$0xff] %v403_v4  ;;  %v375_v15 = vadd.f32 %v343_v61, %v311_v6  ;;  %v276_v17 = vmul.f32 %v598_v0, %v237_v1  ;;  %v244_v38 = vld [vmem:[%s604_s23 + $0xa8] sm:$0xff]  ;;  %v349_v42 = vld [vmem:[%s610_s26 + $0x80] sm:$0xff]  ;;  %v351_v47 = vld [vmem:[%s610_s26 + $0x90] sm:$0xff] }
  0x1e   : > { %436 = vst [vmem:[%s646_s5 + $0x38] sm:$0xff] %v404_v5  ;;  %v314_v16 = vadd.f32 %v616_v2, %v275_v9  ;;  %v277_v18 = vmul.f32 %v598_v0, %v238_v3  ;;  %v405_v21 = vmax.f32 %v373_v10, 0.0  ;;  %v376_v23 = vadd.f32 %v344_v7, %v312_v12  ;;  %v350_v43 = vld [vmem:[%s610_s26 + $0x88] sm:$0xff]  ;;  %v245_v50 = vld [vmem:[%s604_s23 + $0xb0] sm:$0xff]  ;;  %v246_v51 = vld [vmem:[%s604_s23 + $0xb8] sm:$0xff] }
  0x1f   : > { %v406_v22 = vmax.f32 %v374_v11, 0.0  ;;  %v377_v24 = vadd.f32 %v345_v8, %v313_v13  ;;  %v407_v28 = vmax.f32 %v375_v15, 0.0  ;;  %v315_v30 = vadd.f32 %v616_v2, %v276_v17  ;;  %v352_v55 = vld [vmem:[%s610_s26 + $0x98] sm:$0xff]  ;;  %v353_v56 = vld [vmem:[%s610_s26 + $0xa0] sm:$0xff]  ;;  %v354_v62 = vld [vmem:[%s610_s26 + $0xa8] sm:$0xff] }
  0x20   : > { %v378_v29 = vadd.f32 %v346_v14, %v314_v16  ;;  %v316_v31 = vadd.f32 %v616_v2, %v277_v18  ;;  %437 = vst [vmem:[%s646_s5 + $0x40] sm:$0xff] %v405_v21  ;;  %v408_v34 = vmax.f32 %v376_v23, 0.0  ;;  %v278_v36 = vmul.f32 %v598_v0, %v239_v19  ;;  %v247_v5 = vld [vmem:[%s604_s23 + $0xc0] sm:$0xff]  ;;  %v248_v6 = vld [vmem:[%s604_s23 + $0xc8] sm:$0xff]  ;;  %v355_v11 = vld [vmem:[%s610_s26 + $0xb0] sm:$0xff] }
  0x21   : > { %438 = vst [vmem:[%s646_s5 + $0x48] sm:$0xff] %v406_v22  ;;  %v409_v35 = vmax.f32 %v377_v24, 0.0  ;;  %v279_v37 = vmul.f32 %v598_v0, %v240_v20  ;;  %439 = vst [vmem:[%s646_s5 + $0x50] sm:$0xff] %v407_v28  ;;  %v379_v40 = vadd.f32 %v347_v25, %v315_v30  ;;  %v280_v44 = vmul.f32 %v598_v0, %v241_v27  ;;  %v356_v12 = vld [vmem:[%s610_s26 + $0xb8] sm:$0xff]  ;;  %v249_v13 = vld [vmem:[%s604_s23 + $0xd0] sm:$0xff] }
  0x22   : > { %v410_v39 = vmax.f32 %v378_v29, 0.0  ;;  %v380_v41 = vadd.f32 %v348_v26, %v316_v31  ;;  %440 = vst [vmem:[%s646_s5 + $0x58] sm:$0xff] %v408_v34  ;;  %v317_v45 = vadd.f32 %v616_v2, %v278_v36  ;;  %v281_v48 = vmul.f32 %v598_v0, %v242_v32  ;;  %v250_v18 = vld [vmem:[%s604_s23 + $0xd8] sm:$0xff]  ;;  %v251_v19 = vld [vmem:[%s604_s23 + $0xe0] sm:$0xff]  ;;  %v252_v24 = vld [vmem:[%s604_s23 + $0xe8] sm:$0xff] }
  0x23   : > { %441 = vst [vmem:[%s646_s5 + $0x60] sm:$0xff] %v409_v35  ;;  %v318_v46 = vadd.f32 %v616_v2, %v279_v37  ;;  %v282_v49 = vmul.f32 %v598_v0, %v243_v33  ;;  %v411_v52 = vmax.f32 %v379_v40, 0.0  ;;  %v319_v54 = vadd.f32 %v616_v2, %v280_v44  ;;  %v357_v28 = vld [vmem:[%s610_s26 + $0xc0] sm:$0xff]  ;;  %v358_v29 = vld [vmem:[%s610_s26 + $0xc8] sm:$0xff]  ;;  %v359_v33 = vld [vmem:[%s610_s26 + $0xd0] sm:$0xff] }
  0x24   : > { %442 = vst [vmem:[%s646_s5 + $0x68] sm:$0xff] %v410_v39  ;;  %v412_v53 = vmax.f32 %v380_v41, 0.0  ;;  %v283_v57 = vmul.f32 %v598_v0, %v244_v38  ;;  %v381_v58 = vadd.f32 %v349_v42, %v317_v45  ;;  %v320_v60 = vadd.f32 %v616_v2, %v281_v48  ;;  %v253_v36 = vld [vmem:[%s604_s23 + $0xf0] sm:$0xff]  ;;  %v254_v37 = vld [vmem:[%s604_s23 + $0xf8] sm:$0xff]  ;;  %v361_v42 = vld [vmem:[%s610_s26 + $0xe0] sm:$0xff] }
  0x25   : > { %v382_v59 = vadd.f32 %v350_v43, %v318_v46  ;;  %v321_v61 = vadd.f32 %v616_v2, %v282_v49  ;;  %443 = vst [vmem:[%s646_s5 + $0x70] sm:$0xff] %v411_v52  ;;  %v383_v63 = vadd.f32 %v351_v47, %v319_v54  ;;  %v284_v3 = vmul.f32 %v598_v0, %v245_v50  ;;  %v360_v41 = vld [vmem:[%s610_s26 + $0xd8] sm:$0xff]  ;;  %v362_v48 = vld [vmem:[%s610_s26 + $0xe8] sm:$0xff] }
  0x26   : > { %444 = vst [vmem:[%s646_s5 + $0x78] sm:$0xff] %v412_v53  ;;  %v322_v1 = vadd.f32 %v616_v2, %v283_v57  ;;  %v285_v4 = vmul.f32 %v598_v0, %v246_v51  ;;  %v413_v7 = vmax.f32 %v381_v58, 0.0  ;;  %v384_v9 = vadd.f32 %v352_v55, %v320_v60  ;;  %v363_v57 = vld [vmem:[%s610_s26 + $0xf0] sm:$0xff]  ;;  %v364_v58 = vld [vmem:[%s610_s26 + $0xf8] sm:$0xff] }
  0x27   : > { %v414_v8 = vmax.f32 %v382_v59, 0.0  ;;  %v385_v10 = vadd.f32 %v353_v56, %v321_v61  ;;  %v415_v14 = vmax.f32 %v383_v63, 0.0  ;;  %v323_v16 = vadd.f32 %v616_v2, %v284_v3 }
  0x28   : > { %v386_v15 = vadd.f32 %v354_v62, %v322_v1  ;;  %v324_v17 = vadd.f32 %v616_v2, %v285_v4  ;;  %445 = vst [vmem:[%s646_s5 + $0x80] sm:$0xff] %v413_v7  ;;  %v416_v20 = vmax.f32 %v384_v9, 0.0  ;;  %v286_v22 = vmul.f32 %v598_v0, %v247_v5 }
  0x29   : > { %446 = vst [vmem:[%s646_s5 + $0x88] sm:$0xff] %v414_v8  ;;  %v417_v21 = vmax.f32 %v385_v10, 0.0  ;;  %v287_v23 = vmul.f32 %v598_v0, %v248_v6  ;;  %447 = vst [vmem:[%s646_s5 + $0x90] sm:$0xff] %v415_v14  ;;  %v387_v26 = vadd.f32 %v355_v11, %v323_v16  ;;  %v288_v30 = vmul.f32 %v598_v0, %v249_v13 }
  0x2a   : > { %v418_v25 = vmax.f32 %v386_v15, 0.0  ;;  %v388_v27 = vadd.f32 %v356_v12, %v324_v17  ;;  %448 = vst [vmem:[%s646_s5 + $0x98] sm:$0xff] %v416_v20  ;;  %v325_v31 = vadd.f32 %v616_v2, %v286_v22  ;;  %v289_v34 = vmul.f32 %v598_v0, %v250_v18 }
  0x2b   : > { %449 = vst [vmem:[%s646_s5 + $0xa0] sm:$0xff] %v417_v21  ;;  %v326_v32 = vadd.f32 %v616_v2, %v287_v23  ;;  %v290_v35 = vmul.f32 %v598_v0, %v251_v19  ;;  %v419_v38 = vmax.f32 %v387_v26, 0.0  ;;  %v327_v40 = vadd.f32 %v616_v2, %v288_v30 }
  0x2c   : > { %450 = vst [vmem:[%s646_s5 + $0xa8] sm:$0xff] %v418_v25  ;;  %v420_v39 = vmax.f32 %v388_v27, 0.0  ;;  %v291_v43 = vmul.f32 %v598_v0, %v252_v24  ;;  %v389_v44 = vadd.f32 %v357_v28, %v325_v31  ;;  %v328_v46 = vadd.f32 %v616_v2, %v289_v34 }
  0x2d   : > { %v390_v45 = vadd.f32 %v358_v29, %v326_v32  ;;  %v329_v47 = vadd.f32 %v616_v2, %v290_v35  ;;  %451 = vst [vmem:[%s646_s5 + $0xb0] sm:$0xff] %v419_v38  ;;  %v391_v49 = vadd.f32 %v359_v33, %v327_v40  ;;  %v292_v51 = vmul.f32 %v598_v0, %v253_v36 }
  0x2e   : > { %452 = vst [vmem:[%s646_s5 + $0xb8] sm:$0xff] %v420_v39  ;;  %v330_v50 = vadd.f32 %v616_v2, %v291_v43  ;;  %v293_v52 = vmul.f32 %v598_v0, %v254_v37  ;;  %v421_v53 = vmax.f32 %v389_v44, 0.0  ;;  %v392_v55 = vadd.f32 %v360_v41, %v328_v46 }
  0x2f   : > { %v422_v54 = vmax.f32 %v390_v45, 0.0  ;;  %v393_v56 = vadd.f32 %v361_v42, %v329_v47  ;;  %v423_v59 = vmax.f32 %v391_v49, 0.0  ;;  %v331_v61 = vadd.f32 %v616_v2, %v292_v51 }
  0x30   : > { %v394_v60 = vadd.f32 %v362_v48, %v330_v50  ;;  %v332_v62 = vadd.f32 %v616_v2, %v293_v52  ;;  %453 = vst [vmem:[%s646_s5 + $0xc0] sm:$0xff] %v421_v53  ;;  %v424_v0 = vmax.f32 %v392_v55, 0.0 }
  0x31   : > { %454 = vst [vmem:[%s646_s5 + $0xc8] sm:$0xff] %v422_v54  ;;  %v425_v63 = vmax.f32 %v393_v56, 0.0  ;;  %455 = vst [vmem:[%s646_s5 + $0xd0] sm:$0xff] %v423_v59  ;;  %v395_v3 = vadd.f32 %v363_v57, %v331_v61 }
  0x32   : > { %v426_v1 = vmax.f32 %v394_v60, 0.0  ;;  %v396_v4 = vadd.f32 %v364_v58, %v332_v62  ;;  %456 = vst [vmem:[%s646_s5 + $0xd8] sm:$0xff] %v424_v0 }
  0x33   : > { %457 = vst [vmem:[%s646_s5 + $0xe0] sm:$0xff] %v425_v63  ;;  %v427_v5 = vmax.f32 %v395_v3, 0.0 }
  0x34   : > { %458 = vst [vmem:[%s646_s5 + $0xe8] sm:$0xff] %v426_v1  ;;  %v428_v6 = vmax.f32 %v396_v4, 0.0 }
  0x35   : > { %459 = vst [vmem:[%s646_s5 + $0xf0] sm:$0xff] %v427_v5 }
  0x36   : > { %460 = vst [vmem:[%s646_s5 + $0xf8] sm:$0xff] %v428_v6 }
  0x37 PF: > { %s14_s15 = sadd.s32 1, %s558_s15  }
  0x38   : > { %p11_p4 = scmp.ge.s32.totalorder %s14_s15, 4  }
  0x3a   :  { %13 = sbr.rel (!%p11_p4) target bundleno = 1 (0x1), region = 69 }

// kernel: residual_block_mulgrid.18
= control target key start
LH: loop header
LB: loop body
LE: loop exit
PB: predicated region body
PF: predicated region fallthrough
CT: control target
= control target key end

     0   :  { %s4128_s12 = smov 0   ;;  %s4130_s13 = smov 0   ;;  %s5224_s0 = inlined_call_operand.vmem [shape: f32[2,20,20,128], index: 0, kind: input, shape index: {}]   ;;  %s5225_s1 = inlined_call_operand.vmem [shape: f32[9,128,128], index: 1, kind: input, shape index: {}]   ;;  %s5226_s2 = inlined_call_operand.vmem [shape: f32[2,16,16,128], index: 2, kind: output, shape index: {0}]   ;;  %s5227_s3 = inlined_call_operand.vmem [shape: f32[2,2,2,128], index: 3, kind: output, shape index: {1}]  }
   0x1   :  { %s4132_s14 = smov 0   ;;  %s4134_s15 = smov 0  }
   0x2   :  { %s4136_s16 = smov 0  }
   0x3 LB: > { %s23_s17 = sadd.s32 1, %s4098_s14  ;;  %s26_s18 = sadd.s32 1, %s4102_s15  ;;  %s4106_s16 = sphi %s4136_s16, %s14_s16   ;;  %s4102_s15 = sphi %s4134_s15, %s5231_s15   ;;  %s4098_s14 = sphi %s4132_s14, %s5230_s14   ;;  %s4094_s13 = sphi %s4130_s13, %s5229_s13   ;;  %s4090_s12 = sphi %s4128_s12, %s5228_s12  }
   0x4   : > { %p24_p0 = scmp.ge.s32.totalorder %s23_s17, 2  ;;  %p2580_p1 = scmp.ge.s32.totalorder %s4106_s16, 1 }
   0x5   : > { %p122_p2 = scmp.lt.s32.totalorder %s4106_s16, 5 }
   0x6   : > { %s5233_s17 = smov (%p24_p0, %s23_s17), 0  ;;  %s5235_s18 = smov (!%p24_p0, %s26_s18), %s4102_s15 }
   0x7   : > { %p123_p3 = pnand %p2580_p1, %p122_p2  ;;  %p28_p4 = scmp.ge.s32.totalorder %s5235_s18, 2 }
   0x8   : > { %s2581_s19 = sshll.u32 (!%p123_p3), %s4090_s12, 3  ;;  %p153_p5 = scmp.lt.s32.totalorder (!%p123_p3), %s4094_s13, 1 }
   0x9   : > { %s5237_s18 = smov (%p28_p4, %s5235_s18), 0  ;;  %126 = sbr.rel (%p123_p3) target bundleno = 520 (0x208), region = 24 }
   0xa   : > { %p155_p6 = scmp.lt.s32.totalorder (!%p123_p3), %s2581_s19, 15  ;;  %p165_p7 = scmp.lt.s32.totalorder (!%p123_p3), %s4090_s12, 1 }
   0xb   : > { %p2587_p8 = scmp.ne.s32.totalorder (!%p123_p3), %s4090_s12, 0 }
  0x10   : > { %s154_s20 = scalar_select %p153_p5, %s4094_s13, 1 }
  0x11   : > { %s5239_s19 = smov (!%p155_p6, %s2581_s19), 15  ;;  %s175_s8 = smul.u32 (!%p2587_p8), 480, %s4094_s13 }
  0x12   : > { %s2583_s21 = sshll.u32 %s154_s20, 5  ;;  %s2582_s22 = sshll.u32 %s5239_s19, 1 }
  0x13   : > { %s159_s23 = sadd.s32 %s2583_s21, %s2582_s22  ;;  %s2585_s28 = sshll.u32 %s154_s20, 1 }
  0x14   : > { %s2584_s24 = sshll.u32 %s159_s23, 3  ;;  %174 = sbr.rel (%p2587_p8) target bundleno = 45 (0x2d), region = 28 }
  0x15   : > { %s4169_s27 = scalar_lea.vmem %s5226_s2, %s2584_s24  ;;  %s4182_s11 = scalar_lea.vmem (!%p2587_p8), %s5224_s0, %s175_s8 }
  0x16   : > { %s166_s29 = scalar_select %p165_p7, %s4090_s12, 1 }
  0x17   : > { %v236_v0 = vld [vmem:[%s4182_s11] sm:$0xff] (!%p2587_p8)  ;;  %v238_v1 = vld [vmem:[%s4182_s11 + $0x8] sm:$0xff] (!%p2587_p8)  ;;  %v240_v2 = vld [vmem:[%s4182_s11 + $0x18] sm:$0xff] (!%p2587_p8) }
  0x18   : > { %s168_s30 = sadd.s32 %s2585_s28, %s166_s29  ;;  %237 = vst [vmem:[#allocation2] sm:$0xff] (!%p2587_p8), %v236_v0  ;;  %239 = vst [vmem:[#allocation2 + $0x8] sm:$0xff] (!%p2587_p8), %v238_v1  ;;  %v242_v3 = vld [vmem:[%s4182_s11 + $0x20] sm:$0xff] (!%p2587_p8)  ;;  %v244_v4 = vld [vmem:[%s4182_s11 + $0x30] sm:$0xff] (!%p2587_p8) }
  0x19   : > { %s2586_s4 = sshll.u32 %s168_s30, 1  ;;  %241 = vst [vmem:[#allocation2 + $0x18] sm:$0xff] (!%p2587_p8), %v240_v2  ;;  %v246_v5 = vld [vmem:[%s4182_s11 + $0x38] sm:$0xff] (!%p2587_p8)  ;;  %243 = vst [vmem:[#allocation2 + $0x20] sm:$0xff] (!%p2587_p8), %v242_v3  ;;  %v248_v6 = vld [vmem:[%s4182_s11 + $0x48] sm:$0xff] (!%p2587_p8) }
  0x1a   : > { %s4175_s7 = scalar_lea.vmem %s5227_s3, %s2586_s4  ;;  %245 = vst [vmem:[#allocation2 + $0x30] sm:$0xff] (!%p2587_p8), %v244_v4  ;;  %247 = vst [vmem:[#allocation2 + $0x38] sm:$0xff] (!%p2587_p8), %v246_v5  ;;  %v250_v7 = vld [vmem:[%s4182_s11 + $0x50] sm:$0xff] (!%p2587_p8)  ;;  %v252_v8 = vld [vmem:[%s4182_s11 + $0x60] sm:$0xff] (!%p2587_p8) }
  0x1b   : > { %249 = vst [vmem:[#allocation2 + $0x48] sm:$0xff] %v248_v6  ;;  %251 = vst [vmem:[#allocation2 + $0x50] sm:$0xff] %v250_v7  ;;  %v254_v9 = vld [vmem:[%s4182_s11 + $0x68] sm:$0xff]  ;;  %v256_v10 = vld [vmem:[%s4182_s11 + $0x78] sm:$0xff] }
  0x1c   : > { %253 = vst [vmem:[#allocation2 + $0x60] sm:$0xff] %v252_v8  ;;  %v258_v11 = vld [vmem:[%s4182_s11 + $0x80] sm:$0xff]  ;;  %255 = vst [vmem:[#allocation2 + $0x68] sm:$0xff] %v254_v9  ;;  %v260_v12 = vld [vmem:[%s4182_s11 + $0x90] sm:$0xff] }
  0x1d   : > { %257 = vst [vmem:[#allocation2 + $0x78] sm:$0xff] %v256_v10  ;;  %259 = vst [vmem:[#allocation2 + $0x80] sm:$0xff] %v258_v11  ;;  %v262_v13 = vld [vmem:[%s4182_s11 + $0x98] sm:$0xff]  ;;  %v264_v14 = vld [vmem:[%s4182_s11 + $0xa8] sm:$0xff] }
  0x1e   : > { %261 = vst [vmem:[#allocation2 + $0x90] sm:$0xff] %v260_v12  ;;  %263 = vst [vmem:[#allocation2 + $0x98] sm:$0xff] %v262_v13  ;;  %v266_v15 = vld [vmem:[%s4182_s11 + $0xb0] sm:$0xff]  ;;  %v268_v16 = vld [vmem:[%s4182_s11 + $0xc0] sm:$0xff] }
  0x1f   : > { %265 = vst [vmem:[#allocation2 + $0xa8] sm:$0xff] %v264_v14  ;;  %v270_v17 = vld [vmem:[%s4182_s11 + $0xc8] sm:$0xff]  ;;  %267 = vst [vmem:[#allocation2 + $0xb0] sm:$0xff] %v266_v15  ;;  %v272_v18 = vld [vmem:[%s4182_s11 + $0xd8] sm:$0xff] }
  0x20   : > { %269 = vst [vmem:[#allocation2 + $0xc0] sm:$0xff] %v268_v16  ;;  %271 = vst [vmem:[#allocation2 + $0xc8] sm:$0xff] %v270_v17  ;;  %v274_v19 = vld [vmem:[%s4182_s11 + $0xe0] sm:$0xff]  ;;  %v276_v20 = vld [vmem:[%s4182_s11 + $0xf0] sm:$0xff] }
  0x21   : > { %273 = vst [vmem:[#allocation2 + $0xd8] sm:$0xff] %v272_v18  ;;  %275 = vst [vmem:[#allocation2 + $0xe0] sm:$0xff] %v274_v19  ;;  %v278_v21 = vld [vmem:[%s4182_s11 + $0xf8] sm:$0xff]  ;;  %v280_v22 = vld [vmem:[%s4182_s11 + $0x108] sm:$0xff] }
  0x22   : > { %277 = vst [vmem:[#allocation2 + $0xf0] sm:$0xff] %v276_v20  ;;  %v282_v23 = vld [vmem:[%s4182_s11 + $0x110] sm:$0xff]  ;;  %279 = vst [vmem:[#allocation2 + $0xf8] sm:$0xff] %v278_v21  ;;  %v2589_v25 = vld [vmem:[%s4182_s11 + $0x28] sm:$0xf] }
  0x23   : > { %281 = vst [vmem:[#allocation2 + $0x108] sm:$0xff] %v280_v22  ;;  %283 = vst [vmem:[#allocation2 + $0x110] sm:$0xff] %v282_v23  ;;  %v2588_v24 = vld [vmem:[%s4182_s11 + $0x10] sm:$0xf]  ;;  %v2590_v26 = vld [vmem:[%s4182_s11 + $0x40] sm:$0xf] }
  0x24   : > { %294 = vst [vmem:[#allocation2 + $0x10] sm:$0xf] %v2588_v24  ;;  %296 = vst [vmem:[#allocation2 + $0x28] sm:$0xf] %v2589_v25  ;;  %v2591_v27 = vld [vmem:[%s4182_s11 + $0x58] sm:$0xf] }
  0x25   : > { %298 = vst [vmem:[#allocation2 + $0x40] sm:$0xf] %v2590_v26  ;;  %v2592_v28 = vld [vmem:[%s4182_s11 + $0x70] sm:$0xf]  ;;  %v2593_v29 = vld [vmem:[%s4182_s11 + $0x88] sm:$0xf] }
  0x26   : > { %300 = vst [vmem:[#allocation2 + $0x58] sm:$0xf] %v2591_v27  ;;  %302 = vst [vmem:[#allocation2 + $0x70] sm:$0xf] %v2592_v28  ;;  %v2594_v30 = vld [vmem:[%s4182_s11 + $0xa0] sm:$0xf] }
  0x27   : > { %304 = vst [vmem:[#allocation2 + $0x88] sm:$0xf] %v2593_v29  ;;  %v2595_v31 = vld [vmem:[%s4182_s11 + $0xb8] sm:$0xf]  ;;  %v2596_v32 = vld [vmem:[%s4182_s11 + $0xd0] sm:$0xf] }
  0x28   : > { %306 = vst [vmem:[#allocation2 + $0xa0] sm:$0xf] %v2594_v30  ;;  %308 = vst [vmem:[#allocation2 + $0xb8] sm:$0xf] %v2595_v31  ;;  %v2597_v33 = vld [vmem:[%s4182_s11 + $0xe8] sm:$0xf] }
  0x29   : > { %310 = vst [vmem:[#allocation2 + $0xd0] sm:$0xf] %v2596_v32  ;;  %v2598_v34 = vld [vmem:[%s4182_s11 + $0x100] sm:$0xf]  ;;  %v2599_v35 = vld [vmem:[%s4182_s11 + $0x118] sm:$0xf] }
  0x2a   : > { %312 = vst [vmem:[#allocation2 + $0xe8] sm:$0xf] %v2597_v33  ;;  %314 = vst [vmem:[#allocation2 + $0x100] sm:$0xf] %v2598_v34 }
  0x2b   : > { %316 = vst [vmem:[#allocation2 + $0x118] sm:$0xf] %v2599_v35 }
  0x2c   : > { %320 = vsyncadd [#allocation3], 3840 }
  0x2d PF: > { %s321_s19 = sadd.s32 1, %s4090_s12 }
  0x2e   : > { %p2600_p9 = scmp.ge.s32.totalorder %s321_s19, 2 }
  0x2f   : > { %p327_p10 = scmp.lt.s32.totalorder (!%p2600_p9), %s321_s19, 0  ;;  %s328_s20 = ssub.s32 (!%p2600_p9), 0, %s321_s19 }
  0x30   : > { %325 = sbr.rel (%p2600_p9) target bundleno = 81 (0x51), region = 69  ;;  %s2601_s21 = smin.u32 (!%p2600_p9), %s328_s20, %s321_s19 }
  0x31   : > { %s2486_s22 = smul.u32 (!%p2600_p9), 192, %s4090_s12  ;;  %s330_s23 = sand.u32 (!%p2600_p9), 1, %s2601_s21  }
  0x32   : > { %s2487_s24 = smul.u32 (!%p2600_p9), 480, %s4094_s13  ;;  %s331_s25 = ssub.s32 (!%p2600_p9), 0, %s330_s23 }
  0x34   : > { %s2488_s26 = sadd.s32 (!%p2600_p9), %s2487_s24, %s2486_s22 }
  0x35   : > { %s4226_s4 = scalar_lea.vmem (!%p2600_p9), %s5224_s0, %s2488_s26 }
  0x36   : > { %v2605_v36 = vld [vmem:[%s4226_s4 + $0xc0] sm:$0xff] (!%p2600_p9)  ;;  %v2606_v37 = vld [vmem:[%s4226_s4 + $0xc8] sm:$0xff] (!%p2600_p9)  ;;  %v2607_v38 = vld [vmem:[%s4226_s4 + $0xd8] sm:$0xff] (!%p2600_p9) }
  0x37   : > { %s5241_s25 = smov (!%p327_p10, %s331_s25), %s330_s23  ;;  %v2608_v39 = vld [vmem:[%s4226_s4 + $0xe0] sm:$0xff]  ;;  %v2609_v40 = vld [vmem:[%s4226_s4 + $0xf0] sm:$0xff]  ;;  %v2610_v41 = vld [vmem:[%s4226_s4 + $0xf8] sm:$0xff] }
  0x38   : > { %p2603_p11 = scmp.lt.s32.totalorder %s5241_s25, 0  ;;  %s337_s28 = sadd.s32 2, %s5241_s25  ;;  %v2611_v42 = vld [vmem:[%s4226_s4 + $0x108] sm:$0xff]  ;;  %v2612_v43 = vld [vmem:[%s4226_s4 + $0x110] sm:$0xff]  ;;  %v2613_v44 = vld [vmem:[%s4226_s4 + $0x120] sm:$0xff] }
  0x39   : > { %v2614_v45 = vld [vmem:[%s4226_s4 + $0x128] sm:$0xff]  ;;  %v2615_v46 = vld [vmem:[%s4226_s4 + $0x138] sm:$0xff]  ;;  %v2616_v47 = vld [vmem:[%s4226_s4 + $0x140] sm:$0xff] }
  0x3a   : > { %s5243_s28 = smov (!%p2603_p11, %s337_s28), %s5241_s25  ;;  %v2617_v48 = vld [vmem:[%s4226_s4 + $0x150] sm:$0xff]  ;;  %v2618_v49 = vld [vmem:[%s4226_s4 + $0x158] sm:$0xff]  ;;  %v2619_v50 = vld [vmem:[%s4226_s4 + $0x168] sm:$0xff] }
  0x3b   : > { %s343_s13 = smul.u32 288, %s5243_s28  ;;  %v2620_v51 = vld [vmem:[%s4226_s4 + $0x170] sm:$0xff]  ;;  %v2621_v52 = vld [vmem:[%s4226_s4 + $0x180] sm:$0xff]  ;;  %v2622_v53 = vld [vmem:[%s4226_s4 + $0x188] sm:$0xff]  ;;  %s345_s6 = scalar_lea.sflag [#allocation3], %s5243_s28 }
  0x3c   : > { %v2623_v54 = vld [vmem:[%s4226_s4 + $0x198] sm:$0xff]  ;;  %v2624_v55 = vld [vmem:[%s4226_s4 + $0x1a0] sm:$0xff]  ;;  %v2625_v56 = vld [vmem:[%s4226_s4 + $0x1b0] sm:$0xff] }
  0x3d   : > { %s4246_s5 = scalar_lea.vmem [#allocation2], %s343_s13  ;;  %v2626_v57 = vld [vmem:[%s4226_s4 + $0x1b8] sm:$0xff]  ;;  %v2627_v58 = vld [vmem:[%s4226_s4 + $0x1c8] sm:$0xff]  ;;  %v2628_v59 = vld [vmem:[%s4226_s4 + $0x1d0] sm:$0xff] }
  0x3e   : > { %406 = vst [vmem:[%s4246_s5] sm:$0xff] %v2605_v36  ;;  %408 = vst [vmem:[%s4246_s5 + $0x8] sm:$0xff] %v2606_v37  ;;  %v2629_v60 = vld [vmem:[%s4226_s4 + $0xd0] sm:$0xf]  ;;  %v2631_v61 = vld [vmem:[%s4226_s4 + $0xe8] sm:$0xf] }
  0x3f   : > { %410 = vst [vmem:[%s4246_s5 + $0x18] sm:$0xff] %v2607_v38  ;;  %412 = vst [vmem:[%s4246_s5 + $0x20] sm:$0xff] %v2608_v39  ;;  %v2633_v62 = vld [vmem:[%s4226_s4 + $0x100] sm:$0xf]  ;;  %v2635_v63 = vld [vmem:[%s4226_s4 + $0x118] sm:$0xf] }
  0x40   : > { %414 = vst [vmem:[%s4246_s5 + $0x30] sm:$0xff] %v2609_v40  ;;  %416 = vst [vmem:[%s4246_s5 + $0x38] sm:$0xff] %v2610_v41  ;;  %v2637_v0 = vld [vmem:[%s4226_s4 + $0x130] sm:$0xf]  ;;  %v2639_v1 = vld [vmem:[%s4226_s4 + $0x148] sm:$0xf] }
  0x41   : > { %418 = vst [vmem:[%s4246_s5 + $0x48] sm:$0xff] %v2611_v42  ;;  %420 = vst [vmem:[%s4246_s5 + $0x50] sm:$0xff] %v2612_v43  ;;  %v2641_v2 = vld [vmem:[%s4226_s4 + $0x160] sm:$0xf]  ;;  %v2643_v3 = vld [vmem:[%s4226_s4 + $0x178] sm:$0xf] }
  0x42   : > { %422 = vst [vmem:[%s4246_s5 + $0x60] sm:$0xff] %v2613_v44  ;;  %424 = vst [vmem:[%s4246_s5 + $0x68] sm:$0xff] %v2614_v45  ;;  %v2645_v4 = vld [vmem:[%s4226_s4 + $0x190] sm:$0xf]  ;;  %v2647_v5 = vld [vmem:[%s4226_s4 + $0x1a8] sm:$0xf] }
  0x43   : > { %426 = vst [vmem:[%s4246_s5 + $0x78] sm:$0xff] %v2615_v46  ;;  %428 = vst [vmem:[%s4246_s5 + $0x80] sm:$0xff] %v2616_v47  ;;  %v2649_v6 = vld [vmem:[%s4226_s4 + $0x1c0] sm:$0xf]  ;;  %v2651_v7 = vld [vmem:[%s4226_s4 + $0x1d8] sm:$0xf] }
  0x44   : > { %430 = vst [vmem:[%s4246_s5 + $0x90] sm:$0xff] %v2617_v48  ;;  %432 = vst [vmem:[%s4246_s5 + $0x98] sm:$0xff] %v2618_v49 }
  0x45   : > { %434 = vst [vmem:[%s4246_s5 + $0xa8] sm:$0xff] %v2619_v50  ;;  %436 = vst [vmem:[%s4246_s5 + $0xb0] sm:$0xff] %v2620_v51 }
  0x46   : > { %438 = vst [vmem:[%s4246_s5 + $0xc0] sm:$0xff] %v2621_v52  ;;  %440 = vst [vmem:[%s4246_s5 + $0xc8] sm:$0xff] %v2622_v53 }
  0x47   : > { %442 = vst [vmem:[%s4246_s5 + $0xd8] sm:$0xff] %v2623_v54  ;;  %444 = vst [vmem:[%s4246_s5 + $0xe0] sm:$0xff] %v2624_v55 }
  0x48   : > { %446 = vst [vmem:[%s4246_s5 + $0xf0] sm:$0xff] %v2625_v56  ;;  %448 = vst [vmem:[%s4246_s5 + $0xf8] sm:$0xff] %v2626_v57 }
  0x49   : > { %450 = vst [vmem:[%s4246_s5 + $0x108] sm:$0xff] %v2627_v58  ;;  %452 = vst [vmem:[%s4246_s5 + $0x110] sm:$0xff] %v2628_v59 }
  0x4a   : > { %2630 = vst [vmem:[%s4246_s5 + $0x10] sm:$0xf] %v2629_v60  ;;  %2632 = vst [vmem:[%s4246_s5 + $0x28] sm:$0xf] %v2631_v61 }
  0x4b   : > { %2634 = vst [vmem:[%s4246_s5 + $0x40] sm:$0xf] %v2633_v62  ;;  %2636 = vst [vmem:[%s4246_s5 + $0x58] sm:$0xf] %v2635_v63 }
  0x4c   : > { %2638 = vst [vmem:[%s4246_s5 + $0x70] sm:$0xf] %v2637_v0  ;;  %2640 = vst [vmem:[%s4246_s5 + $0x88] sm:$0xf] %v2639_v1 }
  0x4d   : > { %2642 = vst [vmem:[%s4246_s5 + $0xa0] sm:$0xf] %v2641_v2  ;;  %2644 = vst [vmem:[%s4246_s5 + $0xb8] sm:$0xf] %v2643_v3 }
  0x4e   : > { %2646 = vst [vmem:[%s4246_s5 + $0xd0] sm:$0xf] %v2645_v4  ;;  %2648 = vst [vmem:[%s4246_s5 + $0xe8] sm:$0xf] %v2647_v5 }
  0x4f   : > { %2650 = vst [vmem:[%s4246_s5 + $0x100] sm:$0xf] %v2649_v6  ;;  %2652 = vst [vmem:[%s4246_s5 + $0x118] sm:$0xf] %v2651_v7 }
  0x50   : > { %489 = vsyncadd %s345_s6, 3840 }
  0x51 PF: > { %p490_p12 = scmp.lt.s32.totalorder %s4090_s12, 0  ;;  %s491_s8 = ssub.s32 0, %s4090_s12 }
  0x52   : > { %s2665_s9 = smin.u32 %s4090_s12, %s491_s8 }
  0x53   : > { %s493_s10 = sand.u32 1, %s2665_s9  }
  0x54   : > { %s494_s11 = ssub.s32 0, %s493_s10 }
  0x55   : > { %s5245_s11 = smov (!%p490_p12, %s494_s11), %s493_s10 }
  0x56   : > { %p2667_p13 = scmp.lt.s32.totalorder %s5245_s11, 0  ;;  %s500_s19 = sadd.s32 2, %s5245_s11 }
  0x58   : > { %s5247_s19 = smov (!%p2667_p13, %s500_s19), %s5245_s11 }
  0x59   : > { %s502_s20 = smul.u32 288, %s5247_s19  ;;  %s504_s22 = scalar_lea.sflag [#allocation3], %s5247_s19 }
  0x5b   : > { %s4309_s21 = scalar_lea.vmem [#allocation2], %s502_s20 }
  0x5c   : > { %4086 = dma.done.wait %s504_s22, 3840 }
  0x5d   : > { %4087 = vsyncadd %s504_s22, 4294963456  ;;  %v2668_v8 = vld [vmem:[%s5225_s1 + $0x80] sm:$0xff]  ;;  %v2669_v9 = vld [vmem:[%s5225_s1 + $0x88] sm:$0xff]  ;;  %vm585_vm0 = vcmask 1045504   ;;  %vm949_vm1 = vcmask 1043456   ;;  %vm2394_vm2 = vcmask 1040384  }
  0x5e   : > { %v2716_v10 = vld [vmem:[%s5225_s1 + $0x200] sm:$0xff]  ;;  %v3592_v11 = vpack.c.bf16 %v2669_v9, %v2668_v8  ;;  %v2717_v12 = vld [vmem:[%s5225_s1 + $0x208] sm:$0xff]  ;;  %v2670_v13 = vld [vmem:[%s5225_s1 + $0x90] sm:$0xff] }
  0x5f   : > { %v2671_v14 = vld [vmem:[%s5225_s1 + $0x98] sm:$0xff]  ;;  %v3720_v15 = vpack.c.bf16 %v2717_v12, %v2716_v10  ;;  %v2718_v17 = vld [vmem:[%s5225_s1 + $0x210] sm:$0xff]  ;;  %v2672_v19 = vld [vmem:[%s5225_s1 + $0xa0] sm:$0xff] }
  0x60   : > { %v3596_v16 = vpack.c.bf16 %v2671_v14, %v2670_v13  ;;  %v2719_v18 = vld [vmem:[%s5225_s1 + $0x218] sm:$0xff]  ;;  %3593 = vmatprep.subr.bf16.mxu1 %v3592_v11  ;;  %v2673_v21 = vld [vmem:[%s5225_s1 + $0xa8] sm:$0xff]  ;;  %v2720_v22 = vld [vmem:[%s5225_s1 + $0x220] sm:$0xff] }
  0x61   : > { %v3724_v20 = vpack.c.bf16 %v2719_v18, %v2718_v17  ;;  %v2721_v23 = vld [vmem:[%s5225_s1 + $0x228] sm:$0xff]  ;;  %3721 = vmatprep.subr.bf16.mxu0 %v3720_v15  ;;  %3595 = vmatpush3.bf16.msra.mxu1 %v3592_v11  ;;  %v3600_v24 = vpack.c.bf16 %v2673_v21, %v2672_v19  ;;  %v2674_v26 = vld [vmem:[%s5225_s1 + $0xb0] sm:$0xff]  ;;  %v2675_v27 = vld [vmem:[%s5225_s1 + $0xb8] sm:$0xff] }
  0x62   : > { %3723 = vmatpush3.bf16.msra.mxu0 %v3720_v15  ;;  %3597 = vmatprep.subr.bf16.mxu1 %v3596_v16  ;;  %v3728_v25 = vpack.c.bf16 %v2721_v23, %v2720_v22  ;;  %v2722_v28 = vld [vmem:[%s5225_s1 + $0x230] sm:$0xff]  ;;  %v2723_v29 = vld [vmem:[%s5225_s1 + $0x238] sm:$0xff]  ;;  %v3604_v30 = vpack.c.bf16 %v2675_v27, %v2674_v26  ;;  %v2676_v31 = vld [vmem:[%s5225_s1 + $0xc0] sm:$0xff] }
  0x63   : > { %3725 = vmatprep.subr.bf16.mxu0 %v3724_v20  ;;  %v2677_v32 = vld [vmem:[%s5225_s1 + $0xc8] sm:$0xff]  ;;  %v3732_v33 = vpack.c.bf16 %v2723_v29, %v2722_v28  ;;  %v2724_v34 = vld [vmem:[%s5225_s1 + $0x240] sm:$0xff]  ;;  %v4379_v39 = vld [vmem:[%s4309_s21 + $0x30] sm:$0xff] }
  0x64   : > { %v2725_v35 = vld [vmem:[%s5225_s1 + $0x248] sm:$0xff]  ;;  %v4372_v36 = vld [vmem:[%s4309_s21] sm:$0xff]  ;;  %v4382_v40 = vld [vmem:[%s4309_s21 + $0x38] sm:$0xff]  ;;  %v596_v42 = vrot.slane %v4379_v39, 2  ;;  %v3608_v44 = vpack.c.bf16 %v2677_v32, %v2676_v31 }
  0x65   : > { %3599 = vmatpush3.bf16.msra.mxu1 %v3596_v16  ;;  %v4375_v37 = vld [vmem:[%s4309_s21 + $0x8] sm:$0xff]  ;;  %v586_v38 = vrot.slane %v4372_v36, 2  ;;  %v597_v43 = vrot.slane %v4382_v40, 2  ;;  %v3736_v45 = vpack.c.bf16 %v2725_v35, %v2724_v34  ;;  %v2678_v46 = vld [vmem:[%s5225_s1 + $0xd0] sm:$0xff]  ;;  %v2679_v47 = vld [vmem:[%s5225_s1 + $0xd8] sm:$0xff] }
  0x66   : > { %3727 = vmatpush3.bf16.msra.mxu0 %v3724_v20  ;;  %3601 = vmatprep.subr.bf16.mxu1 %v3600_v24  ;;  %v587_v41 = vrot.slane %v4375_v37, 2  ;;  %v2726_v50 = vld [vmem:[%s5225_s1 + $0x250] sm:$0xff]  ;;  %v2727_v51 = vld [vmem:[%s5225_s1 + $0x258] sm:$0xff]  ;;  %v3612_v52 = vpack.c.bf16 %v2679_v47, %v2678_v46  ;;  %v2680_v54 = vld [vmem:[%s5225_s1 + $0xe0] sm:$0xff] }
  0x67   : > { %3729 = vmatprep.subr.bf16.mxu0 %v3728_v25  ;;  %v4399_v49 = vsel %vm585_vm0, %v596_v42, %v597_v43  ;;  %v3740_v53 = vpack.c.bf16 %v2727_v51, %v2726_v50  ;;  %v2681_v55 = vld [vmem:[%s5225_s1 + $0xe8] sm:$0xff]  ;;  %v2728_v56 = vld [vmem:[%s5225_s1 + $0x260] sm:$0xff]  ;;  %v2682_v60 = vld [vmem:[%s5225_s1 + $0xf0] sm:$0xff] }
  0x68   : > { %v588_v48 = vsel %vm585_vm0, %v586_v38, %v587_v41  ;;  %3344 = vmatprep.mubr.f32.mxu0 %v4399_v49  ;;  %v2729_v57 = vld [vmem:[%s5225_s1 + $0x268] sm:$0xff]  ;;  %v3616_v58 = vpack.c.bf16 %v2681_v55, %v2680_v54  ;;  %v2683_v61 = vld [vmem:[%s5225_s1 + $0xf8] sm:$0xff]  ;;  %v2730_v62 = vld [vmem:[%s5225_s1 + $0x270] sm:$0xff] }
  0x69   : > { %3603 = vmatpush3.bf16.msra.mxu1 %v3600_v24  ;;  %3120 = vmatprep.mubr.f32.mxu1 %v588_v48  ;;  %v3744_v59 = vpack.c.bf16 %v2729_v57, %v2728_v56  ;;  %v2731_v63 = vld [vmem:[%s5225_s1 + $0x278] sm:$0xff]  ;;  %v3620_v0 = vpack.c.bf16 %v2683_v61, %v2682_v60  ;;  %v4433_v1 = vld [vmem:[%s4309_s21 + $0x10] sm:$0xf]  ;;  %v545_v2 = vld [vmem:[%s5225_s1] sm:$0xff] }
  0x6a   : > { %3731 = vmatpush3.bf16.msra.mxu0 %v3728_v25  ;;  %3605 = vmatprep.subr.bf16.mxu1 %v3604_v30  ;;  %v3748_v3 = vpack.c.bf16 %v2731_v63, %v2730_v62  ;;  %v546_v4 = vld [vmem:[%s5225_s1 + $0x8] sm:$0xff]  ;;  %v4442_v5 = vld [vmem:[%s4309_s21 + $0x40] sm:$0xf]  ;;  %v4451_v8 = vld [vmem:[%s4309_s21 + $0x18] sm:$0xff]  ;;  %v589_v10 = vrot.slane %v4433_v1, 2 }
  0x6b   : > { %3733 = vmatprep.subr.bf16.mxu0 %v3732_v33  ;;  %v2732_v6 = vld [vmem:[%s5225_s1 + $0x280] sm:$0xff]  ;;  %v2733_v7 = vld [vmem:[%s5225_s1 + $0x288] sm:$0xff]  ;;  %v4461_v12 = vld [vmem:[%s4309_s21 + $0x50] sm:$0xff]  ;;  %v3624_v13 = vpack.c.bf16 %v546_v4, %v545_v2  ;;  %v599_v14 = vrot.slane %v4442_v5, 2  ;;  %v591_v17 = vrot.slane %v4451_v8, 2 }
  0x6c   : > { %v4454_v9 = vld [vmem:[%s4309_s21 + $0x20] sm:$0xff]  ;;  %v4458_v11 = vld [vmem:[%s4309_s21 + $0x48] sm:$0xff]  ;;  %v3752_v16 = vpack.c.bf16 %v2733_v7, %v2732_v6  ;;  %v4470_v19 = vld [vmem:[%s4309_s21 + $0x58] sm:$0xf]  ;;  %v602_v21 = vrot.slane %v4461_v12, 2  ;;  %v590_v25 = vsel %vm585_vm0, %v587_v41, %v589_v10  ;;  %v950_v6 = vrot.slane %v4372_v36, 4 }
  0x6d   : > { %3607 = vmatpush3.bf16.msra.mxu1 %v3604_v30  ;;  %v4465_v15 = vld [vmem:[%s4309_s21 + $0x28] sm:$0xf]  ;;  %v592_v18 = vrot.slane %v4454_v9, 2  ;;  %v601_v20 = vrot.slane %v4458_v11, 2  ;;  %v547_v22 = vld [vmem:[%s5225_s1 + $0x10] sm:$0xff]  ;;  %v548_v23 = vld [vmem:[%s5225_s1 + $0x18] sm:$0xff]  ;;  %v600_v30 = vsel %vm585_vm0, %v597_v43, %v599_v14 }
  0x6e   : > { %3735 = vmatpush3.bf16.msra.mxu0 %v3732_v33  ;;  %3609 = vmatprep.subr.bf16.mxu1 %v3608_v44  ;;  %v2734_v24 = vld [vmem:[%s5225_s1 + $0x290] sm:$0xff]  ;;  %v594_v26 = vrot.slane %v4465_v15, 2  ;;  %v2735_v27 = vld [vmem:[%s5225_s1 + $0x298] sm:$0xff]  ;;  %v4491_v28 = vld [vmem:[%s4309_s21 + $0x60] sm:$0xff]  ;;  %v604_v31 = vrot.slane %v4470_v19, 2  ;;  %v3628_v33 = vpack.c.bf16 %v548_v23, %v547_v22 }
  0x6f   : > { %3737 = vmatprep.subr.bf16.mxu0 %v3736_v45  ;;  %v4494_v29 = vld [vmem:[%s4309_s21 + $0x68] sm:$0xff]  ;;  %v593_v32 = vsel %vm585_vm0, %v591_v17, %v592_v18  ;;  %v4502_v34 = vld [vmem:[%s4309_s21 + $0x70] sm:$0xf]  ;;  %v4505_v35 = vsel %vm585_vm0, %v601_v20, %v602_v21  ;;  %v3756_v38 = vpack.c.bf16 %v2735_v27, %v2734_v24  ;;  %v606_v41 = vrot.slane %v4491_v28, 2  ;;  %v549_v43 = vld [vmem:[%s5225_s1 + $0x20] sm:$0xff] }
  0x70   : > { %v607_v42 = vrot.slane %v4494_v29, 2  ;;  %v595_v46 = vsel %vm585_vm0, %v592_v18, %v594_v26  ;;  %v2737_v47 = vld [vmem:[%s5225_s1 + $0x2a8] sm:$0xff]  ;;  %v4523_v48 = vld [vmem:[%s4309_s21 + $0x78] sm:$0xff]  ;;  %v4526_v50 = vld [vmem:[%s4309_s21 + $0x80] sm:$0xff]  ;;  %v605_v51 = vsel %vm585_vm0, %v602_v21, %v604_v31  ;;  %v951_v20 = vrot.slane %v4375_v37, 4 }
  0x71   : > { %3611 = vmatpush3.bf16.msra.mxu1 %v3608_v44  ;;  %v550_v44 = vld [vmem:[%s5225_s1 + $0x28] sm:$0xff]  ;;  %v551_v55 = vld [vmem:[%s5225_s1 + $0x30] sm:$0xff]  ;;  %v552_v60 = vld [vmem:[%s5225_s1 + $0x38] sm:$0xff]  ;;  %v956_v26 = vrot.slane %v4454_v9, 4 }
  0x72   : > { %3739 = vmatpush3.bf16.msra.mxu0 %v3736_v45  ;;  %3613 = vmatprep.subr.bf16.mxu1 %v3612_v52  ;;  %v2736_v45 = vld [vmem:[%s5225_s1 + $0x2a0] sm:$0xff]  ;;  %v3632_v54 = vpack.c.bf16 %v550_v44, %v549_v43  ;;  %v4538_v56 = vsel %vm585_vm0, %v606_v41, %v607_v42  ;;  %v4546_v61 = vld [vmem:[%s4309_s21 + $0x90] sm:$0xff]  ;;  %v4549_v62 = vld [vmem:[%s4309_s21 + $0x98] sm:$0xff]  ;;  %v3636_v7 = vpack.c.bf16 %v552_v60, %v551_v55 }
  0x73   : > { %3741 = vmatprep.subr.bf16.mxu0 %v3740_v53  ;;  %v3760_v57 = vpack.c.bf16 %v2737_v47, %v2736_v45  ;;  %v2739_v2 = vld [vmem:[%s5225_s1 + $0x2b8] sm:$0xff]  ;;  %v616_v10 = vrot.slane %v4546_v61, 2  ;;  %v4568_v14 = vld [vmem:[%s4309_s21 + $0xa0] sm:$0xf]  ;;  %v554_v17 = vld [vmem:[%s5225_s1 + $0x48] sm:$0xff] }
  0x74   : > { %v2740_v18 = vld [vmem:[%s5225_s1 + $0x2c0] sm:$0xff]  ;;  %v2741_v22 = vld [vmem:[%s5225_s1 + $0x2c8] sm:$0xff]  ;;  %v4594_v24 = vld [vmem:[%s4309_s21 + $0xb0] sm:$0xff]  ;;  %v619_v27 = vrot.slane %v4568_v14, 2 }
  0x75   : > { %3615 = vmatpush3.bf16.msra.mxu1 %v3612_v52  ;;  %v609_v52 = vrot.slane %v4502_v34, 2  ;;  %v4591_v23 = vld [vmem:[%s4309_s21 + $0xa8] sm:$0xff]  ;;  %v555_v44 = vld [vmem:[%s5225_s1 + $0x50] sm:$0xff]  ;;  %v556_v45 = vld [vmem:[%s5225_s1 + $0x58] sm:$0xff] }
  0x76   : > { %3743 = vmatpush3.bf16.msra.mxu0 %v3740_v53  ;;  %3617 = vmatprep.subr.bf16.mxu1 %v3616_v58  ;;  %v4531_v53 = vld [vmem:[%s4309_s21 + $0x88] sm:$0xf]  ;;  %v621_v43 = vrot.slane %v4591_v23, 2 }
  0x77   : > { %3745 = vmatprep.subr.bf16.mxu0 %v3744_v59  ;;  %v614_v63 = vrot.slane %v4531_v53, 2  ;;  %v4561_v4 = vsel %vm585_vm0, %v607_v42, %v609_v52  ;;  %v3768_v42 = vpack.c.bf16 %v2741_v22, %v2740_v18  ;;  %v4636_v52 = vld [vmem:[%s4309_s21 + $0xc0] sm:$0xff] }
  0x79   : > { %3619 = vmatpush3.bf16.msra.mxu1 %v3616_v58  ;;  %v611_v58 = vrot.slane %v4523_v48, 2 }
  0x7a   : > { %3747 = vmatpush3.bf16.msra.mxu0 %v3744_v59  ;;  %3621 = vmatprep.subr.bf16.mxu1 %v3620_v0  ;;  %v612_v59 = vrot.slane %v4526_v50, 2 }
  0x7b   : > { %3749 = vmatprep.subr.bf16.mxu0 %v3748_v3 }
  0x7c   : > { %v4585_v21 = vsel %vm585_vm0, %v612_v59, %v614_v63 }
  0x7d   : > { %3623 = vmatpush3.bf16.msra.mxu1 %v3620_v0  ;;  %v2738_v0 = vld [vmem:[%s5225_s1 + $0x2b0] sm:$0xff] }
  0x7e   : > { %3751 = vmatpush3.bf16.msra.mxu0 %v3748_v3  ;;  %3625 = vmatprep.subr.bf16.mxu1 %v3624_v13  ;;  %v953_v3 = vrot.slane %v4433_v1, 4  ;;  %v3764_v1 = vpack.c.bf16 %v2739_v2, %v2738_v0  ;;  %v1368_v0 = vrot.slane %v4636_v52, 2 }
  0x7f   : > { %3753 = vmatprep.subr.bf16.mxu0 %v3752_v16 }
  0x80   : > { %3121 = vmatmul.mubr.f32.vlgmr.msra.gmra.mrb[0].mxu1 %v590_v25  ;;  %v955_v25 = vrot.slane %v4451_v8, 4  ;;  %v4604_v31 = vsel %vm949_vm1, %v951_v20, %v953_v3  ;;  %v557_v3 = vld [vmem:[%s5225_s1 + $0x60] sm:$0xff] }
  0x81   : > { %3345 = vmatmul.mubr.f32.vlgmr.msra.gmra.mrb[0].mxu0 %v600_v30  ;;  %3627 = vmatpush3.bf16.msra.mxu1 %v3624_v13  ;;  %v617_v13 = vrot.slane %v4549_v62, 2 }
  0x82   : > { %3755 = vmatpush3.bf16.msra.mxu0 %v3752_v16  ;;  %3123 = vmatprep.mubr.f32.mxu1 %v593_v32  ;;  %v553_v16 = vld [vmem:[%s5225_s1 + $0x40] sm:$0xff]  ;;  %v958_v32 = vrot.slane %v4465_v15, 4  ;;  %v4615_v41 = vsel %vm949_vm1, %v955_v25, %v956_v26  ;;  %v622_v15 = vrot.slane %v4594_v24, 2 }
  0x83   : > { %3347 = vmatprep.mubr.f32.mxu0 %v4505_v35  ;;  %3629 = vmatprep.subr.bf16.mxu1 %v3628_v33  ;;  %v4643_v55 = vsel %vm585_vm0, %v617_v13, %v619_v27 }
  0x84   : > { %3124 = vmatmul.mubr.f32.gmra.mrb[2].mxu1 %v595_v46  ;;  %3757 = vmatprep.subr.bf16.mxu0 %v3756_v38  ;;  %v2742_v46 = vld [vmem:[%s5225_s1 + $0x2d0] sm:$0xff]  ;;  %v4629_v47 = vsel %vm949_vm1, %v956_v26, %v958_v32  ;;  %v4652_v60 = vsel %vm585_vm0, %v621_v43, %v622_v15  ;;  %v2747_v43 = vld [vmem:[%s5225_s1 + $0x2f8] sm:$0xff] }
  0x85   : > { %3348 = vmatmul.mubr.f32.gmra.mrb[2].mxu0 %v605_v51  ;;  %3631 = vmatpush3.bf16.msra.mxu1 %v3628_v33  ;;  %v4609_v33 = vsel %vm585_vm0, %v616_v10, %v617_v13  ;;  %v2745_v10 = vld [vmem:[%s5225_s1 + $0x2e8] sm:$0xff]  ;;  %v4670_v13 = vld [vmem:[%s4309_s21 + $0xd8] sm:$0xff]  ;;  %v559_v32 = vld [vmem:[%s5225_s1 + $0x70] sm:$0xff] }
  0x86   : > { %3759 = vmatpush3.bf16.msra.mxu0 %v3756_v38  ;;  %3126 = vmatprep.mubr.f32.mxu1 %v4399_v49  ;;  %v4571_v49 = vsel %vm585_vm0, %v611_v58, %v612_v59  ;;  %v3640_v38 = vpack.c.bf16 %v554_v17, %v553_v16  ;;  %v3644_v58 = vpack.c.bf16 %v556_v45, %v555_v44  ;;  %v4648_v59 = vld [vmem:[%s4309_s21 + $0xd0] sm:$0xf]  ;;  %v1373_v26 = vrot.slane %v4670_v13, 2 }
  0x87   : > { %3350 = vmatprep.mubr.f32.mxu0 %v4538_v56  ;;  %3633 = vmatprep.subr.bf16.mxu1 %v3632_v54  ;;  %v1371_v17 = vrot.slane %v4648_v59, 2 }
  0x88   : > { %3127 = vmatmul.mubr.f32.gmra.mrb[4].mxu1 %v600_v30  ;;  %3761 = vmatprep.subr.bf16.mxu0 %v3760_v57  ;;  %v4601_v30 = vsel %vm949_vm1, %v950_v6, %v951_v20  ;;  %v558_v6 = vld [vmem:[%s5225_s1 + $0x68] sm:$0xff] }
  0x89   : > { %3351 = vmatmul.mubr.f32.gmra.mrb[4].mxu0 %v4561_v4  ;;  %3635 = vmatpush3.bf16.msra.mxu1 %v3632_v54  ;;  %v4639_v54 = vld [vmem:[%s4309_s21 + $0xc8] sm:$0xff]  ;;  %v3648_v18 = vpack.c.bf16 %v558_v6, %v557_v3  ;;  %v963_v6 = vrot.slane %v4442_v5, 4  ;;  %v966_v5 = vrot.slane %v4461_v12, 4 }
  0x8a   : > { %3763 = vmatpush3.bf16.msra.mxu0 %v3760_v57  ;;  %3129 = vmatprep.mubr.f32.mxu1 %v4505_v35  ;;  %v4612_v35 = vld [vmem:[%s4309_s21 + $0xb8] sm:$0xf]  ;;  %v1369_v2 = vrot.slane %v4639_v54, 2  ;;  %v4682_v20 = vld [vmem:[%s4309_s21 + $0xe8] sm:$0xf] }
  0x8b   : > { %3353 = vmatprep.mubr.f32.mxu0 %v4571_v49  ;;  %3637 = vmatprep.subr.bf16.mxu1 %v3636_v7  ;;  %v624_v57 = vrot.slane %v4612_v35, 2  ;;  %v1376_v44 = vrot.slane %v4682_v20, 2  ;;  %v2749_v3 = vld [vmem:[%s5225_s1 + $0x308] sm:$0xff] }
  0x8c   : > { %3130 = vmatmul.mubr.f32.gmra.mrb[6].mxu1 %v605_v51  ;;  %3765 = vmatprep.subr.bf16.mxu0 %v3764_v1  ;;  %v2743_v51 = vld [vmem:[%s5225_s1 + $0x2d8] sm:$0xff]  ;;  %v4686_v22 = vsel %vm585_vm0, %v1368_v0, %v1369_v2  ;;  %v2685_v0 = vld [vmem:[%s5225_s1 + $0x108] sm:$0xff] }
  0x8d   : > { %3354 = vmatmul.mubr.f32.gmra.mrb[6].mxu0 %v4585_v21  ;;  %3639 = vmatpush3.bf16.msra.mxu1 %v3636_v7  ;;  %v3772_v63 = vpack.c.bf16 %v2743_v51, %v2742_v46  ;;  %v2744_v7 = vld [vmem:[%s5225_s1 + $0x2e0] sm:$0xff]  ;;  %v4677_v16 = vsel %vm585_vm0, %v622_v15, %v624_v57  ;;  %v4705_v15 = vsel %vm585_vm0, %v1369_v2, %v1371_v17  ;;  %v960_v57 = vrot.slane %v4379_v39, 4 }
  0x8e   : > { %3767 = vmatpush3.bf16.msra.mxu0 %v3764_v1  ;;  %3132 = vmatprep.mubr.f32.mxu1 %v4538_v56  ;;  %v4673_v1 = vld [vmem:[%s4309_s21 + $0xe0] sm:$0xff]  ;;  %v3776_v25 = vpack.c.bf16 %v2745_v10, %v2744_v7 }
  0x8f   : > { %3356 = vmatprep.mubr.f32.mxu0 %v4609_v33  ;;  %3641 = vmatprep.subr.bf16.mxu1 %v3640_v38  ;;  %v1374_v27 = vrot.slane %v4673_v1, 2  ;;  %v2748_v2 = vld [vmem:[%s5225_s1 + $0x300] sm:$0xff] }
  0x90   : > { %3133 = vmatmul.mubr.f32.gmra.mrb[8].mxu1 %v4561_v4  ;;  %3769 = vmatprep.subr.bf16.mxu0 %v3768_v42 }
  0x91   : > { %3357 = vmatmul.mubr.f32.gmra.mrb[8].mxu0 %v4643_v55  ;;  %3643 = vmatpush3.bf16.msra.mxu1 %v3640_v38  ;;  %v560_v38 = vld [vmem:[%s5225_s1 + $0x78] sm:$0xff]  ;;  %v4711_v46 = vsel %vm585_vm0, %v1373_v26, %v1374_v27  ;;  %v4731_v7 = vsel %vm585_vm0, %v1374_v27, %v1376_v44  ;;  %v965_v26 = vrot.slane %v4458_v11, 4 }
  0x92   : > { %3771 = vmatpush3.bf16.msra.mxu0 %v3768_v42  ;;  %3135 = vmatprep.mubr.f32.mxu1 %v4571_v49  ;;  %v2746_v42 = vld [vmem:[%s5225_s1 + $0x2f0] sm:$0xff]  ;;  %v3652_v45 = vpack.c.bf16 %v560_v38, %v559_v32  ;;  %v2687_v27 = vld [vmem:[%s5225_s1 + $0x118] sm:$0xff] }
  0x93   : > { %3359 = vmatprep.mubr.f32.mxu0 %v4652_v60  ;;  %3645 = vmatprep.subr.bf16.mxu1 %v3644_v58  ;;  %v3780_v51 = vpack.c.bf16 %v2747_v43, %v2746_v42  ;;  %v2750_v32 = vld [vmem:[%s5225_s1 + $0x310] sm:$0xff]  ;;  %v2751_v38 = vld [vmem:[%s5225_s1 + $0x318] sm:$0xff]  ;;  %v968_v43 = vrot.slane %v4470_v19, 4  ;;  %v2689_v19 = vld [vmem:[%s5225_s1 + $0x128] sm:$0xff] }
  0x94   : > { %3136 = vmatmul.mubr.f32.gmra.mrb[10].mxu1 %v4585_v21  ;;  %3773 = vmatprep.subr.bf16.mxu0 %v3772_v63 }
  0x95   : > { %3360 = vmatmul.mubr.f32.gmra.mrb[10].mxu0 %v4677_v16  ;;  %3647 = vmatpush3.bf16.msra.mxu1 %v3644_v58  ;;  %v961_v58 = vrot.slane %v4382_v40, 4 }
  0x96   : > { %3775 = vmatpush3.bf16.msra.mxu0 %v3772_v63  ;;  %3138 = vmatprep.mubr.f32.mxu1 %v4609_v33  ;;  %v2684_v63 = vld [vmem:[%s5225_s1 + $0x100] sm:$0xff] }
  0x97   : > { %3362 = vmatprep.mubr.f32.mxu0 %v4686_v22  ;;  %3649 = vmatprep.subr.bf16.mxu1 %v3648_v18  ;;  %v3656_v10 = vpack.c.bf16 %v2685_v0, %v2684_v63  ;;  %v4736_v17 = vsel %vm949_vm1, %v960_v57, %v961_v58  ;;  %v4755_v42 = vsel %vm949_vm1, %v961_v58, %v963_v6  ;;  %v2688_v58 = vld [vmem:[%s5225_s1 + $0x120] sm:$0xff]  ;;  %v2753_v63 = vld [vmem:[%s5225_s1 + $0x328] sm:$0xff] }
  0x98   : > { %3139 = vmatmul.mubr.f32.gmra.mrb[12].mxu1 %v4643_v55  ;;  %3777 = vmatprep.subr.bf16.mxu0 %v3776_v25  ;;  %v3788_v57 = vpack.c.bf16 %v2751_v38, %v2750_v32  ;;  %v4780_v0 = vsel %vm949_vm1, %v966_v5, %v968_v43 }
  0x99   : > { %3363 = vmatmul.mubr.f32.gmra.mrb[12].mxu0 %v4705_v15  ;;  %3651 = vmatpush3.bf16.msra.mxu1 %v3648_v18  ;;  %v3784_v18 = vpack.c.bf16 %v2749_v3, %v2748_v2  ;;  %v973_v2 = vrot.slane %v4502_v34, 4  ;;  %v3664_v3 = vpack.c.bf16 %v2689_v19, %v2688_v58  ;;  %v2691_v34 = vld [vmem:[%s5225_s1 + $0x138] sm:$0xff]  ;;  %v983_v58 = vrot.slane %v4568_v14, 4 }
  0x9a   : > { %3779 = vmatpush3.bf16.msra.mxu0 %v3776_v25  ;;  %3141 = vmatprep.mubr.f32.mxu1 %v4652_v60  ;;  %v2686_v25 = vld [vmem:[%s5225_s1 + $0x110] sm:$0xff]  ;;  %v2695_v14 = vld [vmem:[%s5225_s1 + $0x158] sm:$0xff] }
  0x9b   : > { %3365 = vmatprep.mubr.f32.mxu0 %v4711_v46  ;;  %3653 = vmatprep.subr.bf16.mxu1 %v3652_v45  ;;  %v3660_v44 = vpack.c.bf16 %v2687_v27, %v2686_v25  ;;  %v978_v27 = vrot.slane %v4531_v53, 4  ;;  %v2693_v53 = vld [vmem:[%s5225_s1 + $0x148] sm:$0xff] }
  0x9c   : > { %3142 = vmatmul.mubr.f32.gmra.mrb[14].mxu1 %v4677_v16  ;;  %3781 = vmatprep.subr.bf16.mxu0 %v3780_v51 }
  0x9d   : > { %3366 = vmatmul.mubr.f32.gmra.mrb[14].mxu0 %v4731_v7  ;;  %3655 = vmatpush3.bf16.msra.mxu1 %v3652_v45  ;;  %v4761_v45 = vsel %vm949_vm1, %v965_v26, %v966_v5  ;;  %v2690_v26 = vld [vmem:[%s5225_s1 + $0x130] sm:$0xff]  ;;  %v2755_v5 = vld [vmem:[%s5225_s1 + $0x338] sm:$0xff] }
  0x9e   : > { %3783 = vmatpush3.bf16.msra.mxu0 %v3780_v51  ;;  %3176 = vmatprep.mubr.f32.mxu1 %v4372_v36  ;;  %v970_v51 = vrot.slane %v4491_v28, 4  ;;  %v971_v36 = vrot.slane %v4494_v29, 4  ;;  %v3668_v32 = vpack.c.bf16 %v2691_v34, %v2690_v26  ;;  %v988_v34 = vrot.slane %v4612_v35, 4  ;;  %v2697_v35 = vld [vmem:[%s5225_s1 + $0x168] sm:$0xff] }
  0x9f   : > { %3400 = vmatprep.mubr.f32.mxu0 %v4736_v17  ;;  %3657 = vmatprep.subr.bf16.mxu1 %v3656_v10 }
  0xa0   : > { %3177 = vmatmul.mubr.f32.vlgmr.msra.gmra.mrb[0].mxu1 %v4375_v37  ;;  %3785 = vmatprep.subr.bf16.mxu0 %v3784_v18  ;;  %v2752_v37 = vld [vmem:[%s5225_s1 + $0x320] sm:$0xff]  ;;  %v4786_v6 = vsel %vm949_vm1, %v970_v51, %v971_v36  ;;  %v4805_v25 = vsel %vm949_vm1, %v971_v36, %v973_v2  ;;  %v2757_v51 = vld [vmem:[%s5225_s1 + $0x348] sm:$0xff]  ;;  %v985_v2 = vrot.slane %v4591_v23, 4 }
  0xa1   : > { %3401 = vmatmul.mubr.f32.vlgmr.msra.gmra.mrb[0].mxu0 %v4755_v42  ;;  %3659 = vmatpush3.bf16.msra.mxu1 %v3656_v10  ;;  %v3792_v10 = vpack.c.bf16 %v2753_v63, %v2752_v37 }
  0xa2   : > { %3787 = vmatpush3.bf16.msra.mxu0 %v3784_v18  ;;  %3179 = vmatprep.mubr.f32.mxu1 %v4451_v8  ;;  %v975_v18 = vrot.slane %v4523_v48, 4  ;;  %v976_v8 = vrot.slane %v4526_v50, 4 }
  0xa3   : > { %3403 = vmatprep.mubr.f32.mxu0 %v4761_v45  ;;  %3661 = vmatprep.subr.bf16.mxu1 %v3660_v44 }
  0xa4   : > { %3180 = vmatmul.mubr.f32.gmra.mrb[2].mxu1 %v4454_v9  ;;  %3789 = vmatprep.subr.bf16.mxu0 %v3788_v57  ;;  %v2754_v9 = vld [vmem:[%s5225_s1 + $0x330] sm:$0xff]  ;;  %v4811_v38 = vsel %vm949_vm1, %v975_v18, %v976_v8  ;;  %v4830_v36 = vsel %vm949_vm1, %v976_v8, %v978_v27  ;;  %v2759_v8 = vld [vmem:[%s5225_s1 + $0x358] sm:$0xff] }
  0xa5   : > { %3404 = vmatmul.mubr.f32.gmra.mrb[2].mxu0 %v4780_v0  ;;  %3663 = vmatpush3.bf16.msra.mxu1 %v3660_v44  ;;  %v3796_v43 = vpack.c.bf16 %v2755_v5, %v2754_v9  ;;  %v980_v44 = vrot.slane %v4546_v61, 4  ;;  %v2758_v18 = vld [vmem:[%s5225_s1 + $0x350] sm:$0xff] }
  0xa6   : > { %3791 = vmatpush3.bf16.msra.mxu0 %v3788_v57  ;;  %3182 = vmatprep.mubr.f32.mxu1 %v4379_v39  ;;  %v981_v39 = vrot.slane %v4549_v62, 4  ;;  %v2692_v57 = vld [vmem:[%s5225_s1 + $0x140] sm:$0xff]  ;;  %v3804_v27 = vpack.c.bf16 %v2759_v8, %v2758_v18  ;;  %v1568_v8 = vrot.slane %v4682_v20, 4 }
  0xa7   : > { %3406 = vmatprep.mubr.f32.mxu0 %v4786_v6  ;;  %3665 = vmatprep.subr.bf16.mxu1 %v3664_v3  ;;  %v3672_v19 = vpack.c.bf16 %v2693_v53, %v2692_v57  ;;  %v2761_v57 = vld [vmem:[%s5225_s1 + $0x368] sm:$0xff]  ;;  %v2764_v20 = vld [vmem:[%s5225_s1 + $0x380] sm:$0xff] }
  0xa8   : > { %3183 = vmatmul.mubr.f32.gmra.mrb[4].mxu1 %v4382_v40  ;;  %3793 = vmatprep.subr.bf16.mxu0 %v3792_v10  ;;  %v2756_v40 = vld [vmem:[%s5225_s1 + $0x340] sm:$0xff]  ;;  %v4836_v37 = vsel %vm949_vm1, %v980_v44, %v981_v39  ;;  %v4855_v26 = vsel %vm949_vm1, %v981_v39, %v983_v58 }
  0xa9   : > { %3407 = vmatmul.mubr.f32.gmra.mrb[4].mxu0 %v4805_v25  ;;  %3667 = vmatpush3.bf16.msra.mxu1 %v3664_v3  ;;  %v3800_v63 = vpack.c.bf16 %v2757_v51, %v2756_v40  ;;  %v986_v3 = vrot.slane %v4594_v24, 4  ;;  %v2696_v44 = vld [vmem:[%s5225_s1 + $0x160] sm:$0xff]  ;;  %v1563_v40 = vrot.slane %v4648_v59, 4  ;;  %v2699_v59 = vld [vmem:[%s5225_s1 + $0x178] sm:$0xff] }
  0xaa   : > { %3795 = vmatpush3.bf16.msra.mxu0 %v3792_v10  ;;  %3185 = vmatprep.mubr.f32.mxu1 %v4458_v11  ;;  %v2694_v10 = vld [vmem:[%s5225_s1 + $0x150] sm:$0xff]  ;;  %v2760_v39 = vld [vmem:[%s5225_s1 + $0x360] sm:$0xff]  ;;  %v3680_v51 = vpack.c.bf16 %v2697_v35, %v2696_v44  ;;  %v2765_v44 = vld [vmem:[%s5225_s1 + $0x388] sm:$0xff] }
  0xab   : > { %3409 = vmatprep.mubr.f32.mxu0 %v4811_v38  ;;  %3669 = vmatprep.subr.bf16.mxu1 %v3668_v32  ;;  %v3676_v9 = vpack.c.bf16 %v2695_v14, %v2694_v10  ;;  %v4861_v5 = vsel %vm949_vm1, %v985_v2, %v986_v3  ;;  %v4880_v53 = vsel %vm949_vm1, %v986_v3, %v988_v34  ;;  %v1566_v2 = vrot.slane %v4673_v1, 4  ;;  %v2698_v3 = vld [vmem:[%s5225_s1 + $0x170] sm:$0xff]  ;;  %v2763_v14 = vld [vmem:[%s5225_s1 + $0x378] sm:$0xff] }
  0xac   : > { %3186 = vmatmul.mubr.f32.gmra.mrb[6].mxu1 %v4461_v12  ;;  %3797 = vmatprep.subr.bf16.mxu0 %v3796_v43  ;;  %v2762_v10 = vld [vmem:[%s5225_s1 + $0x370] sm:$0xff]  ;;  %v3684_v34 = vpack.c.bf16 %v2699_v59, %v2698_v3  ;;  %v2704_v59 = vld [vmem:[%s5225_s1 + $0x1a0] sm:$0xff] }
  0xad   : > { %3410 = vmatmul.mubr.f32.gmra.mrb[6].mxu0 %v4830_v36  ;;  %3671 = vmatpush3.bf16.msra.mxu1 %v3668_v32  ;;  %v1560_v32 = vrot.slane %v4636_v52, 4  ;;  %v4928_v35 = vsel %vm949_vm1, %v1566_v2, %v1568_v8 }
  0xae   : > { %3799 = vmatpush3.bf16.msra.mxu0 %v3796_v43  ;;  %3188 = vmatprep.mubr.f32.mxu1 %v4491_v28  ;;  %v1561_v43 = vrot.slane %v4639_v54, 4 }
  0xaf   : > { %3412 = vmatprep.mubr.f32.mxu0 %v4836_v37  ;;  %3673 = vmatprep.subr.bf16.mxu1 %v3672_v19 }
  0xb0   : > { %3189 = vmatmul.mubr.f32.gmra.mrb[8].mxu1 %v4494_v29  ;;  %3801 = vmatprep.subr.bf16.mxu0 %v3800_v63  ;;  %v4886_v58 = vsel %vm949_vm1, %v1560_v32, %v1561_v43  ;;  %v4905_v18 = vsel %vm949_vm1, %v1561_v43, %v1563_v40  ;;  %v3812_v32 = vpack.c.bf16 %v2763_v14, %v2762_v10  ;;  %v2701_v43 = vld [vmem:[%s5225_s1 + $0x188] sm:$0xff]  ;;  %v2702_v40 = vld [vmem:[%s5225_s1 + $0x190] sm:$0xff] }
  0xb1   : > { %3413 = vmatmul.mubr.f32.gmra.mrb[8].mxu0 %v4855_v26  ;;  %3675 = vmatpush3.bf16.msra.mxu1 %v3672_v19  ;;  %v3808_v19 = vpack.c.bf16 %v2761_v57, %v2760_v39  ;;  %v3816_v57 = vpack.c.bf16 %v2765_v44, %v2764_v20  ;;  %v2705_v10 = vld [vmem:[%s5225_s1 + $0x1a8] sm:$0xff]  ;;  %v2708_v20 = vld [vmem:[%s5225_s1 + $0x1c0] sm:$0xff] }
  0xb2   : > { %3803 = vmatpush3.bf16.msra.mxu0 %v3800_v63  ;;  %3191 = vmatprep.mubr.f32.mxu1 %v4523_v48  ;;  %v1565_v63 = vrot.slane %v4670_v13, 4  ;;  %v3696_v14 = vpack.c.bf16 %v2705_v10, %v2704_v59  ;;  %v2709_v44 = vld [vmem:[%s5225_s1 + $0x1c8] sm:$0xff]  ;;  %v2776_v59 = vld [vmem:[%s5225_s1 + $0x3e0] sm:$0xff] }
  0xb3   : > { %3415 = vmatprep.mubr.f32.mxu0 %v4861_v5  ;;  %3677 = vmatprep.subr.bf16.mxu1 %v3676_v9  ;;  %v2777_v10 = vld [vmem:[%s5225_s1 + $0x3e8] sm:$0xff] }
  0xb4   : > { %3192 = vmatmul.mubr.f32.gmra.mrb[10].mxu1 %v4526_v50  ;;  %3805 = vmatprep.subr.bf16.mxu0 %v3804_v27 }
  0xb5   : > { %3416 = vmatmul.mubr.f32.gmra.mrb[10].mxu0 %v4880_v53  ;;  %3679 = vmatpush3.bf16.msra.mxu1 %v3676_v9  ;;  %v4911_v9 = vsel %vm949_vm1, %v1565_v63, %v1566_v2  ;;  %v2767_v63 = vld [vmem:[%s5225_s1 + $0x398] sm:$0xff] }
  0xb6   : > { %3807 = vmatpush3.bf16.msra.mxu0 %v3804_v27  ;;  %3194 = vmatprep.mubr.f32.mxu1 %v4546_v61  ;;  %v2700_v27 = vld [vmem:[%s5225_s1 + $0x180] sm:$0xff] }
  0xb7   : > { %3418 = vmatprep.mubr.f32.mxu0 %v4886_v58  ;;  %3681 = vmatprep.subr.bf16.mxu1 %v3680_v51  ;;  %v3688_v39 = vpack.c.bf16 %v2701_v43, %v2700_v27 }
  0xb8   : > { %3195 = vmatmul.mubr.f32.gmra.mrb[12].mxu1 %v4549_v62  ;;  %3809 = vmatprep.subr.bf16.mxu0 %v3808_v19 }
  0xb9   : > { %3419 = vmatmul.mubr.f32.gmra.mrb[12].mxu0 %v4905_v18  ;;  %3683 = vmatpush3.bf16.msra.mxu1 %v3680_v51  ;;  %v2703_v51 = vld [vmem:[%s5225_s1 + $0x198] sm:$0xff] }
  0xba   : > { %3811 = vmatpush3.bf16.msra.mxu0 %v3808_v19  ;;  %3197 = vmatprep.mubr.f32.mxu1 %v4591_v23  ;;  %v2766_v19 = vld [vmem:[%s5225_s1 + $0x390] sm:$0xff]  ;;  %v3692_v2 = vpack.c.bf16 %v2703_v51, %v2702_v40  ;;  %v2711_v51 = vld [vmem:[%s5225_s1 + $0x1d8] sm:$0xff] }
  0xbb   : > { %3421 = vmatprep.mubr.f32.mxu0 %v4911_v9  ;;  %3685 = vmatprep.subr.bf16.mxu1 %v3684_v34  ;;  %v3820_v3 = vpack.c.bf16 %v2767_v63, %v2766_v19  ;;  %v2710_v40 = vld [vmem:[%s5225_s1 + $0x1d0] sm:$0xff] }
  0xbc   : > { %3198 = vmatmul.mubr.f32.gmra.mrb[14].mxu1 %v4594_v24  ;;  %3813 = vmatprep.subr.bf16.mxu0 %v3812_v32  ;;  %v3708_v19 = vpack.c.bf16 %v2711_v51, %v2710_v40  ;;  %v2783_v40 = vld [vmem:[%s5225_s1 + $0x418] sm:$0xff]  ;;  %v4064_v51 = vld [vmem:[%s4309_s21 + $0x30] sm:$0xff] }
  0xbd   : > { %3422 = vmatmul.mubr.f32.gmra.mrb[14].mxu0 %v4928_v35  ;;  %3687 = vmatpush3.bf16.msra.mxu1 %v3684_v34  ;;  %v2706_v34 = vld [vmem:[%s5225_s1 + $0x1b0] sm:$0xff] }
  0xbe   : > { %3815 = vmatpush3.bf16.msra.mxu0 %v3812_v32  ;;  %3232 = vmatprep.mubr.f32.mxu1 %v4601_v30  ;;  %v2768_v30 = vld [vmem:[%s5225_s1 + $0x3a0] sm:$0xff]  ;;  %v2707_v32 = vld [vmem:[%s5225_s1 + $0x1b8] sm:$0xff] }
  0xbf   : > { %3456 = vmatprep.mubr.f32.mxu0 %v4491_v28  ;;  %3689 = vmatprep.subr.bf16.mxu1 %v3688_v39  ;;  %v3700_v27 = vpack.c.bf16 %v2707_v32, %v2706_v34  ;;  %v2715_v34 = vld [vmem:[%s5225_s1 + $0x1f8] sm:$0xff]  ;;  %v2778_v32 = vld [vmem:[%s5225_s1 + $0x3f0] sm:$0xff] }
  0xc0   : > { %3233 = vmatmul.mubr.f32.vlgmr.msra.gmra.mrb[0].mxu1 %v4604_v31  ;;  %3817 = vmatprep.subr.bf16.mxu0 %v3816_v57  ;;  %v2769_v31 = vld [vmem:[%s5225_s1 + $0x3a8] sm:$0xff] }
  0xc1   : > { %3457 = vmatmul.mubr.f32.vlgmr.msra.gmra.mrb[0].mxu0 %v4494_v29  ;;  %3691 = vmatpush3.bf16.msra.mxu1 %v3688_v39  ;;  %v3824_v8 = vpack.c.bf16 %v2769_v31, %v2768_v30  ;;  %v3704_v39 = vpack.c.bf16 %v2709_v44, %v2708_v20  ;;  %v5029_v31 = vld [vmem:[%s4309_s21 + $0xf0] sm:$0xff]  ;;  %v2780_v44 = vld [vmem:[%s5225_s1 + $0x400] sm:$0xff] }
  0xc2   : > { %3819 = vmatpush3.bf16.msra.mxu0 %v3816_v57  ;;  %3235 = vmatprep.mubr.f32.mxu1 %v4615_v41  ;;  %v2770_v41 = vld [vmem:[%s5225_s1 + $0x3b0] sm:$0xff] }
  0xc3   : > { %3459 = vmatprep.mubr.f32.mxu0 %v4523_v48  ;;  %3693 = vmatprep.subr.bf16.mxu1 %v3692_v2 }
  0xc4   : > { %3236 = vmatmul.mubr.f32.gmra.mrb[2].mxu1 %v4629_v47  ;;  %3821 = vmatprep.subr.bf16.mxu0 %v3820_v3  ;;  %v2771_v47 = vld [vmem:[%s5225_s1 + $0x3b8] sm:$0xff] }
  0xc5   : > { %3460 = vmatmul.mubr.f32.gmra.mrb[2].mxu0 %v4526_v50  ;;  %3695 = vmatpush3.bf16.msra.mxu1 %v3692_v2  ;;  %v3828_v43 = vpack.c.bf16 %v2771_v47, %v2770_v41  ;;  %v2712_v2 = vld [vmem:[%s5225_s1 + $0x1e0] sm:$0xff]  ;;  %v2779_v41 = vld [vmem:[%s5225_s1 + $0x3f8] sm:$0xff] }
  0xc6   : > { %3823 = vmatpush3.bf16.msra.mxu0 %v3820_v3  ;;  %3238 = vmatprep.mubr.f32.mxu1 %v4736_v17  ;;  %v2772_v17 = vld [vmem:[%s5225_s1 + $0x3c0] sm:$0xff]  ;;  %v2713_v3 = vld [vmem:[%s5225_s1 + $0x1e8] sm:$0xff]  ;;  %v5046_v47 = vld [vmem:[%s4309_s21 + $0xf8] sm:$0xff]  ;;  %v3844_v20 = vpack.c.bf16 %v2779_v41, %v2778_v32 }
  0xc7   : > { %3462 = vmatprep.mubr.f32.mxu0 %v4546_v61  ;;  %3697 = vmatprep.subr.bf16.mxu1 %v3696_v14  ;;  %v3712_v30 = vpack.c.bf16 %v2713_v3, %v2712_v2  ;;  %v2786_v2 = vld [vmem:[%s5225_s1 + $0x430] sm:$0xff]  ;;  %v2787_v3 = vld [vmem:[%s5225_s1 + $0x438] sm:$0xff] }
  0xc8   : > { %3239 = vmatmul.mubr.f32.gmra.mrb[4].mxu1 %v4755_v42  ;;  %3825 = vmatprep.subr.bf16.mxu0 %v3824_v8  ;;  %v2773_v42 = vld [vmem:[%s5225_s1 + $0x3c8] sm:$0xff] }
  0xc9   : > { %3463 = vmatmul.mubr.f32.gmra.mrb[4].mxu0 %v4549_v62  ;;  %3699 = vmatpush3.bf16.msra.mxu1 %v3696_v14  ;;  %v3832_v57 = vpack.c.bf16 %v2773_v42, %v2772_v17  ;;  %v3840_v14 = vpack.c.bf16 %v2777_v10, %v2776_v59  ;;  %v2781_v17 = vld [vmem:[%s5225_s1 + $0x408] sm:$0xff]  ;;  %v5062_v42 = vld [vmem:[%s4309_s21 + $0x110] sm:$0xff] }
  0xca   : > { %3827 = vmatpush3.bf16.msra.mxu0 %v3824_v8  ;;  %3241 = vmatprep.mubr.f32.mxu1 %v4761_v45  ;;  %v2774_v45 = vld [vmem:[%s5225_s1 + $0x3d0] sm:$0xff]  ;;  %v1942_v59 = vrot.slane %v5062_v42, 2 }
  0xcb   : > { %3465 = vmatprep.mubr.f32.mxu0 %v4591_v23  ;;  %3701 = vmatprep.subr.bf16.mxu1 %v3700_v27  ;;  %v2714_v8 = vld [vmem:[%s5225_s1 + $0x1f0] sm:$0xff] }
  0xcc   : > { %3242 = vmatmul.mubr.f32.gmra.mrb[6].mxu1 %v4780_v0  ;;  %3829 = vmatprep.subr.bf16.mxu0 %v3828_v43  ;;  %v2775_v0 = vld [vmem:[%s5225_s1 + $0x3d8] sm:$0xff] }
  0xcd   : > { %3466 = vmatmul.mubr.f32.gmra.mrb[6].mxu0 %v4594_v24  ;;  %3703 = vmatpush3.bf16.msra.mxu1 %v3700_v27  ;;  %v3836_v63 = vpack.c.bf16 %v2775_v0, %v2774_v45  ;;  %v3716_v27 = vpack.c.bf16 %v2715_v34, %v2714_v8  ;;  %v4065_v0 = vld [vmem:[%s4309_s21 + $0x38] sm:$0xff]  ;;  %v2134_v8 = vrot.slane %v5062_v42, 4 }
  0xce   : > { %3831 = vmatpush3.bf16.msra.mxu0 %v3828_v43  ;;  %3244 = vmatprep.mubr.f32.mxu1 %v4786_v6  ;;  %v5051_v43 = vld [vmem:[%s4309_s21 + $0x108] sm:$0xff] }
  0xcf   : > { %3468 = vmatprep.mubr.f32.mxu0 %v4636_v52  ;;  %3705 = vmatprep.subr.bf16.mxu1 %v3704_v39 }
  0xd0   : > { %3245 = vmatmul.mubr.f32.gmra.mrb[8].mxu1 %v4805_v25  ;;  %3833 = vmatprep.subr.bf16.mxu0 %v3832_v57 }
  0xd1   : > { %3469 = vmatmul.mubr.f32.gmra.mrb[8].mxu0 %v4639_v54  ;;  %3707 = vmatpush3.bf16.msra.mxu1 %v3704_v39  ;;  %v3848_v39 = vpack.c.bf16 %v2781_v17, %v2780_v44 }
  0xd2   : > { %3835 = vmatpush3.bf16.msra.mxu0 %v3832_v57  ;;  %3247 = vmatprep.mubr.f32.mxu1 %v4811_v38  ;;  %v2782_v57 = vld [vmem:[%s5225_s1 + $0x410] sm:$0xff] }
  0xd3   : > { %3471 = vmatprep.mubr.f32.mxu0 %v4670_v13  ;;  %3709 = vmatprep.subr.bf16.mxu1 %v3708_v19  ;;  %v3852_v45 = vpack.c.bf16 %v2783_v40, %v2782_v57 }
  0xd4   : > { %3248 = vmatmul.mubr.f32.gmra.mrb[10].mxu1 %v4830_v36  ;;  %3837 = vmatprep.subr.bf16.mxu0 %v3836_v63 }
  0xd5   : > { %3472 = vmatmul.mubr.f32.gmra.mrb[10].mxu0 %v4673_v1  ;;  %3711 = vmatpush3.bf16.msra.mxu1 %v3708_v19  ;;  %v2784_v19 = vld [vmem:[%s5225_s1 + $0x420] sm:$0xff] }
  0xd6   : > { %3839 = vmatpush3.bf16.msra.mxu0 %v3836_v63  ;;  %3250 = vmatprep.mubr.f32.mxu1 %v4836_v37  ;;  %v2785_v63 = vld [vmem:[%s5225_s1 + $0x428] sm:$0xff] }
  0xd7   : > { %3474 = vmatprep.mubr.f32.mxu0 %v5029_v31  ;;  %3713 = vmatprep.subr.bf16.mxu1 %v3712_v30 }
  0xd8   : > { %3251 = vmatmul.mubr.f32.gmra.mrb[12].mxu1 %v4855_v26  ;;  %3841 = vmatprep.subr.bf16.mxu0 %v3840_v14 }
  0xd9   : > { %3475 = vmatmul.mubr.f32.gmra.mrb[12].mxu0 %v5046_v47  ;;  %3715 = vmatpush3.bf16.msra.mxu1 %v3712_v30 }
  0xda   : > { %3843 = vmatpush3.bf16.msra.mxu0 %v3840_v14  ;;  %3253 = vmatprep.mubr.f32.mxu1 %v4861_v5 }
  0xdb   : > { %3477 = vmatprep.mubr.f32.mxu0 %v5051_v43  ;;  %3717 = vmatprep.subr.bf16.mxu1 %v3716_v27 }
  0xdc   : > { %3254 = vmatmul.mubr.f32.gmra.mrb[14].mxu1 %v4880_v53  ;;  %3845 = vmatprep.subr.bf16.mxu0 %v3844_v20 }
  0xdd   : > { %3478 = vmatmul.mubr.f32.gmra.mrb[14].mxu0 %v5062_v42  ;;  %3719 = vmatpush3.bf16.msra.mxu1 %v3716_v27 }
  0xde   : > { %3847 = vmatpush3.bf16.msra.mxu0 %v3844_v20  ;;  %3288 = vmatprep.mubr.f32.mxu1 %v4064_v51 }
  0xdf   : > { %3512 = vmatprep.mubr.f32.mxu0 %v4538_v56  ;;  %3849 = vmatprep.subr.bf16.mxu0 %v3848_v39  ;;  %v3856_v56 = vpack.c.bf16 %v2785_v63, %v2784_v19 }
  0xe0   : > { %3289 = vmatmul.mubr.f32.vlgmr.msra.gmra.mrb[0].mxu1 %v4065_v0  ;;  %3880 = vmatprep.subr.bf16.mxu1 %v3848_v39 }
  0xe1   : > { %3513 = vmatmul.mubr.f32.vlgmr.msra.gmra.mrb[0].mxu0 %v4561_v4  ;;  %3888 = vmatpush3.bf16.msra.mxu1 %v3848_v39  ;;  %v2789_v4 = vld [vmem:[%s5225_s1 + $0x448] sm:$0xff] }
  0xe2   : > { %3851 = vmatpush3.bf16.msra.mxu0 %v3848_v39  ;;  %3291 = vmatprep.mubr.f32.mxu1 %v4458_v11  ;;  %v3860_v11 = vpack.c.bf16 %v2787_v3, %v2786_v2 }
  0xe3   : > { %3515 = vmatprep.mubr.f32.mxu0 %v4571_v49  ;;  %3853 = vmatprep.subr.bf16.mxu0 %v3852_v45  ;;  %v2791_v49 = vld [vmem:[%s5225_s1 + $0x458] sm:$0xff] }
  0xe4   : > { %3292 = vmatmul.mubr.f32.gmra.mrb[2].mxu1 %v4461_v12  ;;  %3881 = vmatprep.subr.bf16.mxu1 %v3852_v45  ;;  %v2788_v12 = vld [vmem:[%s5225_s1 + $0x440] sm:$0xff] }
  0xe5   : > { %3516 = vmatmul.mubr.f32.gmra.mrb[2].mxu0 %v4585_v21  ;;  %3889 = vmatpush3.bf16.msra.mxu1 %v3852_v45  ;;  %v1936_v21 = vrot.slane %v5029_v31, 2 }
  0xe6   : > { %3855 = vmatpush3.bf16.msra.mxu0 %v3852_v45  ;;  %3294 = vmatprep.mubr.f32.mxu1 %v4491_v28  ;;  %v3864_v28 = vpack.c.bf16 %v2789_v4, %v2788_v12 }
  0xe7   : > { %3518 = vmatprep.mubr.f32.mxu0 %v4609_v33  ;;  %3857 = vmatprep.subr.bf16.mxu0 %v3856_v56  ;;  %v1937_v33 = vrot.slane %v5046_v47, 2 }
  0xe8   : > { %3295 = vmatmul.mubr.f32.gmra.mrb[4].mxu1 %v4494_v29  ;;  %3882 = vmatprep.subr.bf16.mxu1 %v3856_v56  ;;  %v2790_v29 = vld [vmem:[%s5225_s1 + $0x450] sm:$0xff] }
  0xe9   : > { %3519 = vmatmul.mubr.f32.gmra.mrb[4].mxu0 %v4643_v55  ;;  %3890 = vmatpush3.bf16.msra.mxu1 %v3856_v56  ;;  %v2792_v55 = vld [vmem:[%s5225_s1 + $0x460] sm:$0xff] }
  0xea   : > { %3859 = vmatpush3.bf16.msra.mxu0 %v3856_v56  ;;  %3297 = vmatprep.mubr.f32.mxu1 %v4523_v48  ;;  %v3868_v48 = vpack.c.bf16 %v2791_v49, %v2790_v29 }
  0xeb   : > { %3521 = vmatprep.mubr.f32.mxu0 %v4652_v60  ;;  %3861 = vmatprep.subr.bf16.mxu0 %v3860_v11 }
  0xec   : > { %3298 = vmatmul.mubr.f32.gmra.mrb[6].mxu1 %v4526_v50  ;;  %3883 = vmatprep.subr.bf16.mxu1 %v3860_v11  ;;  %v5116_v50 = vld [vmem:[%s4309_s21 + $0x100] sm:$0xf] }
  0xed   : > { %3522 = vmatmul.mubr.f32.gmra.mrb[6].mxu0 %v4677_v16  ;;  %3891 = vmatpush3.bf16.msra.mxu1 %v3860_v11  ;;  %v1939_v60 = vrot.slane %v5116_v50, 2  ;;  %v544_v16 = vld [vmem:[%s4309_s21 + $0x118] sm:$0xf] }
  0xee   : > { %3863 = vmatpush3.bf16.msra.mxu0 %v3860_v11  ;;  %3300 = vmatprep.mubr.f32.mxu1 %v4546_v61  ;;  %v2793_v61 = vld [vmem:[%s5225_s1 + $0x468] sm:$0xff] }
  0xef   : > { %3524 = vmatprep.mubr.f32.mxu0 %v4686_v22  ;;  %3865 = vmatprep.subr.bf16.mxu0 %v3864_v28  ;;  %v1941_v22 = vrot.slane %v5051_v43, 2  ;;  %v1940_v10 = vsel %vm585_vm0, %v1937_v33, %v1939_v60 }
  0xf0   : > { %3301 = vmatmul.mubr.f32.gmra.mrb[8].mxu1 %v4549_v62  ;;  %3884 = vmatprep.subr.bf16.mxu1 %v3864_v28  ;;  %v3872_v62 = vpack.c.bf16 %v2793_v61, %v2792_v55 }
  0xf1   : > { %3525 = vmatmul.mubr.f32.gmra.mrb[8].mxu0 %v4705_v15  ;;  %3892 = vmatpush3.bf16.msra.mxu1 %v3864_v28  ;;  %v1938_v15 = vsel %vm585_vm0, %v1936_v21, %v1937_v33  ;;  %v1943_v14 = vsel %vm585_vm0, %v1941_v22, %v1942_v59 }
  0xf2   : > { %3867 = vmatpush3.bf16.msra.mxu0 %v3864_v28  ;;  %3303 = vmatprep.mubr.f32.mxu1 %v4591_v23  ;;  %v2794_v23 = vld [vmem:[%s5225_s1 + $0x470] sm:$0xff] }
  0xf3   : > { %3527 = vmatprep.mubr.f32.mxu0 %v4711_v46  ;;  %3869 = vmatprep.subr.bf16.mxu0 %v3868_v48  ;;  %v2795_v46 = vld [vmem:[%s5225_s1 + $0x478] sm:$0xff] }
  0xf4   : > { %3304 = vmatmul.mubr.f32.gmra.mrb[10].mxu1 %v4594_v24  ;;  %3885 = vmatprep.subr.bf16.mxu1 %v3868_v48  ;;  %v1944_v24 = vrot.slane %v544_v16, 2  ;;  %v3876_v30 = vpack.c.bf16 %v2795_v46, %v2794_v23 }
  0xf5   : > { %3528 = vmatmul.mubr.f32.gmra.mrb[10].mxu0 %v4731_v7  ;;  %3893 = vmatpush3.bf16.msra.mxu1 %v3868_v48 }
  0xf6   : > { %3871 = vmatpush3.bf16.msra.mxu0 %v3868_v48  ;;  %3306 = vmatprep.mubr.f32.mxu1 %v4636_v52  ;;  %v1945_v7 = vsel %vm585_vm0, %v1942_v59, %v1944_v24  ;;  %v2128_v52 = vrot.slane %v5029_v31, 4 }
  0xf7   : > { %3530 = vmatprep.mubr.f32.mxu0 %v1938_v15  ;;  %3873 = vmatprep.subr.bf16.mxu0 %v3872_v62 }
  0xf8   : > { %3307 = vmatmul.mubr.f32.gmra.mrb[12].mxu1 %v4639_v54  ;;  %3886 = vmatprep.subr.bf16.mxu1 %v3872_v62  ;;  %v2129_v54 = vrot.slane %v5046_v47, 4 }
  0xf9   : > { %3531 = vmatmul.mubr.f32.gmra.mrb[12].mxu0 %v1940_v10  ;;  %3894 = vmatpush3.bf16.msra.mxu1 %v3872_v62 }
  0xfa   : > { %3875 = vmatpush3.bf16.msra.mxu0 %v3872_v62  ;;  %3309 = vmatprep.mubr.f32.mxu1 %v4670_v13  ;;  %v2131_v13 = vrot.slane %v5116_v50, 4  ;;  %v2130_v31 = vsel %vm949_vm1, %v2128_v52, %v2129_v54 }
  0xfb   : > { %3533 = vmatprep.mubr.f32.mxu0 %v1943_v14  ;;  %3877 = vmatprep.subr.bf16.mxu0 %v3876_v30 }
  0xfc   : > { %3310 = vmatmul.mubr.f32.gmra.mrb[14].mxu1 %v4673_v1  ;;  %3887 = vmatprep.subr.bf16.mxu1 %v3876_v30  ;;  %v2133_v1 = vrot.slane %v5051_v43, 4 }
  0xfd   : > { %3534 = vmatmul.mubr.f32.gmra.mrb[14].mxu0 %v1945_v7  ;;  %3895 = vmatpush3.bf16.msra.mxu1 %v3876_v30 }
  0xfe   : > { %3879 = vmatpush3.bf16.msra.mxu0 %v3876_v30  ;;  %3568 = vmatprep.mubr.f32.mxu0 %v4786_v6  ;;  %v2132_v6 = vsel %vm949_vm1, %v2129_v54, %v2131_v13 }
  0xff   : > { %3580 = vmatprep.mubr.f32.mxu1 %v4886_v58  ;;  %v2135_v58 = vsel %vm949_vm1, %v2133_v1, %v2134_v8 }
 0x100   : > { %3581 = vmatmul.mubr.f32.vlgmr.msra.gmra.mrb[16].mxu1 %v4905_v18 }
 0x101   : > { %3569 = vmatmul.mubr.f32.vlgmr.msra.gmra.mrb[0].mxu0 %v4805_v25  ;;  %3583 = vmatprep.mubr.f32.mxu1 %v4911_v9  ;;  %v2136_v25 = vrot.slane %v544_v16, 4 }
 0x102   : > { %3571 = vmatprep.mubr.f32.mxu0 %v4811_v38 }
 0x103   : > { %v2137_v38 = vsel %vm949_vm1, %v2134_v8, %v2136_v25 }
 0x104   : > { %3584 = vmatmul.mubr.f32.gmra.mrb[18].mxu1 %v4928_v35 }
 0x105   : > { %3572 = vmatmul.mubr.f32.gmra.mrb[2].mxu0 %v4830_v36  ;;  %3586 = vmatprep.mubr.f32.mxu1 %v2130_v31 }
 0x106   : > { %3574 = vmatprep.mubr.f32.mxu0 %v4836_v37 }
 0x108   : > { %3587 = vmatmul.mubr.f32.gmra.mrb[20].mxu1 %v2132_v6 }
 0x109   : > { %3575 = vmatmul.mubr.f32.gmra.mrb[4].mxu0 %v4855_v26  ;;  %3589 = vmatprep.mubr.f32.mxu1 %v2135_v58 }
 0x10a   : > { %3577 = vmatprep.mubr.f32.mxu0 %v4861_v5 }
 0x10c   : > { %3590 = vmatmul.mubr.f32.gmra.mrb[22].mxu1 %v2137_v38 }
 0x10d   : > { %3578 = vmatmul.mubr.f32.gmra.mrb[6].mxu0 %v4880_v53 }
 0x1b3   : > { %v3290_v36 = vpop.f32.mrb[0].mxu1 }
 0x1b4   : > { %v1267_v18 = vpop.f32.mrb[1].mxu1 }
 0x1b7   : > { %v3293_v9 = vpop.f32.mrb[2].mxu1 }
 0x1b8   : > { %v1277_v35 = vpop.f32.mrb[3].mxu1 }
 0x1bb   : > { %v3296_v34 = vpop.f32.mrb[4].mxu1 }
 0x1bc   : > { %v5171_v32 = vpop.f32.mrb[5].mxu1 }
 0x1bf   : > { %v5173_v37 = vpop.f32.mrb[6].mxu1 }
 0x1c0   : > { %v5175_v41 = vpop.f32.mrb[7].mxu1 }
 0x1c3   : > { %v3302_v26 = vpop.f32.mrb[8].mxu1 }
 0x1c4   : > { %v3526_v47 = vpop.f32.mrb[8].mxu0  ;;  %v1307_v27 = vpop.f32.mrb[9].mxu1 }
 0x1c5   : > { %v3904_v43 = vadd.f32 %v3526_v47, %v3302_v26  ;;  %v2073_v20 = vpop.f32.mrb[9].mxu0 }
 0x1c6   : > { %v3906_v5 = vadd.f32 %v2073_v20, %v1307_v27 }
 0x1c7   : > { %v3305_v44 = vpop.f32.mrb[10].mxu1 }
 0x1c8   : > { %v3529_v17 = vpop.f32.mrb[10].mxu0  ;;  %v1317_v53 = vpop.f32.mrb[11].mxu1 }
 0x1c9   : > { %v3908_v42 = vadd.f32 %v3529_v17, %v3305_v44  ;;  %v2083_v39 = vpop.f32.mrb[11].mxu0 }
 0x1ca   : > { %v3910_v57 = vadd.f32 %v2083_v39, %v1317_v53 }
 0x1cb   : > { %v3308_v40 = vpop.f32.mrb[12].mxu1 }
 0x1cc   : > { %v3532_v51 = vpop.f32.mrb[12].mxu0  ;;  %v1327_v45 = vpop.f32.mrb[13].mxu1 }
 0x1cd   : > { %v3912_v0 = vadd.f32 %v3532_v51, %v3308_v40  ;;  %v2093_v19 = vpop.f32.mrb[13].mxu0 }
 0x1ce   : > { %v3914_v63 = vadd.f32 %v2093_v19, %v1327_v45 }
 0x1cf   : > { %v3311_v56 = vpop.f32.mrb[14].mxu1 }
 0x1d0   : > { %v3535_v2 = vpop.f32.mrb[14].mxu0  ;;  %v1337_v3 = vpop.f32.mrb[15].mxu1 }
 0x1d1   : > { %v3916_v11 = vadd.f32 %v3535_v2, %v3311_v56  ;;  %v2103_v12 = vpop.f32.mrb[15].mxu0 }
 0x1d2   : > { %v3918_v4 = vadd.f32 %v2103_v12, %v1337_v3 }
 0x1d3   : > { %v3582_v28 = vpop.f32.mrb[16].mxu1 }
 0x1d4   : > { %v3570_v29 = vpop.f32.mrb[0].mxu0  ;;  %v5177_v49 = vadd.f32 %v3904_v43, %v3582_v28  ;;  %v2265_v48 = vpop.f32.mrb[17].mxu1 }
 0x1d5   : > { %v3896_v50 = vadd.f32 %v3570_v29, %v3290_v36  ;;  %v2225_v21 = vpop.f32.mrb[1].mxu0  ;;  %v5179_v33 = vadd.f32 %v3906_v5, %v2265_v48 }
 0x1d6   : > { %2329 = vst [vmem:[%s4169_s27 + $0x48] sm:$0xff] %v5177_v49  ;;  %v3897_v55 = vadd.f32 %v2225_v21, %v1267_v18 }
 0x1d7   : > { %2321 = vst [vmem:[%s4169_s27 + $0x8] sm:$0xff] %v3896_v50  ;;  %v2358_v61 = vmul.f32 %v3896_v50, %v3896_v50  ;;  %2328 = vst [vmem:[%s4169_s27 + $0x40] sm:$0xff] %v5179_v33  ;;  %v3585_v60 = vpop.f32.mrb[18].mxu1 }
 0x1d8   : > { %2320 = vst [vmem:[%s4169_s27] sm:$0xff] %v3897_v55  ;;  %v2336_v62 = vadd.f32 %v3897_v55, %v3896_v50  ;;  %v2357_v16 = vmul.f32 %v3897_v55, %v3897_v55  ;;  %v3573_v22 = vpop.f32.mrb[2].mxu0  ;;  %v3909_v59 = vadd.f32 %v3908_v42, %v3585_v60  ;;  %v2275_v15 = vpop.f32.mrb[19].mxu1 }
 0x1d9   : > { %v3898_v23 = vadd.f32 %v3573_v22, %v3293_v9  ;;  %v2235_v46 = vpop.f32.mrb[3].mxu0  ;;  %v3911_v10 = vadd.f32 %v3910_v57, %v2275_v15 }
 0x1da   : > { %v2373_v24 = vadd.f32 %v2358_v61, %v2357_v16  ;;  %2331 = vst [vmem:[%s4169_s27 + $0x58] sm:$0xff] %v3909_v59  ;;  %v3899_v30 = vadd.f32 %v2235_v46, %v1277_v35  ;;  %v2368_v12 = vmul.f32 %v3909_v59, %v3909_v59 }
 0x1db   : > { %2323 = vst [vmem:[%s4169_s27 + $0x18] sm:$0xff] %v3898_v23  ;;  %2330 = vst [vmem:[%s4169_s27 + $0x50] sm:$0xff] %v3911_v10  ;;  %v3588_v14 = vpop.f32.mrb[20].mxu1  ;;  %v2360_v25 = vmul.f32 %v3898_v23, %v3898_v23  ;;  %v2367_v2 = vmul.f32 %v3911_v10, %v3911_v10 }
 0x1dc   : > { %2322 = vst [vmem:[%s4169_s27 + $0x10] sm:$0xff] %v3899_v30  ;;  %v2337_v7 = vadd.f32 %v3899_v30, %v2336_v62  ;;  %v2359_v52 = vmul.f32 %v3899_v30, %v3899_v30  ;;  %v3576_v54 = vpop.f32.mrb[4].mxu0  ;;  %v3913_v13 = vadd.f32 %v3912_v0, %v3588_v14  ;;  %v2285_v1 = vpop.f32.mrb[21].mxu1 }
 0x1dd   : > { %v3900_v8 = vadd.f32 %v3576_v54, %v3296_v34  ;;  %v2245_v31 = vpop.f32.mrb[5].mxu0  ;;  %v3915_v6 = vadd.f32 %v3914_v63, %v2285_v1  ;;  %v2366_v63 = vmul.f32 %v5177_v49, %v5177_v49 }
 0x1de   : > { %v2374_v58 = vadd.f32 %v2373_v24, %v2359_v52  ;;  %2333 = vst [vmem:[%s4169_s27 + $0x68] sm:$0xff] %v3913_v13  ;;  %v3901_v38 = vadd.f32 %v2245_v31, %v5171_v32  ;;  %v2338_v36 = vadd.f32 %v3898_v23, %v2337_v7  ;;  %v2370_v21 = vmul.f32 %v3913_v13, %v3913_v13 }
 0x1df   : > { %2325 = vst [vmem:[%s4169_s27 + $0x28] sm:$0xff] %v3900_v8  ;;  %2332 = vst [vmem:[%s4169_s27 + $0x60] sm:$0xff] %v3915_v6  ;;  %v3591_v18 = vpop.f32.mrb[22].mxu1  ;;  %v2362_v32 = vmul.f32 %v3900_v8, %v3900_v8  ;;  %v2369_v29 = vmul.f32 %v3915_v6, %v3915_v6 }
 0x1e0   : > { %2324 = vst [vmem:[%s4169_s27 + $0x20] sm:$0xff] %v3901_v38  ;;  %v2339_v9 = vadd.f32 %v3901_v38, %v2338_v36  ;;  %v2361_v35 = vmul.f32 %v3901_v38, %v3901_v38  ;;  %v2375_v26 = vadd.f32 %v2374_v58, %v2360_v25  ;;  %v3579_v34 = vpop.f32.mrb[6].mxu0  ;;  %v3917_v47 = vadd.f32 %v3916_v11, %v3591_v18  ;;  %v2295_v27 = vpop.f32.mrb[23].mxu1 }
 0x1e1   : > { %v3902_v43 = vadd.f32 %v3579_v34, %v5173_v37  ;;  %v2255_v20 = vpop.f32.mrb[7].mxu0  ;;  %v3919_v5 = vadd.f32 %v3918_v4, %v2295_v27  ;;  %v2365_v37 = vmul.f32 %v5179_v33, %v5179_v33 }
 0x1e2   : > { %v2376_v44 = vadd.f32 %v2375_v26, %v2361_v35  ;;  %2335 = vst [vmem:[%s4169_s27 + $0x78] sm:$0xff] %v3917_v47  ;;  %v3903_v17 = vadd.f32 %v2255_v20, %v5175_v41  ;;  %v2340_v53 = vadd.f32 %v3900_v8, %v2339_v9  ;;  %v2372_v16 = vmul.f32 %v3917_v47, %v3917_v47 }
 0x1e3   : > { %2327 = vst [vmem:[%s4169_s27 + $0x38] sm:$0xff] %v3902_v43  ;;  %2334 = vst [vmem:[%s4169_s27 + $0x70] sm:$0xff] %v3919_v5  ;;  %v2364_v40 = vmul.f32 %v3902_v43, %v3902_v43  ;;  %v2371_v60 = vmul.f32 %v3919_v5, %v3919_v5 }
 0x1e4   : > { %2326 = vst [vmem:[%s4169_s27 + $0x30] sm:$0xff] %v3903_v17  ;;  %v2341_v42 = vadd.f32 %v3903_v17, %v2340_v53  ;;  %v2363_v39 = vmul.f32 %v3903_v17, %v3903_v17  ;;  %v2377_v57 = vadd.f32 %v2376_v44, %v2362_v32 }
 0x1e6   : > { %v2342_v51 = vadd.f32 %v3902_v43, %v2341_v42  ;;  %v2378_v45 = vadd.f32 %v2377_v57, %v2363_v39 }
 0x1e8   : > { %v2343_v0 = vadd.f32 %v5179_v33, %v2342_v51  ;;  %v2379_v19 = vadd.f32 %v2378_v45, %v2364_v40 }
 0x1ea   : > { %v2344_v41 = vadd.f32 %v5177_v49, %v2343_v0  ;;  %v2380_v56 = vadd.f32 %v2379_v19, %v2365_v37 }
 0x1ec   : > { %v2381_v3 = vadd.f32 %v2380_v56, %v2366_v63  ;;  %v2345_v11 = vadd.f32 %v3911_v10, %v2344_v41 }
 0x1ee   : > { %v2346_v4 = vadd.f32 %v3909_v59, %v2345_v11  ;;  %v2382_v28 = vadd.f32 %v2381_v3, %v2367_v2 }
 0x1f0   : > { %v2347_v48 = vadd.f32 %v3915_v6, %v2346_v4  ;;  %v2383_v50 = vadd.f32 %v2382_v28, %v2368_v12 }
 0x1f2   : > { %v2348_v55 = vadd.f32 %v3913_v13, %v2347_v48  ;;  %v2384_v61 = vadd.f32 %v2383_v50, %v2369_v29 }
 0x1f4   : > { %v2349_v33 = vadd.f32 %v3919_v5, %v2348_v55  ;;  %v2385_v62 = vadd.f32 %v2384_v61, %v2370_v21 }
 0x1f6   : > { %v2350_v22 = vadd.f32 %v3917_v47, %v2349_v33  ;;  %v2386_v15 = vadd.f32 %v2385_v62, %v2371_v60 }
 0x1f8   : > { %v2351_v49 = vrot.slane %v2350_v22, 4  ;;  %v2387_v23 = vadd.f32 %v2386_v15, %v2372_v16 }
 0x1fa   : > { %v2352_v46 = vadd.f32 %v2351_v49, %v2350_v22  ;;  %v2388_v10 = vrot.slane %v2387_v23, 4 }
 0x1fc   : > { %v2353_v24 = vrot.slane %v2352_v46, 2  ;;  %v2389_v59 = vadd.f32 %v2388_v10, %v2387_v23 }
 0x1fe   : > { %v2354_v30 = vadd.f32 %v2353_v24, %v2352_v46  ;;  %v2390_v14 = vrot.slane %v2389_v59, 2 }
 0x200   : > { %v2355_v7 = vrot.slane %v2354_v30, 1  ;;  %v2391_v52 = vadd.f32 %v2390_v14, %v2389_v59 }
 0x202   : > { %v2392_v54 = vrot.slane %v2391_v52, 1  ;;  %v2356_v13 = vadd.f32 %v2355_v7, %v2354_v30 }
 0x204   : > { %v2393_v1 = vadd.f32 %v2392_v54, %v2391_v52 }
 0x206   : > { %v2395_v8 = vsel %vm2394_vm2, %v2356_v13, %v2393_v1 }
 0x207   : > { %2396 = vst [vmem:[%s4175_s7] sm:$0x3] %v2395_v8 }
 0x208 PF: > { %s14_s16 = sadd.s32 1, %s4106_s16   ;;  %s5228_s12 = smov %s4098_s14 }
 0x209   : > { %p11_p0 = scmp.ge.s32.totalorder %s14_s16, 6   ;;  %s5229_s13 = smov %s4102_s15 }
 0x20a   : > { %s5230_s14 = smov %s5233_s17  ;;  %s5231_s15 = smov %s5237_s18 }
 0x20b   :  { %13 = sbr.rel (!%p11_p0) target bundleno = 3 (0x3), region = 188 }
 0x212   :  { %2451 = vsyncmov [#allocation3] }
 0x215   :  { %s2452_s27 = vpop.sfrf %2451 }
 0x216   :  { %p2798_p1 = scmp.ne.s32.totalorder %s2452_s27, 0 }
 0x218   :  { %2456 = shalt.err (%p2798_p1)  }
 0x219   :  { %2458 = vsyncmov [#allocation3 + $0x1] }
 0x21c   :  { %s2459_s7 = vpop.sfrf %2458 }
 0x21d   :  { %p2799_p2 = scmp.ne.s32.totalorder %s2459_s7, 0 }
 0x21f   :  { %2463 = shalt.err (%p2799_p2)  }

// kernel: residual_block_mulgrid.24
= control target key start
LH: loop header
LB: loop body
LE: loop exit
PB: predicated region body
PF: predicated region fallthrough
CT: control target
= control target key end

     0   :  { %s4040_s12 = smov 0   ;;  %s4042_s13 = smov 0   ;;  %s5128_s0 = inlined_call_operand.vmem [shape: f32[2,24,24,128], index: 0, kind: input, shape index: {}]   ;;  %s5129_s1 = inlined_call_operand.vmem [shape: f32[9,128,128], index: 1, kind: input, shape index: {}]   ;;  %s5130_s2 = inlined_call_operand.vmem [shape: f32[2,16,16,128], index: 2, kind: output, shape index: {0}]   ;;  %s5131_s3 = inlined_call_operand.vmem [shape: f32[2,2,2,128], index: 3, kind: output, shape index: {1}]  }
   0x1   :  { %s4044_s14 = smov 0   ;;  %s4046_s15 = smov 0  }
   0x2   :  { %s4048_s16 = smov 0  }
   0x3 LB: > { %s23_s17 = sadd.s32 1, %s4010_s14  ;;  %s26_s18 = sadd.s32 1, %s4014_s15  ;;  %s4018_s16 = sphi %s4048_s16, %s14_s16   ;;  %s4014_s15 = sphi %s4046_s15, %s5135_s15   ;;  %s4010_s14 = sphi %s4044_s14, %s5134_s14   ;;  %s4006_s13 = sphi %s4042_s13, %s5133_s13   ;;  %s4002_s12 = sphi %s4040_s12, %s5132_s12  }
   0x4   : > { %p24_p0 = scmp.ge.s32.totalorder %s23_s17, 2  ;;  %p2518_p1 = scmp.ge.s32.totalorder %s4018_s16, 1 }
   0x5   : > { %p122_p2 = scmp.lt.s32.totalorder %s4018_s16, 5 }
   0x6   : > { %s5137_s17 = smov (%p24_p0, %s23_s17), 0  ;;  %s5139_s18 = smov (!%p24_p0, %s26_s18), %s4014_s15 }
   0x7   : > { %p123_p3 = pnand %p2518_p1, %p122_p2  ;;  %p28_p4 = scmp.ge.s32.totalorder %s5139_s18, 2 }
   0x8   : > { %s2519_s19 = sshll.u32 (!%p123_p3), %s4002_s12, 3  ;;  %p153_p5 = scmp.lt.s32.totalorder (!%p123_p3), %s4006_s13, 1 }
   0x9   : > { %s5141_s18 = smov (%p28_p4, %s5139_s18), 0  ;;  %126 = sbr.rel (%p123_p3) target bundleno = 530 (0x212), region = 24 }
   0xa   : > { %p155_p6 = scmp.lt.s32.totalorder (!%p123_p3), %s2519_s19, 15  ;;  %p165_p7 = scmp.lt.s32.totalorder (!%p123_p3), %s4002_s12, 1 }
   0xb   : > { %p2525_p8 = scmp.ne.s32.totalorder (!%p123_p3), %s4002_s12, 0 }
  0x10   : > { %s154_s20 = scalar_select %p153_p5, %s4006_s13, 1 }
  0x11   : > { %s5143_s19 = smov (!%p155_p6, %s2519_s19), 15  ;;  %s175_s8 = smul.u32 (!%p2525_p8), 576, %s4006_s13 }
  0x12   : > { %s2521_s21 = sshll.u32 %s154_s20, 5  ;;  %s2520_s22 = sshll.u32 %s5143_s19, 1 }
  0x13   : > { %s159_s23 = sadd.s32 %s2521_s21, %s2520_s22  ;;  %s2523_s28 = sshll.u32 %s154_s20, 1 }
  0x14   : > { %s2522_s24 = sshll.u32 %s159_s23, 3  ;;  %174 = sbr.rel (%p2525_p8) target bundleno = 49 (0x31), region = 28 }
  0x15   : > { %s4081_s27 = scalar_lea.vmem %s5130_s2, %s2522_s24  ;;  %s4094_s11 = scalar_lea.vmem (!%p2525_p8), %s5128_s0, %s175_s8 }
  0x16   : > { %s166_s29 = scalar_select %p165_p7, %s4002_s12, 1 }
  0x17   : > { %v209_v0 = vld [vmem:[%s4094_s11] sm:$0xff] (!%p2525_p8)  ;;  %v211_v1 = vld [vmem:[%s4094_s11 + $0x8] sm:$0xff] (!%p2525_p8)  ;;  %v213_v2 = vld [vmem:[%s4094_s11 + $0x10] sm:$0xff] (!%p2525_p8) }
  0x18   : > { %s168_s30 = sadd.s32 %s2523_s28, %s166_s29  ;;  %210 = vst [vmem:[#allocation2] sm:$0xff] (!%p2525_p8), %v209_v0  ;;  %212 = vst [vmem:[#allocation2 + $0x8] sm:$0xff] (!%p2525_p8), %v211_v1  ;;  %v215_v3 = vld [vmem:[%s4094_s11 + $0x18] sm:$0xff] (!%p2525_p8)  ;;  %v217_v4 = vld [vmem:[%s4094_s11 + $0x20] sm:$0xff] (!%p2525_p8) }
  0x19   : > { %s2524_s4 = sshll.u32 %s168_s30, 1  ;;  %214 = vst [vmem:[#allocation2 + $0x10] sm:$0xff] (!%p2525_p8), %v213_v2  ;;  %v219_v5 = vld [vmem:[%s4094_s11 + $0x28] sm:$0xff] (!%p2525_p8)  ;;  %216 = vst [vmem:[#allocation2 + $0x18] sm:$0xff] (!%p2525_p8), %v215_v3  ;;  %v221_v6 = vld [vmem:[%s4094_s11 + $0x30] sm:$0xff] (!%p2525_p8) }
  0x1a   : > { %s4087_s7 = scalar_lea.vmem %s5131_s3, %s2524_s4  ;;  %218 = vst [vmem:[#allocation2 + $0x20] sm:$0xff] (!%p2525_p8), %v217_v4  ;;  %220 = vst [vmem:[#allocation2 + $0x28] sm:$0xff] (!%p2525_p8), %v219_v5  ;;  %v223_v7 = vld [vmem:[%s4094_s11 + $0x38] sm:$0xff] (!%p2525_p8)  ;;  %v225_v8 = vld [vmem:[%s4094_s11 + $0x40] sm:$0xff] (!%p2525_p8) }
  0x1b   : > { %222 = vst [vmem:[#allocation2 + $0x30] sm:$0xff] %v221_v6  ;;  %224 = vst [vmem:[#allocation2 + $0x38] sm:$0xff] %v223_v7  ;;  %v227_v9 = vld [vmem:[%s4094_s11 + $0x48] sm:$0xff]  ;;  %v229_v10 = vld [vmem:[%s4094_s11 + $0x50] sm:$0xff] }
  0x1c   : > { %226 = vst [vmem:[#allocation2 + $0x40] sm:$0xff] %v225_v8  ;;  %v231_v11 = vld [vmem:[%s4094_s11 + $0x58] sm:$0xff]  ;;  %228 = vst [vmem:[#allocation2 + $0x48] sm:$0xff] %v227_v9  ;;  %v233_v12 = vld [vmem:[%s4094_s11 + $0x60] sm:$0xff] }
  0x1d   : > { %230 = vst [vmem:[#allocation2 + $0x50] sm:$0xff] %v229_v10  ;;  %232 = vst [vmem:[#allocation2 + $0x58] sm:$0xff] %v231_v11  ;;  %v235_v13 = vld [vmem:[%s4094_s11 + $0x68] sm:$0xff]  ;;  %v237_v14 = vld [vmem:[%s4094_s11 + $0x70] sm:$0xff] }
  0x1e   : > { %234 = vst [vmem:[#allocation2 + $0x60] sm:$0xff] %v233_v12  ;;  %236 = vst [vmem:[#allocation2 + $0x68] sm:$0xff] %v235_v13  ;;  %v239_v15 = vld [vmem:[%s4094_s11 + $0x78] sm:$0xff]  ;;  %v241_v16 = vld [vmem:[%s4094_s11 + $0x80] sm:$0xff] }
  0x1f   : > { %238 = vst [vmem:[#allocation2 + $0x70] sm:$0xff] %v237_v14  ;;  %v243_v17 = vld [vmem:[%s4094_s11 + $0x88] sm:$0xff]  ;;  %240 = vst [vmem:[#allocation2 + $0x78] sm:$0xff] %v239_v15  ;;  %v245_v18 = vld [vmem:[%s4094_s11 + $0x90] sm:$0xff] }
  0x20   : > { %242 = vst [vmem:[#allocation2 + $0x80] sm:$0xff] %v241_v16  ;;  %244 = vst [vmem:[#allocation2 + $0x88] sm:$0xff] %v243_v17  ;;  %v247_v19 = vld [vmem:[%s4094_s11 + $0x98] sm:$0xff]  ;;  %v249_v20 = vld [vmem:[%s4094_s11 + $0xa0] sm:$0xff] }
  0x21   : > { %246 = vst [vmem:[#allocation2 + $0x90] sm:$0xff] %v245_v18  ;;  %248 = vst [vmem:[#allocation2 + $0x98] sm:$0xff] %v247_v19  ;;  %v251_v21 = vld [vmem:[%s4094_s11 + $0xa8] sm:$0xff]  ;;  %v253_v22 = vld [vmem:[%s4094_s11 + $0xb0] sm:$0xff] }
  0x22   : > { %250 = vst [vmem:[#allocation2 + $0xa0] sm:$0xff] %v249_v20  ;;  %v255_v23 = vld [vmem:[%s4094_s11 + $0xb8] sm:$0xff]  ;;  %252 = vst [vmem:[#allocation2 + $0xa8] sm:$0xff] %v251_v21  ;;  %v257_v24 = vld [vmem:[%s4094_s11 + $0xc0] sm:$0xff] }
  0x23   : > { %254 = vst [vmem:[#allocation2 + $0xb0] sm:$0xff] %v253_v22  ;;  %256 = vst [vmem:[#allocation2 + $0xb8] sm:$0xff] %v255_v23  ;;  %v259_v25 = vld [vmem:[%s4094_s11 + $0xc8] sm:$0xff]  ;;  %v261_v26 = vld [vmem:[%s4094_s11 + $0xd0] sm:$0xff] }
  0x24   : > { %258 = vst [vmem:[#allocation2 + $0xc0] sm:$0xff] %v257_v24  ;;  %260 = vst [vmem:[#allocation2 + $0xc8] sm:$0xff] %v259_v25  ;;  %v263_v27 = vld [vmem:[%s4094_s11 + $0xd8] sm:$0xff]  ;;  %v265_v28 = vld [vmem:[%s4094_s11 + $0xe0] sm:$0xff] }
  0x25   : > { %262 = vst [vmem:[#allocation2 + $0xd0] sm:$0xff] %v261_v26  ;;  %v267_v29 = vld [vmem:[%s4094_s11 + $0xe8] sm:$0xff]  ;;  %264 = vst [vmem:[#allocation2 + $0xd8] sm:$0xff] %v263_v27  ;;  %v269_v30 = vld [vmem:[%s4094_s11 + $0xf0] sm:$0xff] }
  0x26   : > { %266 = vst [vmem:[#allocation2 + $0xe0] sm:$0xff] %v265_v28  ;;  %268 = vst [vmem:[#allocation2 + $0xe8] sm:$0xff] %v267_v29  ;;  %v271_v31 = vld [vmem:[%s4094_s11 + $0xf8] sm:$0xff]  ;;  %v273_v32 = vld [vmem:[%s4094_s11 + $0x100] sm:$0xff] }
  0x27   : > { %270 = vst [vmem:[#allocation2 + $0xf0] sm:$0xff] %v269_v30  ;;  %272 = vst [vmem:[#allocation2 + $0xf8] sm:$0xff] %v271_v31  ;;  %v275_v33 = vld [vmem:[%s4094_s11 + $0x108] sm:$0xff]  ;;  %v277_v34 = vld [vmem:[%s4094_s11 + $0x110] sm:$0xff] }
  0x28   : > { %274 = vst [vmem:[#allocation2 + $0x100] sm:$0xff] %v273_v32  ;;  %v279_v35 = vld [vmem:[%s4094_s11 + $0x118] sm:$0xff]  ;;  %276 = vst [vmem:[#allocation2 + $0x108] sm:$0xff] %v275_v33  ;;  %v281_v36 = vld [vmem:[%s4094_s11 + $0x120] sm:$0xff] }
  0x29   : > { %278 = vst [vmem:[#allocation2 + $0x110] sm:$0xff] %v277_v34  ;;  %280 = vst [vmem:[#allocation2 + $0x118] sm:$0xff] %v279_v35  ;;  %v283_v37 = vld [vmem:[%s4094_s11 + $0x128] sm:$0xff]  ;;  %v285_v38 = vld [vmem:[%s4094_s11 + $0x130] sm:$0xff] }
  0x2a   : > { %282 = vst [vmem:[#allocation2 + $0x120] sm:$0xff] %v281_v36  ;;  %284 = vst [vmem:[#allocation2 + $0x128] sm:$0xff] %v283_v37  ;;  %v287_v39 = vld [vmem:[%s4094_s11 + $0x138] sm:$0xff]  ;;  %v289_v40 = vld [vmem:[%s4094_s11 + $0x140] sm:$0xff] }
  0x2b   : > { %286 = vst [vmem:[#allocation2 + $0x130] sm:$0xff] %v285_v38  ;;  %v291_v41 = vld [vmem:[%s4094_s11 + $0x148] sm:$0xff]  ;;  %288 = vst [vmem:[#allocation2 + $0x138] sm:$0xff] %v287_v39  ;;  %v293_v42 = vld [vmem:[%s4094_s11 + $0x150] sm:$0xff] }
  0x2c   : > { %290 = vst [vmem:[#allocation2 + $0x140] sm:$0xff] %v289_v40  ;;  %292 = vst [vmem:[#allocation2 + $0x148] sm:$0xff] %v291_v41  ;;  %v295_v43 = vld [vmem:[%s4094_s11 + $0x158] sm:$0xff]  ;;  %v297_v44 = vld [vmem:[%s4094_s11 + $0x160] sm:$0xff] }
  0x2d   : > { %294 = vst [vmem:[#allocation2 + $0x150] sm:$0xff] %v293_v42  ;;  %296 = vst [vmem:[#allocation2 + $0x158] sm:$0xff] %v295_v43  ;;  %v299_v45 = vld [vmem:[%s4094_s11 + $0x168] sm:$0xff]  ;;  %v301_v46 = vld [vmem:[%s4094_s11 + $0x170] sm:$0xff] }
  0x2e   : > { %298 = vst [vmem:[#allocation2 + $0x160] sm:$0xff] %v297_v44  ;;  %v303_v47 = vld [vmem:[%s4094_s11 + $0x178] sm:$0xff]  ;;  %300 = vst [vmem:[#allocation2 + $0x168] sm:$0xff] %v299_v45 }
  0x2f   : > { %302 = vst [vmem:[#allocation2 + $0x170] sm:$0xff] %v301_v46  ;;  %304 = vst [vmem:[#allocation2 + $0x178] sm:$0xff] %v303_v47 }
  0x30   : > { %312 = vsyncadd [#allocation3], 6144 }
  0x31 PF: > { %s313_s19 = sadd.s32 1, %s4002_s12 }
  0x32   : > { %p2526_p9 = scmp.ge.s32.totalorder %s313_s19, 2 }
  0x33   : > { %p319_p10 = scmp.lt.s32.totalorder (!%p2526_p9), %s313_s19, 0  ;;  %s320_s20 = ssub.s32 (!%p2526_p9), 0, %s313_s19 }
  0x34   : > { %317 = sbr.rel (%p2526_p9) target bundleno = 91 (0x5b), region = 66  ;;  %s2527_s21 = smin.u32 (!%p2526_p9), %s320_s20, %s313_s19 }
  0x35   : > { %s2435_s22 = smul.u32 (!%p2526_p9), 192, %s4002_s12  ;;  %s322_s23 = sand.u32 (!%p2526_p9), 1, %s2527_s21  }
  0x36   : > { %s2436_s24 = smul.u32 (!%p2526_p9), 576, %s4006_s13  ;;  %s323_s25 = ssub.s32 (!%p2526_p9), 0, %s322_s23 }
  0x38   : > { %s2437_s26 = sadd.s32 (!%p2526_p9), %s2436_s24, %s2435_s22 }
  0x39   : > { %s4150_s4 = scalar_lea.vmem (!%p2526_p9), %s5128_s0, %s2437_s26 }
  0x3a   : > { %v2530_v48 = vld [vmem:[%s4150_s4 + $0xc0] sm:$0xff] (!%p2526_p9)  ;;  %v2531_v49 = vld [vmem:[%s4150_s4 + $0xc8] sm:$0xff] (!%p2526_p9)  ;;  %v2532_v50 = vld [vmem:[%s4150_s4 + $0xd0] sm:$0xff] (!%p2526_p9) }
  0x3b   : > { %s5145_s25 = smov (!%p319_p10, %s323_s25), %s322_s23  ;;  %v2533_v51 = vld [vmem:[%s4150_s4 + $0xd8] sm:$0xff]  ;;  %v2534_v52 = vld [vmem:[%s4150_s4 + $0xe0] sm:$0xff]  ;;  %v2535_v53 = vld [vmem:[%s4150_s4 + $0xe8] sm:$0xff] }
  0x3c   : > { %p2529_p11 = scmp.lt.s32.totalorder %s5145_s25, 0  ;;  %s329_s28 = sadd.s32 2, %s5145_s25  ;;  %v2536_v54 = vld [vmem:[%s4150_s4 + $0xf0] sm:$0xff]  ;;  %v2537_v55 = vld [vmem:[%s4150_s4 + $0xf8] sm:$0xff]  ;;  %v2538_v56 = vld [vmem:[%s4150_s4 + $0x100] sm:$0xff] }
  0x3d   : > { %v2539_v57 = vld [vmem:[%s4150_s4 + $0x108] sm:$0xff]  ;;  %v2540_v58 = vld [vmem:[%s4150_s4 + $0x110] sm:$0xff]  ;;  %v2541_v59 = vld [vmem:[%s4150_s4 + $0x118] sm:$0xff] }
  0x3e   : > { %s5147_s28 = smov (!%p2529_p11, %s329_s28), %s5145_s25  ;;  %v2542_v60 = vld [vmem:[%s4150_s4 + $0x120] sm:$0xff]  ;;  %v2543_v61 = vld [vmem:[%s4150_s4 + $0x128] sm:$0xff]  ;;  %v2544_v62 = vld [vmem:[%s4150_s4 + $0x130] sm:$0xff] }
  0x3f   : > { %s335_s13 = smul.u32 384, %s5147_s28  ;;  %v2545_v63 = vld [vmem:[%s4150_s4 + $0x138] sm:$0xff]  ;;  %v2546_v0 = vld [vmem:[%s4150_s4 + $0x140] sm:$0xff]  ;;  %v2547_v1 = vld [vmem:[%s4150_s4 + $0x148] sm:$0xff]  ;;  %s337_s6 = scalar_lea.sflag [#allocation3], %s5147_s28 }
  0x40   : > { %v2548_v2 = vld [vmem:[%s4150_s4 + $0x150] sm:$0xff]  ;;  %v2549_v3 = vld [vmem:[%s4150_s4 + $0x158] sm:$0xff]  ;;  %v2550_v4 = vld [vmem:[%s4150_s4 + $0x160] sm:$0xff] }
  0x41   : > { %s4170_s5 = scalar_lea.vmem [#allocation2], %s335_s13  ;;  %v2551_v5 = vld [vmem:[%s4150_s4 + $0x168] sm:$0xff]  ;;  %v2552_v6 = vld [vmem:[%s4150_s4 + $0x170] sm:$0xff]  ;;  %v2553_v7 = vld [vmem:[%s4150_s4 + $0x178] sm:$0xff] }
  0x42   : > { %371 = vst [vmem:[%s4170_s5] sm:$0xff] %v2530_v48  ;;  %373 = vst [vmem:[%s4170_s5 + $0x8] sm:$0xff] %v2531_v49  ;;  %v2554_v8 = vld [vmem:[%s4150_s4 + $0x180] sm:$0xff]  ;;  %v2555_v9 = vld [vmem:[%s4150_s4 + $0x188] sm:$0xff] }
  0x43   : > { %375 = vst [vmem:[%s4170_s5 + $0x10] sm:$0xff] %v2532_v50  ;;  %377 = vst [vmem:[%s4170_s5 + $0x18] sm:$0xff] %v2533_v51  ;;  %v2556_v10 = vld [vmem:[%s4150_s4 + $0x190] sm:$0xff]  ;;  %v2557_v11 = vld [vmem:[%s4150_s4 + $0x198] sm:$0xff] }
  0x44   : > { %379 = vst [vmem:[%s4170_s5 + $0x20] sm:$0xff] %v2534_v52  ;;  %381 = vst [vmem:[%s4170_s5 + $0x28] sm:$0xff] %v2535_v53  ;;  %v2558_v12 = vld [vmem:[%s4150_s4 + $0x1a0] sm:$0xff]  ;;  %v2559_v13 = vld [vmem:[%s4150_s4 + $0x1a8] sm:$0xff] }
  0x45   : > { %383 = vst [vmem:[%s4170_s5 + $0x30] sm:$0xff] %v2536_v54  ;;  %385 = vst [vmem:[%s4170_s5 + $0x38] sm:$0xff] %v2537_v55  ;;  %v2560_v14 = vld [vmem:[%s4150_s4 + $0x1b0] sm:$0xff]  ;;  %v2561_v15 = vld [vmem:[%s4150_s4 + $0x1b8] sm:$0xff] }
  0x46   : > { %387 = vst [vmem:[%s4170_s5 + $0x40] sm:$0xff] %v2538_v56  ;;  %389 = vst [vmem:[%s4170_s5 + $0x48] sm:$0xff] %v2539_v57  ;;  %v2562_v16 = vld [vmem:[%s4150_s4 + $0x1c0] sm:$0xff]  ;;  %v2563_v17 = vld [vmem:[%s4150_s4 + $0x1c8] sm:$0xff] }
  0x47   : > { %391 = vst [vmem:[%s4170_s5 + $0x50] sm:$0xff] %v2540_v58  ;;  %393 = vst [vmem:[%s4170_s5 + $0x58] sm:$0xff] %v2541_v59  ;;  %v2564_v18 = vld [vmem:[%s4150_s4 + $0x1d0] sm:$0xff]  ;;  %v2565_v19 = vld [vmem:[%s4150_s4 + $0x1d8] sm:$0xff] }
  0x48   : > { %395 = vst [vmem:[%s4170_s5 + $0x60] sm:$0xff] %v2542_v60  ;;  %397 = vst [vmem:[%s4170_s5 + $0x68] sm:$0xff] %v2543_v61  ;;  %v2566_v20 = vld [vmem:[%s4150_s4 + $0x1e0] sm:$0xff]  ;;  %v2567_v21 = vld [vmem:[%s4150_s4 + $0x1e8] sm:$0xff] }
  0x49   : > { %399 = vst [vmem:[%s4170_s5 + $0x70] sm:$0xff] %v2544_v62  ;;  %401 = vst [vmem:[%s4170_s5 + $0x78] sm:$0xff] %v2545_v63  ;;  %v2568_v22 = vld [vmem:[%s4150_s4 + $0x1f0] sm:$0xff]  ;;  %v2569_v23 = vld [vmem:[%s4150_s4 + $0x1f8] sm:$0xff] }
  0x4a   : > { %403 = vst [vmem:[%s4170_s5 + $0x80] sm:$0xff] %v2546_v0  ;;  %405 = vst [vmem:[%s4170_s5 + $0x88] sm:$0xff] %v2547_v1  ;;  %v2570_v24 = vld [vmem:[%s4150_s4 + $0x200] sm:$0xff]  ;;  %v2571_v25 = vld [vmem:[%s4150_s4 + $0x208] sm:$0xff] }
  0x4b   : > { %407 = vst [vmem:[%s4170_s5 + $0x90] sm:$0xff] %v2548_v2  ;;  %409 = vst [vmem:[%s4170_s5 + $0x98] sm:$0xff] %v2549_v3  ;;  %v2572_v26 = vld [vmem:[%s4150_s4 + $0x210] sm:$0xff]  ;;  %v2573_v27 = vld [vmem:[%s4150_s4 + $0x218] sm:$0xff] }
  0x4c   : > { %411 = vst [vmem:[%s4170_s5 + $0xa0] sm:$0xff] %v2550_v4  ;;  %413 = vst [vmem:[%s4170_s5 + $0xa8] sm:$0xff] %v2551_v5  ;;  %v2574_v28 = vld [vmem:[%s4150_s4 + $0x220] sm:$0xff]  ;;  %v2575_v29 = vld [vmem:[%s4150_s4 + $0x228] sm:$0xff] }
  0x4d   : > { %415 = vst [vmem:[%s4170_s5 + $0xb0] sm:$0xff] %v2552_v6  ;;  %417 = vst [vmem:[%s4170_s5 + $0xb8] sm:$0xff] %v2553_v7  ;;  %v2576_v30 = vld [vmem:[%s4150_s4 + $0x230] sm:$0xff]  ;;  %v2577_v31 = vld [vmem:[%s4150_s4 + $0x238] sm:$0xff] }
  0x4e   : > { %419 = vst [vmem:[%s4170_s5 + $0xc0] sm:$0xff] %v2554_v8  ;;  %421 = vst [vmem:[%s4170_s5 + $0xc8] sm:$0xff] %v2555_v9 }
  0x4f   : > { %423 = vst [vmem:[%s4170_s5 + $0xd0] sm:$0xff] %v2556_v10  ;;  %425 = vst [vmem:[%s4170_s5 + $0xd8] sm:$0xff] %v2557_v11 }
  0x50   : > { %427 = vst [vmem:[%s4170_s5 + $0xe0] sm:$0xff] %v2558_v12  ;;  %429 = vst [vmem:[%s4170_s5 + $0xe8] sm:$0xff] %v2559_v13 }
  0x51   : > { %431 = vst [vmem:[%s4170_s5 + $0xf0] sm:$0xff] %v2560_v14  ;;  %433 = vst [vmem:[%s4170_s5 + $0xf8] sm:$0xff] %v2561_v15 }
  0x52   : > { %435 = vst [vmem:[%s4170_s5 + $0x100] sm:$0xff] %v2562_v16  ;;  %437 = vst [vmem:[%s4170_s5 + $0x108] sm:$0xff] %v2563_v17 }
  0x53   : > { %439 = vst [vmem:[%s4170_s5 + $0x110] sm:$0xff] %v2564_v18  ;;  %441 = vst [vmem:[%s4170_s5 + $0x118] sm:$0xff] %v2565_v19 }
  0x54   : > { %443 = vst [vmem:[%s4170_s5 + $0x120] sm:$0xff] %v2566_v20  ;;  %445 = vst [vmem:[%s4170_s5 + $0x128] sm:$0xff] %v2567_v21 }
  0x55   : > { %447 = vst [vmem:[%s4170_s5 + $0x130] sm:$0xff] %v2568_v22  ;;  %449 = vst [vmem:[%s4170_s5 + $0x138] sm:$0xff] %v2569_v23 }
  0x56   : > { %451 = vst [vmem:[%s4170_s5 + $0x140] sm:$0xff] %v2570_v24  ;;  %453 = vst [vmem:[%s4170_s5 + $0x148] sm:$0xff] %v2571_v25 }
  0x57   : > { %455 = vst [vmem:[%s4170_s5 + $0x150] sm:$0xff] %v2572_v26  ;;  %457 = vst [vmem:[%s4170_s5 + $0x158] sm:$0xff] %v2573_v27 }
  0x58   : > { %459 = vst [vmem:[%s4170_s5 + $0x160] sm:$0xff] %v2574_v28  ;;  %461 = vst [vmem:[%s4170_s5 + $0x168] sm:$0xff] %v2575_v29 }
  0x59   : > { %463 = vst [vmem:[%s4170_s5 + $0x170] sm:$0xff] %v2576_v30  ;;  %465 = vst [vmem:[%s4170_s5 + $0x178] sm:$0xff] %v2577_v31 }
  0x5a   : > { %473 = vsyncadd %s337_s6, 6144 }
  0x5b PF: > { %p474_p12 = scmp.lt.s32.totalorder %s4002_s12, 0  ;;  %s475_s8 = ssub.s32 0, %s4002_s12 }
  0x5c   : > { %s2579_s9 = smin.u32 %s4002_s12, %s475_s8 }
  0x5d   : > { %s477_s10 = sand.u32 1, %s2579_s9  }
  0x5e   : > { %s478_s11 = ssub.s32 0, %s477_s10 }
  0x5f   : > { %s5149_s11 = smov (!%p474_p12, %s478_s11), %s477_s10 }
  0x60   : > { %p2581_p13 = scmp.lt.s32.totalorder %s5149_s11, 0  ;;  %s484_s19 = sadd.s32 2, %s5149_s11 }
  0x62   : > { %s5151_s19 = smov (!%p2581_p13, %s484_s19), %s5149_s11 }
  0x63   : > { %s486_s20 = smul.u32 384, %s5151_s19  ;;  %s488_s22 = scalar_lea.sflag [#allocation3], %s5151_s19 }
  0x65   : > { %s4257_s21 = scalar_lea.vmem [#allocation2], %s486_s20 }
  0x66   : > { %3998 = dma.done.wait %s488_s22, 6144 }
  0x67   : > { %3999 = vsyncadd %s488_s22, 4294961152  ;;  %v2582_v32 = vld [vmem:[%s5129_s1 + $0x80] sm:$0xff]  ;;  %v2583_v33 = vld [vmem:[%s5129_s1 + $0x88] sm:$0xff]  ;;  %vm581_vm0 = vcmask 1043456   ;;  %vm2345_vm1 = vcmask 1040384  }
  0x68   : > { %v2630_v34 = vld [vmem:[%s5129_s1 + $0x200] sm:$0xff]  ;;  %v3506_v35 = vpack.c.bf16 %v2583_v33, %v2582_v32  ;;  %v2631_v36 = vld [vmem:[%s5129_s1 + $0x208] sm:$0xff]  ;;  %v2584_v37 = vld [vmem:[%s5129_s1 + $0x90] sm:$0xff] }
  0x69   : > { %v2585_v38 = vld [vmem:[%s5129_s1 + $0x98] sm:$0xff]  ;;  %v3634_v39 = vpack.c.bf16 %v2631_v36, %v2630_v34  ;;  %v2632_v41 = vld [vmem:[%s5129_s1 + $0x210] sm:$0xff]  ;;  %v2586_v43 = vld [vmem:[%s5129_s1 + $0xa0] sm:$0xff] }
  0x6a   : > { %v3510_v40 = vpack.c.bf16 %v2585_v38, %v2584_v37  ;;  %v2633_v42 = vld [vmem:[%s5129_s1 + $0x218] sm:$0xff]  ;;  %3507 = vmatprep.subr.bf16.mxu1 %v3506_v35  ;;  %v2587_v45 = vld [vmem:[%s5129_s1 + $0xa8] sm:$0xff]  ;;  %v2634_v46 = vld [vmem:[%s5129_s1 + $0x220] sm:$0xff] }
  0x6b   : > { %v3638_v44 = vpack.c.bf16 %v2633_v42, %v2632_v41  ;;  %v2635_v47 = vld [vmem:[%s5129_s1 + $0x228] sm:$0xff]  ;;  %3635 = vmatprep.subr.bf16.mxu0 %v3634_v39  ;;  %3509 = vmatpush3.bf16.msra.mxu1 %v3506_v35  ;;  %v3514_v48 = vpack.c.bf16 %v2587_v45, %v2586_v43  ;;  %v2588_v50 = vld [vmem:[%s5129_s1 + $0xb0] sm:$0xff]  ;;  %v2589_v51 = vld [vmem:[%s5129_s1 + $0xb8] sm:$0xff] }
  0x6c   : > { %3637 = vmatpush3.bf16.msra.mxu0 %v3634_v39  ;;  %3511 = vmatprep.subr.bf16.mxu1 %v3510_v40  ;;  %v3642_v49 = vpack.c.bf16 %v2635_v47, %v2634_v46  ;;  %v2636_v52 = vld [vmem:[%s5129_s1 + $0x230] sm:$0xff]  ;;  %v2637_v53 = vld [vmem:[%s5129_s1 + $0x238] sm:$0xff]  ;;  %v3518_v54 = vpack.c.bf16 %v2589_v51, %v2588_v50  ;;  %v2590_v55 = vld [vmem:[%s5129_s1 + $0xc0] sm:$0xff] }
  0x6d   : > { %3639 = vmatprep.subr.bf16.mxu0 %v3638_v44  ;;  %v2591_v56 = vld [vmem:[%s5129_s1 + $0xc8] sm:$0xff]  ;;  %v3646_v57 = vpack.c.bf16 %v2637_v53, %v2636_v52  ;;  %v2638_v58 = vld [vmem:[%s5129_s1 + $0x240] sm:$0xff]  ;;  %v2592_v6 = vld [vmem:[%s5129_s1 + $0xd0] sm:$0xff] }
  0x6e   : > { %v2639_v59 = vld [vmem:[%s5129_s1 + $0x248] sm:$0xff]  ;;  %v4320_v60 = vld [vmem:[%s4257_s21] sm:$0xff]  ;;  %v3522_v4 = vpack.c.bf16 %v2591_v56, %v2590_v55  ;;  %v2593_v7 = vld [vmem:[%s5129_s1 + $0xd8] sm:$0xff] }
  0x6f   : > { %3513 = vmatpush3.bf16.msra.mxu1 %v3510_v40  ;;  %v4323_v61 = vld [vmem:[%s4257_s21 + $0x8] sm:$0xff]  ;;  %v582_v62 = vrot.slane %v4320_v60, 4  ;;  %v4327_v63 = vld [vmem:[%s4257_s21 + $0x60] sm:$0xff]  ;;  %v3650_v5 = vpack.c.bf16 %v2639_v59, %v2638_v58  ;;  %v2640_v10 = vld [vmem:[%s5129_s1 + $0x250] sm:$0xff]  ;;  %v3526_v12 = vpack.c.bf16 %v2593_v7, %v2592_v6 }
  0x70   : > { %3641 = vmatpush3.bf16.msra.mxu0 %v3638_v44  ;;  %3515 = vmatprep.subr.bf16.mxu1 %v3514_v48  ;;  %v4330_v0 = vld [vmem:[%s4257_s21 + $0x68] sm:$0xff]  ;;  %v583_v1 = vrot.slane %v4323_v61, 4  ;;  %v602_v2 = vrot.slane %v4327_v63, 4  ;;  %v2641_v11 = vld [vmem:[%s5129_s1 + $0x258] sm:$0xff]  ;;  %v2594_v14 = vld [vmem:[%s5129_s1 + $0xe0] sm:$0xff] }
  0x71   : > { %3643 = vmatprep.subr.bf16.mxu0 %v3642_v49  ;;  %v603_v3 = vrot.slane %v4330_v0, 4  ;;  %v3654_v13 = vpack.c.bf16 %v2641_v11, %v2640_v10  ;;  %v2595_v15 = vld [vmem:[%s5129_s1 + $0xe8] sm:$0xff]  ;;  %v2642_v16 = vld [vmem:[%s5129_s1 + $0x260] sm:$0xff]  ;;  %v2596_v20 = vld [vmem:[%s5129_s1 + $0xf0] sm:$0xff] }
  0x72   : > { %v584_v8 = vsel %vm581_vm0, %v582_v62, %v583_v1  ;;  %v2643_v17 = vld [vmem:[%s5129_s1 + $0x268] sm:$0xff]  ;;  %v3530_v18 = vpack.c.bf16 %v2595_v15, %v2594_v14  ;;  %v2597_v21 = vld [vmem:[%s5129_s1 + $0xf8] sm:$0xff]  ;;  %v2644_v22 = vld [vmem:[%s5129_s1 + $0x270] sm:$0xff] }
  0x73   : > { %3517 = vmatpush3.bf16.msra.mxu1 %v3514_v48  ;;  %v4347_v9 = vsel %vm581_vm0, %v602_v2, %v603_v3  ;;  %3034 = vmatprep.mubr.f32.mxu1 %v584_v8  ;;  %v3658_v19 = vpack.c.bf16 %v2643_v17, %v2642_v16  ;;  %v2645_v23 = vld [vmem:[%s5129_s1 + $0x278] sm:$0xff]  ;;  %v3534_v24 = vpack.c.bf16 %v2597_v21, %v2596_v20  ;;  %v4381_v25 = vld [vmem:[%s4257_s21 + $0x10] sm:$0xff]  ;;  %v541_v26 = vld [vmem:[%s5129_s1] sm:$0xff] }
  0x74   : > { %3645 = vmatpush3.bf16.msra.mxu0 %v3642_v49  ;;  %3519 = vmatprep.subr.bf16.mxu1 %v3518_v54  ;;  %v3662_v27 = vpack.c.bf16 %v2645_v23, %v2644_v22  ;;  %v542_v28 = vld [vmem:[%s5129_s1 + $0x8] sm:$0xff]  ;;  %v4390_v29 = vld [vmem:[%s4257_s21 + $0x70] sm:$0xff]  ;;  %v2646_v30 = vld [vmem:[%s5129_s1 + $0x280] sm:$0xff]  ;;  %v585_v34 = vrot.slane %v4381_v25, 4 }
  0x75   : > { %3647 = vmatprep.subr.bf16.mxu0 %v3646_v57  ;;  %3258 = vmatprep.mubr.f32.mxu0 %v4347_v9  ;;  %v2647_v31 = vld [vmem:[%s5129_s1 + $0x288] sm:$0xff]  ;;  %v4399_v32 = vld [vmem:[%s4257_s21 + $0x18] sm:$0xff]  ;;  %v4402_v33 = vld [vmem:[%s4257_s21 + $0x20] sm:$0xff]  ;;  %v3538_v37 = vpack.c.bf16 %v542_v28, %v541_v26  ;;  %v605_v38 = vrot.slane %v4390_v29, 4 }
  0x76   : > { %v4406_v35 = vld [vmem:[%s4257_s21 + $0x78] sm:$0xff]  ;;  %v4409_v36 = vld [vmem:[%s4257_s21 + $0x80] sm:$0xff]  ;;  %v4413_v39 = vld [vmem:[%s4257_s21 + $0x28] sm:$0xff]  ;;  %v3666_v40 = vpack.c.bf16 %v2647_v31, %v2646_v30  ;;  %v587_v41 = vrot.slane %v4399_v32, 4  ;;  %v588_v42 = vrot.slane %v4402_v33, 4  ;;  %v586_v51 = vsel %vm581_vm0, %v583_v1, %v585_v34 }
  0x77   : > { %3521 = vmatpush3.bf16.msra.mxu1 %v3518_v54  ;;  %v543_v43 = vld [vmem:[%s5129_s1 + $0x10] sm:$0xff]  ;;  %v544_v44 = vld [vmem:[%s5129_s1 + $0x18] sm:$0xff]  ;;  %v4424_v45 = vld [vmem:[%s4257_s21 + $0x88] sm:$0xff]  ;;  %v607_v46 = vrot.slane %v4406_v35, 4  ;;  %v608_v47 = vrot.slane %v4409_v36, 4  ;;  %v590_v52 = vrot.slane %v4413_v39, 4  ;;  %v4453_v56 = vsel %vm581_vm0, %v603_v3, %v605_v38 }
  0x78   : > { %3649 = vmatpush3.bf16.msra.mxu0 %v3646_v57  ;;  %3523 = vmatprep.subr.bf16.mxu1 %v3522_v4  ;;  %v2648_v48 = vld [vmem:[%s5129_s1 + $0x290] sm:$0xff]  ;;  %v4435_v50 = vld [vmem:[%s4257_s21 + $0x38] sm:$0xff]  ;;  %v610_v57 = vrot.slane %v4424_v45, 4  ;;  %v4457_v58 = vld [vmem:[%s4257_s21 + $0x40] sm:$0xff]  ;;  %v589_v59 = vsel %vm581_vm0, %v587_v41, %v588_v42  ;;  %v3542_v62 = vpack.c.bf16 %v544_v44, %v543_v43 }
  0x79   : > { %3651 = vmatprep.subr.bf16.mxu0 %v3650_v5  ;;  %v4432_v49 = vld [vmem:[%s4257_s21 + $0x30] sm:$0xff]  ;;  %v2649_v53 = vld [vmem:[%s5129_s1 + $0x298] sm:$0xff]  ;;  %v593_v2 = vrot.slane %v4435_v50, 4  ;;  %v546_v3 = vld [vmem:[%s5129_s1 + $0x28] sm:$0xff]  ;;  %v4472_v6 = vsel %vm581_vm0, %v607_v46, %v608_v47  ;;  %v591_v14 = vsel %vm581_vm0, %v588_v42, %v590_v52  ;;  %v595_v15 = vrot.slane %v4457_v58, 4 }
  0x7a   : > { %v4445_v54 = vld [vmem:[%s4257_s21 + $0x90] sm:$0xff]  ;;  %v4448_v55 = vld [vmem:[%s4257_s21 + $0x98] sm:$0xff]  ;;  %v592_v1 = vrot.slane %v4432_v49, 4  ;;  %v3670_v7 = vpack.c.bf16 %v2649_v53, %v2648_v48  ;;  %v2650_v11 = vld [vmem:[%s5129_s1 + $0x2a0] sm:$0xff] }
  0x7b   : > { %3525 = vmatpush3.bf16.msra.mxu1 %v3522_v4  ;;  %v545_v4 = vld [vmem:[%s5129_s1 + $0x20] sm:$0xff]  ;;  %v612_v8 = vrot.slane %v4445_v54, 4  ;;  %v613_v10 = vrot.slane %v4448_v55, 4  ;;  %v2651_v16 = vld [vmem:[%s5129_s1 + $0x2a8] sm:$0xff]  ;;  %v4502_v21 = vld [vmem:[%s4257_s21 + $0x58] sm:$0xff]  ;;  %v596_v41 = vsel %vm581_vm0, %v593_v2, %v595_v15 }
  0x7c   : > { %3653 = vmatpush3.bf16.msra.mxu0 %v3650_v5  ;;  %3527 = vmatprep.subr.bf16.mxu1 %v3526_v12  ;;  %v4469_v5 = vld [vmem:[%s4257_s21 + $0xa0] sm:$0xff]  ;;  %v4492_v17 = vld [vmem:[%s4257_s21 + $0xa8] sm:$0xff]  ;;  %v594_v22 = vsel %vm581_vm0, %v592_v1, %v593_v2  ;;  %v3546_v23 = vpack.c.bf16 %v546_v3, %v545_v4  ;;  %v3674_v30 = vpack.c.bf16 %v2651_v16, %v2650_v11  ;;  %v548_v38 = vld [vmem:[%s5129_s1 + $0x38] sm:$0xff]  ;;  %v600_v42 = vrot.slane %v4502_v21, 4 }
  0x7d   : > { %3655 = vmatprep.subr.bf16.mxu0 %v3654_v13  ;;  %v615_v20 = vrot.slane %v4469_v5, 4  ;;  %v4512_v28 = vsel %vm581_vm0, %v612_v8, %v613_v10  ;;  %v617_v31 = vrot.slane %v4492_v17, 4  ;;  %v2653_v43 = vld [vmem:[%s5129_s1 + $0x2b8] sm:$0xff]  ;;  %v4532_v44 = vld [vmem:[%s4257_s21 + $0xc0] sm:$0xff]  ;;  %v4535_v46 = vld [vmem:[%s4257_s21 + $0xc8] sm:$0xff] }
  0x7e   : > { %v4544_v53 = vld [vmem:[%s4257_s21 + $0xd0] sm:$0xff]  ;;  %v1314_v1 = vrot.slane %v4535_v46, 4  ;;  %v549_v2 = vld [vmem:[%s5129_s1 + $0x40] sm:$0xff]  ;;  %v550_v4 = vld [vmem:[%s5129_s1 + $0x48] sm:$0xff] }
  0x7f   : > { %3529 = vmatpush3.bf16.msra.mxu1 %v3526_v12  ;;  %v4480_v12 = vld [vmem:[%s4257_s21 + $0x48] sm:$0xff]  ;;  %v2654_v3 = vld [vmem:[%s5129_s1 + $0x2c0] sm:$0xff]  ;;  %v1316_v15 = vrot.slane %v4544_v53, 4  ;;  %v3554_v16 = vpack.c.bf16 %v550_v4, %v549_v2 }
  0x80   : > { %3657 = vmatpush3.bf16.msra.mxu0 %v3654_v13  ;;  %3531 = vmatprep.subr.bf16.mxu1 %v3530_v18  ;;  %v4483_v13 = vld [vmem:[%s4257_s21 + $0x50] sm:$0xff]  ;;  %v2655_v8 = vld [vmem:[%s5129_s1 + $0x2c8] sm:$0xff]  ;;  %v4569_v11 = vld [vmem:[%s4257_s21 + $0xe0] sm:$0xff] }
  0x81   : > { %3659 = vmatprep.subr.bf16.mxu0 %v3658_v19  ;;  %v598_v26 = vrot.slane %v4483_v13, 4  ;;  %v2659_v2 = vld [vmem:[%s5129_s1 + $0x2e8] sm:$0xff] }
  0x82   : > { %v4632_v4 = vld [vmem:[%s4257_s21 + $0x108] sm:$0xff] }
  0x83   : > { %3533 = vmatpush3.bf16.msra.mxu1 %v3530_v18  ;;  %v4495_v18 = vld [vmem:[%s4257_s21 + $0xb0] sm:$0xff] }
  0x84   : > { %3661 = vmatpush3.bf16.msra.mxu0 %v3658_v19  ;;  %3535 = vmatprep.subr.bf16.mxu1 %v3534_v24  ;;  %v4498_v19 = vsel %vm581_vm0, %v608_v47, %v610_v57  ;;  %v618_v34 = vrot.slane %v4495_v18, 4  ;;  %v4538_v47 = vsel %vm581_vm0, %v613_v10, %v615_v20  ;;  %v4566_v10 = vld [vmem:[%s4257_s21 + $0xd8] sm:$0xff]  ;;  %v4577_v20 = vld [vmem:[%s4257_s21 + $0xe8] sm:$0xff] }
  0x85   : > { %3663 = vmatprep.subr.bf16.mxu0 %v3662_v27 }
  0x86   : > { %v4547_v57 = vsel %vm581_vm0, %v617_v31, %v618_v34  ;;  %v552_v31 = vld [vmem:[%s5129_s1 + $0x58] sm:$0xff] }
  0x87   : > { %3537 = vmatpush3.bf16.msra.mxu1 %v3534_v24  ;;  %v597_v24 = vrot.slane %v4480_v12, 4 }
  0x88   : > { %3665 = vmatpush3.bf16.msra.mxu0 %v3662_v27  ;;  %3539 = vmatprep.subr.bf16.mxu1 %v3538_v37  ;;  %v4509_v27 = vld [vmem:[%s4257_s21 + $0xb8] sm:$0xff] }
  0x89   : > { %3667 = vmatprep.subr.bf16.mxu0 %v3666_v40  ;;  %v620_v48 = vrot.slane %v4509_v27, 4 }
  0x8a   : > { %3035 = vmatmul.mubr.f32.vlgmr.msra.gmra.mrb[0].mxu1 %v586_v51  ;;  %v599_v51 = vsel %vm581_vm0, %v597_v24, %v598_v26  ;;  %v1318_v24 = vrot.slane %v4566_v10, 4 }
  0x8b   : > { %3259 = vmatmul.mubr.f32.vlgmr.msra.gmra.mrb[0].mxu0 %v4453_v56  ;;  %3541 = vmatpush3.bf16.msra.mxu1 %v3538_v37  ;;  %v547_v37 = vld [vmem:[%s5129_s1 + $0x30] sm:$0xff] }
  0x8c   : > { %3669 = vmatpush3.bf16.msra.mxu0 %v3666_v40  ;;  %3037 = vmatprep.mubr.f32.mxu1 %v589_v59  ;;  %v2652_v40 = vld [vmem:[%s5129_s1 + $0x2b0] sm:$0xff]  ;;  %v3550_v52 = vpack.c.bf16 %v548_v38, %v547_v37  ;;  %v2657_v37 = vld [vmem:[%s5129_s1 + $0x2d8] sm:$0xff] }
  0x8d   : > { %3261 = vmatprep.mubr.f32.mxu0 %v4472_v6  ;;  %3543 = vmatprep.subr.bf16.mxu1 %v3542_v62  ;;  %v3678_v59 = vpack.c.bf16 %v2653_v43, %v2652_v40  ;;  %v4598_v38 = vld [vmem:[%s4257_s21 + $0xf0] sm:$0xff]  ;;  %v4601_v40 = vld [vmem:[%s4257_s21 + $0xf8] sm:$0xff] }
  0x8e   : > { %3038 = vmatmul.mubr.f32.gmra.mrb[2].mxu1 %v591_v14  ;;  %3671 = vmatprep.subr.bf16.mxu0 %v3670_v7  ;;  %v4572_v14 = vsel %vm581_vm0, %v618_v34, %v620_v48  ;;  %v2656_v34 = vld [vmem:[%s5129_s1 + $0x2d0] sm:$0xff]  ;;  %v4610_v48 = vld [vmem:[%s4257_s21 + $0x100] sm:$0xff] }
  0x8f   : > { %3262 = vmatmul.mubr.f32.gmra.mrb[2].mxu0 %v4498_v19  ;;  %3545 = vmatpush3.bf16.msra.mxu1 %v3542_v62  ;;  %v1313_v62 = vrot.slane %v4532_v44, 4 }
  0x90   : > { %3673 = vmatpush3.bf16.msra.mxu0 %v3670_v7  ;;  %3040 = vmatprep.mubr.f32.mxu1 %v594_v22  ;;  %v601_v7 = vsel %vm581_vm0, %v598_v26, %v600_v42  ;;  %v1319_v26 = vrot.slane %v4569_v11, 4  ;;  %v1321_v42 = vrot.slane %v4577_v20, 4 }
  0x91   : > { %3264 = vmatprep.mubr.f32.mxu0 %v4512_v28  ;;  %3547 = vmatprep.subr.bf16.mxu1 %v3546_v23  ;;  %v4580_v22 = vsel %vm581_vm0, %v1313_v62, %v1314_v1  ;;  %v553_v62 = vld [vmem:[%s5129_s1 + $0x60] sm:$0xff] }
  0x92   : > { %3041 = vmatmul.mubr.f32.gmra.mrb[4].mxu1 %v596_v41  ;;  %3675 = vmatprep.subr.bf16.mxu0 %v3674_v30  ;;  %v4605_v41 = vsel %vm581_vm0, %v1314_v1, %v1316_v15  ;;  %v554_v1 = vld [vmem:[%s5129_s1 + $0x68] sm:$0xff] }
  0x93   : > { %3265 = vmatmul.mubr.f32.gmra.mrb[4].mxu0 %v4538_v47  ;;  %3549 = vmatpush3.bf16.msra.mxu1 %v3546_v23  ;;  %v3682_v23 = vpack.c.bf16 %v2655_v8, %v2654_v3  ;;  %v4635_v3 = vld [vmem:[%s4257_s21 + $0x110] sm:$0xff]  ;;  %v1326_v8 = vrot.slane %v4610_v48, 4  ;;  %v3562_v15 = vpack.c.bf16 %v554_v1, %v553_v62 }
  0x94   : > { %3677 = vmatpush3.bf16.msra.mxu0 %v3674_v30  ;;  %3043 = vmatprep.mubr.f32.mxu1 %v599_v51  ;;  %v551_v30 = vld [vmem:[%s5129_s1 + $0x50] sm:$0xff]  ;;  %v4614_v51 = vsel %vm581_vm0, %v1318_v24, %v1319_v26 }
  0x95   : > { %3267 = vmatprep.mubr.f32.mxu0 %v4547_v57  ;;  %3551 = vmatprep.subr.bf16.mxu1 %v3550_v52  ;;  %v3558_v43 = vpack.c.bf16 %v552_v31, %v551_v30  ;;  %v555_v30 = vld [vmem:[%s5129_s1 + $0x70] sm:$0xff]  ;;  %v556_v31 = vld [vmem:[%s5129_s1 + $0x78] sm:$0xff] }
  0x96   : > { %3044 = vmatmul.mubr.f32.gmra.mrb[6].mxu1 %v601_v7  ;;  %3679 = vmatprep.subr.bf16.mxu0 %v3678_v59  ;;  %v4639_v7 = vsel %vm581_vm0, %v1319_v26, %v1321_v42  ;;  %v1329_v26 = vrot.slane %v4635_v3, 4 }
  0x97   : > { %3268 = vmatmul.mubr.f32.gmra.mrb[6].mxu0 %v4572_v14  ;;  %3553 = vmatpush3.bf16.msra.mxu1 %v3550_v52  ;;  %v1323_v52 = vrot.slane %v4598_v38, 4 }
  0x98   : > { %3681 = vmatpush3.bf16.msra.mxu0 %v3678_v59  ;;  %3046 = vmatprep.mubr.f32.mxu1 %v4347_v9  ;;  %v3686_v9 = vpack.c.bf16 %v2657_v37, %v2656_v34  ;;  %v1324_v59 = vrot.slane %v4601_v40, 4  ;;  %v2661_v34 = vld [vmem:[%s5129_s1 + $0x2f8] sm:$0xff] }
  0x99   : > { %3270 = vmatprep.mubr.f32.mxu0 %v4580_v22  ;;  %3555 = vmatprep.subr.bf16.mxu1 %v3554_v16 }
  0x9a   : > { %3047 = vmatmul.mubr.f32.gmra.mrb[8].mxu1 %v4453_v56  ;;  %3683 = vmatprep.subr.bf16.mxu0 %v3682_v23  ;;  %v2658_v56 = vld [vmem:[%s5129_s1 + $0x2e0] sm:$0xff]  ;;  %v4648_v24 = vsel %vm581_vm0, %v1323_v52, %v1324_v59  ;;  %v4667_v37 = vsel %vm581_vm0, %v1324_v59, %v1326_v8  ;;  %v2663_v59 = vld [vmem:[%s5129_s1 + $0x308] sm:$0xff]  ;;  %v2600_v8 = vld [vmem:[%s5129_s1 + $0x110] sm:$0xff] }
  0x9b   : > { %3271 = vmatmul.mubr.f32.gmra.mrb[8].mxu0 %v4605_v41  ;;  %3557 = vmatpush3.bf16.msra.mxu1 %v3554_v16  ;;  %v4644_v16 = vld [vmem:[%s4257_s21 + $0x118] sm:$0xff] }
  0x9c   : > { %3685 = vmatpush3.bf16.msra.mxu0 %v3682_v23  ;;  %3049 = vmatprep.mubr.f32.mxu1 %v4472_v6  ;;  %v3690_v23 = vpack.c.bf16 %v2659_v2, %v2658_v56  ;;  %v1328_v6 = vrot.slane %v4632_v4, 4  ;;  %v1331_v42 = vrot.slane %v4644_v16, 4 }
  0x9d   : > { %3273 = vmatprep.mubr.f32.mxu0 %v4614_v51  ;;  %3559 = vmatprep.subr.bf16.mxu1 %v3558_v43 }
  0x9e   : > { %3050 = vmatmul.mubr.f32.gmra.mrb[10].mxu1 %v4498_v19  ;;  %3687 = vmatprep.subr.bf16.mxu0 %v3686_v9  ;;  %v2660_v19 = vld [vmem:[%s5129_s1 + $0x2f0] sm:$0xff]  ;;  %v4673_v52 = vsel %vm581_vm0, %v1328_v6, %v1329_v26  ;;  %v4690_v1 = vsel %vm581_vm0, %v1329_v26, %v1331_v42  ;;  %v2602_v26 = vld [vmem:[%s5129_s1 + $0x120] sm:$0xff] }
  0x9f   : > { %3274 = vmatmul.mubr.f32.gmra.mrb[10].mxu0 %v4639_v7  ;;  %3561 = vmatpush3.bf16.msra.mxu1 %v3558_v43  ;;  %v3566_v43 = vpack.c.bf16 %v556_v31, %v555_v30  ;;  %v3694_v62 = vpack.c.bf16 %v2661_v34, %v2660_v19  ;;  %v2603_v30 = vld [vmem:[%s5129_s1 + $0x128] sm:$0xff]  ;;  %v2604_v42 = vld [vmem:[%s5129_s1 + $0x130] sm:$0xff] }
  0xa0   : > { %3689 = vmatpush3.bf16.msra.mxu0 %v3686_v9  ;;  %3052 = vmatprep.mubr.f32.mxu1 %v4512_v28  ;;  %v2598_v28 = vld [vmem:[%s5129_s1 + $0x100] sm:$0xff]  ;;  %v2599_v9 = vld [vmem:[%s5129_s1 + $0x108] sm:$0xff]  ;;  %v3578_v19 = vpack.c.bf16 %v2603_v30, %v2602_v26 }
  0xa1   : > { %3276 = vmatprep.mubr.f32.mxu0 %v4648_v24  ;;  %3563 = vmatprep.subr.bf16.mxu1 %v3562_v15  ;;  %v3570_v56 = vpack.c.bf16 %v2599_v9, %v2598_v28  ;;  %v2667_v31 = vld [vmem:[%s5129_s1 + $0x328] sm:$0xff]  ;;  %v2610_v26 = vld [vmem:[%s5129_s1 + $0x160] sm:$0xff] }
  0xa2   : > { %3053 = vmatmul.mubr.f32.gmra.mrb[12].mxu1 %v4538_v47  ;;  %3691 = vmatprep.subr.bf16.mxu0 %v3690_v23  ;;  %v2662_v47 = vld [vmem:[%s5129_s1 + $0x300] sm:$0xff]  ;;  %v2611_v30 = vld [vmem:[%s5129_s1 + $0x168] sm:$0xff] }
  0xa3   : > { %3277 = vmatmul.mubr.f32.gmra.mrb[12].mxu0 %v4667_v37  ;;  %3565 = vmatpush3.bf16.msra.mxu1 %v3562_v15  ;;  %v3698_v2 = vpack.c.bf16 %v2663_v59, %v2662_v47  ;;  %v2601_v15 = vld [vmem:[%s5129_s1 + $0x118] sm:$0xff]  ;;  %v2606_v47 = vld [vmem:[%s5129_s1 + $0x140] sm:$0xff]  ;;  %v2607_v59 = vld [vmem:[%s5129_s1 + $0x148] sm:$0xff] }
  0xa4   : > { %3693 = vmatpush3.bf16.msra.mxu0 %v3690_v23  ;;  %3055 = vmatprep.mubr.f32.mxu1 %v4547_v57  ;;  %v2664_v57 = vld [vmem:[%s5129_s1 + $0x310] sm:$0xff]  ;;  %v3574_v23 = vpack.c.bf16 %v2601_v15, %v2600_v8 }
  0xa5   : > { %3279 = vmatprep.mubr.f32.mxu0 %v4673_v52  ;;  %3567 = vmatprep.subr.bf16.mxu1 %v3566_v43  ;;  %v2608_v15 = vld [vmem:[%s5129_s1 + $0x150] sm:$0xff] }
  0xa6   : > { %3056 = vmatmul.mubr.f32.gmra.mrb[14].mxu1 %v4572_v14  ;;  %3695 = vmatprep.subr.bf16.mxu0 %v3694_v62  ;;  %v2665_v14 = vld [vmem:[%s5129_s1 + $0x318] sm:$0xff] }
  0xa7   : > { %3280 = vmatmul.mubr.f32.gmra.mrb[14].mxu0 %v4690_v1  ;;  %3569 = vmatpush3.bf16.msra.mxu1 %v3566_v43  ;;  %v3702_v6 = vpack.c.bf16 %v2665_v14, %v2664_v57  ;;  %v2605_v43 = vld [vmem:[%s5129_s1 + $0x138] sm:$0xff] }
  0xa8   : > { %3697 = vmatpush3.bf16.msra.mxu0 %v3694_v62  ;;  %3090 = vmatprep.mubr.f32.mxu1 %v4320_v60  ;;  %v2666_v60 = vld [vmem:[%s5129_s1 + $0x320] sm:$0xff]  ;;  %v2669_v62 = vld [vmem:[%s5129_s1 + $0x338] sm:$0xff]  ;;  %v3582_v28 = vpack.c.bf16 %v2605_v43, %v2604_v42  ;;  %v2612_v42 = vld [vmem:[%s5129_s1 + $0x170] sm:$0xff] }
  0xa9   : > { %3314 = vmatprep.mubr.f32.mxu0 %v4330_v0  ;;  %3571 = vmatprep.subr.bf16.mxu1 %v3570_v56  ;;  %v3706_v34 = vpack.c.bf16 %v2667_v31, %v2666_v60  ;;  %v2609_v57 = vld [vmem:[%s5129_s1 + $0x158] sm:$0xff]  ;;  %v2674_v60 = vld [vmem:[%s5129_s1 + $0x360] sm:$0xff]  ;;  %v2675_v31 = vld [vmem:[%s5129_s1 + $0x368] sm:$0xff] }
  0xaa   : > { %3091 = vmatmul.mubr.f32.vlgmr.msra.gmra.mrb[0].mxu1 %v4323_v61  ;;  %3699 = vmatprep.subr.bf16.mxu0 %v3698_v2  ;;  %v2673_v14 = vld [vmem:[%s5129_s1 + $0x358] sm:$0xff] }
  0xab   : > { %3315 = vmatmul.mubr.f32.vlgmr.msra.gmra.mrb[0].mxu0 %v4390_v29  ;;  %3573 = vmatpush3.bf16.msra.mxu1 %v3570_v56  ;;  %v2671_v56 = vld [vmem:[%s5129_s1 + $0x348] sm:$0xff]  ;;  %v2613_v43 = vld [vmem:[%s5129_s1 + $0x178] sm:$0xff] }
  0xac   : > { %3701 = vmatpush3.bf16.msra.mxu0 %v3698_v2  ;;  %3093 = vmatprep.mubr.f32.mxu1 %v4399_v32  ;;  %v2668_v32 = vld [vmem:[%s5129_s1 + $0x330] sm:$0xff]  ;;  %v3586_v2 = vpack.c.bf16 %v2607_v59, %v2606_v47  ;;  %v2614_v47 = vld [vmem:[%s5129_s1 + $0x180] sm:$0xff]  ;;  %v2615_v59 = vld [vmem:[%s5129_s1 + $0x188] sm:$0xff] }
  0xad   : > { %3317 = vmatprep.mubr.f32.mxu0 %v4409_v36  ;;  %3575 = vmatprep.subr.bf16.mxu1 %v3574_v23  ;;  %v3710_v9 = vpack.c.bf16 %v2669_v62, %v2668_v32  ;;  %v2676_v32 = vld [vmem:[%s5129_s1 + $0x370] sm:$0xff]  ;;  %v2677_v62 = vld [vmem:[%s5129_s1 + $0x378] sm:$0xff] }
  0xae   : > { %3094 = vmatmul.mubr.f32.gmra.mrb[2].mxu1 %v4402_v33  ;;  %3703 = vmatprep.subr.bf16.mxu0 %v3702_v6 }
  0xaf   : > { %3318 = vmatmul.mubr.f32.gmra.mrb[2].mxu0 %v4424_v45  ;;  %3577 = vmatpush3.bf16.msra.mxu1 %v3574_v23  ;;  %v3590_v23 = vpack.c.bf16 %v2609_v57, %v2608_v15  ;;  %v2616_v15 = vld [vmem:[%s5129_s1 + $0x190] sm:$0xff]  ;;  %v2617_v57 = vld [vmem:[%s5129_s1 + $0x198] sm:$0xff] }
  0xb0   : > { %3705 = vmatpush3.bf16.msra.mxu0 %v3702_v6  ;;  %3096 = vmatprep.mubr.f32.mxu1 %v4432_v49  ;;  %v2670_v49 = vld [vmem:[%s5129_s1 + $0x340] sm:$0xff] }
  0xb1   : > { %3320 = vmatprep.mubr.f32.mxu0 %v4448_v55  ;;  %3579 = vmatprep.subr.bf16.mxu1 %v3578_v19  ;;  %v3714_v8 = vpack.c.bf16 %v2671_v56, %v2670_v49  ;;  %v2678_v49 = vld [vmem:[%s5129_s1 + $0x380] sm:$0xff]  ;;  %v2679_v56 = vld [vmem:[%s5129_s1 + $0x388] sm:$0xff] }
  0xb2   : > { %3097 = vmatmul.mubr.f32.gmra.mrb[4].mxu1 %v4435_v50  ;;  %3707 = vmatprep.subr.bf16.mxu0 %v3706_v34 }
  0xb3   : > { %3321 = vmatmul.mubr.f32.gmra.mrb[4].mxu0 %v4469_v5  ;;  %3581 = vmatpush3.bf16.msra.mxu1 %v3578_v19  ;;  %v3594_v19 = vpack.c.bf16 %v2611_v30, %v2610_v26  ;;  %v2618_v26 = vld [vmem:[%s5129_s1 + $0x1a0] sm:$0xff]  ;;  %v2619_v30 = vld [vmem:[%s5129_s1 + $0x1a8] sm:$0xff] }
  0xb4   : > { %3709 = vmatpush3.bf16.msra.mxu0 %v3706_v34  ;;  %3099 = vmatprep.mubr.f32.mxu1 %v4480_v12  ;;  %v2672_v12 = vld [vmem:[%s5129_s1 + $0x350] sm:$0xff]  ;;  %v3722_v34 = vpack.c.bf16 %v2675_v31, %v2674_v60  ;;  %v3610_v60 = vpack.c.bf16 %v2619_v30, %v2618_v26 }
  0xb5   : > { %3323 = vmatprep.mubr.f32.mxu0 %v4495_v18  ;;  %3583 = vmatprep.subr.bf16.mxu1 %v3582_v28  ;;  %v3718_v6 = vpack.c.bf16 %v2673_v14, %v2672_v12  ;;  %v2680_v12 = vld [vmem:[%s5129_s1 + $0x390] sm:$0xff]  ;;  %v2681_v14 = vld [vmem:[%s5129_s1 + $0x398] sm:$0xff] }
  0xb6   : > { %3100 = vmatmul.mubr.f32.gmra.mrb[6].mxu1 %v4483_v13  ;;  %3711 = vmatprep.subr.bf16.mxu0 %v3710_v9  ;;  %v4931_v26 = vld [vmem:[%s4257_s21 + $0x150] sm:$0xff] }
  0xb7   : > { %3324 = vmatmul.mubr.f32.gmra.mrb[6].mxu0 %v4509_v27  ;;  %3585 = vmatpush3.bf16.msra.mxu1 %v3582_v28  ;;  %v3598_v28 = vpack.c.bf16 %v2613_v43, %v2612_v42 }
  0xb8   : > { %3713 = vmatpush3.bf16.msra.mxu0 %v3710_v9  ;;  %3102 = vmatprep.mubr.f32.mxu1 %v4327_v63  ;;  %v3726_v9 = vpack.c.bf16 %v2677_v62, %v2676_v32  ;;  %v2622_v32 = vld [vmem:[%s5129_s1 + $0x1c0] sm:$0xff]  ;;  %v2623_v62 = vld [vmem:[%s5129_s1 + $0x1c8] sm:$0xff] }
  0xb9   : > { %3326 = vmatprep.mubr.f32.mxu0 %v4535_v46  ;;  %3587 = vmatprep.subr.bf16.mxu1 %v3586_v2 }
  0xba   : > { %3103 = vmatmul.mubr.f32.gmra.mrb[8].mxu1 %v4330_v0  ;;  %3715 = vmatprep.subr.bf16.mxu0 %v3714_v8 }
  0xbb   : > { %3327 = vmatmul.mubr.f32.gmra.mrb[8].mxu0 %v4544_v53  ;;  %3589 = vmatpush3.bf16.msra.mxu1 %v3586_v2  ;;  %v3602_v2 = vpack.c.bf16 %v2615_v59, %v2614_v47  ;;  %v2624_v59 = vld [vmem:[%s5129_s1 + $0x1d0] sm:$0xff] }
  0xbc   : > { %3717 = vmatpush3.bf16.msra.mxu0 %v3714_v8  ;;  %3105 = vmatprep.mubr.f32.mxu1 %v4406_v35  ;;  %v3730_v8 = vpack.c.bf16 %v2679_v56, %v2678_v49  ;;  %v2689_v49 = vld [vmem:[%s5129_s1 + $0x3d8] sm:$0xff]  ;;  %v4904_v56 = vld [vmem:[%s4257_s21 + $0x128] sm:$0xff] }
  0xbd   : > { %3329 = vmatprep.mubr.f32.mxu0 %v4569_v11  ;;  %3591 = vmatprep.subr.bf16.mxu1 %v3590_v23 }
  0xbe   : > { %3106 = vmatmul.mubr.f32.gmra.mrb[10].mxu1 %v4409_v36  ;;  %3719 = vmatprep.subr.bf16.mxu0 %v3718_v6 }
  0xbf   : > { %3330 = vmatmul.mubr.f32.gmra.mrb[10].mxu0 %v4577_v20  ;;  %3593 = vmatpush3.bf16.msra.mxu1 %v3590_v23  ;;  %v3606_v23 = vpack.c.bf16 %v2617_v57, %v2616_v15  ;;  %v2626_v57 = vld [vmem:[%s5129_s1 + $0x1e0] sm:$0xff] }
  0xc0   : > { %3721 = vmatpush3.bf16.msra.mxu0 %v3718_v6  ;;  %3108 = vmatprep.mubr.f32.mxu1 %v4445_v54  ;;  %v3734_v6 = vpack.c.bf16 %v2681_v14, %v2680_v12  ;;  %v2627_v12 = vld [vmem:[%s5129_s1 + $0x1e8] sm:$0xff] }
  0xc1   : > { %3332 = vmatprep.mubr.f32.mxu0 %v4601_v40  ;;  %3595 = vmatprep.subr.bf16.mxu1 %v3594_v19  ;;  %v2691_v14 = vld [vmem:[%s5129_s1 + $0x3e8] sm:$0xff] }
  0xc2   : > { %3109 = vmatmul.mubr.f32.gmra.mrb[12].mxu1 %v4448_v55  ;;  %3723 = vmatprep.subr.bf16.mxu0 %v3722_v34 }
  0xc3   : > { %3333 = vmatmul.mubr.f32.gmra.mrb[12].mxu0 %v4610_v48  ;;  %3597 = vmatpush3.bf16.msra.mxu1 %v3594_v19  ;;  %v2620_v19 = vld [vmem:[%s5129_s1 + $0x1b0] sm:$0xff] }
  0xc4   : > { %3725 = vmatpush3.bf16.msra.mxu0 %v3722_v34  ;;  %3111 = vmatprep.mubr.f32.mxu1 %v4492_v17  ;;  %v2621_v34 = vld [vmem:[%s5129_s1 + $0x1b8] sm:$0xff] }
  0xc5   : > { %3335 = vmatprep.mubr.f32.mxu0 %v4635_v3  ;;  %3599 = vmatprep.subr.bf16.mxu1 %v3598_v28  ;;  %v3614_v42 = vpack.c.bf16 %v2621_v34, %v2620_v19  ;;  %v4953_v34 = vld [vmem:[%s4257_s21 + $0x168] sm:$0xff] }
  0xc6   : > { %3112 = vmatmul.mubr.f32.gmra.mrb[14].mxu1 %v4495_v18  ;;  %3727 = vmatprep.subr.bf16.mxu0 %v3726_v9 }
  0xc7   : > { %3336 = vmatmul.mubr.f32.gmra.mrb[14].mxu0 %v4644_v16  ;;  %3601 = vmatpush3.bf16.msra.mxu1 %v3598_v28  ;;  %v3618_v28 = vpack.c.bf16 %v2623_v62, %v2622_v32  ;;  %v2696_v32 = vld [vmem:[%s5129_s1 + $0x410] sm:$0xff]  ;;  %v2697_v62 = vld [vmem:[%s5129_s1 + $0x418] sm:$0xff] }
  0xc8   : > { %3729 = vmatpush3.bf16.msra.mxu0 %v3726_v9  ;;  %3146 = vmatprep.mubr.f32.mxu1 %v4323_v61  ;;  %v2682_v61 = vld [vmem:[%s5129_s1 + $0x3a0] sm:$0xff] }
  0xc9   : > { %3370 = vmatprep.mubr.f32.mxu0 %v4532_v44  ;;  %3603 = vmatprep.subr.bf16.mxu1 %v3602_v2  ;;  %v4887_v9 = vld [vmem:[%s4257_s21 + $0x120] sm:$0xff] }
  0xca   : > { %3147 = vmatmul.mubr.f32.vlgmr.msra.gmra.mrb[0].mxu1 %v4381_v25  ;;  %3731 = vmatprep.subr.bf16.mxu0 %v3730_v8  ;;  %v2683_v25 = vld [vmem:[%s5129_s1 + $0x3a8] sm:$0xff] }
  0xcb   : > { %3371 = vmatmul.mubr.f32.vlgmr.msra.gmra.mrb[0].mxu0 %v4535_v46  ;;  %3605 = vmatpush3.bf16.msra.mxu1 %v3602_v2  ;;  %v3738_v31 = vpack.c.bf16 %v2683_v25, %v2682_v61  ;;  %v2628_v61 = vld [vmem:[%s5129_s1 + $0x1f0] sm:$0xff]  ;;  %v2629_v25 = vld [vmem:[%s5129_s1 + $0x1f8] sm:$0xff] }
  0xcc   : > { %3733 = vmatpush3.bf16.msra.mxu0 %v3730_v8  ;;  %3149 = vmatprep.mubr.f32.mxu1 %v4402_v33  ;;  %v2684_v33 = vld [vmem:[%s5129_s1 + $0x3b0] sm:$0xff]  ;;  %v4909_v8 = vld [vmem:[%s4257_s21 + $0x138] sm:$0xff]  ;;  %v3630_v19 = vpack.c.bf16 %v2629_v25, %v2628_v61 }
  0xcd   : > { %3373 = vmatprep.mubr.f32.mxu0 %v4566_v10  ;;  %3607 = vmatprep.subr.bf16.mxu1 %v3606_v23 }
  0xce   : > { %3150 = vmatmul.mubr.f32.gmra.mrb[2].mxu1 %v4413_v39  ;;  %3735 = vmatprep.subr.bf16.mxu0 %v3734_v6  ;;  %v2685_v39 = vld [vmem:[%s5129_s1 + $0x3b8] sm:$0xff] }
  0xcf   : > { %3374 = vmatmul.mubr.f32.gmra.mrb[2].mxu0 %v4569_v11  ;;  %3609 = vmatpush3.bf16.msra.mxu1 %v3606_v23  ;;  %v3742_v43 = vpack.c.bf16 %v2685_v39, %v2684_v33  ;;  %v4926_v23 = vld [vmem:[%s4257_s21 + $0x140] sm:$0xff] }
  0xd0   : > { %3737 = vmatpush3.bf16.msra.mxu0 %v3734_v6  ;;  %3152 = vmatprep.mubr.f32.mxu1 %v4435_v50  ;;  %v2686_v50 = vld [vmem:[%s5129_s1 + $0x3c0] sm:$0xff]  ;;  %v3626_v6 = vpack.c.bf16 %v2627_v12, %v2626_v57 }
  0xd1   : > { %3376 = vmatprep.mubr.f32.mxu0 %v4598_v38  ;;  %3611 = vmatprep.subr.bf16.mxu1 %v3610_v60  ;;  %v2694_v39 = vld [vmem:[%s5129_s1 + $0x400] sm:$0xff] }
  0xd2   : > { %3153 = vmatmul.mubr.f32.gmra.mrb[4].mxu1 %v4457_v58  ;;  %3739 = vmatprep.subr.bf16.mxu0 %v3738_v31  ;;  %v2687_v58 = vld [vmem:[%s5129_s1 + $0x3c8] sm:$0xff] }
  0xd3   : > { %3377 = vmatmul.mubr.f32.gmra.mrb[4].mxu0 %v4601_v40  ;;  %3613 = vmatpush3.bf16.msra.mxu1 %v3610_v60  ;;  %v3746_v47 = vpack.c.bf16 %v2687_v58, %v2686_v50  ;;  %v2693_v60 = vld [vmem:[%s5129_s1 + $0x3f8] sm:$0xff]  ;;  %v3766_v50 = vpack.c.bf16 %v2697_v62, %v2696_v32  ;;  %v2699_v58 = vld [vmem:[%s5129_s1 + $0x428] sm:$0xff] }
  0xd4   : > { %3741 = vmatpush3.bf16.msra.mxu0 %v3738_v31  ;;  %3155 = vmatprep.mubr.f32.mxu1 %v4483_v13  ;;  %v2625_v13 = vld [vmem:[%s5129_s1 + $0x1d8] sm:$0xff] }
  0xd5   : > { %3379 = vmatprep.mubr.f32.mxu0 %v4632_v4  ;;  %3615 = vmatprep.subr.bf16.mxu1 %v3614_v42  ;;  %v3622_v2 = vpack.c.bf16 %v2625_v13, %v2624_v59  ;;  %v4948_v31 = vld [vmem:[%s4257_s21 + $0x158] sm:$0xff] }
  0xd6   : > { %3156 = vmatmul.mubr.f32.gmra.mrb[6].mxu1 %v4502_v21  ;;  %3743 = vmatprep.subr.bf16.mxu0 %v3742_v43  ;;  %v2688_v21 = vld [vmem:[%s5129_s1 + $0x3d0] sm:$0xff] }
  0xd7   : > { %3380 = vmatmul.mubr.f32.gmra.mrb[6].mxu0 %v4635_v3  ;;  %3617 = vmatpush3.bf16.msra.mxu1 %v3614_v42  ;;  %v3750_v15 = vpack.c.bf16 %v2689_v49, %v2688_v21  ;;  %v2695_v42 = vld [vmem:[%s5129_s1 + $0x408] sm:$0xff]  ;;  %v537_v21 = vld [vmem:[%s4257_s21 + $0x160] sm:$0xff]  ;;  %v1897_v49 = vrot.slane %v4931_v26, 4 }
  0xd8   : > { %3745 = vmatpush3.bf16.msra.mxu0 %v3742_v43  ;;  %3158 = vmatprep.mubr.f32.mxu1 %v4330_v0  ;;  %v4964_v43 = vld [vmem:[%s4257_s21 + $0x170] sm:$0xff]  ;;  %v1900_v57 = vrot.slane %v537_v21, 4 }
  0xd9   : > { %3382 = vmatprep.mubr.f32.mxu0 %v4887_v9  ;;  %3619 = vmatprep.subr.bf16.mxu1 %v3618_v28 }
  0xda   : > { %3159 = vmatmul.mubr.f32.gmra.mrb[8].mxu1 %v4390_v29  ;;  %3747 = vmatprep.subr.bf16.mxu0 %v3746_v47  ;;  %v2690_v29 = vld [vmem:[%s5129_s1 + $0x3e0] sm:$0xff] }
  0xdb   : > { %3383 = vmatmul.mubr.f32.gmra.mrb[8].mxu0 %v4904_v56  ;;  %3621 = vmatpush3.bf16.msra.mxu1 %v3618_v28  ;;  %v3754_v30 = vpack.c.bf16 %v2691_v14, %v2690_v29  ;;  %v5014_v28 = vld [vmem:[%s4257_s21 + $0x148] sm:$0xff]  ;;  %v540_v29 = vld [vmem:[%s4257_s21 + $0x178] sm:$0xff]  ;;  %v1902_v14 = vrot.slane %v4953_v34, 4 }
  0xdc   : > { %3749 = vmatpush3.bf16.msra.mxu0 %v3746_v47  ;;  %3161 = vmatprep.mubr.f32.mxu1 %v4409_v36  ;;  %v1893_v47 = vrot.slane %v4926_v23, 4  ;;  %v1905_v25 = vrot.slane %v540_v29, 4 }
  0xdd   : > { %3385 = vmatprep.mubr.f32.mxu0 %v4909_v8  ;;  %3623 = vmatprep.subr.bf16.mxu1 %v3622_v2 }
  0xde   : > { %3162 = vmatmul.mubr.f32.gmra.mrb[10].mxu1 %v4424_v45  ;;  %3751 = vmatprep.subr.bf16.mxu0 %v3750_v15  ;;  %v2692_v45 = vld [vmem:[%s5129_s1 + $0x3f0] sm:$0xff] }
  0xdf   : > { %3386 = vmatmul.mubr.f32.gmra.mrb[10].mxu0 %v4926_v23  ;;  %3625 = vmatpush3.bf16.msra.mxu1 %v3622_v2  ;;  %v3758_v33 = vpack.c.bf16 %v2693_v60, %v2692_v45  ;;  %v1898_v2 = vrot.slane %v4948_v31, 4 }
  0xe0   : > { %3753 = vmatpush3.bf16.msra.mxu0 %v3750_v15  ;;  %3164 = vmatprep.mubr.f32.mxu1 %v4448_v55 }
  0xe1   : > { %3388 = vmatprep.mubr.f32.mxu0 %v4931_v26  ;;  %3627 = vmatprep.subr.bf16.mxu1 %v3626_v6  ;;  %v1899_v26 = vsel %vm581_vm0, %v1897_v49, %v1898_v2  ;;  %v1901_v61 = vsel %vm581_vm0, %v1898_v2, %v1900_v57 }
  0xe2   : > { %3165 = vmatmul.mubr.f32.gmra.mrb[12].mxu1 %v4469_v5  ;;  %3755 = vmatprep.subr.bf16.mxu0 %v3754_v30  ;;  %v3762_v5 = vpack.c.bf16 %v2695_v42, %v2694_v39 }
  0xe3   : > { %3389 = vmatmul.mubr.f32.gmra.mrb[12].mxu0 %v4948_v31  ;;  %3629 = vmatpush3.bf16.msra.mxu1 %v3626_v6  ;;  %v1903_v6 = vrot.slane %v4964_v43, 4 }
  0xe4   : > { %3757 = vmatpush3.bf16.msra.mxu0 %v3754_v30  ;;  %3167 = vmatprep.mubr.f32.mxu1 %v4495_v18  ;;  %v2709_v30 = vld [vmem:[%s5129_s1 + $0x478] sm:$0xff] }
  0xe5   : > { %3391 = vmatprep.mubr.f32.mxu0 %v4953_v34  ;;  %3631 = vmatprep.subr.bf16.mxu1 %v3630_v19  ;;  %v1904_v60 = vsel %vm581_vm0, %v1902_v14, %v1903_v6 }
  0xe6   : > { %3168 = vmatmul.mubr.f32.gmra.mrb[14].mxu1 %v4509_v27  ;;  %3759 = vmatprep.subr.bf16.mxu0 %v3758_v33  ;;  %v2698_v27 = vld [vmem:[%s5129_s1 + $0x420] sm:$0xff] }
  0xe7   : > { %3392 = vmatmul.mubr.f32.gmra.mrb[14].mxu0 %v4964_v43  ;;  %3633 = vmatpush3.bf16.msra.mxu1 %v3630_v19  ;;  %v1906_v19 = vsel %vm581_vm0, %v1903_v6, %v1905_v25 }
  0xe8   : > { %3761 = vmatpush3.bf16.msra.mxu0 %v3758_v33  ;;  %3202 = vmatprep.mubr.f32.mxu1 %v4327_v63  ;;  %v3770_v63 = vpack.c.bf16 %v2699_v58, %v2698_v27 }
  0xe9   : > { %3426 = vmatprep.mubr.f32.mxu0 %v4580_v22  ;;  %3763 = vmatprep.subr.bf16.mxu0 %v3762_v5  ;;  %v2701_v22 = vld [vmem:[%s5129_s1 + $0x438] sm:$0xff] }
  0xea   : > { %3203 = vmatmul.mubr.f32.vlgmr.msra.gmra.mrb[0].mxu1 %v4330_v0  ;;  %3794 = vmatprep.subr.bf16.mxu1 %v3762_v5  ;;  %v2700_v0 = vld [vmem:[%s5129_s1 + $0x430] sm:$0xff] }
  0xeb   : > { %3427 = vmatmul.mubr.f32.vlgmr.msra.gmra.mrb[0].mxu0 %v4605_v41  ;;  %3802 = vmatpush3.bf16.msra.mxu1 %v3762_v5  ;;  %v1887_v41 = vrot.slane %v4887_v9, 4  ;;  %v1892_v9 = vrot.slane %v4909_v8, 4  ;;  %v2707_v8 = vld [vmem:[%s5129_s1 + $0x468] sm:$0xff] }
  0xec   : > { %3765 = vmatpush3.bf16.msra.mxu0 %v3762_v5  ;;  %3205 = vmatprep.mubr.f32.mxu1 %v4406_v35  ;;  %v3774_v35 = vpack.c.bf16 %v2701_v22, %v2700_v0 }
  0xed   : > { %3429 = vmatprep.mubr.f32.mxu0 %v4614_v51  ;;  %3767 = vmatprep.subr.bf16.mxu0 %v3766_v50  ;;  %v1888_v51 = vrot.slane %v4904_v56, 4 }
  0xee   : > { %3206 = vmatmul.mubr.f32.gmra.mrb[2].mxu1 %v4409_v36  ;;  %3795 = vmatprep.subr.bf16.mxu1 %v3766_v50  ;;  %v4998_v36 = vld [vmem:[%s4257_s21 + $0x130] sm:$0xff] }
  0xef   : > { %3430 = vmatmul.mubr.f32.gmra.mrb[2].mxu0 %v4639_v7  ;;  %3803 = vmatpush3.bf16.msra.mxu1 %v3766_v50  ;;  %v2702_v7 = vld [vmem:[%s5129_s1 + $0x440] sm:$0xff] }
  0xf0   : > { %3769 = vmatpush3.bf16.msra.mxu0 %v3766_v50  ;;  %3208 = vmatprep.mubr.f32.mxu1 %v4445_v54  ;;  %v2703_v54 = vld [vmem:[%s5129_s1 + $0x448] sm:$0xff] }
  0xf1   : > { %3432 = vmatprep.mubr.f32.mxu0 %v4648_v24  ;;  %3771 = vmatprep.subr.bf16.mxu0 %v3770_v63  ;;  %v1890_v24 = vrot.slane %v4998_v36, 4 }
  0xf2   : > { %3209 = vmatmul.mubr.f32.gmra.mrb[4].mxu1 %v4448_v55  ;;  %3796 = vmatprep.subr.bf16.mxu1 %v3770_v63  ;;  %v3778_v55 = vpack.c.bf16 %v2703_v54, %v2702_v7 }
  0xf3   : > { %3433 = vmatmul.mubr.f32.gmra.mrb[4].mxu0 %v4667_v37  ;;  %3804 = vmatpush3.bf16.msra.mxu1 %v3770_v63  ;;  %v1889_v37 = vsel %vm581_vm0, %v1887_v41, %v1888_v51  ;;  %v1891_v59 = vsel %vm581_vm0, %v1888_v51, %v1890_v24 }
  0xf4   : > { %3773 = vmatpush3.bf16.msra.mxu0 %v3770_v63  ;;  %3211 = vmatprep.mubr.f32.mxu1 %v4492_v17  ;;  %v2704_v17 = vld [vmem:[%s5129_s1 + $0x450] sm:$0xff] }
  0xf5   : > { %3435 = vmatprep.mubr.f32.mxu0 %v4673_v52  ;;  %3775 = vmatprep.subr.bf16.mxu0 %v3774_v35  ;;  %v2705_v52 = vld [vmem:[%s5129_s1 + $0x458] sm:$0xff] }
  0xf6   : > { %3212 = vmatmul.mubr.f32.gmra.mrb[6].mxu1 %v4495_v18  ;;  %3797 = vmatprep.subr.bf16.mxu1 %v3774_v35  ;;  %v1895_v18 = vrot.slane %v5014_v28, 4  ;;  %v3782_v13 = vpack.c.bf16 %v2705_v52, %v2704_v17 }
  0xf7   : > { %3436 = vmatmul.mubr.f32.gmra.mrb[6].mxu0 %v4690_v1  ;;  %3805 = vmatpush3.bf16.msra.mxu1 %v3774_v35  ;;  %v1894_v1 = vsel %vm581_vm0, %v1892_v9, %v1893_v47 }
  0xf8   : > { %3777 = vmatpush3.bf16.msra.mxu0 %v3774_v35  ;;  %3214 = vmatprep.mubr.f32.mxu1 %v4532_v44  ;;  %v2706_v44 = vld [vmem:[%s5129_s1 + $0x460] sm:$0xff]  ;;  %v1896_v15 = vsel %vm581_vm0, %v1893_v47, %v1895_v18 }
  0xf9   : > { %3438 = vmatprep.mubr.f32.mxu0 %v1889_v37  ;;  %3779 = vmatprep.subr.bf16.mxu0 %v3778_v55  ;;  %v3786_v12 = vpack.c.bf16 %v2707_v8, %v2706_v44 }
  0xfa   : > { %3215 = vmatmul.mubr.f32.gmra.mrb[8].mxu1 %v4535_v46  ;;  %3798 = vmatprep.subr.bf16.mxu1 %v3778_v55 }
  0xfb   : > { %3439 = vmatmul.mubr.f32.gmra.mrb[8].mxu0 %v1891_v59  ;;  %3806 = vmatpush3.bf16.msra.mxu1 %v3778_v55 }
  0xfc   : > { %3781 = vmatpush3.bf16.msra.mxu0 %v3778_v55  ;;  %3217 = vmatprep.mubr.f32.mxu1 %v4566_v10  ;;  %v2708_v10 = vld [vmem:[%s5129_s1 + $0x470] sm:$0xff] }
  0xfd   : > { %3441 = vmatprep.mubr.f32.mxu0 %v1894_v1  ;;  %3783 = vmatprep.subr.bf16.mxu0 %v3782_v13  ;;  %v3790_v45 = vpack.c.bf16 %v2709_v30, %v2708_v10 }
  0xfe   : > { %3218 = vmatmul.mubr.f32.gmra.mrb[10].mxu1 %v4569_v11  ;;  %3799 = vmatprep.subr.bf16.mxu1 %v3782_v13 }
  0xff   : > { %3442 = vmatmul.mubr.f32.gmra.mrb[10].mxu0 %v1896_v15  ;;  %3807 = vmatpush3.bf16.msra.mxu1 %v3782_v13 }
 0x100   : > { %3785 = vmatpush3.bf16.msra.mxu0 %v3782_v13  ;;  %3220 = vmatprep.mubr.f32.mxu1 %v4598_v38 }
 0x101   : > { %3444 = vmatprep.mubr.f32.mxu0 %v1899_v26  ;;  %3787 = vmatprep.subr.bf16.mxu0 %v3786_v12 }
 0x102   : > { %3221 = vmatmul.mubr.f32.gmra.mrb[12].mxu1 %v4601_v40  ;;  %3800 = vmatprep.subr.bf16.mxu1 %v3786_v12 }
 0x103   : > { %3445 = vmatmul.mubr.f32.gmra.mrb[12].mxu0 %v1901_v61  ;;  %3808 = vmatpush3.bf16.msra.mxu1 %v3786_v12 }
 0x104   : > { %3789 = vmatpush3.bf16.msra.mxu0 %v3786_v12  ;;  %3223 = vmatprep.mubr.f32.mxu1 %v4632_v4 }
 0x105   : > { %3447 = vmatprep.mubr.f32.mxu0 %v1904_v60  ;;  %3791 = vmatprep.subr.bf16.mxu0 %v3790_v45 }
 0x106   : > { %3224 = vmatmul.mubr.f32.gmra.mrb[14].mxu1 %v4635_v3  ;;  %3801 = vmatprep.subr.bf16.mxu1 %v3790_v45 }
 0x107   : > { %3448 = vmatmul.mubr.f32.gmra.mrb[14].mxu0 %v1906_v19  ;;  %3809 = vmatpush3.bf16.msra.mxu1 %v3790_v45 }
 0x108   : > { %3793 = vmatpush3.bf16.msra.mxu0 %v3790_v45  ;;  %3482 = vmatprep.mubr.f32.mxu0 %v4535_v46 }
 0x109   : > { %3494 = vmatprep.mubr.f32.mxu1 %v4904_v56 }
 0x10a   : > { %3495 = vmatmul.mubr.f32.vlgmr.msra.gmra.mrb[16].mxu1 %v4998_v36 }
 0x10b   : > { %3483 = vmatmul.mubr.f32.vlgmr.msra.gmra.mrb[0].mxu0 %v4544_v53  ;;  %3497 = vmatprep.mubr.f32.mxu1 %v4926_v23 }
 0x10c   : > { %3485 = vmatprep.mubr.f32.mxu0 %v4569_v11 }
 0x10e   : > { %3498 = vmatmul.mubr.f32.gmra.mrb[18].mxu1 %v5014_v28 }
 0x10f   : > { %3486 = vmatmul.mubr.f32.gmra.mrb[2].mxu0 %v4577_v20  ;;  %3500 = vmatprep.mubr.f32.mxu1 %v4948_v31 }
 0x110   : > { %3488 = vmatprep.mubr.f32.mxu0 %v4601_v40 }
 0x112   : > { %3501 = vmatmul.mubr.f32.gmra.mrb[20].mxu1 %v537_v21 }
 0x113   : > { %3489 = vmatmul.mubr.f32.gmra.mrb[4].mxu0 %v4610_v48  ;;  %3503 = vmatprep.mubr.f32.mxu1 %v4964_v43 }
 0x114   : > { %3491 = vmatprep.mubr.f32.mxu0 %v4635_v3 }
 0x116   : > { %3504 = vmatmul.mubr.f32.gmra.mrb[22].mxu1 %v540_v29 }
 0x117   : > { %3492 = vmatmul.mubr.f32.gmra.mrb[6].mxu0 %v4644_v16 }
 0x1bd   : > { %v3204_v46 = vpop.f32.mrb[0].mxu1 }
 0x1be   : > { %v1206_v53 = vpop.f32.mrb[1].mxu1 }
 0x1c1   : > { %v3207_v11 = vpop.f32.mrb[2].mxu1 }
 0x1c2   : > { %v1216_v38 = vpop.f32.mrb[3].mxu1 }
 0x1c5   : > { %v3210_v4 = vpop.f32.mrb[4].mxu1 }
 0x1c6   : > { %v5075_v20 = vpop.f32.mrb[5].mxu1 }
 0x1c9   : > { %v5077_v56 = vpop.f32.mrb[6].mxu1 }
 0x1ca   : > { %v5079_v40 = vpop.f32.mrb[7].mxu1 }
 0x1cd   : > { %v3216_v23 = vpop.f32.mrb[8].mxu1 }
 0x1ce   : > { %v3440_v48 = vpop.f32.mrb[8].mxu0  ;;  %v1246_v31 = vpop.f32.mrb[9].mxu1 }
 0x1cf   : > { %v3818_v34 = vadd.f32 %v3440_v48, %v3216_v23  ;;  %v2038_v33 = vpop.f32.mrb[9].mxu0 }
 0x1d0   : > { %v3820_v3 = vadd.f32 %v2038_v33, %v1246_v31 }
 0x1d1   : > { %v3219_v39 = vpop.f32.mrb[10].mxu1 }
 0x1d2   : > { %v3443_v42 = vpop.f32.mrb[10].mxu0  ;;  %v1256_v16 = vpop.f32.mrb[11].mxu1 }
 0x1d3   : > { %v3822_v43 = vadd.f32 %v3443_v42, %v3219_v39  ;;  %v2048_v5 = vpop.f32.mrb[11].mxu0 }
 0x1d4   : > { %v3824_v32 = vadd.f32 %v2048_v5, %v1256_v16 }
 0x1d5   : > { %v3222_v62 = vpop.f32.mrb[12].mxu1 }
 0x1d6   : > { %v3446_v50 = vpop.f32.mrb[12].mxu0  ;;  %v1266_v27 = vpop.f32.mrb[13].mxu1 }
 0x1d7   : > { %v3826_v58 = vadd.f32 %v3446_v50, %v3222_v62  ;;  %v2058_v63 = vpop.f32.mrb[13].mxu0 }
 0x1d8   : > { %v3828_v0 = vadd.f32 %v2058_v63, %v1266_v27 }
 0x1d9   : > { %v3225_v22 = vpop.f32.mrb[14].mxu1 }
 0x1da   : > { %v3449_v35 = vpop.f32.mrb[14].mxu0  ;;  %v1276_v36 = vpop.f32.mrb[15].mxu1 }
 0x1db   : > { %v3830_v41 = vadd.f32 %v3449_v35, %v3225_v22  ;;  %v2068_v51 = vpop.f32.mrb[15].mxu0 }
 0x1dc   : > { %v3832_v7 = vadd.f32 %v2068_v51, %v1276_v36 }
 0x1dd   : > { %v3496_v54 = vpop.f32.mrb[16].mxu1 }
 0x1de   : > { %v3484_v24 = vpop.f32.mrb[0].mxu0  ;;  %v5081_v55 = vadd.f32 %v3818_v34, %v3496_v54  ;;  %v2216_v28 = vpop.f32.mrb[17].mxu1 }
 0x1df   : > { %v3810_v9 = vadd.f32 %v3484_v24, %v3204_v46  ;;  %v2176_v47 = vpop.f32.mrb[1].mxu0  ;;  %v5083_v37 = vadd.f32 %v3820_v3, %v2216_v28 }
 0x1e0   : > { %2280 = vst [vmem:[%s4081_s27 + $0x48] sm:$0xff] %v5081_v55  ;;  %v3811_v17 = vadd.f32 %v2176_v47, %v1206_v53 }
 0x1e1   : > { %2272 = vst [vmem:[%s4081_s27 + $0x8] sm:$0xff] %v3810_v9  ;;  %v2309_v52 = vmul.f32 %v3810_v9, %v3810_v9  ;;  %2279 = vst [vmem:[%s4081_s27 + $0x40] sm:$0xff] %v5083_v37  ;;  %v3499_v59 = vpop.f32.mrb[18].mxu1 }
 0x1e2   : > { %2271 = vst [vmem:[%s4081_s27] sm:$0xff] %v3811_v17  ;;  %v2287_v18 = vadd.f32 %v3811_v17, %v3810_v9  ;;  %v2308_v13 = vmul.f32 %v3811_v17, %v3811_v17  ;;  %v3487_v21 = vpop.f32.mrb[2].mxu0  ;;  %v3823_v49 = vadd.f32 %v3822_v43, %v3499_v59  ;;  %v2226_v2 = vpop.f32.mrb[19].mxu1 }
 0x1e3   : > { %v3812_v1 = vadd.f32 %v3487_v21, %v3207_v11  ;;  %v2186_v44 = vpop.f32.mrb[3].mxu0  ;;  %v3825_v8 = vadd.f32 %v3824_v32, %v2226_v2 }
 0x1e4   : > { %v2324_v15 = vadd.f32 %v2309_v52, %v2308_v13  ;;  %2282 = vst [vmem:[%s4081_s27 + $0x58] sm:$0xff] %v3823_v49  ;;  %v3813_v57 = vadd.f32 %v2186_v44, %v1216_v38  ;;  %v2319_v51 = vmul.f32 %v3823_v49, %v3823_v49 }
 0x1e5   : > { %2274 = vst [vmem:[%s4081_s27 + $0x18] sm:$0xff] %v3812_v1  ;;  %2281 = vst [vmem:[%s4081_s27 + $0x50] sm:$0xff] %v3825_v8  ;;  %v3502_v12 = vpop.f32.mrb[20].mxu1  ;;  %v2311_v45 = vmul.f32 %v3812_v1, %v3812_v1  ;;  %v2318_v35 = vmul.f32 %v3825_v8, %v3825_v8 }
 0x1e6   : > { %2273 = vst [vmem:[%s4081_s27 + $0x10] sm:$0xff] %v3813_v57  ;;  %v2288_v29 = vadd.f32 %v3813_v57, %v2287_v18  ;;  %v2310_v14 = vmul.f32 %v3813_v57, %v3813_v57  ;;  %v3490_v6 = vpop.f32.mrb[4].mxu0  ;;  %v3827_v26 = vadd.f32 %v3826_v58, %v3502_v12  ;;  %v2236_v10 = vpop.f32.mrb[21].mxu1 }
 0x1e7   : > { %v3814_v30 = vadd.f32 %v3490_v6, %v3210_v4  ;;  %v2196_v61 = vpop.f32.mrb[5].mxu0  ;;  %v3829_v25 = vadd.f32 %v3828_v0, %v2236_v10  ;;  %v2317_v0 = vmul.f32 %v5081_v55, %v5081_v55 }
 0x1e8   : > { %v2325_v60 = vadd.f32 %v2324_v15, %v2310_v14  ;;  %2284 = vst [vmem:[%s4081_s27 + $0x68] sm:$0xff] %v3827_v26  ;;  %v3815_v19 = vadd.f32 %v2196_v61, %v5075_v20  ;;  %v2289_v46 = vadd.f32 %v3812_v1, %v2288_v29  ;;  %v2321_v47 = vmul.f32 %v3827_v26, %v3827_v26 }
 0x1e9   : > { %2276 = vst [vmem:[%s4081_s27 + $0x28] sm:$0xff] %v3814_v30  ;;  %2283 = vst [vmem:[%s4081_s27 + $0x60] sm:$0xff] %v3829_v25  ;;  %v3505_v53 = vpop.f32.mrb[22].mxu1  ;;  %v2313_v20 = vmul.f32 %v3814_v30, %v3814_v30  ;;  %v2320_v24 = vmul.f32 %v3829_v25, %v3829_v25 }
 0x1ea   : > { %2275 = vst [vmem:[%s4081_s27 + $0x20] sm:$0xff] %v3815_v19  ;;  %v2290_v11 = vadd.f32 %v3815_v19, %v2289_v46  ;;  %v2312_v38 = vmul.f32 %v3815_v19, %v3815_v19  ;;  %v2326_v23 = vadd.f32 %v2325_v60, %v2311_v45  ;;  %v3493_v4 = vpop.f32.mrb[6].mxu0  ;;  %v3831_v48 = vadd.f32 %v3830_v41, %v3505_v53  ;;  %v2246_v31 = vpop.f32.mrb[23].mxu1 }
 0x1eb   : > { %v3816_v34 = vadd.f32 %v3493_v4, %v5077_v56  ;;  %v2206_v33 = vpop.f32.mrb[7].mxu0  ;;  %v3833_v3 = vadd.f32 %v3832_v7, %v2246_v31  ;;  %v2316_v56 = vmul.f32 %v5083_v37, %v5083_v37 }
 0x1ec   : > { %v2327_v39 = vadd.f32 %v2326_v23, %v2312_v38  ;;  %2286 = vst [vmem:[%s4081_s27 + $0x78] sm:$0xff] %v3831_v48  ;;  %v3817_v42 = vadd.f32 %v2206_v33, %v5079_v40  ;;  %v2291_v16 = vadd.f32 %v3814_v30, %v2290_v11  ;;  %v2323_v13 = vmul.f32 %v3831_v48, %v3831_v48 }
 0x1ed   : > { %2278 = vst [vmem:[%s4081_s27 + $0x38] sm:$0xff] %v3816_v34  ;;  %2285 = vst [vmem:[%s4081_s27 + $0x70] sm:$0xff] %v3833_v3  ;;  %v2315_v62 = vmul.f32 %v3816_v34, %v3816_v34  ;;  %v2322_v59 = vmul.f32 %v3833_v3, %v3833_v3 }
 0x1ee   : > { %2277 = vst [vmem:[%s4081_s27 + $0x30] sm:$0xff] %v3817_v42  ;;  %v2292_v43 = vadd.f32 %v3817_v42, %v2291_v16  ;;  %v2314_v5 = vmul.f32 %v3817_v42, %v3817_v42  ;;  %v2328_v32 = vadd.f32 %v2327_v39, %v2313_v20 }
 0x1f0   : > { %v2293_v50 = vadd.f32 %v3816_v34, %v2292_v43  ;;  %v2329_v27 = vadd.f32 %v2328_v32, %v2314_v5 }
 0x1f2   : > { %v2294_v58 = vadd.f32 %v5083_v37, %v2293_v50  ;;  %v2330_v63 = vadd.f32 %v2329_v27, %v2315_v62 }
 0x1f4   : > { %v2295_v40 = vadd.f32 %v5081_v55, %v2294_v58  ;;  %v2331_v22 = vadd.f32 %v2330_v63, %v2316_v56 }
 0x1f6   : > { %v2332_v36 = vadd.f32 %v2331_v22, %v2317_v0  ;;  %v2296_v41 = vadd.f32 %v3825_v8, %v2295_v40 }
 0x1f8   : > { %v2297_v7 = vadd.f32 %v3823_v49, %v2296_v41  ;;  %v2333_v54 = vadd.f32 %v2332_v36, %v2318_v35 }
 0x1fa   : > { %v2298_v28 = vadd.f32 %v3829_v25, %v2297_v7  ;;  %v2334_v9 = vadd.f32 %v2333_v54, %v2319_v51 }
 0x1fc   : > { %v2299_v17 = vadd.f32 %v3827_v26, %v2298_v28  ;;  %v2335_v52 = vadd.f32 %v2334_v9, %v2320_v24 }
 0x1fe   : > { %v2300_v37 = vadd.f32 %v3833_v3, %v2299_v17  ;;  %v2336_v18 = vadd.f32 %v2335_v52, %v2321_v47 }
 0x200   : > { %v2301_v21 = vadd.f32 %v3831_v48, %v2300_v37  ;;  %v2337_v2 = vadd.f32 %v2336_v18, %v2322_v59 }
 0x202   : > { %v2302_v55 = vrot.slane %v2301_v21, 4  ;;  %v2338_v1 = vadd.f32 %v2337_v2, %v2323_v13 }
 0x204   : > { %v2303_v44 = vadd.f32 %v2302_v55, %v2301_v21  ;;  %v2339_v8 = vrot.slane %v2338_v1, 4 }
 0x206   : > { %v2304_v15 = vrot.slane %v2303_v44, 2  ;;  %v2340_v49 = vadd.f32 %v2339_v8, %v2338_v1 }
 0x208   : > { %v2305_v57 = vadd.f32 %v2304_v15, %v2303_v44  ;;  %v2341_v12 = vrot.slane %v2340_v49, 2 }
 0x20a   : > { %v2306_v29 = vrot.slane %v2305_v57, 1  ;;  %v2342_v14 = vadd.f32 %v2341_v12, %v2340_v49 }
 0x20c   : > { %v2343_v6 = vrot.slane %v2342_v14, 1  ;;  %v2307_v26 = vadd.f32 %v2306_v29, %v2305_v57 }
 0x20e   : > { %v2344_v10 = vadd.f32 %v2343_v6, %v2342_v14 }
 0x210   : > { %v2346_v30 = vsel %vm2345_vm1, %v2307_v26, %v2344_v10 }
 0x211   : > { %2347 = vst [vmem:[%s4087_s7] sm:$0x3] %v2346_v30 }
 0x212 PF: > { %s14_s16 = sadd.s32 1, %s4018_s16   ;;  %s5132_s12 = smov %s4010_s14 }
 0x213   : > { %p11_p0 = scmp.ge.s32.totalorder %s14_s16, 6   ;;  %s5133_s13 = smov %s4014_s15 }
 0x214   : > { %s5134_s14 = smov %s5137_s17  ;;  %s5135_s15 = smov %s5141_s18 }
 0x215   :  { %13 = sbr.rel (!%p11_p0) target bundleno = 3 (0x3), region = 170 }
 0x21c   :  { %2402 = vsyncmov [#allocation3] }
 0x21f   :  { %s2403_s27 = vpop.sfrf %2402 }
 0x220   :  { %p2712_p1 = scmp.ne.s32.totalorder %s2403_s27, 0 }
 0x222   :  { %2407 = shalt.err (%p2712_p1)  }
 0x223   :  { %2409 = vsyncmov [#allocation3 + $0x1] }
 0x226   :  { %s2410_s7 = vpop.sfrf %2409 }
 0x227   :  { %p2713_p2 = scmp.ne.s32.totalorder %s2410_s7, 0 }
 0x229   :  { %2414 = shalt.err (%p2713_p2)  }

// kernel: residual_block_mulgrid.31
= control target key start
LH: loop header
LB: loop body
LE: loop exit
PB: predicated region body
PF: predicated region fallthrough
CT: control target
= control target key end

     0   :  { %9 = vsyncpa [#allocation3], 0  ;;  %s986_s0 = inlined_call_operand.vmem [shape: f32[512,128], index: 0, kind: input, shape index: {}]   ;;  %s987_s1 = inlined_call_operand.vmem [shape: f32[1,128], index: 1, kind: input, shape index: {}]   ;;  %s988_s2 = inlined_call_operand.vmem [shape: f32[1,128], index: 2, kind: input, shape index: {}]   ;;  %s989_s3 = inlined_call_operand.vmem [shape: f32[512,128], index: 3, kind: input, shape index: {}]   ;;  %s990_s4 = inlined_call_operand.hbm [shape: f32[512,128], index: 4, kind: output, shape index: {}]  }
   0x1   :  { %11 = vsyncpa [#allocation3 + $0x1], 0  ;;  %s697_s15 = smov 0   ;;  %s699_s16 = smov 0  }
   0x2   :  { %s701_s17 = smov 0   ;;  %s703_s18 = smov 0  }
   0x3 LB: > { %s718_s19 = sadd.s32 4294967295, %s667_s18   ;;  %s547_s20 = sadd.s32 4294967294, %s667_s18   ;;  %s667_s18 = sphi %s703_s18, %s996_s18   ;;  %s663_s17 = sphi %s701_s17, %s995_s17   ;;  %s659_s16 = sphi %s699_s16, %s994_s16   ;;  %s655_s15 = sphi %s697_s15, %s993_s15  }
   0x4   : > { %s722_s21 = sadd.s32 1, %s667_s18   ;;  %s118_s22 = sadd.s32 1, %s663_s17 }
   0x5   : > { %s115_s23 = ssub.s32 %s667_s18, %s722_s21  ;;  %p128_p0 = scmp.ne.s32.totalorder %s663_s17, %s659_s16 }
   0x6   : > { %p116_p1 = scmp.eq.s32.totalorder %s115_s23, 0  ;;  %p129_p2 = scmp.eq.s32.totalorder %s718_s19, 1 }
   0x7   : > { %p134_p3 = scmp.ne.s32.totalorder %s659_s16, %s655_s15  ;;  %p135_p4 = scmp.eq.s32.totalorder %s547_s20, 1 }
   0x8   : > { %s733_s24 = scalar_select %p116_p1, %s663_s17, %s118_s22  }
   0x9   : > { %p735_p5 = por %p129_p2, %p128_p0  ;;  %p739_p6 = por %p135_p4, %p134_p3 }
   0xa   : > { %p550_p7 = scmp.ge.s32.totalorder %s667_s18, 1  ;;  %p177_p8 = scmp.lt.s32.totalorder %s667_s18, 3 }
   0xc   : > { %p178_p9 = pnand %p550_p7, %p177_p8 }
   0xd   : > { %s552_s27 = sshll.u32 (!%p178_p9), %s718_s19, 5  ;;  %v749_v0 = vld [vmem:[%s987_s1] ss:$0 sm:$0xff] (!%p178_p9)  ;;  %s205_s11 = sand.u32 (!%p178_p9), 1, %s659_s16  }
   0xe   : > { %181 = sbr.rel (%p178_p9) target bundleno = 77 (0x4d), region = 36  ;;  %p209_p10 = scmp.lt.s32.totalorder (!%p178_p9), %s552_s27, 63  ;;  %v766_v2 = vld [vmem:[%s988_s2] ss:$0 sm:$0xff] (!%p178_p9) }
   0xf   : > { %s779_s14 = sshll.u32 (!%p178_p9), %s205_s11, 8  ;;  %s563_s22 = sshll.u32 (!%p178_p9), %s718_s19, 12 }
  0x10   : > { %s809_s20 = scalar_lea.vmem (!%p178_p9), [#allocation2], %s779_s14  ;;  %s936_s29 = scalar_lea.hbm (!%p178_p9), %s990_s4, %s563_s22 }
  0x11   : > { %s473_s23 = sshll.u32 (!%p178_p9), %s809_s20, 4  ;;  %s945_s19 = scalar_lea.sflag (!%p178_p9), [#allocation3], %s205_s11  ;;  %s938_s23 = int_to_ptr.vmem [resolvable:$true] %s473_s23 }
  0x12   : > { %s605_s30 = scalar_lea.vmem (!%p178_p9), %s938_s23, 4096  ;;  %s669_s5 = smov (!%p178_p9), [#allocation2]  }
  0x13   : > { %p606_p11 = scmp.ne.s32.totalorder (!%p178_p9), %s938_s23, %s605_s30  ;;  %s609_s6 = sshll.u32 (!%p178_p9), %s669_s5, 4  ;;  %s610_s6 = int_to_ptr.vmem [resolvable:$false] %s609_s6 }
  0x14   : > { %p612_p0 = scmp.lt.s32.totalorder (!%p178_p9), %s938_s23, %s610_s6 }
  0x15   : > { %s998_s27 = smov (!%p209_p10, %s552_s27), 63  ;;  %p607_p12 = pnand %p606_p11, %p735_p5 }
  0x16   : > { %s553_s28 = sshll.u32 %s998_s27, 3 }
  0x17   : > { %s754_s7 = scalar_lea.vmem %s986_s0, %s553_s28  ;;  %s759_s10 = scalar_lea.vmem %s989_s3, %s553_s28 }
  0x18   : > { %v221_v1 = vld [vmem:[%s754_s7] sm:$0xff]  ;;  %v222_v3 = vld [vmem:[%s754_s7 + $0x8] sm:$0xff]  ;;  %v223_v7 = vld [vmem:[%s754_s7 + $0x10] sm:$0xff]  ;;  %p608_p13 = pneg %p607_p12 }
  0x19   : > { %v260_v4 = vmul.f32 %v749_v0, %v221_v1  ;;  %v331_v5 = vld [vmem:[%s759_s10] sm:$0xff]  ;;  %v261_v6 = vmul.f32 %v749_v0, %v222_v3  ;;  %v332_v8 = vld [vmem:[%s759_s10 + $0x8] sm:$0xff]  ;;  %v262_v9 = vmul.f32 %v749_v0, %v223_v7  ;;  %v224_v10 = vld [vmem:[%s754_s7 + $0x18] sm:$0xff] }
  0x1a   : > { %v225_v11 = vld [vmem:[%s754_s7 + $0x20] sm:$0xff]  ;;  %v333_v14 = vld [vmem:[%s759_s10 + $0x10] sm:$0xff]  ;;  %v263_v15 = vmul.f32 %v749_v0, %v224_v10  ;;  %v334_v16 = vld [vmem:[%s759_s10 + $0x18] sm:$0xff] }
  0x1b   : > { %v299_v12 = vadd.f32 %v766_v2, %v260_v4  ;;  %v300_v13 = vadd.f32 %v766_v2, %v261_v6  ;;  %v264_v17 = vmul.f32 %v749_v0, %v225_v11  ;;  %v226_v18 = vld [vmem:[%s754_s7 + $0x28] sm:$0xff]  ;;  %v301_v19 = vadd.f32 %v766_v2, %v262_v9  ;;  %v335_v20 = vld [vmem:[%s759_s10 + $0x20] sm:$0xff]  ;;  %v227_v22 = vld [vmem:[%s754_s7 + $0x30] sm:$0xff] }
  0x1c   : > { %v265_v21 = vmul.f32 %v749_v0, %v226_v18  ;;  %v228_v23 = vld [vmem:[%s754_s7 + $0x38] sm:$0xff]  ;;  %v302_v26 = vadd.f32 %v766_v2, %v263_v15  ;;  %v336_v28 = vld [vmem:[%s759_s10 + $0x28] sm:$0xff]  ;;  %v266_v31 = vmul.f32 %v749_v0, %v227_v22  ;;  %v229_v33 = vld [vmem:[%s754_s7 + $0x40] sm:$0xff] }
  0x1d   : > { %v363_v24 = vadd.f32 %v331_v5, %v299_v12  ;;  %v364_v25 = vadd.f32 %v332_v8, %v300_v13  ;;  %v303_v27 = vadd.f32 %v766_v2, %v264_v17  ;;  %v365_v29 = vadd.f32 %v333_v14, %v301_v19  ;;  %v230_v34 = vld [vmem:[%s754_s7 + $0x48] sm:$0xff]  ;;  %v337_v39 = vld [vmem:[%s759_s10 + $0x30] sm:$0xff]  ;;  %v338_v40 = vld [vmem:[%s759_s10 + $0x38] sm:$0xff] }
  0x1e   : > { %v304_v30 = vadd.f32 %v766_v2, %v265_v21  ;;  %v267_v32 = vmul.f32 %v749_v0, %v228_v23  ;;  %v366_v37 = vadd.f32 %v334_v16, %v302_v26  ;;  %v231_v41 = vld [vmem:[%s754_s7 + $0x50] sm:$0xff]  ;;  %v305_v44 = vadd.f32 %v766_v2, %v266_v31  ;;  %v232_v46 = vld [vmem:[%s754_s7 + $0x58] sm:$0xff]  ;;  %v233_v47 = vld [vmem:[%s754_s7 + $0x60] sm:$0xff] }
  0x1f   : > { %v395_v35 = vmax.f32 %v363_v24, 0.0  ;;  %v396_v36 = vmax.f32 %v364_v25, 0.0  ;;  %v367_v38 = vadd.f32 %v335_v20, %v303_v27  ;;  %v397_v42 = vmax.f32 %v365_v29, 0.0  ;;  %v234_v52 = vld [vmem:[%s754_s7 + $0x68] sm:$0xff]  ;;  %v339_v56 = vld [vmem:[%s759_s10 + $0x40] sm:$0xff]  ;;  %v341_v61 = vld [vmem:[%s759_s10 + $0x50] sm:$0xff] }
  0x20   : > { %v368_v43 = vadd.f32 %v336_v28, %v304_v30  ;;  %v306_v45 = vadd.f32 %v766_v2, %v267_v32  ;;  %v398_v48 = vmax.f32 %v366_v37, 0.0  ;;  %v268_v50 = vmul.f32 %v749_v0, %v229_v33  ;;  %v340_v57 = vld [vmem:[%s759_s10 + $0x48] sm:$0xff]  ;;  %v235_v1 = vld [vmem:[%s754_s7 + $0x70] sm:$0xff]  ;;  %v236_v3 = vld [vmem:[%s754_s7 + $0x78] sm:$0xff] }
  0x21   : > { %427 = vst [vmem:[%s809_s20] sm:$0xff] %v395_v35  ;;  %428 = vst [vmem:[%s809_s20 + $0x8] sm:$0xff] %v396_v36  ;;  %v399_v49 = vmax.f32 %v367_v38, 0.0  ;;  %v269_v51 = vmul.f32 %v749_v0, %v230_v34  ;;  %v369_v54 = vadd.f32 %v337_v39, %v305_v44  ;;  %v270_v58 = vmul.f32 %v749_v0, %v231_v41  ;;  %v342_v7 = vld [vmem:[%s759_s10 + $0x58] sm:$0xff]  ;;  %v343_v8 = vld [vmem:[%s759_s10 + $0x60] sm:$0xff] }
  0x22   : > { %429 = vst [vmem:[%s809_s20 + $0x10] sm:$0xff] %v397_v42  ;;  %v400_v53 = vmax.f32 %v368_v43, 0.0  ;;  %v370_v55 = vadd.f32 %v338_v40, %v306_v45  ;;  %430 = vst [vmem:[%s809_s20 + $0x18] sm:$0xff] %v398_v48  ;;  %v307_v59 = vadd.f32 %v766_v2, %v268_v50  ;;  %v271_v62 = vmul.f32 %v749_v0, %v232_v46  ;;  %v344_v14 = vld [vmem:[%s759_s10 + $0x68] sm:$0xff]  ;;  %v237_v19 = vld [vmem:[%s754_s7 + $0x80] sm:$0xff] }
  0x23   : > { %431 = vst [vmem:[%s809_s20 + $0x20] sm:$0xff] %v399_v49  ;;  %v308_v60 = vadd.f32 %v766_v2, %v269_v51  ;;  %v272_v63 = vmul.f32 %v749_v0, %v233_v47  ;;  %v401_v4 = vmax.f32 %v369_v54, 0.0  ;;  %v309_v6 = vadd.f32 %v766_v2, %v270_v58  ;;  %v238_v20 = vld [vmem:[%s754_s7 + $0x88] sm:$0xff]  ;;  %v345_v25 = vld [vmem:[%s759_s10 + $0x70] sm:$0xff]  ;;  %v346_v26 = vld [vmem:[%s759_s10 + $0x78] sm:$0xff] }
  0x24   : > { %432 = vst [vmem:[%s809_s20 + $0x28] sm:$0xff] %v400_v53  ;;  %v402_v5 = vmax.f32 %v370_v55, 0.0  ;;  %v273_v9 = vmul.f32 %v749_v0, %v234_v52  ;;  %v371_v10 = vadd.f32 %v339_v56, %v307_v59  ;;  %v310_v12 = vadd.f32 %v766_v2, %v271_v62  ;;  %v239_v27 = vld [vmem:[%s754_s7 + $0x90] sm:$0xff]  ;;  %v240_v32 = vld [vmem:[%s754_s7 + $0x98] sm:$0xff]  ;;  %v241_v33 = vld [vmem:[%s754_s7 + $0xa0] sm:$0xff] }
  0x25   : > { %v372_v11 = vadd.f32 %v340_v57, %v308_v60  ;;  %v311_v13 = vadd.f32 %v766_v2, %v272_v63  ;;  %433 = vst [vmem:[%s809_s20 + $0x30] sm:$0xff] %v401_v4  ;;  %v373_v15 = vadd.f32 %v341_v61, %v309_v6  ;;  %v274_v17 = vmul.f32 %v749_v0, %v235_v1  ;;  %v242_v38 = vld [vmem:[%s754_s7 + $0xa8] sm:$0xff]  ;;  %v347_v42 = vld [vmem:[%s759_s10 + $0x80] sm:$0xff]  ;;  %v349_v47 = vld [vmem:[%s759_s10 + $0x90] sm:$0xff] }
  0x26   : > { %434 = vst [vmem:[%s809_s20 + $0x38] sm:$0xff] %v402_v5  ;;  %v312_v16 = vadd.f32 %v766_v2, %v273_v9  ;;  %v275_v18 = vmul.f32 %v749_v0, %v236_v3  ;;  %v403_v21 = vmax.f32 %v371_v10, 0.0  ;;  %v374_v23 = vadd.f32 %v342_v7, %v310_v12  ;;  %v348_v43 = vld [vmem:[%s759_s10 + $0x88] sm:$0xff]  ;;  %v243_v50 = vld [vmem:[%s754_s7 + $0xb0] sm:$0xff]  ;;  %v244_v51 = vld [vmem:[%s754_s7 + $0xb8] sm:$0xff] }
  0x27   : > { %v404_v22 = vmax.f32 %v372_v11, 0.0  ;;  %v375_v24 = vadd.f32 %v343_v8, %v311_v13  ;;  %v405_v28 = vmax.f32 %v373_v15, 0.0  ;;  %v313_v30 = vadd.f32 %v766_v2, %v274_v17  ;;  %v350_v55 = vld [vmem:[%s759_s10 + $0x98] sm:$0xff]  ;;  %v351_v56 = vld [vmem:[%s759_s10 + $0xa0] sm:$0xff]  ;;  %v352_v62 = vld [vmem:[%s759_s10 + $0xa8] sm:$0xff] }
  0x28   : > { %v376_v29 = vadd.f32 %v344_v14, %v312_v16  ;;  %v314_v31 = vadd.f32 %v766_v2, %v275_v18  ;;  %435 = vst [vmem:[%s809_s20 + $0x40] sm:$0xff] %v403_v21  ;;  %v406_v34 = vmax.f32 %v374_v23, 0.0  ;;  %v276_v36 = vmul.f32 %v749_v0, %v237_v19  ;;  %v245_v5 = vld [vmem:[%s754_s7 + $0xc0] sm:$0xff]  ;;  %v246_v6 = vld [vmem:[%s754_s7 + $0xc8] sm:$0xff]  ;;  %v353_v11 = vld [vmem:[%s759_s10 + $0xb0] sm:$0xff] }
  0x29   : > { %436 = vst [vmem:[%s809_s20 + $0x48] sm:$0xff] %v404_v22  ;;  %v407_v35 = vmax.f32 %v375_v24, 0.0  ;;  %v277_v37 = vmul.f32 %v749_v0, %v238_v20  ;;  %437 = vst [vmem:[%s809_s20 + $0x50] sm:$0xff] %v405_v28  ;;  %v377_v40 = vadd.f32 %v345_v25, %v313_v30  ;;  %v278_v44 = vmul.f32 %v749_v0, %v239_v27  ;;  %v354_v12 = vld [vmem:[%s759_s10 + $0xb8] sm:$0xff]  ;;  %v247_v13 = vld [vmem:[%s754_s7 + $0xd0] sm:$0xff] }
  0x2a   : > { %v408_v39 = vmax.f32 %v376_v29, 0.0  ;;  %v378_v41 = vadd.f32 %v346_v26, %v314_v31  ;;  %438 = vst [vmem:[%s809_s20 + $0x58] sm:$0xff] %v406_v34  ;;  %v315_v45 = vadd.f32 %v766_v2, %v276_v36  ;;  %v279_v48 = vmul.f32 %v749_v0, %v240_v32  ;;  %v248_v18 = vld [vmem:[%s754_s7 + $0xd8] sm:$0xff]  ;;  %v249_v19 = vld [vmem:[%s754_s7 + $0xe0] sm:$0xff]  ;;  %v250_v24 = vld [vmem:[%s754_s7 + $0xe8] sm:$0xff] }
  0x2b   : > { %439 = vst [vmem:[%s809_s20 + $0x60] sm:$0xff] %v407_v35  ;;  %v316_v46 = vadd.f32 %v766_v2, %v277_v37  ;;  %v280_v49 = vmul.f32 %v749_v0, %v241_v33  ;;  %v409_v52 = vmax.f32 %v377_v40, 0.0  ;;  %v317_v54 = vadd.f32 %v766_v2, %v278_v44  ;;  %v355_v28 = vld [vmem:[%s759_s10 + $0xc0] sm:$0xff]  ;;  %v356_v29 = vld [vmem:[%s759_s10 + $0xc8] sm:$0xff]  ;;  %v357_v33 = vld [vmem:[%s759_s10 + $0xd0] sm:$0xff] }
  0x2c   : > { %440 = vst [vmem:[%s809_s20 + $0x68] sm:$0xff] %v408_v39  ;;  %v410_v53 = vmax.f32 %v378_v41, 0.0  ;;  %v281_v57 = vmul.f32 %v749_v0, %v242_v38  ;;  %v379_v58 = vadd.f32 %v347_v42, %v315_v45  ;;  %v318_v60 = vadd.f32 %v766_v2, %v279_v48  ;;  %v251_v36 = vld [vmem:[%s754_s7 + $0xf0] sm:$0xff]  ;;  %v252_v37 = vld [vmem:[%s754_s7 + $0xf8] sm:$0xff]  ;;  %v359_v42 = vld [vmem:[%s759_s10 + $0xe0] sm:$0xff]  ;;  %s611_s7 = scalar_lea.vmem %s610_s6, 8192 }
  0x2d   : > { %v380_v59 = vadd.f32 %v348_v43, %v316_v46  ;;  %v319_v61 = vadd.f32 %v766_v2, %v280_v49  ;;  %441 = vst [vmem:[%s809_s20 + $0x70] sm:$0xff] %v409_v52  ;;  %v381_v63 = vadd.f32 %v349_v47, %v317_v54  ;;  %v282_v3 = vmul.f32 %v749_v0, %v243_v50  ;;  %v358_v41 = vld [vmem:[%s759_s10 + $0xd8] sm:$0xff]  ;;  %v360_v48 = vld [vmem:[%s759_s10 + $0xe8] sm:$0xff]  ;;  %p613_p1 = scmp.lt.s32.totalorder %s611_s7, %s605_s30 }
  0x2e   : > { %442 = vst [vmem:[%s809_s20 + $0x78] sm:$0xff] %v410_v53  ;;  %v320_v1 = vadd.f32 %v766_v2, %v281_v57  ;;  %v283_v4 = vmul.f32 %v749_v0, %v244_v51  ;;  %v411_v7 = vmax.f32 %v379_v58, 0.0  ;;  %v382_v9 = vadd.f32 %v350_v55, %v318_v60  ;;  %v361_v57 = vld [vmem:[%s759_s10 + $0xf0] sm:$0xff]  ;;  %v362_v58 = vld [vmem:[%s759_s10 + $0xf8] sm:$0xff] }
  0x2f   : > { %v412_v8 = vmax.f32 %v380_v59, 0.0  ;;  %v383_v10 = vadd.f32 %v351_v56, %v319_v61  ;;  %v413_v14 = vmax.f32 %v381_v63, 0.0  ;;  %v321_v16 = vadd.f32 %v766_v2, %v282_v3  ;;  %p614_p2 = por %p613_p1, %p612_p0 }
  0x30   : > { %v384_v15 = vadd.f32 %v352_v62, %v320_v1  ;;  %v322_v17 = vadd.f32 %v766_v2, %v283_v4  ;;  %443 = vst [vmem:[%s809_s20 + $0x80] sm:$0xff] %v411_v7  ;;  %v414_v20 = vmax.f32 %v382_v9, 0.0  ;;  %v284_v22 = vmul.f32 %v749_v0, %v245_v5 }
  0x31   : > { %444 = vst [vmem:[%s809_s20 + $0x88] sm:$0xff] %v412_v8  ;;  %v415_v21 = vmax.f32 %v383_v10, 0.0  ;;  %v285_v23 = vmul.f32 %v749_v0, %v246_v6  ;;  %445 = vst [vmem:[%s809_s20 + $0x90] sm:$0xff] %v413_v14  ;;  %v385_v26 = vadd.f32 %v353_v11, %v321_v16  ;;  %v286_v30 = vmul.f32 %v749_v0, %v247_v13  ;;  %p615_p3 = pnand %p614_p2, %p608_p13 }
  0x32   : > { %v416_v25 = vmax.f32 %v384_v15, 0.0  ;;  %v386_v27 = vadd.f32 %v354_v12, %v322_v17  ;;  %446 = vst [vmem:[%s809_s20 + $0x98] sm:$0xff] %v414_v20  ;;  %v323_v31 = vadd.f32 %v766_v2, %v284_v22  ;;  %v287_v34 = vmul.f32 %v749_v0, %v248_v18 }
  0x33   : > { %447 = vst [vmem:[%s809_s20 + $0xa0] sm:$0xff] %v415_v21  ;;  %v324_v32 = vadd.f32 %v766_v2, %v285_v23  ;;  %v288_v35 = vmul.f32 %v749_v0, %v249_v19  ;;  %v417_v38 = vmax.f32 %v385_v26, 0.0  ;;  %v325_v40 = vadd.f32 %v766_v2, %v286_v30 }
  0x34   : > { %448 = vst [vmem:[%s809_s20 + $0xa8] sm:$0xff] %v416_v25  ;;  %v418_v39 = vmax.f32 %v386_v27, 0.0  ;;  %v289_v43 = vmul.f32 %v749_v0, %v250_v24  ;;  %v387_v44 = vadd.f32 %v355_v28, %v323_v31  ;;  %v326_v46 = vadd.f32 %v766_v2, %v287_v34 }
  0x35   : > { %v388_v45 = vadd.f32 %v356_v29, %v324_v32  ;;  %v327_v47 = vadd.f32 %v766_v2, %v288_v35  ;;  %449 = vst [vmem:[%s809_s20 + $0xb0] sm:$0xff] %v417_v38  ;;  %v389_v49 = vadd.f32 %v357_v33, %v325_v40  ;;  %v290_v51 = vmul.f32 %v749_v0, %v251_v36 }
  0x36   : > { %450 = vst [vmem:[%s809_s20 + $0xb8] sm:$0xff] %v418_v39  ;;  %v328_v50 = vadd.f32 %v766_v2, %v289_v43  ;;  %v291_v52 = vmul.f32 %v749_v0, %v252_v37  ;;  %v419_v53 = vmax.f32 %v387_v44, 0.0  ;;  %v390_v55 = vadd.f32 %v358_v41, %v326_v46 }
  0x37   : > { %v420_v54 = vmax.f32 %v388_v45, 0.0  ;;  %v391_v56 = vadd.f32 %v359_v42, %v327_v47  ;;  %v421_v59 = vmax.f32 %v389_v49, 0.0  ;;  %v329_v61 = vadd.f32 %v766_v2, %v290_v51 }
  0x38   : > { %v392_v60 = vadd.f32 %v360_v48, %v328_v50  ;;  %v330_v62 = vadd.f32 %v766_v2, %v291_v52  ;;  %451 = vst [vmem:[%s809_s20 + $0xc0] sm:$0xff] %v419_v53  ;;  %v422_v0 = vmax.f32 %v390_v55, 0.0 }
  0x39   : > { %452 = vst [vmem:[%s809_s20 + $0xc8] sm:$0xff] %v420_v54  ;;  %v423_v63 = vmax.f32 %v391_v56, 0.0  ;;  %453 = vst [vmem:[%s809_s20 + $0xd0] sm:$0xff] %v421_v59  ;;  %v393_v3 = vadd.f32 %v361_v57, %v329_v61 }
  0x3a   : > { %v424_v1 = vmax.f32 %v392_v60, 0.0  ;;  %v394_v4 = vadd.f32 %v362_v58, %v330_v62  ;;  %454 = vst [vmem:[%s809_s20 + $0xd8] sm:$0xff] %v422_v0 }
  0x3b   : > { %455 = vst [vmem:[%s809_s20 + $0xe0] sm:$0xff] %v423_v63  ;;  %v425_v2 = vmax.f32 %v393_v3, 0.0 }
  0x3c   : > { %456 = vst [vmem:[%s809_s20 + $0xe8] sm:$0xff] %v424_v1  ;;  %v426_v5 = vmax.f32 %v394_v4, 0.0 }
  0x3d   : > { %457 = vst [vmem:[%s809_s20 + $0xf0] sm:$0xff] %v425_v2 }
  0x3e   : > { %458 = vst [vmem:[%s809_s20 + $0xf8] sm:$0xff] %v426_v5 }
  0x3f   : > { %618 = shalt.err (!%p615_p3)
}
  0x40   : > { %s619_s8 = scalar_lea.hbm %s936_s29, 4096  ;;  %s623_s11 = scalar_lea.hbm %s990_s4, 8192 }
  0x41   : > { %p620_p4 = scmp.ne.s32.totalorder %s936_s29, %s619_s8  ;;  %p624_p9 = scmp.lt.u32.totalorder %s936_s29, %s990_s4 }
  0x42   : > { %p625_p10 = scmp.lt.u32.totalorder %s623_s11, %s619_s8  ;;  %p627_p12 = scmp.lt.u32.totalorder %s619_s8, %s936_s29 }
  0x43   : > { %p621_p7 = pnand %p620_p4, %p735_p5 }
  0x44   : > { %p626_p11 = por %p625_p10, %p624_p9 }
  0x45   : > { %p622_p8 = pneg %p621_p7 }
  0x46   : > { %p628_p13 = por %p627_p12, %p626_p11 }
  0x48   : > { %p629_p0 = pnand %p628_p13, %p622_p8 }
  0x4a   : > { %632 = shalt.err (!%p629_p0)
}
  0x4b   : > { %s670_s14 = smov 128   ;;  %s671_s20 = smov 8  }
  0x4c   : > { %564 = dma.vmem_to_hbm [thread:$0]  (%p735_p5), %s938_s23, 4096, %s936_s29, %s945_s19, %s670_s14, %s670_s14, %s671_s20  }
  0x4d PF: > { %p570_p1 = scmp.ge.s32.totalorder %s667_s18, 2  ;;  %s488_s22 = sand.u32 1, %s655_s15  }
  0x4e   : > { %s489_s27 = scalar_lea.sflag [#allocation3], %s488_s22 }
  0x4f   : > { %p567_p2 = pnand %p570_p1, %p739_p6 }
  0x51   : > { %650 = dma.done.wait (!%p567_p2), %s489_s27, 4096  }
  0x52   : > { %652 = vsyncadd (!%p567_p2), %s489_s27, 4294963200  ;;  %p14_p3 = scmp.ge.s32.totalorder %s722_s21, 4   ;;  %s993_s15 = smov %s659_s16 }
  0x53   : > { %s994_s16 = smov %s663_s17  ;;  %s995_s17 = smov %s733_s24 }
  0x54   : > { %s996_s18 = smov %s722_s21  ;;  %16 = sbr.rel (!%p14_p3) target bundleno = 3 (0x3), region = 74 }
  0x5b   :  { %494 = vsyncpa [#allocation3], 1 }
  0x5c   :  { %496 = vsyncpa [#allocation3 + $0x1], 1 }

</bundles_post_ra>
